<compile_context>
chip_gen: v7x
topology: tpu7x:2x2x1
jax: 0.10.0
libtpu: 0.0.40
codegen_flags: <defaults>
</compile_context>

<pallas_src>
import functools

import jax
import jax.numpy as jnp
from jax.experimental import pallas as pl
from jax.experimental.pallas import tpu as pltpu

EPS = 1e-5
EXPANSION = 4
_VMEM_LIMIT = 48 * 1024 * 1024   # explicit scoped-VMEM cap; fits v5e/v6e and v7x's 64MiB


# ----------------------------------------------------------------------------
# helpers
# ----------------------------------------------------------------------------
def _round_up(x, m):
    return (x + m - 1) // m * m


def _ds(start, size, stride=1):
    return pl.ds(start, size) if stride == 1 else pl.ds(start, size, stride)


def _dot_precision(dtype):
    # True-f32 MXU passes when computing in f32; default (native) path for bf16.
    return (jax.lax.Precision.HIGHEST if dtype == jnp.float32
            else jax.lax.Precision.DEFAULT)


def _cparams(*semantics):
    return pltpu.CompilerParams(dimension_semantics=tuple(semantics),
                                vmem_limit_bytes=_VMEM_LIMIT)


def _stats_to_scale_shift(partials, count, gamma, beta):
    """(tiles, 2, C) per-tile (sum, sum_sq) partials -> BN scale/shift (training mode)."""
    total = jnp.sum(partials, axis=0)                         # (2, C)
    mean = total[0] / count
    var = jnp.maximum(total[1] / count - mean * mean, 0.0)    # biased variance
    scale = gamma / jnp.sqrt(var + EPS)
    shift = beta - mean * scale
    return scale, shift


def _bn_scale_shift_from_moments(mean, var, gamma, beta):
    scale = gamma / jnp.sqrt(var + EPS)
    shift = beta - mean * scale
    return scale, shift


# ----------------------------------------------------------------------------
# Fused BN + ReLU + 1x1-conv (matmul) kernel, tiled over M
#   optional fused residual add, optional per-tile BN partial statistics of the output
# ----------------------------------------------------------------------------
def bnrelu_matmul(x2d, scale, shift, w, residual=None, *, compute_dtype=jnp.bfloat16,
                  out_dtype=None, with_stats=False, tile_m=512):
    m, cin = x2d.shape
    cout = w.shape[1]
    out_dtype = out_dtype or compute_dtype
    tm = min(tile_m, _round_up(m, 8))
    mp = _round_up(m, tm)
    if mp != m:
        x2d = jnp.pad(x2d, ((0, mp - m), (0, 0)))
        if residual is not None:
            residual = jnp.pad(residual, ((0, mp - m), (0, 0)))
    n_tiles = mp // tm
    prec = _dot_precision(compute_dtype)
    with_res = residual is not None

    def kernel(*refs):
        if with_res:
            x_ref, s_ref, b_ref, w_ref, r_ref, o_ref = refs[:6]
            rest = refs[6:]
        else:
            x_ref, s_ref, b_ref, w_ref, o_ref = refs[:5]
            rest = refs[5:]
        # BN + ReLU in f32, single cast to the MXU compute dtype, f32 accumulation.
        a = jnp.maximum(x_ref[...].astype(jnp.float32) * s_ref[...] + b_ref[...], 0.0)
        acc = jnp.dot(a.astype(w_ref.dtype), w_ref[...],
                      preferred_element_type=jnp.float32, precision=prec)
        if with_res:
            acc = acc + r_ref[...].astype(jnp.float32)
        o_ref[...] = acc.astype(o_ref.dtype)
        if with_stats:
            st_ref = rest[0]
            row = (jax.lax.broadcasted_iota(jnp.int32, (tm, 1), 0)
                   + pl.program_id(0) * tm)
            am = jnp.where(row < m, acc, 0.0)      # mask padded rows out of the stats
            st_ref[...] = jnp.concatenate(
                [jnp.sum(am, axis=0, keepdims=True),
                 jnp.sum(am * am, axis=0, keepdims=True)], axis=0)[None]

    in_specs = [
        pl.BlockSpec((tm, cin), lambda i: (i, 0)),
        pl.BlockSpec((1, cin), lambda i: (0, 0)),
        pl.BlockSpec((1, cin), lambda i: (0, 0)),
        # TODO(synk): mark this constant-index weight single-buffered (pl.Buffered(1))
        # once verified on all target generations to save VMEM at large C.
        pl.BlockSpec((cin, cout), lambda i: (0, 0)),
    ]
    args = [x2d,
            scale.reshape(1, cin).astype(jnp.float32),
            shift.reshape(1, cin).astype(jnp.float32),
            w.astype(compute_dtype)]
    if with_res:
        in_specs.append(pl.BlockSpec((tm, cout), lambda i: (i, 0)))
        args.append(residual)

    out_shape = [jax.ShapeDtypeStruct((mp, cout), out_dtype)]
    out_specs = [pl.BlockSpec((tm, cout), lambda i: (i, 0))]
    if with_stats:
        out_shape.append(jax.ShapeDtypeStruct((n_tiles, 2, cout), jnp.float32))
        out_specs.append(pl.BlockSpec((1, 2, cout), lambda i: (i, 0, 0)))

    res = pl.pallas_call(
        kernel,
        out_shape=tuple(out_shape),
        grid=(n_tiles,),
        in_specs=in_specs,
        out_specs=tuple(out_specs),
        compiler_params=_cparams("parallel"),
    )(*args)
    out = res[0]
    if mp != m:
        out = out[:m]
    return (out, res[1]) if with_stats else out


# ----------------------------------------------------------------------------
# Fused BN + ReLU + 3x3 conv (padding=1, stride); whole-image blocks, auto-pipelined,
# emits per-step BN partial statistics of its own output.
# ----------------------------------------------------------------------------
def _conv2_batch_tile(n, h, w, cin, ho, wo, cout, itemsize, target_m=512,
                      vmem_budget=8 * 1024 * 1024):
    """Images per conv2 grid step: grow until each tap's dot has M >= target_m."""
    best = 1
    for bt in range(1, n + 1):
        if n % bt:
            continue
        need = itemsize * bt * (2 * h * w * cin + (h + 2) * (w + 2) * cin
                                + 2 * ho * wo * cout)
        if bt > 1 and need > vmem_budget:
            break
        best = bt
        if bt * ho * wo >= target_m:
            break
    return best


def conv3x3_bn_relu(h1, scale, shift, w2, *, stride=1, compute_dtype=jnp.bfloat16,
                    out_dtype=None):
    n, h, w, cin = h1.shape
    cout = w2.shape[-1]
    out_dtype = out_dtype or compute_dtype
    ho = (h - 1) // stride + 1
    wo = (w - 1) // stride + 1
    hp, wp = h + 2, w + 2
    itemsize = jnp.dtype(compute_dtype).itemsize
    bt = _conv2_batch_tile(n, h, w, cin, ho, wo, cout, itemsize)
    nb = n // bt
    m2 = bt * ho * wo
    prec = _dot_precision(compute_dtype)
    # TODO(synk): for very large feature maps add a row-blocked fallback (halo-window
    # manual DMA) instead of whole-image blocks.

    def kernel(x_ref, s_ref, b_ref, w_ref, o_ref, st_ref, abuf):
        # BN2 + ReLU in f32, single cast, written into the spatially zero-padded scratch.
        a = jnp.maximum(x_ref[...].astype(jnp.float32) * s_ref[...] + b_ref[...], 0.0)
        abuf[:, 1:h + 1, 1:w + 1, :] = a.astype(abuf.dtype)
        zrow = jnp.zeros((bt, 1, wp, cin), abuf.dtype)
        abuf[:, 0:1, :, :] = zrow
        abuf[:, hp - 1:hp, :, :] = zrow
        zcol = jnp.zeros((bt, hp, 1, cin), abuf.dtype)
        abuf[:, :, 0:1, :] = zcol
        abuf[:, :, wp - 1:wp, :] = zcol

        # Unrolled 9-tap accumulation; weights stay VMEM-resident, conv stride applied
        # here so only strided output rows/cols are ever computed.
        acc = None
        for dy in range(3):
            for dx in range(3):
                patch = abuf[:, _ds(dy, ho, stride), _ds(dx, wo, stride), :]
                # TODO(synk): the reshape relayouts when wo % 8 != 0; switch to a
                # direct >2-D contraction when Mosaic supports it for this shape.
                d = jnp.dot(patch.reshape(m2, cin), w_ref[dy * 3 + dx],
                            preferred_element_type=jnp.float32, precision=prec)
                acc = d if acc is None else acc + d
        o_ref[...] = acc.reshape(bt, ho, wo, cout).astype(o_ref.dtype)
        # BN3 partial stats of the f32 output (all rows of this block are valid).
        st_ref[...] = jnp.concatenate(
            [jnp.sum(acc, axis=0, keepdims=True),
             jnp.sum(acc * acc, axis=0, keepdims=True)], axis=0)[None]

    out, stats = pl.pallas_call(
        kernel,
        out_shape=(jax.ShapeDtypeStruct((n, ho, wo, cout), out_dtype),
                   jax.ShapeDtypeStruct((nb, 2, cout), jnp.float32)),
        grid=(nb,),
        in_specs=[
            pl.BlockSpec((bt, h, w, cin), lambda b: (b, 0, 0, 0)),
            pl.BlockSpec((1, cin), lambda b: (0, 0)),
            pl.BlockSpec((1, cin), lambda b: (0, 0)),
            pl.BlockSpec((9, cin, cout), lambda b: (0, 0, 0)),   # VMEM-resident weights
        ],
        out_specs=(pl.BlockSpec((bt, ho, wo, cout), lambda b: (b, 0, 0, 0)),
                   pl.BlockSpec((1, 2, cout), lambda b: (b, 0, 0))),
        scratch_shapes=[pltpu.VMEM((bt, hp, wp, cin), compute_dtype)],
        compiler_params=_cparams("parallel"),
    )(h1,
      scale.reshape(1, cin).astype(jnp.float32),
      shift.reshape(1, cin).astype(jnp.float32),
      w2.reshape(9, cin, cout).astype(compute_dtype))
    return out, stats


# ----------------------------------------------------------------------------
# Fused BN + ReLU + strided 1x1 conv (the stride-2 shortcut) — stride folded in-kernel
# instead of an XLA strided-slice gather of x.
# ----------------------------------------------------------------------------
def bnrelu_conv1x1_strided(x, scale, shift, w, *, stride, compute_dtype=jnp.bfloat16,
                           out_dtype=None):
    n, h, w_sp, cin = x.shape
    cout = w.shape[1]
    out_dtype = out_dtype or compute_dtype
    ho = (h - 1) // stride + 1
    wo = (w_sp - 1) // stride + 1
    prec = _dot_precision(compute_dtype)

    def kernel(x_ref, s_ref, b_ref, w_ref, o_ref):
        xs = x_ref[_ds(0, ho, stride), _ds(0, wo, stride), :]          # (ho, wo, cin)
        a = jnp.maximum(xs.astype(jnp.float32) * s_ref[...] + b_ref[...], 0.0)
        out = jnp.dot(a.reshape(ho * wo, cin).astype(w_ref.dtype), w_ref[...],
                      preferred_element_type=jnp.float32, precision=prec)
        o_ref[...] = out.reshape(ho, wo, cout).astype(o_ref.dtype)

    return pl.pallas_call(
        kernel,
        out_shape=jax.ShapeDtypeStruct((n, ho, wo, cout), out_dtype),
        grid=(n,),
        in_specs=[
            pl.BlockSpec((None, h, w_sp, cin), lambda b: (b, 0, 0, 0)),
            pl.BlockSpec((1, cin), lambda b: (0, 0)),
            pl.BlockSpec((1, cin), lambda b: (0, 0)),
            pl.BlockSpec((cin, cout), lambda b: (0, 0)),
        ],
        out_specs=pl.BlockSpec((None, ho, wo, cout), lambda b: (b, 0, 0, 0)),
        compiler_params=_cparams("parallel"),
    )(x,
      scale.reshape(1, cin).astype(jnp.float32),
      shift.reshape(1, cin).astype(jnp.float32),
      w.astype(compute_dtype))


# ----------------------------------------------------------------------------
# PreActBottleneck forward (glue in plain JAX is only scalar-sized reductions / reshapes)
# ----------------------------------------------------------------------------
def preact_bottleneck(x_nchw, params, *, stride=1, compute_dtype=jnp.bfloat16):
    planes = params["w1"].shape[1]
    cout = EXPANSION * planes
    # TODO(synk): keep the surrounding network NHWC to drop these two full-tensor passes.
    x = jnp.transpose(x_nchw, (0, 2, 3, 1)).astype(jnp.float32)   # NHWC
    n, h, w, cin = x.shape
    ho = (h - 1) // stride + 1
    wo = (w - 1) // stride + 1

    # BN1 statistics: the producing layer lives outside this block, so this is one XLA
    # pass over x.  TODO(synk): in a full network take these as per-tile partials emitted
    # by the previous block's kernels, like BN2/BN3 below.
    s1, b1 = _bn_scale_shift_from_moments(jnp.mean(x, axis=(0, 1, 2)),
                                          jnp.var(x, axis=(0, 1, 2)),
                                          params["bn1_gamma"], params["bn1_beta"])
    x2d = x.reshape(n * h * w, cin)

    # conv1: 1x1 on relu(bn1(x)) — BN1+ReLU fused; emits BN2 partial stats of h1.
    h1_2d, st1 = bnrelu_matmul(x2d, s1, b1, params["w1"], compute_dtype=compute_dtype,
                               out_dtype=compute_dtype, with_stats=True)
    s2, b2 = _stats_to_scale_shift(st1, n * h * w,
                                   params["bn2_gamma"], params["bn2_beta"])

    # shortcut: 1x1 stride-s conv of relu(bn1(x)) (fused), or the identity.
    has_shortcut = (stride != 1) or (cin != cout)
    if has_shortcut:
        if stride == 1:
            sc2d = bnrelu_matmul(x2d, s1, b1, params["w_sc"],
                                 compute_dtype=compute_dtype, out_dtype=compute_dtype)
        else:
            sc = bnrelu_conv1x1_strided(x, s1, b1, params["w_sc"], stride=stride,
                                        compute_dtype=compute_dtype,
                                        out_dtype=compute_dtype)
            sc2d = sc.reshape(n * ho * wo, cout)
    else:
        sc2d = x2d   # identity residual stays f32 (no extra pass, no precision loss)

    # conv2: 3x3 / stride on relu(bn2(h1)) — BN2+ReLU + stride + padding fused in-kernel;
    # emits BN3 partial stats of h2.
    h2, st2 = conv3x3_bn_relu(h1_2d.reshape(n, h, w, planes), s2, b2, params["w2"],
                              stride=stride, compute_dtype=compute_dtype,
                              out_dtype=compute_dtype)
    s3, b3 = _stats_to_scale_shift(st2, n * ho * wo,
                                   params["bn3_gamma"], params["bn3_beta"])

    # conv3: 1x1 on relu(bn3(h2)) with the residual add fused; final output in f32.
    out2d = bnrelu_matmul(h2.reshape(n * ho * wo, planes), s3, b3, params["w3"],
                          residual=sc2d, compute_dtype=compute_dtype,
                          out_dtype=jnp.float32)
    out = out2d.reshape(n, ho, wo, cout)
    return jnp.transpose(out, (0, 3, 1, 2))   # back to NCHW


# ----------------------------------------------------------------------------
# Pure-JAX reference (for correctness check)
# ----------------------------------------------------------------------------
def _ref_forward(x_nchw, params, *, stride=1):
    in_planes = x_nchw.shape[1]
    planes = params["w1"].shape[1]
    x = jnp.transpose(x_nchw, (0, 2, 3, 1)).astype(jnp.float32)

    def bn_relu_ref(t, g, b):
        mean = jnp.mean(t, axis=(0, 1, 2))
        var = jnp.var(t, axis=(0, 1, 2))
        return jnp.maximum((t - mean) / jnp.sqrt(var + EPS) * g + b, 0.0)

    def conv(t, wgt, s=1, pad=0):
        return jax.lax.conv_general_dilated(
            t, wgt, (s, s), [(pad, pad), (pad, pad)],
            dimension_numbers=("NHWC", "HWIO", "NHWC"),
            precision=jax.lax.Precision.HIGHEST)

    y = bn_relu_ref(x, params["bn1_gamma"], params["bn1_beta"])
    has_shortcut = stride != 1 or in_planes != EXPANSION * planes
    sc = conv(y, params["w_sc"][None, None], stride) if has_shortcut else x
    h1 = conv(y, params["w1"][None, None])
    h2 = conv(bn_relu_ref(h1, params["bn2_gamma"], params["bn2_beta"]),
              params["w2"], stride, pad=1)
    out = conv(bn_relu_ref(h2, params["bn3_gamma"], params["bn3_beta"]),
               params["w3"][None, None]) + sc
    return jnp.transpose(out, (0, 3, 1, 2))


# ----------------------------------------------------------------------------
if __name__ == "__main__":
    key = jax.random.PRNGKey(0)

    def make_params(k, in_planes, planes, with_shortcut):
        ks = jax.random.split(k, 10)
        p = {
            "bn1_gamma": 1.0 + 0.1 * jax.random.normal(ks[0], (in_planes,), jnp.float32),
            "bn1_beta": 0.1 * jax.random.normal(ks[1], (in_planes,), jnp.float32),
            "w1": 0.1 * jax.random.normal(ks[2], (in_planes, planes), jnp.float32),
            "bn2_gamma": 1.0 + 0.1 * jax.random.normal(ks[3], (planes,), jnp.float32),
            "bn2_beta": 0.1 * jax.random.normal(ks[4], (planes,), jnp.float32),
            "w2": 0.1 * jax.random.normal(ks[5], (3, 3, planes, planes), jnp.float32),
            "bn3_gamma": 1.0 + 0.1 * jax.random.normal(ks[6], (planes,), jnp.float32),
            "bn3_beta": 0.1 * jax.random.normal(ks[7], (planes,), jnp.float32),
            "w3": 0.1 * jax.random.normal(ks[8], (planes, EXPANSION * planes), jnp.float32),
        }
        if with_shortcut:
            p["w_sc"] = 0.1 * jax.random.normal(
                ks[9], (in_planes, EXPANSION * planes), jnp.float32)
        return p

    # (in_planes, planes, stride, compute_dtype, tol)
    # NOTE: toy channel sizes (4-16) sit below the (8,128) lane tile; real ResNet shapes
    # (C >= 64) are what the tiling / bf16 MXU feed is sized for.
    configs = [
        (4, 4, 1, jnp.bfloat16, 3e-2),   # conv-shortcut path, bf16 storage + MXU feed
        (4, 4, 1, jnp.float32, 1e-3),    # same, true-f32 path (tight tolerance)
        (16, 4, 1, jnp.float32, 1e-3),   # identity-shortcut path
        (8, 4, 2, jnp.float32, 1e-3),    # stride-2: strided shortcut + strided conv2
    ]
    for idx, (cin, planes, stride, cd, tol) in enumerate(configs):
        kx, kp = jax.random.split(jax.random.fold_in(key, idx))
        x = jax.random.normal(kx, (2, cin, 16, 16), jnp.float32)
        has_sc = (stride != 1) or (cin != EXPANSION * planes)
        params = make_params(kp, cin, planes, has_sc)

        fwd = jax.jit(functools.partial(preact_bottleneck,
                                        stride=stride, compute_dtype=cd))
        out = jax.block_until_ready(fwd(x, params))
        ref = jax.block_until_ready(_ref_forward(x, params, stride=stride))

        assert out.shape == ref.shape, (out.shape, ref.shape)
        err = float(jnp.max(jnp.abs(out - ref)))
        assert jnp.allclose(out, ref, atol=tol, rtol=tol), \
            f"config {idx}: max abs err {err}"

    print("KERNEL_OK")
</pallas_src>

<mosaic_0001>
module attributes {stable_mosaic.version = 11 : i64} {
  func.func @kernel(%arg0: i32, %arg1: memref<512x4xf32, #tpu.memory_space<vmem>>, %arg2: memref<1x4xf32, #tpu.memory_space<vmem>>, %arg3: memref<1x4xf32, #tpu.memory_space<vmem>>, %arg4: memref<4x4xbf16, #tpu.memory_space<vmem>>, %arg5: memref<512x4xbf16, #tpu.memory_space<vmem>>, %arg6: memref<1x2x4xf32, #tpu.memory_space<vmem>>) attributes {dimension_semantics = [#tpu.dimension_semantics<parallel>], iteration_bounds = array<i64: 1>, scalar_prefetch = 0 : i64, scratch_operands = 0 : i64, tpu.core_type = #tpu.core_type<tc>, window_params = [{transform_indices = @transform_0, window_bounds = array<i64: 512, 4>}, {pipeline_mode = #tpu.pipeline_mode<synchronous>, transform_indices = @transform_1, window_bounds = array<i64: 1, 4>}, {pipeline_mode = #tpu.pipeline_mode<synchronous>, transform_indices = @transform_2, window_bounds = array<i64: 1, 4>}, {pipeline_mode = #tpu.pipeline_mode<synchronous>, transform_indices = @transform_3, window_bounds = array<i64: 4, 4>}, {transform_indices = @transform_4, window_bounds = array<i64: 512, 4>}, {transform_indices = @transform_5, window_bounds = array<i64: 1, 2, 4>}]} {
    %c0 = arith.constant 0 : index
    %c0_0 = arith.constant 0 : index
    %0 = vector.load %arg1[%c0, %c0_0] : memref<512x4xf32, #tpu.memory_space<vmem>>, vector<512x4xf32>
    %c0_1 = arith.constant 0 : index
    %c0_2 = arith.constant 0 : index
    %1 = vector.load %arg2[%c0_1, %c0_2] : memref<1x4xf32, #tpu.memory_space<vmem>>, vector<1x4xf32>
    %2 = vector.broadcast %1 : vector<1x4xf32> to vector<512x4xf32>
    %3 = arith.mulf %0, %2 : vector<512x4xf32>
    %c0_3 = arith.constant 0 : index
    %c0_4 = arith.constant 0 : index
    %4 = vector.load %arg3[%c0_3, %c0_4] : memref<1x4xf32, #tpu.memory_space<vmem>>, vector<1x4xf32>
    %5 = vector.broadcast %4 : vector<1x4xf32> to vector<512x4xf32>
    %6 = arith.addf %3, %5 : vector<512x4xf32>
    %cst = arith.constant 0.000000e+00 : f32
    %7 = vector.broadcast %cst : f32 to vector<512x4xf32>
    %8 = arith.maximumf %6, %7 : vector<512x4xf32>
    %9 = arith.truncf %8 : vector<512x4xf32> to vector<512x4xbf16>
    %c0_5 = arith.constant 0 : index
    %c0_6 = arith.constant 0 : index
    %10 = vector.load %arg4[%c0_5, %c0_6] : memref<4x4xbf16, #tpu.memory_space<vmem>>, vector<4x4xbf16>
    %cst_7 = arith.constant dense<0.000000e+00> : vector<512x4xf32>
    %11 = tpu.matmul %9, %10, %cst_7 {dimension_numbers = #tpu.dot_dimension_numbers<[1], [0], [0], [1], [0, 0, 1, 1], [], []>} : vector<512x4xbf16>, vector<4x4xbf16>, vector<512x4xf32> -> vector<512x4xf32>
    %12 = arith.truncf %11 : vector<512x4xf32> to vector<512x4xbf16>
    %c0_8 = arith.constant 0 : index
    %c0_9 = arith.constant 0 : index
    %13 = vector.load %arg5[%c0_8, %c0_9] : memref<512x4xbf16, #tpu.memory_space<vmem>>, vector<512x4xbf16>
    tpu.vector_store %arg5[%c0_8, %c0_9], %12 {strides = array<i32>} : memref<512x4xbf16, #tpu.memory_space<vmem>>, vector<512x4xbf16>,
    %14 = tpu.iota {dimensions = array<i32: 0>} : vector<512x1xi32>
    %c512_i32 = arith.constant 512 : i32
    %15 = arith.muli %arg0, %c512_i32 : i32
    %16 = vector.broadcast %15 : i32 to vector<512x1xi32>
    %17 = arith.addi %14, %16 : vector<512x1xi32>
    %c512_i32_10 = arith.constant 512 : i32
    %18 = vector.broadcast %c512_i32_10 : i32 to vector<512x1xi32>
    %19 = arith.cmpi slt, %17, %18 : vector<512x1xi32>
    %cst_11 = arith.constant 0.000000e+00 : f32
    %20 = vector.shape_cast %19 : vector<512x1xi1> to vector<512x1xi1>
    %21 = vector.broadcast %20 : vector<512x1xi1> to vector<512x4xi1>
    %22 = vector.broadcast %cst_11 : f32 to vector<512x4xf32>
    %23 = arith.select %21, %11, %22 : vector<512x4xi1>, vector<512x4xf32>
    %cst_12 = arith.constant dense<0.000000e+00> : vector<4xf32>
    %24 = vector.multi_reduction <add>, %23, %cst_12 [0] : vector<512x4xf32> to vector<4xf32>
    %25 = vector.shape_cast %24 : vector<4xf32> to vector<1x4xf32>
    %26 = arith.mulf %23, %23 : vector<512x4xf32>
    %cst_13 = arith.constant dense<0.000000e+00> : vector<4xf32>
    %27 = vector.multi_reduction <add>, %26, %cst_13 [0] : vector<512x4xf32> to vector<4xf32>
    %28 = vector.shape_cast %27 : vector<4xf32> to vector<1x4xf32>
    %29 = tpu.concatenate %25, %28 in 0 : vector<1x4xf32>, vector<1x4xf32> -> vector<2x4xf32>
    %30 = vector.shape_cast %29 : vector<2x4xf32> to vector<1x2x4xf32>
    %c0_14 = arith.constant 0 : index
    %c0_15 = arith.constant 0 : index
    %c0_16 = arith.constant 0 : index
    %31 = vector.load %arg6[%c0_14, %c0_15, %c0_16] : memref<1x2x4xf32, #tpu.memory_space<vmem>>, vector<1x2x4xf32>
    tpu.vector_store %arg6[%c0_14, %c0_15, %c0_16], %30 {strides = array<i32>} : memref<1x2x4xf32, #tpu.memory_space<vmem>>, vector<1x2x4xf32>,
    return
  }
  func.func @transform_0(%arg0: i32) -> (i32, i32) {
    %c0_i32 = arith.constant 0 : i32
    %c0_i32_0 = arith.constant 0 : i32
    return %arg0, %c0_i32 : i32, i32
  }
  func.func @transform_1(%arg0: i32) -> (i32, i32) {
    %c0_i32 = arith.constant 0 : i32
    %c0_i32_0 = arith.constant 0 : i32
    %c0_i32_1 = arith.constant 0 : i32
    return %c0_i32, %c0_i32_0 : i32, i32
  }
  func.func @transform_2(%arg0: i32) -> (i32, i32) {
    %c0_i32 = arith.constant 0 : i32
    %c0_i32_0 = arith.constant 0 : i32
    %c0_i32_1 = arith.constant 0 : i32
    return %c0_i32, %c0_i32_0 : i32, i32
  }
  func.func @transform_3(%arg0: i32) -> (i32, i32) {
    %c0_i32 = arith.constant 0 : i32
    %c0_i32_0 = arith.constant 0 : i32
    %c0_i32_1 = arith.constant 0 : i32
    return %c0_i32, %c0_i32_0 : i32, i32
  }
  func.func @transform_4(%arg0: i32) -> (i32, i32) {
    %c0_i32 = arith.constant 0 : i32
    %c0_i32_0 = arith.constant 0 : i32
    return %arg0, %c0_i32 : i32, i32
  }
  func.func @transform_5(%arg0: i32) -> (i32, i32, i32) {
    %c0_i32 = arith.constant 0 : i32
    %c0_i32_0 = arith.constant 0 : i32
    %c0_i32_1 = arith.constant 0 : i32
    return %arg0, %c0_i32, %c0_i32_0 : i32, i32, i32
  }
}

module attributes {stable_mosaic.version = 11 : i64} {
  func.func @kernel(%arg0: i32, %arg1: memref<2x16x16x4xbf16, #tpu.memory_space<vmem>>, %arg2: memref<1x4xf32, #tpu.memory_space<vmem>>, %arg3: memref<1x4xf32, #tpu.memory_space<vmem>>, %arg4: memref<9x4x4xbf16, #tpu.memory_space<vmem>>, %arg5: memref<2x16x16x4xbf16, #tpu.memory_space<vmem>>, %arg6: memref<1x2x4xf32, #tpu.memory_space<vmem>>, %arg7: memref<2x18x18x4xbf16, #tpu.memory_space<vmem>>) attributes {dimension_semantics = [#tpu.dimension_semantics<parallel>], iteration_bounds = array<i64: 1>, scalar_prefetch = 0 : i64, scratch_operands = 1 : i64, tpu.core_type = #tpu.core_type<tc>, window_params = [{transform_indices = @transform_0, window_bounds = array<i64: 2, 16, 16, 4>}, {pipeline_mode = #tpu.pipeline_mode<synchronous>, transform_indices = @transform_1, window_bounds = array<i64: 1, 4>}, {pipeline_mode = #tpu.pipeline_mode<synchronous>, transform_indices = @transform_2, window_bounds = array<i64: 1, 4>}, {pipeline_mode = #tpu.pipeline_mode<synchronous>, transform_indices = @transform_3, window_bounds = array<i64: 9, 4, 4>}, {transform_indices = @transform_4, window_bounds = array<i64: 2, 16, 16, 4>}, {transform_indices = @transform_5, window_bounds = array<i64: 1, 2, 4>}]} {
    %c0 = arith.constant 0 : index
    %c0_0 = arith.constant 0 : index
    %c0_1 = arith.constant 0 : index
    %c0_2 = arith.constant 0 : index
    %0 = vector.load %arg1[%c0, %c0_0, %c0_1, %c0_2] : memref<2x16x16x4xbf16, #tpu.memory_space<vmem>>, vector<2x16x16x4xbf16>
    %1 = arith.extf %0 : vector<2x16x16x4xbf16> to vector<2x16x16x4xf32>
    %c0_3 = arith.constant 0 : index
    %c0_4 = arith.constant 0 : index
    %2 = vector.load %arg2[%c0_3, %c0_4] : memref<1x4xf32, #tpu.memory_space<vmem>>, vector<1x4xf32>
    %3 = vector.shape_cast %2 : vector<1x4xf32> to vector<1x1x1x4xf32>
    %4 = vector.broadcast %3 : vector<1x1x1x4xf32> to vector<2x16x16x4xf32>
    %5 = arith.mulf %1, %4 : vector<2x16x16x4xf32>
    %c0_5 = arith.constant 0 : index
    %c0_6 = arith.constant 0 : index
    %6 = vector.load %arg3[%c0_5, %c0_6] : memref<1x4xf32, #tpu.memory_space<vmem>>, vector<1x4xf32>
    %7 = vector.shape_cast %6 : vector<1x4xf32> to vector<1x1x1x4xf32>
    %8 = vector.broadcast %7 : vector<1x1x1x4xf32> to vector<2x16x16x4xf32>
    %9 = arith.addf %5, %8 : vector<2x16x16x4xf32>
    %cst = arith.constant 0.000000e+00 : f32
    %10 = vector.broadcast %cst : f32 to vector<2x16x16x4xf32>
    %11 = arith.maximumf %9, %10 : vector<2x16x16x4xf32>
    %12 = arith.truncf %11 : vector<2x16x16x4xf32> to vector<2x16x16x4xbf16>
    %c0_7 = arith.constant 0 : index
    %c1 = arith.constant 1 : index
    %c1_8 = arith.constant 1 : index
    %c0_9 = arith.constant 0 : index
    %13 = vector.load %arg7[%c0_7, %c1, %c1_8, %c0_9] : memref<2x18x18x4xbf16, #tpu.memory_space<vmem>>, vector<2x16x16x4xbf16>
    tpu.vector_store %arg7[%c0_7, %c1, %c1_8, %c0_9], %12 {strides = array<i32>} : memref<2x18x18x4xbf16, #tpu.memory_space<vmem>>, vector<2x16x16x4xbf16>,
    %cst_10 = arith.constant 0.000000e+00 : bf16
    %14 = vector.broadcast %cst_10 : bf16 to vector<2x1x18x4xbf16>
    %c0_11 = arith.constant 0 : index
    %c0_12 = arith.constant 0 : index
    %c0_13 = arith.constant 0 : index
    %c0_14 = arith.constant 0 : index
    %15 = vector.load %arg7[%c0_11, %c0_12, %c0_13, %c0_14] : memref<2x18x18x4xbf16, #tpu.memory_space<vmem>>, vector<2x1x18x4xbf16>
    tpu.vector_store %arg7[%c0_11, %c0_12, %c0_13, %c0_14], %14 {strides = array<i32>} : memref<2x18x18x4xbf16, #tpu.memory_space<vmem>>, vector<2x1x18x4xbf16>,
    %c0_15 = arith.constant 0 : index
    %c17 = arith.constant 17 : index
    %c0_16 = arith.constant 0 : index
    %c0_17 = arith.constant 0 : index
    %16 = vector.load %arg7[%c0_15, %c17, %c0_16, %c0_17] : memref<2x18x18x4xbf16, #tpu.memory_space<vmem>>, vector<2x1x18x4xbf16>
    tpu.vector_store %arg7[%c0_15, %c17, %c0_16, %c0_17], %14 {strides = array<i32>} : memref<2x18x18x4xbf16, #tpu.memory_space<vmem>>, vector<2x1x18x4xbf16>,
    %cst_18 = arith.constant 0.000000e+00 : bf16
    %17 = vector.broadcast %cst_18 : bf16 to vector<2x18x1x4xbf16>
    %c0_19 = arith.constant 0 : index
    %c0_20 = arith.constant 0 : index
    %c0_21 = arith.constant 0 : index
    %c0_22 = arith.constant 0 : index
    %18 = vector.load %arg7[%c0_19, %c0_20, %c0_21, %c0_22] : memref<2x18x18x4xbf16, #tpu.memory_space<vmem>>, vector<2x18x1x4xbf16>
    tpu.vector_store %arg7[%c0_19, %c0_20, %c0_21, %c0_22], %17 {strides = array<i32>} : memref<2x18x18x4xbf16, #tpu.memory_space<vmem>>, vector<2x18x1x4xbf16>,
    %c0_23 = arith.constant 0 : index
    %c0_24 = arith.constant 0 : index
    %c17_25 = arith.constant 17 : index
    %c0_26 = arith.constant 0 : index
    %19 = vector.load %arg7[%c0_23, %c0_24, %c17_25, %c0_26] : memref<2x18x18x4xbf16, #tpu.memory_space<vmem>>, vector<2x18x1x4xbf16>
    tpu.vector_store %arg7[%c0_23, %c0_24, %c17_25, %c0_26], %17 {strides = array<i32>} : memref<2x18x18x4xbf16, #tpu.memory_space<vmem>>, vector<2x18x1x4xbf16>,
    %c0_27 = arith.constant 0 : index
    %c0_28 = arith.constant 0 : index
    %c0_29 = arith.constant 0 : index
    %c0_30 = arith.constant 0 : index
    %20 = vector.load %arg7[%c0_27, %c0_28, %c0_29, %c0_30] : memref<2x18x18x4xbf16, #tpu.memory_space<vmem>>, vector<2x16x16x4xbf16>
    %21 = vector.shape_cast %20 : vector<2x16x16x4xbf16> to vector<512x4xbf16>
    %c0_31 = arith.constant 0 : index
    %c0_32 = arith.constant 0 : index
    %c0_33 = arith.constant 0 : index
    %22 = vector.load %arg4[%c0_31, %c0_32, %c0_33] : memref<9x4x4xbf16, #tpu.memory_space<vmem>>, vector<1x4x4xbf16>
    %23 = vector.shape_cast %22 : vector<1x4x4xbf16> to vector<4x4xbf16>
    %cst_34 = arith.constant dense<0.000000e+00> : vector<512x4xf32>
    %24 = tpu.matmul %21, %23, %cst_34 {dimension_numbers = #tpu.dot_dimension_numbers<[1], [0], [0], [1], [0, 0, 1, 1], [], []>} : vector<512x4xbf16>, vector<4x4xbf16>, vector<512x4xf32> -> vector<512x4xf32>
    %c0_35 = arith.constant 0 : index
    %c0_36 = arith.constant 0 : index
    %c1_37 = arith.constant 1 : index
    %c0_38 = arith.constant 0 : index
    %25 = vector.load %arg7[%c0_35, %c0_36, %c1_37, %c0_38] : memref<2x18x18x4xbf16, #tpu.memory_space<vmem>>, vector<2x16x16x4xbf16>
    %26 = vector.shape_cast %25 : vector<2x16x16x4xbf16> to vector<512x4xbf16>
    %c1_39 = arith.constant 1 : index
    %c0_40 = arith.constant 0 : index
    %c0_41 = arith.constant 0 : index
    %27 = vector.load %arg4[%c1_39, %c0_40, %c0_41] : memref<9x4x4xbf16, #tpu.memory_space<vmem>>, vector<1x4x4xbf16>
    %28 = vector.shape_cast %27 : vector<1x4x4xbf16> to vector<4x4xbf16>
    %cst_42 = arith.constant dense<0.000000e+00> : vector<512x4xf32>
    %29 = tpu.matmul %26, %28, %cst_42 {dimension_numbers = #tpu.dot_dimension_numbers<[1], [0], [0], [1], [0, 0, 1, 1], [], []>} : vector<512x4xbf16>, vector<4x4xbf16>, vector<512x4xf32> -> vector<512x4xf32>
    %30 = arith.addf %24, %29 : vector<512x4xf32>
    %c0_43 = arith.constant 0 : index
    %c0_44 = arith.constant 0 : index
    %c2 = arith.constant 2 : index
    %c0_45 = arith.constant 0 : index
    %31 = vector.load %arg7[%c0_43, %c0_44, %c2, %c0_45] : memref<2x18x18x4xbf16, #tpu.memory_space<vmem>>, vector<2x16x16x4xbf16>
    %32 = vector.shape_cast %31 : vector<2x16x16x4xbf16> to vector<512x4xbf16>
    %c2_46 = arith.constant 2 : index
    %c0_47 = arith.constant 0 : index
    %c0_48 = arith.constant 0 : index
    %33 = vector.load %arg4[%c2_46, %c0_47, %c0_48] : memref<9x4x4xbf16, #tpu.memory_space<vmem>>, vector<1x4x4xbf16>
    %34 = vector.shape_cast %33 : vector<1x4x4xbf16> to vector<4x4xbf16>
    %cst_49 = arith.constant dense<0.000000e+00> : vector<512x4xf32>
    %35 = tpu.matmul %32, %34, %cst_49 {dimension_numbers = #tpu.dot_dimension_numbers<[1], [0], [0], [1], [0, 0, 1, 1], [], []>} : vector<512x4xbf16>, vector<4x4xbf16>, vector<512x4xf32> -> vector<512x4xf32>
    %36 = arith.addf %30, %35 : vector<512x4xf32>
    %c0_50 = arith.constant 0 : index
    %c1_51 = arith.constant 1 : index
    %c0_52 = arith.constant 0 : index
    %c0_53 = arith.constant 0 : index
    %37 = vector.load %arg7[%c0_50, %c1_51, %c0_52, %c0_53] : memref<2x18x18x4xbf16, #tpu.memory_space<vmem>>, vector<2x16x16x4xbf16>
    %38 = vector.shape_cast %37 : vector<2x16x16x4xbf16> to vector<512x4xbf16>
    %c3 = arith.constant 3 : index
    %c0_54 = arith.constant 0 : index
    %c0_55 = arith.constant 0 : index
    %39 = vector.load %arg4[%c3, %c0_54, %c0_55] : memref<9x4x4xbf16, #tpu.memory_space<vmem>>, vector<1x4x4xbf16>
    %40 = vector.shape_cast %39 : vector<1x4x4xbf16> to vector<4x4xbf16>
    %cst_56 = arith.constant dense<0.000000e+00> : vector<512x4xf32>
    %41 = tpu.matmul %38, %40, %cst_56 {dimension_numbers = #tpu.dot_dimension_numbers<[1], [0], [0], [1], [0, 0, 1, 1], [], []>} : vector<512x4xbf16>, vector<4x4xbf16>, vector<512x4xf32> -> vector<512x4xf32>
    %42 = arith.addf %36, %41 : vector<512x4xf32>
    %c0_57 = arith.constant 0 : index
    %c1_58 = arith.constant 1 : index
    %c1_59 = arith.constant 1 : index
    %c0_60 = arith.constant 0 : index
    %43 = vector.load %arg7[%c0_57, %c1_58, %c1_59, %c0_60] : memref<2x18x18x4xbf16, #tpu.memory_space<vmem>>, vector<2x16x16x4xbf16>
    %44 = vector.shape_cast %43 : vector<2x16x16x4xbf16> to vector<512x4xbf16>
    %c4 = arith.constant 4 : index
    %c0_61 = arith.constant 0 : index
    %c0_62 = arith.constant 0 : index
    %45 = vector.load %arg4[%c4, %c0_61, %c0_62] : memref<9x4x4xbf16, #tpu.memory_space<vmem>>, vector<1x4x4xbf16>
    %46 = vector.shape_cast %45 : vector<1x4x4xbf16> to vector<4x4xbf16>
    %cst_63 = arith.constant dense<0.000000e+00> : vector<512x4xf32>
    %47 = tpu.matmul %44, %46, %cst_63 {dimension_numbers = #tpu.dot_dimension_numbers<[1], [0], [0], [1], [0, 0, 1, 1], [], []>} : vector<512x4xbf16>, vector<4x4xbf16>, vector<512x4xf32> -> vector<512x4xf32>
    %48 = arith.addf %42, %47 : vector<512x4xf32>
    %c0_64 = arith.constant 0 : index
    %c1_65 = arith.constant 1 : index
    %c2_66 = arith.constant 2 : index
    %c0_67 = arith.constant 0 : index
    %49 = vector.load %arg7[%c0_64, %c1_65, %c2_66, %c0_67] : memref<2x18x18x4xbf16, #tpu.memory_space<vmem>>, vector<2x16x16x4xbf16>
    %50 = vector.shape_cast %49 : vector<2x16x16x4xbf16> to vector<512x4xbf16>
    %c5 = arith.constant 5 : index
    %c0_68 = arith.constant 0 : index
    %c0_69 = arith.constant 0 : index
    %51 = vector.load %arg4[%c5, %c0_68, %c0_69] : memref<9x4x4xbf16, #tpu.memory_space<vmem>>, vector<1x4x4xbf16>
    %52 = vector.shape_cast %51 : vector<1x4x4xbf16> to vector<4x4xbf16>
    %cst_70 = arith.constant dense<0.000000e+00> : vector<512x4xf32>
    %53 = tpu.matmul %50, %52, %cst_70 {dimension_numbers = #tpu.dot_dimension_numbers<[1], [0], [0], [1], [0, 0, 1, 1], [], []>} : vector<512x4xbf16>, vector<4x4xbf16>, vector<512x4xf32> -> vector<512x4xf32>
    %54 = arith.addf %48, %53 : vector<512x4xf32>
    %c0_71 = arith.constant 0 : index
    %c2_72 = arith.constant 2 : index
    %c0_73 = arith.constant 0 : index
    %c0_74 = arith.constant 0 : index
    %55 = vector.load %arg7[%c0_71, %c2_72, %c0_73, %c0_74] : memref<2x18x18x4xbf16, #tpu.memory_space<vmem>>, vector<2x16x16x4xbf16>
    %56 = vector.shape_cast %55 : vector<2x16x16x4xbf16> to vector<512x4xbf16>
    %c6 = arith.constant 6 : index
    %c0_75 = arith.constant 0 : index
    %c0_76 = arith.constant 0 : index
    %57 = vector.load %arg4[%c6, %c0_75, %c0_76] : memref<9x4x4xbf16, #tpu.memory_space<vmem>>, vector<1x4x4xbf16>
    %58 = vector.shape_cast %57 : vector<1x4x4xbf16> to vector<4x4xbf16>
    %cst_77 = arith.constant dense<0.000000e+00> : vector<512x4xf32>
    %59 = tpu.matmul %56, %58, %cst_77 {dimension_numbers = #tpu.dot_dimension_numbers<[1], [0], [0], [1], [0, 0, 1, 1], [], []>} : vector<512x4xbf16>, vector<4x4xbf16>, vector<512x4xf32> -> vector<512x4xf32>
    %60 = arith.addf %54, %59 : vector<512x4xf32>
    %c0_78 = arith.constant 0 : index
    %c2_79 = arith.constant 2 : index
    %c1_80 = arith.constant 1 : index
    %c0_81 = arith.constant 0 : index
    %61 = vector.load %arg7[%c0_78, %c2_79, %c1_80, %c0_81] : memref<2x18x18x4xbf16, #tpu.memory_space<vmem>>, vector<2x16x16x4xbf16>
    %62 = vector.shape_cast %61 : vector<2x16x16x4xbf16> to vector<512x4xbf16>
    %c7 = arith.constant 7 : index
    %c0_82 = arith.constant 0 : index
    %c0_83 = arith.constant 0 : index
    %63 = vector.load %arg4[%c7, %c0_82, %c0_83] : memref<9x4x4xbf16, #tpu.memory_space<vmem>>, vector<1x4x4xbf16>
    %64 = vector.shape_cast %63 : vector<1x4x4xbf16> to vector<4x4xbf16>
    %cst_84 = arith.constant dense<0.000000e+00> : vector<512x4xf32>
    %65 = tpu.matmul %62, %64, %cst_84 {dimension_numbers = #tpu.dot_dimension_numbers<[1], [0], [0], [1], [0, 0, 1, 1], [], []>} : vector<512x4xbf16>, vector<4x4xbf16>, vector<512x4xf32> -> vector<512x4xf32>
    %66 = arith.addf %60, %65 : vector<512x4xf32>
    %c0_85 = arith.constant 0 : index
    %c2_86 = arith.constant 2 : index
    %c2_87 = arith.constant 2 : index
    %c0_88 = arith.constant 0 : index
    %67 = vector.load %arg7[%c0_85, %c2_86, %c2_87, %c0_88] : memref<2x18x18x4xbf16, #tpu.memory_space<vmem>>, vector<2x16x16x4xbf16>
    %68 = vector.shape_cast %67 : vector<2x16x16x4xbf16> to vector<512x4xbf16>
    %c8 = arith.constant 8 : index
    %c0_89 = arith.constant 0 : index
    %c0_90 = arith.constant 0 : index
    %69 = vector.load %arg4[%c8, %c0_89, %c0_90] : memref<9x4x4xbf16, #tpu.memory_space<vmem>>, vector<1x4x4xbf16>
    %70 = vector.shape_cast %69 : vector<1x4x4xbf16> to vector<4x4xbf16>
    %cst_91 = arith.constant dense<0.000000e+00> : vector<512x4xf32>
    %71 = tpu.matmul %68, %70, %cst_91 {dimension_numbers = #tpu.dot_dimension_numbers<[1], [0], [0], [1], [0, 0, 1, 1], [], []>} : vector<512x4xbf16>, vector<4x4xbf16>, vector<512x4xf32> -> vector<512x4xf32>
    %72 = arith.addf %66, %71 : vector<512x4xf32>
    %73 = vector.shape_cast %72 : vector<512x4xf32> to vector<2x16x16x4xf32>
    %74 = arith.truncf %73 : vector<2x16x16x4xf32> to vector<2x16x16x4xbf16>
    %c0_92 = arith.constant 0 : index
    %c0_93 = arith.constant 0 : index
    %c0_94 = arith.constant 0 : index
    %c0_95 = arith.constant 0 : index
    %75 = vector.load %arg5[%c0_92, %c0_93, %c0_94, %c0_95] : memref<2x16x16x4xbf16, #tpu.memory_space<vmem>>, vector<2x16x16x4xbf16>
    tpu.vector_store %arg5[%c0_92, %c0_93, %c0_94, %c0_95], %74 {strides = array<i32>} : memref<2x16x16x4xbf16, #tpu.memory_space<vmem>>, vector<2x16x16x4xbf16>,
    %cst_96 = arith.constant dense<0.000000e+00> : vector<4xf32>
    %76 = vector.multi_reduction <add>, %72, %cst_96 [0] : vector<512x4xf32> to vector<4xf32>
    %77 = vector.shape_cast %76 : vector<4xf32> to vector<1x4xf32>
    %78 = arith.mulf %72, %72 : vector<512x4xf32>
    %cst_97 = arith.constant dense<0.000000e+00> : vector<4xf32>
    %79 = vector.multi_reduction <add>, %78, %cst_97 [0] : vector<512x4xf32> to vector<4xf32>
    %80 = vector.shape_cast %79 : vector<4xf32> to vector<1x4xf32>
    %81 = tpu.concatenate %77, %80 in 0 : vector<1x4xf32>, vector<1x4xf32> -> vector<2x4xf32>
    %82 = vector.shape_cast %81 : vector<2x4xf32> to vector<1x2x4xf32>
    %c0_98 = arith.constant 0 : index
    %c0_99 = arith.constant 0 : index
    %c0_100 = arith.constant 0 : index
    %83 = vector.load %arg6[%c0_98, %c0_99, %c0_100] : memref<1x2x4xf32, #tpu.memory_space<vmem>>, vector<1x2x4xf32>
    tpu.vector_store %arg6[%c0_98, %c0_99, %c0_100], %82 {strides = array<i32>} : memref<1x2x4xf32, #tpu.memory_space<vmem>>, vector<1x2x4xf32>,
    return
  }
  func.func @transform_0(%arg0: i32) -> (i32, i32, i32, i32) {
    %c0_i32 = arith.constant 0 : i32
    %c0_i32_0 = arith.constant 0 : i32
    %c0_i32_1 = arith.constant 0 : i32
    %c0_i32_2 = arith.constant 0 : i32
    return %arg0, %c0_i32, %c0_i32_0, %c0_i32_1 : i32, i32, i32, i32
  }
  func.func @transform_1(%arg0: i32) -> (i32, i32) {
    %c0_i32 = arith.constant 0 : i32
    %c0_i32_0 = arith.constant 0 : i32
    %c0_i32_1 = arith.constant 0 : i32
    return %c0_i32, %c0_i32_0 : i32, i32
  }
  func.func @transform_2(%arg0: i32) -> (i32, i32) {
    %c0_i32 = arith.constant 0 : i32
    %c0_i32_0 = arith.constant 0 : i32
    %c0_i32_1 = arith.constant 0 : i32
    return %c0_i32, %c0_i32_0 : i32, i32
  }
  func.func @transform_3(%arg0: i32) -> (i32, i32, i32) {
    %c0_i32 = arith.constant 0 : i32
    %c0_i32_0 = arith.constant 0 : i32
    %c0_i32_1 = arith.constant 0 : i32
    %c0_i32_2 = arith.constant 0 : i32
    return %c0_i32, %c0_i32_0, %c0_i32_1 : i32, i32, i32
  }
  func.func @transform_4(%arg0: i32) -> (i32, i32, i32, i32) {
    %c0_i32 = arith.constant 0 : i32
    %c0_i32_0 = arith.constant 0 : i32
    %c0_i32_1 = arith.constant 0 : i32
    %c0_i32_2 = arith.constant 0 : i32
    return %arg0, %c0_i32, %c0_i32_0, %c0_i32_1 : i32, i32, i32, i32
  }
  func.func @transform_5(%arg0: i32) -> (i32, i32, i32) {
    %c0_i32 = arith.constant 0 : i32
    %c0_i32_0 = arith.constant 0 : i32
    %c0_i32_1 = arith.constant 0 : i32
    return %arg0, %c0_i32, %c0_i32_0 : i32, i32, i32
  }
}

module attributes {stable_mosaic.version = 11 : i64} {
  func.func @kernel(%arg0: i32, %arg1: memref<512x4xf32, #tpu.memory_space<vmem>>, %arg2: memref<1x4xf32, #tpu.memory_space<vmem>>, %arg3: memref<1x4xf32, #tpu.memory_space<vmem>>, %arg4: memref<4x16xbf16, #tpu.memory_space<vmem>>, %arg5: memref<512x16xbf16, #tpu.memory_space<vmem>>) attributes {dimension_semantics = [#tpu.dimension_semantics<parallel>], iteration_bounds = array<i64: 1>, scalar_prefetch = 0 : i64, scratch_operands = 0 : i64, tpu.core_type = #tpu.core_type<tc>, window_params = [{transform_indices = @transform_0, window_bounds = array<i64: 512, 4>}, {pipeline_mode = #tpu.pipeline_mode<synchronous>, transform_indices = @transform_1, window_bounds = array<i64: 1, 4>}, {pipeline_mode = #tpu.pipeline_mode<synchronous>, transform_indices = @transform_2, window_bounds = array<i64: 1, 4>}, {pipeline_mode = #tpu.pipeline_mode<synchronous>, transform_indices = @transform_3, window_bounds = array<i64: 4, 16>}, {transform_indices = @transform_4, window_bounds = array<i64: 512, 16>}]} {
    %c0 = arith.constant 0 : index
    %c0_0 = arith.constant 0 : index
    %0 = vector.load %arg1[%c0, %c0_0] : memref<512x4xf32, #tpu.memory_space<vmem>>, vector<512x4xf32>
    %c0_1 = arith.constant 0 : index
    %c0_2 = arith.constant 0 : index
    %1 = vector.load %arg2[%c0_1, %c0_2] : memref<1x4xf32, #tpu.memory_space<vmem>>, vector<1x4xf32>
    %2 = vector.broadcast %1 : vector<1x4xf32> to vector<512x4xf32>
    %3 = arith.mulf %0, %2 : vector<512x4xf32>
    %c0_3 = arith.constant 0 : index
    %c0_4 = arith.constant 0 : index
    %4 = vector.load %arg3[%c0_3, %c0_4] : memref<1x4xf32, #tpu.memory_space<vmem>>, vector<1x4xf32>
    %5 = vector.broadcast %4 : vector<1x4xf32> to vector<512x4xf32>
    %6 = arith.addf %3, %5 : vector<512x4xf32>
    %cst = arith.constant 0.000000e+00 : f32
    %7 = vector.broadcast %cst : f32 to vector<512x4xf32>
    %8 = arith.maximumf %6, %7 : vector<512x4xf32>
    %9 = arith.truncf %8 : vector<512x4xf32> to vector<512x4xbf16>
    %c0_5 = arith.constant 0 : index
    %c0_6 = arith.constant 0 : index
    %10 = vector.load %arg4[%c0_5, %c0_6] : memref<4x16xbf16, #tpu.memory_space<vmem>>, vector<4x16xbf16>
    %cst_7 = arith.constant dense<0.000000e+00> : vector<512x16xf32>
    %11 = tpu.matmul %9, %10, %cst_7 {dimension_numbers = #tpu.dot_dimension_numbers<[1], [0], [0], [1], [0, 0, 1, 1], [], []>} : vector<512x4xbf16>, vector<4x16xbf16>, vector<512x16xf32> -> vector<512x16xf32>
    %12 = arith.truncf %11 : vector<512x16xf32> to vector<512x16xbf16>
    %c0_8 = arith.constant 0 : index
    %c0_9 = arith.constant 0 : index
    %13 = vector.load %arg5[%c0_8, %c0_9] : memref<512x16xbf16, #tpu.memory_space<vmem>>, vector<512x16xbf16>
    tpu.vector_store %arg5[%c0_8, %c0_9], %12 {strides = array<i32>} : memref<512x16xbf16, #tpu.memory_space<vmem>>, vector<512x16xbf16>,
    return
  }
  func.func @transform_0(%arg0: i32) -> (i32, i32) {
    %c0_i32 = arith.constant 0 : i32
    %c0_i32_0 = arith.constant 0 : i32
    return %arg0, %c0_i32 : i32, i32
  }
  func.func @transform_1(%arg0: i32) -> (i32, i32) {
    %c0_i32 = arith.constant 0 : i32
    %c0_i32_0 = arith.constant 0 : i32
    %c0_i32_1 = arith.constant 0 : i32
    return %c0_i32, %c0_i32_0 : i32, i32
  }
  func.func @transform_2(%arg0: i32) -> (i32, i32) {
    %c0_i32 = arith.constant 0 : i32
    %c0_i32_0 = arith.constant 0 : i32
    %c0_i32_1 = arith.constant 0 : i32
    return %c0_i32, %c0_i32_0 : i32, i32
  }
  func.func @transform_3(%arg0: i32) -> (i32, i32) {
    %c0_i32 = arith.constant 0 : i32
    %c0_i32_0 = arith.constant 0 : i32
    %c0_i32_1 = arith.constant 0 : i32
    return %c0_i32, %c0_i32_0 : i32, i32
  }
  func.func @transform_4(%arg0: i32) -> (i32, i32) {
    %c0_i32 = arith.constant 0 : i32
    %c0_i32_0 = arith.constant 0 : i32
    return %arg0, %c0_i32 : i32, i32
  }
}

module attributes {stable_mosaic.version = 11 : i64} {
  func.func @kernel(%arg0: i32, %arg1: memref<512x4xbf16, #tpu.memory_space<vmem>>, %arg2: memref<1x4xf32, #tpu.memory_space<vmem>>, %arg3: memref<1x4xf32, #tpu.memory_space<vmem>>, %arg4: memref<4x16xbf16, #tpu.memory_space<vmem>>, %arg5: memref<512x16xbf16, #tpu.memory_space<vmem>>, %arg6: memref<512x16xf32, #tpu.memory_space<vmem>>) attributes {dimension_semantics = [#tpu.dimension_semantics<parallel>], iteration_bounds = array<i64: 1>, scalar_prefetch = 0 : i64, scratch_operands = 0 : i64, tpu.core_type = #tpu.core_type<tc>, window_params = [{transform_indices = @transform_0, window_bounds = array<i64: 512, 4>}, {pipeline_mode = #tpu.pipeline_mode<synchronous>, transform_indices = @transform_1, window_bounds = array<i64: 1, 4>}, {pipeline_mode = #tpu.pipeline_mode<synchronous>, transform_indices = @transform_2, window_bounds = array<i64: 1, 4>}, {pipeline_mode = #tpu.pipeline_mode<synchronous>, transform_indices = @transform_3, window_bounds = array<i64: 4, 16>}, {transform_indices = @transform_4, window_bounds = array<i64: 512, 16>}, {transform_indices = @transform_5, window_bounds = array<i64: 512, 16>}]} {
    %c0 = arith.constant 0 : index
    %c0_0 = arith.constant 0 : index
    %0 = vector.load %arg1[%c0, %c0_0] : memref<512x4xbf16, #tpu.memory_space<vmem>>, vector<512x4xbf16>
    %1 = arith.extf %0 : vector<512x4xbf16> to vector<512x4xf32>
    %c0_1 = arith.constant 0 : index
    %c0_2 = arith.constant 0 : index
    %2 = vector.load %arg2[%c0_1, %c0_2] : memref<1x4xf32, #tpu.memory_space<vmem>>, vector<1x4xf32>
    %3 = vector.broadcast %2 : vector<1x4xf32> to vector<512x4xf32>
    %4 = arith.mulf %1, %3 : vector<512x4xf32>
    %c0_3 = arith.constant 0 : index
    %c0_4 = arith.constant 0 : index
    %5 = vector.load %arg3[%c0_3, %c0_4] : memref<1x4xf32, #tpu.memory_space<vmem>>, vector<1x4xf32>
    %6 = vector.broadcast %5 : vector<1x4xf32> to vector<512x4xf32>
    %7 = arith.addf %4, %6 : vector<512x4xf32>
    %cst = arith.constant 0.000000e+00 : f32
    %8 = vector.broadcast %cst : f32 to vector<512x4xf32>
    %9 = arith.maximumf %7, %8 : vector<512x4xf32>
    %10 = arith.truncf %9 : vector<512x4xf32> to vector<512x4xbf16>
    %c0_5 = arith.constant 0 : index
    %c0_6 = arith.constant 0 : index
    %11 = vector.load %arg4[%c0_5, %c0_6] : memref<4x16xbf16, #tpu.memory_space<vmem>>, vector<4x16xbf16>
    %cst_7 = arith.constant dense<0.000000e+00> : vector<512x16xf32>
    %12 = tpu.matmul %10, %11, %cst_7 {dimension_numbers = #tpu.dot_dimension_numbers<[1], [0], [0], [1], [0, 0, 1, 1], [], []>} : vector<512x4xbf16>, vector<4x16xbf16>, vector<512x16xf32> -> vector<512x16xf32>
    %c0_8 = arith.constant 0 : index
    %c0_9 = arith.constant 0 : index
    %13 = vector.load %arg5[%c0_8, %c0_9] : memref<512x16xbf16, #tpu.memory_space<vmem>>, vector<512x16xbf16>
    %14 = arith.extf %13 : vector<512x16xbf16> to vector<512x16xf32>
    %15 = arith.addf %12, %14 : vector<512x16xf32>
    %c0_10 = arith.constant 0 : index
    %c0_11 = arith.constant 0 : index
    %16 = vector.load %arg6[%c0_10, %c0_11] : memref<512x16xf32, #tpu.memory_space<vmem>>, vector<512x16xf32>
    tpu.vector_store %arg6[%c0_10, %c0_11], %15 {strides = array<i32>} : memref<512x16xf32, #tpu.memory_space<vmem>>, vector<512x16xf32>,
    return
  }
  func.func @transform_0(%arg0: i32) -> (i32, i32) {
    %c0_i32 = arith.constant 0 : i32
    %c0_i32_0 = arith.constant 0 : i32
    return %arg0, %c0_i32 : i32, i32
  }
  func.func @transform_1(%arg0: i32) -> (i32, i32) {
    %c0_i32 = arith.constant 0 : i32
    %c0_i32_0 = arith.constant 0 : i32
    %c0_i32_1 = arith.constant 0 : i32
    return %c0_i32, %c0_i32_0 : i32, i32
  }
  func.func @transform_2(%arg0: i32) -> (i32, i32) {
    %c0_i32 = arith.constant 0 : i32
    %c0_i32_0 = arith.constant 0 : i32
    %c0_i32_1 = arith.constant 0 : i32
    return %c0_i32, %c0_i32_0 : i32, i32
  }
  func.func @transform_3(%arg0: i32) -> (i32, i32) {
    %c0_i32 = arith.constant 0 : i32
    %c0_i32_0 = arith.constant 0 : i32
    %c0_i32_1 = arith.constant 0 : i32
    return %c0_i32, %c0_i32_0 : i32, i32
  }
  func.func @transform_4(%arg0: i32) -> (i32, i32) {
    %c0_i32 = arith.constant 0 : i32
    %c0_i32_0 = arith.constant 0 : i32
    return %arg0, %c0_i32 : i32, i32
  }
  func.func @transform_5(%arg0: i32) -> (i32, i32) {
    %c0_i32 = arith.constant 0 : i32
    %c0_i32_0 = arith.constant 0 : i32
    return %arg0, %c0_i32 : i32, i32
  }
}

</mosaic_0001>

<bundles_post_ra>
// kernel: preact_bottleneck.5
= control target key start
LH: loop header
LB: loop body
LE: loop exit
PB: predicated region body
PF: predicated region fallthrough
CT: control target
= control target key end

     0   :  { %vm418_vm0 = vcmask 1041408   ;;  %vm321_vm1 = vcmask 31744   ;;  %vm967_vm2 = vcmask 125952   ;;  %s1947_s3 = inlined_call_operand.vmem [shape: bf16[4,16], index: 3, kind: input, shape index: {}]   ;;  %s1948_s0 = inlined_call_operand.vmem [shape: f32[512,4], index: 0, kind: input, shape index: {}]   ;;  %s1949_s1 = inlined_call_operand.vmem [shape: f32[1,4], index: 1, kind: input, shape index: {}]   ;;  %s1950_s2 = inlined_call_operand.vmem [shape: f32[1,4], index: 2, kind: input, shape index: {}]   ;;  %s1951_s4 = inlined_call_operand.vmem [shape: bf16[512,16], index: 4, kind: output, shape index: {}]  }
   0x1   :  { %v320_v0 = vld [vmem:[%s1947_s3] sm:$0x3]  ;;  %v19_v2 = vld [vmem:[%s1948_s0 + $0x8] sm:$0xff]  ;;  %v20_v11 = vld [vmem:[%s1948_s0 + $0x10] sm:$0xff] }
   0x2   :  { %v18_v1 = vld [vmem:[%s1948_s0] sm:$0xff]  ;;  %1299 = vmatprep.subr.msk.bf16.mxu0 %vm418_vm0, %v320_v0  ;;  %1300 = vmatprep.subr.msk.bf16.mxu1 %vm418_vm0, %v320_v0  ;;  %v420_v3 = vsel %vm418_vm0, %v320_v0, 0  ;;  %v51_v9 = vld [vmem:[%s1948_s0 + $0x108] sm:$0xff]  ;;  %v21_v12 = vld [vmem:[%s1948_s0 + $0x18] sm:$0xff] }
   0x3   :  { %v1338_v4 = vld [vmem:[%s1949_s1] ss:$0 sm:$0xff]  ;;  %1232 = vmatpush3.bf16.msra.mxu0 %v420_v3  ;;  %1298 = vmatpush3.bf16.msra.mxu1 %v420_v3  ;;  %v52_v16 = vld [vmem:[%s1948_s0 + $0x110] sm:$0xff]  ;;  %v53_v17 = vld [vmem:[%s1948_s0 + $0x118] sm:$0xff] }
   0x4   :  { %v1343_v5 = vld [vmem:[%s1950_s2] ss:$0 sm:$0xff]  ;;  %v89_v7 = vmul.f32 %v1338_v4, %v18_v1  ;;  %v90_v8 = vmul.f32 %v1338_v4, %v19_v2  ;;  %v122_v13 = vmul.f32 %v1338_v4, %v51_v9  ;;  %v91_v14 = vmul.f32 %v1338_v4, %v20_v11  ;;  %v23_v27 = vld [vmem:[%s1948_s0 + $0x28] sm:$0xff]  ;;  %v24_v38 = vld [vmem:[%s1948_s0 + $0x30] sm:$0xff] }
   0x5   :  { %v50_v6 = vld [vmem:[%s1948_s0 + $0x100] sm:$0xff]  ;;  %v92_v15 = vmul.f32 %v1338_v4, %v21_v12  ;;  %v123_v21 = vmul.f32 %v1338_v4, %v52_v16  ;;  %v124_v25 = vmul.f32 %v1338_v4, %v53_v17  ;;  %v55_v37 = vld [vmem:[%s1948_s0 + $0x128] sm:$0xff]  ;;  %v94_v42 = vmul.f32 %v1338_v4, %v23_v27  ;;  %v25_v43 = vld [vmem:[%s1948_s0 + $0x38] sm:$0xff] }
   0x6   :  { %v121_v10 = vmul.f32 %v1338_v4, %v50_v6  ;;  %v160_v18 = vadd.f32 %v1343_v5, %v89_v7  ;;  %v161_v19 = vadd.f32 %v1343_v5, %v90_v8  ;;  %v193_v22 = vadd.f32 %v1343_v5, %v122_v13  ;;  %v22_v26 = vld [vmem:[%s1948_s0 + $0x20] sm:$0xff]  ;;  %v56_v52 = vld [vmem:[%s1948_s0 + $0x130] sm:$0xff]  ;;  %v57_v53 = vld [vmem:[%s1948_s0 + $0x138] sm:$0xff] }
   0x7   :  { %v162_v23 = vadd.f32 %v1343_v5, %v91_v14  ;;  %v163_v24 = vadd.f32 %v1343_v5, %v92_v15  ;;  %v194_v31 = vadd.f32 %v1343_v5, %v123_v21  ;;  %v54_v32 = vld [vmem:[%s1948_s0 + $0x120] sm:$0xff]  ;;  %v195_v36 = vadd.f32 %v1343_v5, %v124_v25  ;;  %v27_v62 = vld [vmem:[%s1948_s0 + $0x48] sm:$0xff]  ;;  %v28_v15 = vld [vmem:[%s1948_s0 + $0x50] sm:$0xff] }
   0x8   :  { %v192_v20 = vadd.f32 %v1343_v5, %v121_v10  ;;  %v224_v28 = vmax.f32 %v160_v18, 0.0  ;;  %v225_v29 = vmax.f32 %v161_v19, 0.0  ;;  %v257_v33 = vmax.f32 %v193_v22, 0.0  ;;  %v26_v57 = vld [vmem:[%s1948_s0 + $0x40] sm:$0xff]  ;;  %v59_v6 = vld [vmem:[%s1948_s0 + $0x148] sm:$0xff]  ;;  %v60_v21 = vld [vmem:[%s1948_s0 + $0x150] sm:$0xff] }
   0x9   :  { %v226_v34 = vmax.f32 %v162_v23, 0.0  ;;  %v227_v35 = vmax.f32 %v163_v24, 0.0  ;;  %v258_v40 = vmax.f32 %v194_v31, 0.0  ;;  %v93_v41 = vmul.f32 %v1338_v4, %v22_v26  ;;  %v58_v3 = vld [vmem:[%s1948_s0 + $0x140] sm:$0xff]  ;;  %v61_v26 = vld [vmem:[%s1948_s0 + $0x158] sm:$0xff] }
   0xa   :  { %v256_v30 = vmax.f32 %v192_v20, 0.0  ;;  %v288_v39 = vpack.c.bf16 %v225_v29, %v224_v28  ;;  %v259_v46 = vmax.f32 %v195_v36, 0.0  ;;  %v125_v47 = vmul.f32 %v1338_v4, %v54_v32  ;;  %v29_v20 = vld [vmem:[%s1948_s0 + $0x58] sm:$0xff]  ;;  %v30_v31 = vld [vmem:[%s1948_s0 + $0x60] sm:$0xff]  ;;  %v31_v36 = vld [vmem:[%s1948_s0 + $0x68] sm:$0xff] }
   0xb   :  { %v289_v45 = vpack.c.bf16 %v227_v35, %v226_v34  ;;  %v164_v48 = vadd.f32 %v1343_v5, %v93_v41  ;;  %v165_v49 = vadd.f32 %v1343_v5, %v94_v42  ;;  %v126_v50 = vmul.f32 %v1338_v4, %v55_v37  ;;  %v62_v41 = vld [vmem:[%s1948_s0 + $0x160] sm:$0xff] }
   0xc   :  { %v304_v44 = vpack.c.bf16 %v257_v33, %v256_v30  ;;  %1233 = vmatprep.mubr.msk.bf16.mxu0 %vm321_vm1, %v288_v39  ;;  %v95_v51 = vmul.f32 %v1338_v4, %v24_v38  ;;  %v305_v54 = vpack.c.bf16 %v259_v46, %v258_v40  ;;  %v196_v55 = vadd.f32 %v1343_v5, %v125_v47  ;;  %v63_v46 = vld [vmem:[%s1948_s0 + $0x168] sm:$0xff]  ;;  %v32_v47 = vld [vmem:[%s1948_s0 + $0x70] sm:$0xff] }
   0xd   :  { %1234 = vmatmul.mubr.msk.bf16.vlgmr.msra.gmra.mrb[0].mxu0 %vm321_vm1, %v289_v45  ;;  %v96_v56 = vmul.f32 %v1338_v4, %v25_v43  ;;  %v228_v58 = vmax.f32 %v164_v48, 0.0  ;;  %v229_v59 = vmax.f32 %v165_v49, 0.0  ;;  %v197_v60 = vadd.f32 %v1343_v5, %v126_v50 }
   0xe   :  { %1265 = vmatprep.mubr.msk.bf16.mxu1 %vm321_vm1, %v304_v44  ;;  %v166_v61 = vadd.f32 %v1343_v5, %v95_v51  ;;  %v260_v63 = vmax.f32 %v196_v55, 0.0  ;;  %v127_v1 = vmul.f32 %v1338_v4, %v56_v52  ;;  %v128_v2 = vmul.f32 %v1338_v4, %v57_v53  ;;  %v33_v52 = vld [vmem:[%s1948_s0 + $0x78] sm:$0xff] }
   0xf   :  { %1266 = vmatmul.mubr.msk.bf16.vlgmr.msra.gmra.mrb[0].mxu1 %vm321_vm1, %v305_v54  ;;  %v167_v0 = vadd.f32 %v1343_v5, %v96_v56  ;;  %v290_v7 = vpack.c.bf16 %v229_v59, %v228_v58  ;;  %v261_v8 = vmax.f32 %v197_v60, 0.0  ;;  %v97_v10 = vmul.f32 %v1338_v4, %v26_v57 }
  0x10   :  { %v230_v9 = vmax.f32 %v166_v61, 0.0  ;;  %v198_v12 = vadd.f32 %v1343_v5, %v127_v1  ;;  %v199_v13 = vadd.f32 %v1343_v5, %v128_v2  ;;  %v98_v14 = vmul.f32 %v1338_v4, %v27_v62  ;;  %v64_v61 = vld [vmem:[%s1948_s0 + $0x170] sm:$0xff]  ;;  %v65_v62 = vld [vmem:[%s1948_s0 + $0x178] sm:$0xff] }
  0x11   :  { %v231_v11 = vmax.f32 %v167_v0, 0.0  ;;  %1237 = vmatprep.mubr.msk.bf16.mxu0 %vm321_vm1, %v290_v7  ;;  %v306_v16 = vpack.c.bf16 %v261_v8, %v260_v63  ;;  %v168_v17 = vadd.f32 %v1343_v5, %v97_v10  ;;  %v129_v18 = vmul.f32 %v1338_v4, %v58_v3  ;;  %v34_v3 = vld [vmem:[%s1948_s0 + $0x80] sm:$0xff]  ;;  %v35_v10 = vld [vmem:[%s1948_s0 + $0x88] sm:$0xff] }
  0x12   :  { %v130_v19 = vmul.f32 %v1338_v4, %v59_v6  ;;  %v262_v23 = vmax.f32 %v198_v12, 0.0  ;;  %v263_v24 = vmax.f32 %v199_v13, 0.0  ;;  %v169_v25 = vadd.f32 %v1343_v5, %v98_v14 }
  0x13   :  { %v291_v22 = vpack.c.bf16 %v231_v11, %v230_v9  ;;  %1269 = vmatprep.mubr.msk.bf16.mxu1 %vm321_vm1, %v306_v16  ;;  %v232_v27 = vmax.f32 %v168_v17, 0.0  ;;  %v200_v28 = vadd.f32 %v1343_v5, %v129_v18  ;;  %v99_v30 = vmul.f32 %v1338_v4, %v28_v15  ;;  %v66_v15 = vld [vmem:[%s1948_s0 + $0x180] sm:$0xff]  ;;  %v67_v16 = vld [vmem:[%s1948_s0 + $0x188] sm:$0xff] }
  0x14   :  { %v201_v29 = vadd.f32 %v1343_v5, %v130_v19  ;;  %v307_v32 = vpack.c.bf16 %v263_v24, %v262_v23  ;;  %v233_v33 = vmax.f32 %v169_v25, 0.0  ;;  %v100_v34 = vmul.f32 %v1338_v4, %v29_v20  ;;  %v36_v25 = vld [vmem:[%s1948_s0 + $0x90] sm:$0xff] }
  0x15   :  { %1238 = vmatmul.mubr.msk.bf16.gmra.mrb[4].mxu0 %vm321_vm1, %v291_v22  ;;  %v131_v35 = vmul.f32 %v1338_v4, %v60_v21  ;;  %v264_v37 = vmax.f32 %v200_v28, 0.0  ;;  %v170_v39 = vadd.f32 %v1343_v5, %v99_v30  ;;  %v132_v40 = vmul.f32 %v1338_v4, %v61_v26  ;;  %v37_v30 = vld [vmem:[%s1948_s0 + $0x98] sm:$0xff] }
  0x16   :  { %v265_v38 = vmax.f32 %v201_v29, 0.0  ;;  %v292_v42 = vpack.c.bf16 %v233_v33, %v232_v27  ;;  %v171_v43 = vadd.f32 %v1343_v5, %v100_v34  ;;  %v101_v45 = vmul.f32 %v1338_v4, %v30_v31  ;;  %v68_v31 = vld [vmem:[%s1948_s0 + $0x190] sm:$0xff] }
  0x17   :  { %1270 = vmatmul.mubr.msk.bf16.gmra.mrb[4].mxu1 %vm321_vm1, %v307_v32  ;;  %v202_v44 = vadd.f32 %v1343_v5, %v131_v35  ;;  %v234_v49 = vmax.f32 %v170_v39, 0.0  ;;  %v203_v50 = vadd.f32 %v1343_v5, %v132_v40  ;;  %v102_v51 = vmul.f32 %v1338_v4, %v31_v36  ;;  %v69_v36 = vld [vmem:[%s1948_s0 + $0x198] sm:$0xff] }
  0x18   :  { %v308_v48 = vpack.c.bf16 %v265_v38, %v264_v37  ;;  %1241 = vmatprep.mubr.msk.bf16.mxu0 %vm321_vm1, %v292_v42  ;;  %v235_v53 = vmax.f32 %v171_v43, 0.0  ;;  %v172_v55 = vadd.f32 %v1343_v5, %v101_v45  ;;  %v133_v56 = vmul.f32 %v1338_v4, %v62_v41  ;;  %v38_v41 = vld [vmem:[%s1948_s0 + $0xa0] sm:$0xff] }
  0x19   :  { %v266_v54 = vmax.f32 %v202_v44, 0.0  ;;  %v267_v57 = vmax.f32 %v203_v50, 0.0  ;;  %v173_v58 = vadd.f32 %v1343_v5, %v102_v51  ;;  %v134_v59 = vmul.f32 %v1338_v4, %v63_v46  ;;  %v39_v46 = vld [vmem:[%s1948_s0 + $0xa8] sm:$0xff]  ;;  %v70_v51 = vld [vmem:[%s1948_s0 + $0x1a0] sm:$0xff] }
  0x1a   :  { %1273 = vmatprep.mubr.msk.bf16.mxu1 %vm321_vm1, %v308_v48  ;;  %v103_v60 = vmul.f32 %v1338_v4, %v32_v47  ;;  %v293_v63 = vpack.c.bf16 %v235_v53, %v234_v49  ;;  %v236_v0 = vmax.f32 %v172_v55, 0.0  ;;  %v204_v1 = vadd.f32 %v1343_v5, %v133_v56  ;;  %v71_v56 = vld [vmem:[%s1948_s0 + $0x1a8] sm:$0xff] }
  0x1b   :  { %v104_v2 = vmul.f32 %v1338_v4, %v33_v52  ;;  %v309_v6 = vpack.c.bf16 %v267_v57, %v266_v54  ;;  %v237_v7 = vmax.f32 %v173_v58, 0.0  ;;  %v205_v8 = vadd.f32 %v1343_v5, %v134_v59  ;;  %v40_v57 = vld [vmem:[%s1948_s0 + $0xb0] sm:$0xff] }
  0x1c   :  { %v174_v9 = vadd.f32 %v1343_v5, %v103_v60  ;;  %v268_v11 = vmax.f32 %v204_v1, 0.0  ;;  %v135_v13 = vmul.f32 %v1338_v4, %v64_v61  ;;  %v136_v14 = vmul.f32 %v1338_v4, %v65_v62  ;;  %v41_v62 = vld [vmem:[%s1948_s0 + $0xb8] sm:$0xff] }
  0x1d   :  { %1242 = vmatmul.mubr.msk.bf16.gmra.mrb[8].mxu0 %vm321_vm1, %v293_v63  ;;  %v175_v12 = vadd.f32 %v1343_v5, %v104_v2  ;;  %v294_v17 = vpack.c.bf16 %v237_v7, %v236_v0  ;;  %v269_v18 = vmax.f32 %v205_v8, 0.0  ;;  %v105_v20 = vmul.f32 %v1338_v4, %v34_v3 }
  0x1e   :  { %v238_v19 = vmax.f32 %v174_v9, 0.0  ;;  %v206_v22 = vadd.f32 %v1343_v5, %v135_v13  ;;  %v207_v23 = vadd.f32 %v1343_v5, %v136_v14  ;;  %v106_v24 = vmul.f32 %v1338_v4, %v35_v10  ;;  %v72_v9 = vld [vmem:[%s1948_s0 + $0x1b0] sm:$0xff]  ;;  %v73_v10 = vld [vmem:[%s1948_s0 + $0x1b8] sm:$0xff] }
  0x1f   :  { %1274 = vmatmul.mubr.msk.bf16.gmra.mrb[8].mxu1 %vm321_vm1, %v309_v6  ;;  %v239_v21 = vmax.f32 %v175_v12, 0.0  ;;  %1245 = vmatprep.mubr.msk.bf16.mxu0 %vm321_vm1, %v294_v17  ;;  %v310_v26 = vpack.c.bf16 %v269_v18, %v268_v11  ;;  %v176_v27 = vadd.f32 %v1343_v5, %v105_v20  ;;  %v137_v28 = vmul.f32 %v1338_v4, %v66_v15  ;;  %v42_v15 = vld [vmem:[%s1948_s0 + $0xc0] sm:$0xff]  ;;  %v43_v20 = vld [vmem:[%s1948_s0 + $0xc8] sm:$0xff] }
  0x20   :  { %v138_v29 = vmul.f32 %v1338_v4, %v67_v16  ;;  %v270_v33 = vmax.f32 %v206_v22, 0.0  ;;  %v271_v34 = vmax.f32 %v207_v23, 0.0  ;;  %v177_v35 = vadd.f32 %v1343_v5, %v106_v24 }
  0x21   :  { %v295_v32 = vpack.c.bf16 %v239_v21, %v238_v19  ;;  %1277 = vmatprep.mubr.msk.bf16.mxu1 %vm321_vm1, %v310_v26  ;;  %v240_v37 = vmax.f32 %v176_v27, 0.0  ;;  %v208_v38 = vadd.f32 %v1343_v5, %v137_v28  ;;  %v107_v40 = vmul.f32 %v1338_v4, %v36_v25  ;;  %v74_v25 = vld [vmem:[%s1948_s0 + $0x1c0] sm:$0xff]  ;;  %v75_v26 = vld [vmem:[%s1948_s0 + $0x1c8] sm:$0xff] }
  0x22   :  { %v209_v39 = vadd.f32 %v1343_v5, %v138_v29  ;;  %v311_v42 = vpack.c.bf16 %v271_v34, %v270_v33  ;;  %v241_v43 = vmax.f32 %v177_v35, 0.0  ;;  %v108_v44 = vmul.f32 %v1338_v4, %v37_v30  ;;  %v44_v35 = vld [vmem:[%s1948_s0 + $0xd0] sm:$0xff] }
  0x23   :  { %v139_v45 = vmul.f32 %v1338_v4, %v68_v31  ;;  %v272_v47 = vmax.f32 %v208_v38, 0.0  ;;  %v178_v49 = vadd.f32 %v1343_v5, %v107_v40  ;;  %v140_v50 = vmul.f32 %v1338_v4, %v69_v36  ;;  %v45_v40 = vld [vmem:[%s1948_s0 + $0xd8] sm:$0xff] }
  0x24   :  { %v273_v48 = vmax.f32 %v209_v39, 0.0  ;;  %v296_v52 = vpack.c.bf16 %v241_v43, %v240_v37  ;;  %v179_v53 = vadd.f32 %v1343_v5, %v108_v44  ;;  %v109_v55 = vmul.f32 %v1338_v4, %v38_v41  ;;  %v76_v41 = vld [vmem:[%s1948_s0 + $0x1d0] sm:$0xff] }
  0x25   :  { %1246 = vmatmul.mubr.msk.bf16.gmra.mrb[12].mxu0 %vm321_vm1, %v295_v32  ;;  %v210_v54 = vadd.f32 %v1343_v5, %v139_v45  ;;  %v242_v59 = vmax.f32 %v178_v49, 0.0  ;;  %v211_v60 = vadd.f32 %v1343_v5, %v140_v50  ;;  %v110_v61 = vmul.f32 %v1338_v4, %v39_v46  ;;  %v77_v46 = vld [vmem:[%s1948_s0 + $0x1d8] sm:$0xff] }
  0x26   :  { %v312_v58 = vpack.c.bf16 %v273_v48, %v272_v47  ;;  %1249 = vmatprep.mubr.msk.bf16.mxu0 %vm321_vm1, %v296_v52  ;;  %v243_v63 = vmax.f32 %v179_v53, 0.0  ;;  %v180_v1 = vadd.f32 %v1343_v5, %v109_v55  ;;  %v141_v2 = vmul.f32 %v1338_v4, %v70_v51  ;;  %v46_v51 = vld [vmem:[%s1948_s0 + $0xe0] sm:$0xff] }
  0x27   :  { %1278 = vmatmul.mubr.msk.bf16.gmra.mrb[12].mxu1 %vm321_vm1, %v311_v42  ;;  %v274_v0 = vmax.f32 %v210_v54, 0.0  ;;  %v275_v3 = vmax.f32 %v211_v60, 0.0  ;;  %v181_v6 = vadd.f32 %v1343_v5, %v110_v61  ;;  %v142_v7 = vmul.f32 %v1338_v4, %v71_v56  ;;  %v47_v56 = vld [vmem:[%s1948_s0 + $0xe8] sm:$0xff]  ;;  %v78_v61 = vld [vmem:[%s1948_s0 + $0x1e0] sm:$0xff] }
  0x28   :  { %1281 = vmatprep.mubr.msk.bf16.mxu1 %vm321_vm1, %v312_v58  ;;  %v111_v8 = vmul.f32 %v1338_v4, %v40_v57  ;;  %v297_v11 = vpack.c.bf16 %v243_v63, %v242_v59  ;;  %v244_v12 = vmax.f32 %v180_v1, 0.0  ;;  %v212_v13 = vadd.f32 %v1343_v5, %v141_v2  ;;  %v79_v2 = vld [vmem:[%s1948_s0 + $0x1e8] sm:$0xff] }
  0x29   :  { %v112_v14 = vmul.f32 %v1338_v4, %v41_v62  ;;  %v313_v16 = vpack.c.bf16 %v275_v3, %v274_v0  ;;  %v245_v17 = vmax.f32 %v181_v6, 0.0  ;;  %v213_v18 = vadd.f32 %v1343_v5, %v142_v7  ;;  %v48_v3 = vld [vmem:[%s1948_s0 + $0xf0] sm:$0xff] }
  0x2a   :  { %v182_v19 = vadd.f32 %v1343_v5, %v111_v8  ;;  %v276_v21 = vmax.f32 %v212_v13, 0.0  ;;  %v143_v23 = vmul.f32 %v1338_v4, %v72_v9  ;;  %v144_v24 = vmul.f32 %v1338_v4, %v73_v10  ;;  %v49_v10 = vld [vmem:[%s1948_s0 + $0xf8] sm:$0xff] }
  0x2b   :  { %v183_v22 = vadd.f32 %v1343_v5, %v112_v14  ;;  %v298_v27 = vpack.c.bf16 %v245_v17, %v244_v12  ;;  %v277_v28 = vmax.f32 %v213_v18, 0.0  ;;  %v113_v30 = vmul.f32 %v1338_v4, %v42_v15  ;;  %v80_v18 = vld [vmem:[%s1948_s0 + $0x1f0] sm:$0xff] }
  0x2c   :  { %v246_v29 = vmax.f32 %v182_v19, 0.0  ;;  %v214_v32 = vadd.f32 %v1343_v5, %v143_v23  ;;  %v215_v33 = vadd.f32 %v1343_v5, %v144_v24  ;;  %v114_v34 = vmul.f32 %v1338_v4, %v43_v20  ;;  %v81_v19 = vld [vmem:[%s1948_s0 + $0x1f8] sm:$0xff] }
  0x2d   :  { %1250 = vmatmul.mubr.msk.bf16.gmra.mrb[16].mxu0 %vm321_vm1, %v297_v11  ;;  %v247_v31 = vmax.f32 %v183_v22, 0.0  ;;  %v314_v36 = vpack.c.bf16 %v277_v28, %v276_v21  ;;  %v184_v37 = vadd.f32 %v1343_v5, %v113_v30  ;;  %v145_v38 = vmul.f32 %v1338_v4, %v74_v25 }
  0x2e   :  { %1253 = vmatprep.mubr.msk.bf16.mxu0 %vm321_vm1, %v298_v27  ;;  %v146_v39 = vmul.f32 %v1338_v4, %v75_v26  ;;  %v278_v43 = vmax.f32 %v214_v32, 0.0  ;;  %v279_v44 = vmax.f32 %v215_v33, 0.0  ;;  %v185_v45 = vadd.f32 %v1343_v5, %v114_v34 }
  0x2f   :  { %1282 = vmatmul.mubr.msk.bf16.gmra.mrb[16].mxu1 %vm321_vm1, %v313_v16  ;;  %v299_v42 = vpack.c.bf16 %v247_v31, %v246_v29  ;;  %v248_v47 = vmax.f32 %v184_v37, 0.0  ;;  %v216_v48 = vadd.f32 %v1343_v5, %v145_v38  ;;  %v115_v50 = vmul.f32 %v1338_v4, %v44_v35 }
  0x30   :  { %1285 = vmatprep.mubr.msk.bf16.mxu1 %vm321_vm1, %v314_v36  ;;  %v217_v49 = vadd.f32 %v1343_v5, %v146_v39  ;;  %v315_v52 = vpack.c.bf16 %v279_v44, %v278_v43  ;;  %v249_v53 = vmax.f32 %v185_v45, 0.0  ;;  %v116_v54 = vmul.f32 %v1338_v4, %v45_v40 }
  0x31   :  { %v147_v55 = vmul.f32 %v1338_v4, %v76_v41  ;;  %v280_v57 = vmax.f32 %v216_v48, 0.0  ;;  %v186_v59 = vadd.f32 %v1343_v5, %v115_v50  ;;  %v148_v60 = vmul.f32 %v1338_v4, %v77_v46 }
  0x32   :  { %v281_v58 = vmax.f32 %v217_v49, 0.0  ;;  %v300_v62 = vpack.c.bf16 %v249_v53, %v248_v47  ;;  %v187_v63 = vadd.f32 %v1343_v5, %v116_v54  ;;  %v117_v1 = vmul.f32 %v1338_v4, %v46_v51 }
  0x33   :  { %v218_v0 = vadd.f32 %v1343_v5, %v147_v55  ;;  %v250_v7 = vmax.f32 %v186_v59, 0.0  ;;  %v219_v8 = vadd.f32 %v1343_v5, %v148_v60  ;;  %v118_v9 = vmul.f32 %v1338_v4, %v47_v56 }
  0x34   :  { %v316_v6 = vpack.c.bf16 %v281_v58, %v280_v57  ;;  %v251_v11 = vmax.f32 %v187_v63, 0.0  ;;  %v188_v12 = vadd.f32 %v1343_v5, %v117_v1  ;;  %v149_v13 = vmul.f32 %v1338_v4, %v78_v61 }
  0x35   :  { %1254 = vmatmul.mubr.msk.bf16.gmra.mrb[20].mxu0 %vm321_vm1, %v299_v42  ;;  %v282_v14 = vmax.f32 %v218_v0, 0.0  ;;  %v189_v15 = vadd.f32 %v1343_v5, %v118_v9  ;;  %v150_v16 = vmul.f32 %v1338_v4, %v79_v2  ;;  %v119_v17 = vmul.f32 %v1338_v4, %v48_v3 }
  0x36   :  { %1257 = vmatprep.mubr.msk.bf16.mxu0 %vm321_vm1, %v300_v62  ;;  %v283_v20 = vmax.f32 %v219_v8, 0.0  ;;  %v252_v21 = vmax.f32 %v188_v12, 0.0  ;;  %v220_v22 = vadd.f32 %v1343_v5, %v149_v13  ;;  %v120_v23 = vmul.f32 %v1338_v4, %v49_v10 }
  0x37   :  { %1286 = vmatmul.mubr.msk.bf16.gmra.mrb[20].mxu1 %vm321_vm1, %v315_v52  ;;  %v301_v24 = vpack.c.bf16 %v251_v11, %v250_v7  ;;  %v253_v25 = vmax.f32 %v189_v15, 0.0  ;;  %v221_v26 = vadd.f32 %v1343_v5, %v150_v16  ;;  %v190_v27 = vadd.f32 %v1343_v5, %v119_v17 }
  0x38   :  { %1289 = vmatprep.mubr.msk.bf16.mxu1 %vm321_vm1, %v316_v6  ;;  %v284_v28 = vmax.f32 %v220_v22, 0.0  ;;  %v191_v29 = vadd.f32 %v1343_v5, %v120_v23  ;;  %v151_v30 = vmul.f32 %v1338_v4, %v80_v18  ;;  %v152_v31 = vmul.f32 %v1338_v4, %v81_v19 }
  0x39   :  { %v302_v32 = vpack.c.bf16 %v253_v25, %v252_v21  ;;  %v285_v33 = vmax.f32 %v221_v26, 0.0  ;;  %v317_v34 = vpack.c.bf16 %v283_v20, %v282_v14  ;;  %v254_v38 = vmax.f32 %v190_v27, 0.0 }
  0x3a   :  { %v222_v35 = vadd.f32 %v1343_v5, %v151_v30  ;;  %v223_v36 = vadd.f32 %v1343_v5, %v152_v31  ;;  %v255_v39 = vmax.f32 %v191_v29, 0.0 }
  0x3b   :  { %v318_v37 = vpack.c.bf16 %v285_v33, %v284_v28 }
  0x3c   :  { %v286_v40 = vmax.f32 %v222_v35, 0.0  ;;  %v287_v41 = vmax.f32 %v223_v36, 0.0  ;;  %v303_v4 = vpack.c.bf16 %v255_v39, %v254_v38 }
  0x3d   :  { %1258 = vmatmul.mubr.msk.bf16.gmra.mrb[24].mxu0 %vm321_vm1, %v301_v24 }
  0x3e   :  { %1261 = vmatprep.mubr.msk.bf16.mxu0 %vm321_vm1, %v302_v32  ;;  %v319_v42 = vpack.c.bf16 %v287_v41, %v286_v40 }
  0x3f   :  { %1290 = vmatmul.mubr.msk.bf16.gmra.mrb[24].mxu1 %vm321_vm1, %v317_v34 }
  0x40   :  { %1293 = vmatprep.mubr.msk.bf16.mxu1 %vm321_vm1, %v318_v37 }
  0x45   :  { %1262 = vmatmul.mubr.msk.bf16.gmra.mrb[28].mxu0 %vm321_vm1, %v303_v4 }
  0x47   :  { %1294 = vmatmul.mubr.msk.bf16.gmra.mrb[28].mxu1 %vm321_vm1, %v319_v42 }
  0xe0   :  { %v1235_v5 = vpop.f32.mrb[0].mxu0 }
  0xe1   :  { %v1136_v43 = vpack.c.bf16 %v1235_v5, %v1235_v5  ;;  %v456_v44 = vpop.f32.mrb[1].mxu0 }
  0xe2   :  { %v1267_v45 = vpop.f32.mrb[0].mxu1  ;;  %v1134_v46 = vpack.c.bf16 %v456_v44, %v456_v44  ;;  %v1236_v47 = vpop.f32.mrb[2].mxu0 }
  0xe3   :  { %970 = vst.msk [vmem:[%s1951_s4 + $0x8] sm:$0xf] %vm967_vm2, %v1136_v43  ;;  %v1168_v48 = vpack.c.bf16 %v1267_v45, %v1267_v45  ;;  %v584_v49 = vpop.f32.mrb[1].mxu1  ;;  %v1137_v50 = vpack.c.bf16 %v1236_v47, %v1236_v47  ;;  %v459_v51 = vpop.f32.mrb[3].mxu0 }
  0xe4   :  { %968 = vst.msk [vmem:[%s1951_s4] sm:$0xf] %vm967_vm2, %v1134_v46  ;;  %v1166_v52 = vpack.c.bf16 %v584_v49, %v584_v49  ;;  %v1268_v53 = vpop.f32.mrb[2].mxu1  ;;  %v1135_v54 = vpack.c.bf16 %v459_v51, %v459_v51 }
  0xe5   :  { %1002 = vst.msk [vmem:[%s1951_s4 + $0x88] sm:$0xf] %vm967_vm2, %v1168_v48  ;;  %971 = vst.msk [vmem:[%s1951_s4 + $0xc] sm:$0xf] %vm967_vm2, %v1137_v50  ;;  %v1169_v55 = vpack.c.bf16 %v1268_v53, %v1268_v53  ;;  %v587_v56 = vpop.f32.mrb[3].mxu1 }
  0xe6   :  { %1000 = vst.msk [vmem:[%s1951_s4 + $0x80] sm:$0xf] %vm967_vm2, %v1166_v52  ;;  %969 = vst.msk [vmem:[%s1951_s4 + $0x4] sm:$0xf] %vm967_vm2, %v1135_v54  ;;  %v1167_v57 = vpack.c.bf16 %v587_v56, %v587_v56 }
  0xe7   :  { %1003 = vst.msk [vmem:[%s1951_s4 + $0x8c] sm:$0xf] %vm967_vm2, %v1169_v55 }
  0xe8   :  { %1001 = vst.msk [vmem:[%s1951_s4 + $0x84] sm:$0xf] %vm967_vm2, %v1167_v57  ;;  %v1239_v58 = vpop.f32.mrb[4].mxu0 }
  0xe9   :  { %v1140_v59 = vpack.c.bf16 %v1239_v58, %v1239_v58  ;;  %v472_v60 = vpop.f32.mrb[5].mxu0 }
  0xea   :  { %v1271_v61 = vpop.f32.mrb[4].mxu1  ;;  %v1138_v62 = vpack.c.bf16 %v472_v60, %v472_v60  ;;  %v1240_v63 = vpop.f32.mrb[6].mxu0 }
  0xeb   :  { %974 = vst.msk [vmem:[%s1951_s4 + $0x18] sm:$0xf] %vm967_vm2, %v1140_v59  ;;  %v1172_v0 = vpack.c.bf16 %v1271_v61, %v1271_v61  ;;  %v600_v1 = vpop.f32.mrb[5].mxu1  ;;  %v1141_v2 = vpack.c.bf16 %v1240_v63, %v1240_v63  ;;  %v475_v3 = vpop.f32.mrb[7].mxu0 }
  0xec   :  { %972 = vst.msk [vmem:[%s1951_s4 + $0x10] sm:$0xf] %vm967_vm2, %v1138_v62  ;;  %v1170_v6 = vpack.c.bf16 %v600_v1, %v600_v1  ;;  %v1272_v7 = vpop.f32.mrb[6].mxu1  ;;  %v1139_v8 = vpack.c.bf16 %v475_v3, %v475_v3 }
  0xed   :  { %1006 = vst.msk [vmem:[%s1951_s4 + $0x98] sm:$0xf] %vm967_vm2, %v1172_v0  ;;  %975 = vst.msk [vmem:[%s1951_s4 + $0x1c] sm:$0xf] %vm967_vm2, %v1141_v2  ;;  %v1173_v9 = vpack.c.bf16 %v1272_v7, %v1272_v7  ;;  %v603_v10 = vpop.f32.mrb[7].mxu1 }
  0xee   :  { %1004 = vst.msk [vmem:[%s1951_s4 + $0x90] sm:$0xf] %vm967_vm2, %v1170_v6  ;;  %973 = vst.msk [vmem:[%s1951_s4 + $0x14] sm:$0xf] %vm967_vm2, %v1139_v8  ;;  %v1171_v11 = vpack.c.bf16 %v603_v10, %v603_v10 }
  0xef   :  { %1007 = vst.msk [vmem:[%s1951_s4 + $0x9c] sm:$0xf] %vm967_vm2, %v1173_v9 }
  0xf0   :  { %1005 = vst.msk [vmem:[%s1951_s4 + $0x94] sm:$0xf] %vm967_vm2, %v1171_v11  ;;  %v1243_v12 = vpop.f32.mrb[8].mxu0 }
  0xf1   :  { %v1144_v13 = vpack.c.bf16 %v1243_v12, %v1243_v12  ;;  %v488_v14 = vpop.f32.mrb[9].mxu0 }
  0xf2   :  { %v1275_v15 = vpop.f32.mrb[8].mxu1  ;;  %v1142_v16 = vpack.c.bf16 %v488_v14, %v488_v14  ;;  %v1244_v17 = vpop.f32.mrb[10].mxu0 }
  0xf3   :  { %978 = vst.msk [vmem:[%s1951_s4 + $0x28] sm:$0xf] %vm967_vm2, %v1144_v13  ;;  %v1176_v18 = vpack.c.bf16 %v1275_v15, %v1275_v15  ;;  %v616_v19 = vpop.f32.mrb[9].mxu1  ;;  %v1145_v20 = vpack.c.bf16 %v1244_v17, %v1244_v17  ;;  %v491_v21 = vpop.f32.mrb[11].mxu0 }
  0xf4   :  { %976 = vst.msk [vmem:[%s1951_s4 + $0x20] sm:$0xf] %vm967_vm2, %v1142_v16  ;;  %v1174_v22 = vpack.c.bf16 %v616_v19, %v616_v19  ;;  %v1276_v23 = vpop.f32.mrb[10].mxu1  ;;  %v1143_v24 = vpack.c.bf16 %v491_v21, %v491_v21 }
  0xf5   :  { %1010 = vst.msk [vmem:[%s1951_s4 + $0xa8] sm:$0xf] %vm967_vm2, %v1176_v18  ;;  %979 = vst.msk [vmem:[%s1951_s4 + $0x2c] sm:$0xf] %vm967_vm2, %v1145_v20  ;;  %v1177_v25 = vpack.c.bf16 %v1276_v23, %v1276_v23  ;;  %v619_v26 = vpop.f32.mrb[11].mxu1 }
  0xf6   :  { %1008 = vst.msk [vmem:[%s1951_s4 + $0xa0] sm:$0xf] %vm967_vm2, %v1174_v22  ;;  %977 = vst.msk [vmem:[%s1951_s4 + $0x24] sm:$0xf] %vm967_vm2, %v1143_v24  ;;  %v1175_v27 = vpack.c.bf16 %v619_v26, %v619_v26 }
  0xf7   :  { %1011 = vst.msk [vmem:[%s1951_s4 + $0xac] sm:$0xf] %vm967_vm2, %v1177_v25 }
  0xf8   :  { %1009 = vst.msk [vmem:[%s1951_s4 + $0xa4] sm:$0xf] %vm967_vm2, %v1175_v27  ;;  %v1247_v28 = vpop.f32.mrb[12].mxu0 }
  0xf9   :  { %v1148_v29 = vpack.c.bf16 %v1247_v28, %v1247_v28  ;;  %v504_v30 = vpop.f32.mrb[13].mxu0 }
  0xfa   :  { %v1279_v31 = vpop.f32.mrb[12].mxu1  ;;  %v1146_v32 = vpack.c.bf16 %v504_v30, %v504_v30  ;;  %v1248_v33 = vpop.f32.mrb[14].mxu0 }
  0xfb   :  { %982 = vst.msk [vmem:[%s1951_s4 + $0x38] sm:$0xf] %vm967_vm2, %v1148_v29  ;;  %v1180_v34 = vpack.c.bf16 %v1279_v31, %v1279_v31  ;;  %v632_v35 = vpop.f32.mrb[13].mxu1  ;;  %v1149_v36 = vpack.c.bf16 %v1248_v33, %v1248_v33  ;;  %v507_v37 = vpop.f32.mrb[15].mxu0 }
  0xfc   :  { %980 = vst.msk [vmem:[%s1951_s4 + $0x30] sm:$0xf] %vm967_vm2, %v1146_v32  ;;  %v1178_v38 = vpack.c.bf16 %v632_v35, %v632_v35  ;;  %v1280_v39 = vpop.f32.mrb[14].mxu1  ;;  %v1147_v40 = vpack.c.bf16 %v507_v37, %v507_v37 }
  0xfd   :  { %1014 = vst.msk [vmem:[%s1951_s4 + $0xb8] sm:$0xf] %vm967_vm2, %v1180_v34  ;;  %983 = vst.msk [vmem:[%s1951_s4 + $0x3c] sm:$0xf] %vm967_vm2, %v1149_v36  ;;  %v1181_v41 = vpack.c.bf16 %v1280_v39, %v1280_v39  ;;  %v635_v4 = vpop.f32.mrb[15].mxu1 }
  0xfe   :  { %1012 = vst.msk [vmem:[%s1951_s4 + $0xb0] sm:$0xf] %vm967_vm2, %v1178_v38  ;;  %981 = vst.msk [vmem:[%s1951_s4 + $0x34] sm:$0xf] %vm967_vm2, %v1147_v40  ;;  %v1179_v42 = vpack.c.bf16 %v635_v4, %v635_v4 }
  0xff   :  { %1015 = vst.msk [vmem:[%s1951_s4 + $0xbc] sm:$0xf] %vm967_vm2, %v1181_v41 }
 0x100   :  { %1013 = vst.msk [vmem:[%s1951_s4 + $0xb4] sm:$0xf] %vm967_vm2, %v1179_v42  ;;  %v1251_v5 = vpop.f32.mrb[16].mxu0 }
 0x101   :  { %v1152_v43 = vpack.c.bf16 %v1251_v5, %v1251_v5  ;;  %v520_v44 = vpop.f32.mrb[17].mxu0 }
 0x102   :  { %v1283_v45 = vpop.f32.mrb[16].mxu1  ;;  %v1150_v46 = vpack.c.bf16 %v520_v44, %v520_v44  ;;  %v1252_v47 = vpop.f32.mrb[18].mxu0 }
 0x103   :  { %986 = vst.msk [vmem:[%s1951_s4 + $0x48] sm:$0xf] %vm967_vm2, %v1152_v43  ;;  %v1184_v48 = vpack.c.bf16 %v1283_v45, %v1283_v45  ;;  %v648_v49 = vpop.f32.mrb[17].mxu1  ;;  %v1153_v50 = vpack.c.bf16 %v1252_v47, %v1252_v47  ;;  %v523_v51 = vpop.f32.mrb[19].mxu0 }
 0x104   :  { %984 = vst.msk [vmem:[%s1951_s4 + $0x40] sm:$0xf] %vm967_vm2, %v1150_v46  ;;  %v1182_v52 = vpack.c.bf16 %v648_v49, %v648_v49  ;;  %v1284_v53 = vpop.f32.mrb[18].mxu1  ;;  %v1151_v54 = vpack.c.bf16 %v523_v51, %v523_v51 }
 0x105   :  { %1018 = vst.msk [vmem:[%s1951_s4 + $0xc8] sm:$0xf] %vm967_vm2, %v1184_v48  ;;  %987 = vst.msk [vmem:[%s1951_s4 + $0x4c] sm:$0xf] %vm967_vm2, %v1153_v50  ;;  %v1185_v55 = vpack.c.bf16 %v1284_v53, %v1284_v53  ;;  %v651_v56 = vpop.f32.mrb[19].mxu1 }
 0x106   :  { %1016 = vst.msk [vmem:[%s1951_s4 + $0xc0] sm:$0xf] %vm967_vm2, %v1182_v52  ;;  %985 = vst.msk [vmem:[%s1951_s4 + $0x44] sm:$0xf] %vm967_vm2, %v1151_v54  ;;  %v1183_v57 = vpack.c.bf16 %v651_v56, %v651_v56 }
 0x107   :  { %1019 = vst.msk [vmem:[%s1951_s4 + $0xcc] sm:$0xf] %vm967_vm2, %v1185_v55 }
 0x108   :  { %1017 = vst.msk [vmem:[%s1951_s4 + $0xc4] sm:$0xf] %vm967_vm2, %v1183_v57  ;;  %v1255_v58 = vpop.f32.mrb[20].mxu0 }
 0x109   :  { %v1156_v59 = vpack.c.bf16 %v1255_v58, %v1255_v58  ;;  %v536_v60 = vpop.f32.mrb[21].mxu0 }
 0x10a   :  { %v1287_v61 = vpop.f32.mrb[20].mxu1  ;;  %v1154_v62 = vpack.c.bf16 %v536_v60, %v536_v60  ;;  %v1256_v63 = vpop.f32.mrb[22].mxu0 }
 0x10b   :  { %990 = vst.msk [vmem:[%s1951_s4 + $0x58] sm:$0xf] %vm967_vm2, %v1156_v59  ;;  %v1188_v0 = vpack.c.bf16 %v1287_v61, %v1287_v61  ;;  %v664_v1 = vpop.f32.mrb[21].mxu1  ;;  %v1157_v2 = vpack.c.bf16 %v1256_v63, %v1256_v63  ;;  %v539_v3 = vpop.f32.mrb[23].mxu0 }
 0x10c   :  { %988 = vst.msk [vmem:[%s1951_s4 + $0x50] sm:$0xf] %vm967_vm2, %v1154_v62  ;;  %v1186_v6 = vpack.c.bf16 %v664_v1, %v664_v1  ;;  %v1288_v7 = vpop.f32.mrb[22].mxu1  ;;  %v1155_v8 = vpack.c.bf16 %v539_v3, %v539_v3 }
 0x10d   :  { %1022 = vst.msk [vmem:[%s1951_s4 + $0xd8] sm:$0xf] %vm967_vm2, %v1188_v0  ;;  %991 = vst.msk [vmem:[%s1951_s4 + $0x5c] sm:$0xf] %vm967_vm2, %v1157_v2  ;;  %v1189_v9 = vpack.c.bf16 %v1288_v7, %v1288_v7  ;;  %v667_v10 = vpop.f32.mrb[23].mxu1 }
 0x10e   :  { %1020 = vst.msk [vmem:[%s1951_s4 + $0xd0] sm:$0xf] %vm967_vm2, %v1186_v6  ;;  %989 = vst.msk [vmem:[%s1951_s4 + $0x54] sm:$0xf] %vm967_vm2, %v1155_v8  ;;  %v1187_v11 = vpack.c.bf16 %v667_v10, %v667_v10 }
 0x10f   :  { %1023 = vst.msk [vmem:[%s1951_s4 + $0xdc] sm:$0xf] %vm967_vm2, %v1189_v9 }
 0x110   :  { %1021 = vst.msk [vmem:[%s1951_s4 + $0xd4] sm:$0xf] %vm967_vm2, %v1187_v11  ;;  %v1259_v12 = vpop.f32.mrb[24].mxu0 }
 0x111   :  { %v1160_v13 = vpack.c.bf16 %v1259_v12, %v1259_v12  ;;  %v552_v14 = vpop.f32.mrb[25].mxu0 }
 0x112   :  { %v1291_v15 = vpop.f32.mrb[24].mxu1  ;;  %v1158_v16 = vpack.c.bf16 %v552_v14, %v552_v14  ;;  %v1260_v17 = vpop.f32.mrb[26].mxu0 }
 0x113   :  { %994 = vst.msk [vmem:[%s1951_s4 + $0x68] sm:$0xf] %vm967_vm2, %v1160_v13  ;;  %v1192_v18 = vpack.c.bf16 %v1291_v15, %v1291_v15  ;;  %v680_v19 = vpop.f32.mrb[25].mxu1  ;;  %v1161_v20 = vpack.c.bf16 %v1260_v17, %v1260_v17  ;;  %v555_v21 = vpop.f32.mrb[27].mxu0 }
 0x114   :  { %992 = vst.msk [vmem:[%s1951_s4 + $0x60] sm:$0xf] %vm967_vm2, %v1158_v16  ;;  %v1190_v22 = vpack.c.bf16 %v680_v19, %v680_v19  ;;  %v1292_v23 = vpop.f32.mrb[26].mxu1  ;;  %v1159_v24 = vpack.c.bf16 %v555_v21, %v555_v21 }
 0x115   :  { %1026 = vst.msk [vmem:[%s1951_s4 + $0xe8] sm:$0xf] %vm967_vm2, %v1192_v18  ;;  %995 = vst.msk [vmem:[%s1951_s4 + $0x6c] sm:$0xf] %vm967_vm2, %v1161_v20  ;;  %v1193_v25 = vpack.c.bf16 %v1292_v23, %v1292_v23  ;;  %v683_v26 = vpop.f32.mrb[27].mxu1 }
 0x116   :  { %1024 = vst.msk [vmem:[%s1951_s4 + $0xe0] sm:$0xf] %vm967_vm2, %v1190_v22  ;;  %993 = vst.msk [vmem:[%s1951_s4 + $0x64] sm:$0xf] %vm967_vm2, %v1159_v24  ;;  %v1191_v27 = vpack.c.bf16 %v683_v26, %v683_v26 }
 0x117   :  { %1027 = vst.msk [vmem:[%s1951_s4 + $0xec] sm:$0xf] %vm967_vm2, %v1193_v25 }
 0x118   :  { %1025 = vst.msk [vmem:[%s1951_s4 + $0xe4] sm:$0xf] %vm967_vm2, %v1191_v27  ;;  %v1263_v28 = vpop.f32.mrb[28].mxu0 }
 0x119   :  { %v1164_v29 = vpack.c.bf16 %v1263_v28, %v1263_v28  ;;  %v568_v30 = vpop.f32.mrb[29].mxu0 }
 0x11a   :  { %v1295_v31 = vpop.f32.mrb[28].mxu1  ;;  %v1162_v32 = vpack.c.bf16 %v568_v30, %v568_v30  ;;  %v1264_v33 = vpop.f32.mrb[30].mxu0 }
 0x11b   :  { %998 = vst.msk [vmem:[%s1951_s4 + $0x78] sm:$0xf] %vm967_vm2, %v1164_v29  ;;  %v1196_v34 = vpack.c.bf16 %v1295_v31, %v1295_v31  ;;  %v696_v35 = vpop.f32.mrb[29].mxu1  ;;  %v1165_v36 = vpack.c.bf16 %v1264_v33, %v1264_v33  ;;  %v571_v37 = vpop.f32.mrb[31].mxu0 }
 0x11c   :  { %996 = vst.msk [vmem:[%s1951_s4 + $0x70] sm:$0xf] %vm967_vm2, %v1162_v32  ;;  %v1194_v38 = vpack.c.bf16 %v696_v35, %v696_v35  ;;  %v1296_v39 = vpop.f32.mrb[30].mxu1  ;;  %v1163_v40 = vpack.c.bf16 %v571_v37, %v571_v37 }
 0x11d   :  { %1030 = vst.msk [vmem:[%s1951_s4 + $0xf8] sm:$0xf] %vm967_vm2, %v1196_v34  ;;  %999 = vst.msk [vmem:[%s1951_s4 + $0x7c] sm:$0xf] %vm967_vm2, %v1165_v36  ;;  %v1197_v41 = vpack.c.bf16 %v1296_v39, %v1296_v39  ;;  %v699_v4 = vpop.f32.mrb[31].mxu1 }
 0x11e   :  { %1028 = vst.msk [vmem:[%s1951_s4 + $0xf0] sm:$0xf] %vm967_vm2, %v1194_v38  ;;  %997 = vst.msk [vmem:[%s1951_s4 + $0x74] sm:$0xf] %vm967_vm2, %v1163_v40  ;;  %v1195_v42 = vpack.c.bf16 %v699_v4, %v699_v4 }
 0x11f   :  { %1031 = vst.msk [vmem:[%s1951_s4 + $0xfc] sm:$0xf] %vm967_vm2, %v1197_v41 }
 0x120   :  { %1029 = vst.msk [vmem:[%s1951_s4 + $0xf4] sm:$0xf] %vm967_vm2, %v1195_v42 }

// kernel: preact_bottleneck.7
= control target key start
LH: loop header
LB: loop body
LE: loop exit
PB: predicated region body
PF: predicated region fallthrough
CT: control target
= control target key end

     0   :  { %vm613_vm0 = vcmask 1041408   ;;  %vm516_vm1 = vcmask 31744   ;;  %vm906_vm2 = vcmask 130048   ;;  %s2081_s3 = inlined_call_operand.vmem [shape: bf16[4,16], index: 3, kind: input, shape index: {}]   ;;  %s2082_s0 = inlined_call_operand.vmem [shape: bf16[512,4], index: 0, kind: input, shape index: {}]   ;;  %s2083_s1 = inlined_call_operand.vmem [shape: f32[1,4], index: 1, kind: input, shape index: {}]   ;;  %s2084_s2 = inlined_call_operand.vmem [shape: f32[1,4], index: 2, kind: input, shape index: {}]   ;;  %s2085_s4 = inlined_call_operand.vmem [shape: bf16[512,16], index: 4, kind: input, shape index: {}]   ;;  %s2086_s5 = inlined_call_operand.vmem [shape: f32[512,16], index: 5, kind: output, shape index: {}]  }
   0x1   :  { %v387_v0 = vld [vmem:[%s2081_s3] sm:$0x3]  ;;  %v1265_v7 = vld [vmem:[%s2082_s0 + $0x8] sm:$0xff]   ;;  %v1266_v30 = vld [vmem:[%s2082_s0 + $0x10] sm:$0xff]  }
   0x2   :  { %v1010_v1 = vld [vmem:[%s2082_s0] sm:$0xff]   ;;  %1428 = vmatprep.subr.msk.bf16.mxu0 %vm613_vm0, %v387_v0  ;;  %1429 = vmatprep.subr.msk.bf16.mxu1 %vm613_vm0, %v387_v0  ;;  %v615_v3 = vsel %vm613_vm0, %v387_v0, 0  ;;  %v1015_v11 = vunpack.c.l.bf16 %v1265_v7  ;;  %v1016_v12 = vunpack.c.h.bf16 %v1265_v7  ;;  %v1281_v13 = vld [vmem:[%s2082_s0 + $0x88] sm:$0xff]   ;;  %v1282_v35 = vld [vmem:[%s2082_s0 + $0x90] sm:$0xff]   ;;  %v1019_v44 = vunpack.c.l.bf16 %v1266_v30 }
   0x3   :  { %v1469_v2 = vld [vmem:[%s2083_s1] ss:$0 sm:$0xff]  ;;  %v1011_v4 = vunpack.c.l.bf16 %v1010_v1  ;;  %v1012_v5 = vunpack.c.h.bf16 %v1010_v1  ;;  %1361 = vmatpush3.bf16.msra.mxu0 %v615_v3  ;;  %1427 = vmatpush3.bf16.msra.mxu1 %v615_v3  ;;  %v1079_v16 = vunpack.c.l.bf16 %v1281_v13  ;;  %v1080_v17 = vunpack.c.h.bf16 %v1281_v13  ;;  %v1267_v40 = vld [vmem:[%s2082_s0 + $0x18] sm:$0xff]  }
   0x4   :  { %v1280_v6 = vld [vmem:[%s2082_s0 + $0x80] sm:$0xff]   ;;  %v158_v20 = vmul.f32 %v1015_v11, %v1469_v2  ;;  %v159_v21 = vmul.f32 %v1016_v12, %v1469_v2  ;;  %v1283_v45 = vld [vmem:[%s2082_s0 + $0x98] sm:$0xff]   ;;  %v1020_v48 = vunpack.c.h.bf16 %v1266_v30  ;;  %v1083_v49 = vunpack.c.l.bf16 %v1282_v35 }
   0x5   :  { %v1480_v8 = vld [vmem:[%s2084_s2] ss:$0 sm:$0xff]  ;;  %v1075_v9 = vunpack.c.l.bf16 %v1280_v6  ;;  %v1076_v10 = vunpack.c.h.bf16 %v1280_v6  ;;  %v156_v14 = vmul.f32 %v1011_v4, %v1469_v2  ;;  %v157_v15 = vmul.f32 %v1012_v5, %v1469_v2 }
   0x6   :  { %v190_v24 = vmul.f32 %v1079_v16, %v1469_v2  ;;  %v191_v25 = vmul.f32 %v1080_v17, %v1469_v2  ;;  %v229_v28 = vadd.f32 %v1480_v8, %v158_v20  ;;  %v230_v29 = vadd.f32 %v1480_v8, %v159_v21  ;;  %v1268_v3 = vld [vmem:[%s2082_s0 + $0x20] sm:$0xff]  }
   0x7   :  { %v188_v18 = vmul.f32 %v1075_v9, %v1469_v2  ;;  %v189_v19 = vmul.f32 %v1076_v10, %v1469_v2  ;;  %v227_v22 = vadd.f32 %v1480_v8, %v156_v14  ;;  %v228_v23 = vadd.f32 %v1480_v8, %v157_v15  ;;  %v1284_v13 = vld [vmem:[%s2082_s0 + $0xa0] sm:$0xff]  }
   0x8   :  { %v261_v33 = vadd.f32 %v1480_v8, %v190_v24  ;;  %v262_v34 = vadd.f32 %v1480_v8, %v191_v25  ;;  %v293_v38 = vmax.f32 %v229_v28, 0.0  ;;  %v294_v39 = vmax.f32 %v230_v29, 0.0 }
   0x9   :  { %v259_v26 = vadd.f32 %v1480_v8, %v188_v18  ;;  %v260_v27 = vadd.f32 %v1480_v8, %v189_v19  ;;  %v291_v31 = vmax.f32 %v227_v22, 0.0  ;;  %v292_v32 = vmax.f32 %v228_v23, 0.0  ;;  %v1269_v18 = vld [vmem:[%s2082_s0 + $0x28] sm:$0xff]  }
   0xa   :  { %v325_v42 = vmax.f32 %v261_v33, 0.0  ;;  %v326_v43 = vmax.f32 %v262_v34, 0.0  ;;  %v356_v47 = vpack.c.bf16 %v294_v39, %v293_v38  ;;  %v160_v51 = vmul.f32 %v1019_v44, %v1469_v2 }
   0xb   :  { %v323_v36 = vmax.f32 %v259_v26, 0.0  ;;  %v324_v37 = vmax.f32 %v260_v27, 0.0  ;;  %v355_v41 = vpack.c.bf16 %v292_v32, %v291_v31  ;;  %v1084_v52 = vunpack.c.h.bf16 %v1282_v35  ;;  %v1285_v27 = vld [vmem:[%s2082_s0 + $0xa8] sm:$0xff]  }
   0xc   :  { %v372_v50 = vpack.c.bf16 %v326_v43, %v325_v42  ;;  %v1023_v53 = vunpack.c.l.bf16 %v1267_v40  ;;  %v161_v54 = vmul.f32 %v1020_v48, %v1469_v2  ;;  %v192_v55 = vmul.f32 %v1083_v49, %v1469_v2 }
   0xd   :  { %v371_v46 = vpack.c.bf16 %v324_v37, %v323_v36  ;;  %1362 = vmatprep.mubr.msk.bf16.mxu0 %vm516_vm1, %v355_v41  ;;  %v1024_v56 = vunpack.c.h.bf16 %v1267_v40  ;;  %v1087_v57 = vunpack.c.l.bf16 %v1283_v45  ;;  %v231_v58 = vadd.f32 %v1480_v8, %v160_v51  ;;  %v1270_v40 = vld [vmem:[%s2082_s0 + $0x30] sm:$0xff]  }
   0xe   :  { %1363 = vmatmul.mubr.msk.bf16.vlgmr.msra.gmra.mrb[0].mxu0 %vm516_vm1, %v356_v47  ;;  %v193_v59 = vmul.f32 %v1084_v52, %v1469_v2  ;;  %v162_v60 = vmul.f32 %v1023_v53, %v1469_v2  ;;  %v1088_v61 = vunpack.c.h.bf16 %v1283_v45  ;;  %v232_v62 = vadd.f32 %v1480_v8, %v161_v54  ;;  %v1286_v53 = vld [vmem:[%s2082_s0 + $0xb0] sm:$0xff]  }
   0xf   :  { %1394 = vmatprep.mubr.msk.bf16.mxu1 %vm516_vm1, %v371_v46  ;;  %v263_v63 = vadd.f32 %v1480_v8, %v192_v55  ;;  %v163_v0 = vmul.f32 %v1024_v56, %v1469_v2  ;;  %v194_v1 = vmul.f32 %v1087_v57, %v1469_v2  ;;  %v295_v4 = vmax.f32 %v231_v58, 0.0 }
  0x10   :  { %1395 = vmatmul.mubr.msk.bf16.vlgmr.msra.gmra.mrb[0].mxu1 %vm516_vm1, %v372_v50  ;;  %v264_v5 = vadd.f32 %v1480_v8, %v193_v59  ;;  %v233_v6 = vadd.f32 %v1480_v8, %v162_v60  ;;  %v195_v7 = vmul.f32 %v1088_v61, %v1469_v2  ;;  %v296_v9 = vmax.f32 %v232_v62, 0.0  ;;  %v1271_v62 = vld [vmem:[%s2082_s0 + $0x38] sm:$0xff]  }
  0x11   :  { %v327_v10 = vmax.f32 %v263_v63, 0.0  ;;  %v234_v11 = vadd.f32 %v1480_v8, %v163_v0  ;;  %v265_v12 = vadd.f32 %v1480_v8, %v194_v1  ;;  %v1027_v17 = vunpack.c.l.bf16 %v1268_v3 }
  0x12   :  { %v328_v14 = vmax.f32 %v264_v5, 0.0  ;;  %v297_v15 = vmax.f32 %v233_v6, 0.0  ;;  %v266_v16 = vadd.f32 %v1480_v8, %v195_v7  ;;  %v357_v19 = vpack.c.bf16 %v296_v9, %v295_v4  ;;  %v1287_v4 = vld [vmem:[%s2082_s0 + $0xb8] sm:$0xff]  }
  0x13   :  { %v298_v20 = vmax.f32 %v234_v11, 0.0  ;;  %v329_v21 = vmax.f32 %v265_v12, 0.0  ;;  %v1028_v22 = vunpack.c.h.bf16 %v1268_v3  ;;  %v164_v25 = vmul.f32 %v1027_v17, %v1469_v2 }
  0x14   :  { %v373_v23 = vpack.c.bf16 %v328_v14, %v327_v10  ;;  %v330_v24 = vmax.f32 %v266_v16, 0.0  ;;  %v1091_v26 = vunpack.c.l.bf16 %v1284_v13  ;;  %1366 = vmatprep.mubr.msk.bf16.mxu0 %vm516_vm1, %v357_v19  ;;  %v1092_v30 = vunpack.c.h.bf16 %v1284_v13  ;;  %v1272_v14 = vld [vmem:[%s2082_s0 + $0x40] sm:$0xff]  }
  0x15   :  { %v358_v28 = vpack.c.bf16 %v298_v20, %v297_v15  ;;  %v165_v29 = vmul.f32 %v1028_v22, %v1469_v2  ;;  %v1031_v31 = vunpack.c.l.bf16 %v1269_v18  ;;  %v235_v33 = vadd.f32 %v1480_v8, %v164_v25 }
  0x16   :  { %1398 = vmatprep.mubr.msk.bf16.mxu1 %vm516_vm1, %v373_v23  ;;  %v374_v32 = vpack.c.bf16 %v330_v24, %v329_v21  ;;  %v196_v34 = vmul.f32 %v1091_v26, %v1469_v2  ;;  %v1032_v35 = vunpack.c.h.bf16 %v1269_v18  ;;  %v197_v37 = vmul.f32 %v1092_v30, %v1469_v2 }
  0x17   :  { %1367 = vmatmul.mubr.msk.bf16.gmra.mrb[4].mxu0 %vm516_vm1, %v358_v28  ;;  %v236_v36 = vadd.f32 %v1480_v8, %v165_v29  ;;  %v166_v38 = vmul.f32 %v1031_v31, %v1469_v2  ;;  %v1095_v39 = vunpack.c.l.bf16 %v1285_v27  ;;  %v299_v41 = vmax.f32 %v235_v33, 0.0  ;;  %v1288_v31 = vld [vmem:[%s2082_s0 + $0xc0] sm:$0xff]  }
  0x18   :  { %1399 = vmatmul.mubr.msk.bf16.gmra.mrb[4].mxu1 %vm516_vm1, %v374_v32  ;;  %v267_v42 = vadd.f32 %v1480_v8, %v196_v34  ;;  %v167_v43 = vmul.f32 %v1032_v35, %v1469_v2  ;;  %v1096_v44 = vunpack.c.h.bf16 %v1285_v27  ;;  %v268_v46 = vadd.f32 %v1480_v8, %v197_v37 }
  0x19   :  { %v300_v45 = vmax.f32 %v236_v36, 0.0  ;;  %v237_v47 = vadd.f32 %v1480_v8, %v166_v38  ;;  %v198_v48 = vmul.f32 %v1095_v39, %v1469_v2  ;;  %v1035_v52 = vunpack.c.l.bf16 %v1270_v40  ;;  %v1273_v36 = vld [vmem:[%s2082_s0 + $0x48] sm:$0xff]  }
  0x1a   :  { %v331_v49 = vmax.f32 %v267_v42, 0.0  ;;  %v238_v50 = vadd.f32 %v1480_v8, %v167_v43  ;;  %v199_v51 = vmul.f32 %v1096_v44, %v1469_v2  ;;  %v332_v55 = vmax.f32 %v268_v46, 0.0 }
  0x1b   :  { %v359_v54 = vpack.c.bf16 %v300_v45, %v299_v41  ;;  %v301_v56 = vmax.f32 %v237_v47, 0.0  ;;  %v269_v57 = vadd.f32 %v1480_v8, %v198_v48  ;;  %v1036_v60 = vunpack.c.h.bf16 %v1270_v40  ;;  %v1289_v45 = vld [vmem:[%s2082_s0 + $0xc8] sm:$0xff]  }
  0x1c   :  { %v302_v58 = vmax.f32 %v238_v50, 0.0  ;;  %v270_v59 = vadd.f32 %v1480_v8, %v199_v51  ;;  %v168_v61 = vmul.f32 %v1035_v52, %v1469_v2  ;;  %v375_v63 = vpack.c.bf16 %v332_v55, %v331_v49 }
  0x1d   :  { %1370 = vmatprep.mubr.msk.bf16.mxu0 %vm516_vm1, %v359_v54  ;;  %v333_v0 = vmax.f32 %v269_v57, 0.0  ;;  %v1099_v1 = vunpack.c.l.bf16 %v1286_v53  ;;  %v1100_v3 = vunpack.c.h.bf16 %v1286_v53  ;;  %v169_v7 = vmul.f32 %v1036_v60, %v1469_v2 }
  0x1e   :  { %v360_v5 = vpack.c.bf16 %v302_v58, %v301_v56  ;;  %v334_v6 = vmax.f32 %v270_v59, 0.0  ;;  %v239_v9 = vadd.f32 %v1480_v8, %v168_v61  ;;  %1402 = vmatprep.mubr.msk.bf16.mxu1 %vm516_vm1, %v375_v63  ;;  %v1039_v12 = vunpack.c.l.bf16 %v1271_v62  ;;  %v1274_v58 = vld [vmem:[%s2082_s0 + $0x50] sm:$0xff]  }
  0x1f   :  { %v200_v10 = vmul.f32 %v1099_v1, %v1469_v2  ;;  %v201_v11 = vmul.f32 %v1100_v3, %v1469_v2  ;;  %v1040_v13 = vunpack.c.h.bf16 %v1271_v62  ;;  %v240_v16 = vadd.f32 %v1480_v8, %v169_v7 }
  0x20   :  { %1371 = vmatmul.mubr.msk.bf16.gmra.mrb[8].mxu0 %vm516_vm1, %v360_v5  ;;  %v376_v15 = vpack.c.bf16 %v334_v6, %v333_v0  ;;  %v303_v17 = vmax.f32 %v239_v9, 0.0  ;;  %v1103_v18 = vunpack.c.l.bf16 %v1287_v4  ;;  %v170_v21 = vmul.f32 %v1039_v12, %v1469_v2 }
  0x21   :  { %v271_v19 = vadd.f32 %v1480_v8, %v200_v10  ;;  %v272_v20 = vadd.f32 %v1480_v8, %v201_v11  ;;  %v171_v22 = vmul.f32 %v1040_v13, %v1469_v2  ;;  %v304_v23 = vmax.f32 %v240_v16, 0.0 }
  0x22   :  { %1403 = vmatmul.mubr.msk.bf16.gmra.mrb[8].mxu1 %vm516_vm1, %v376_v15  ;;  %v1104_v24 = vunpack.c.h.bf16 %v1287_v4  ;;  %v202_v25 = vmul.f32 %v1103_v18, %v1469_v2  ;;  %v1043_v26 = vunpack.c.l.bf16 %v1272_v14  ;;  %v241_v29 = vadd.f32 %v1480_v8, %v170_v21  ;;  %v1290_v4 = vld [vmem:[%s2082_s0 + $0xd0] sm:$0xff]   ;;  %v1275_v18 = vld [vmem:[%s2082_s0 + $0x58] sm:$0xff]  }
  0x23   :  { %v335_v27 = vmax.f32 %v271_v19, 0.0  ;;  %v336_v28 = vmax.f32 %v272_v20, 0.0  ;;  %v242_v30 = vadd.f32 %v1480_v8, %v171_v22  ;;  %v361_v32 = vpack.c.bf16 %v304_v23, %v303_v17  ;;  %v1291_v23 = vld [vmem:[%s2082_s0 + $0xd8] sm:$0xff]  }
  0x24   :  { %v203_v33 = vmul.f32 %v1104_v24, %v1469_v2  ;;  %v273_v34 = vadd.f32 %v1480_v8, %v202_v25  ;;  %v1044_v35 = vunpack.c.h.bf16 %v1272_v14  ;;  %v305_v38 = vmax.f32 %v241_v29, 0.0 }
  0x25   :  { %v377_v37 = vpack.c.bf16 %v336_v28, %v335_v27  ;;  %v306_v39 = vmax.f32 %v242_v30, 0.0  ;;  %v172_v40 = vmul.f32 %v1043_v26, %v1469_v2  ;;  %1374 = vmatprep.mubr.msk.bf16.mxu0 %vm516_vm1, %v361_v32  ;;  %v1107_v44 = vunpack.c.l.bf16 %v1288_v31 }
  0x26   :  { %v274_v41 = vadd.f32 %v1480_v8, %v203_v33  ;;  %v337_v42 = vmax.f32 %v273_v34, 0.0  ;;  %v173_v43 = vmul.f32 %v1044_v35, %v1469_v2  ;;  %v1108_v48 = vunpack.c.h.bf16 %v1288_v31 }
  0x27   :  { %1406 = vmatprep.mubr.msk.bf16.mxu1 %vm516_vm1, %v377_v37  ;;  %v362_v46 = vpack.c.bf16 %v306_v39, %v305_v38  ;;  %v243_v47 = vadd.f32 %v1480_v8, %v172_v40  ;;  %v1047_v49 = vunpack.c.l.bf16 %v1273_v36  ;;  %v204_v52 = vmul.f32 %v1107_v44, %v1469_v2 }
  0x28   :  { %v338_v50 = vmax.f32 %v274_v41, 0.0  ;;  %v244_v51 = vadd.f32 %v1480_v8, %v173_v43  ;;  %v1048_v53 = vunpack.c.h.bf16 %v1273_v36  ;;  %v205_v55 = vmul.f32 %v1108_v48, %v1469_v2  ;;  %v1276_v36 = vld [vmem:[%s2082_s0 + $0x60] sm:$0xff]  }
  0x29   :  { %1375 = vmatmul.mubr.msk.bf16.gmra.mrb[12].mxu0 %vm516_vm1, %v362_v46  ;;  %v307_v54 = vmax.f32 %v243_v47, 0.0  ;;  %v174_v56 = vmul.f32 %v1047_v49, %v1469_v2  ;;  %v1111_v57 = vunpack.c.l.bf16 %v1289_v45  ;;  %v275_v61 = vadd.f32 %v1480_v8, %v204_v52  ;;  %v1292_v49 = vld [vmem:[%s2082_s0 + $0xe0] sm:$0xff]  }
  0x2a   :  { %v378_v59 = vpack.c.bf16 %v338_v50, %v337_v42  ;;  %v308_v60 = vmax.f32 %v244_v51, 0.0  ;;  %v175_v62 = vmul.f32 %v1048_v53, %v1469_v2  ;;  %v276_v63 = vadd.f32 %v1480_v8, %v205_v55 }
  0x2b   :  { %v245_v0 = vadd.f32 %v1480_v8, %v174_v56  ;;  %v1112_v1 = vunpack.c.h.bf16 %v1289_v45  ;;  %v206_v3 = vmul.f32 %v1111_v57, %v1469_v2  ;;  %v339_v6 = vmax.f32 %v275_v61, 0.0 }
  0x2c   :  { %1407 = vmatmul.mubr.msk.bf16.gmra.mrb[12].mxu1 %vm516_vm1, %v378_v59  ;;  %v363_v5 = vpack.c.bf16 %v308_v60, %v307_v54  ;;  %v246_v7 = vadd.f32 %v1480_v8, %v175_v62  ;;  %v1051_v9 = vunpack.c.l.bf16 %v1274_v58  ;;  %v340_v10 = vmax.f32 %v276_v63, 0.0  ;;  %v1277_v54 = vld [vmem:[%s2082_s0 + $0x68] sm:$0xff]  }
  0x2d   :  { %v309_v11 = vmax.f32 %v245_v0, 0.0  ;;  %v207_v12 = vmul.f32 %v1112_v1, %v1469_v2  ;;  %v277_v13 = vadd.f32 %v1480_v8, %v206_v3  ;;  %v1052_v15 = vunpack.c.h.bf16 %v1274_v58  ;;  %v1293_v63 = vld [vmem:[%s2082_s0 + $0xe8] sm:$0xff]  }
  0x2e   :  { %1378 = vmatprep.mubr.msk.bf16.mxu0 %vm516_vm1, %v363_v5  ;;  %v310_v14 = vmax.f32 %v246_v7, 0.0  ;;  %v176_v16 = vmul.f32 %v1051_v9, %v1469_v2  ;;  %v1115_v17 = vunpack.c.l.bf16 %v1290_v4  ;;  %v379_v19 = vpack.c.bf16 %v340_v10, %v339_v6 }
  0x2f   :  { %v278_v20 = vadd.f32 %v1480_v8, %v207_v12  ;;  %v341_v21 = vmax.f32 %v277_v13, 0.0  ;;  %v1116_v22 = vunpack.c.h.bf16 %v1290_v4  ;;  %v177_v25 = vmul.f32 %v1052_v15, %v1469_v2 }
  0x30   :  { %v364_v24 = vpack.c.bf16 %v310_v14, %v309_v11  ;;  %v247_v26 = vadd.f32 %v1480_v8, %v176_v16  ;;  %v208_v27 = vmul.f32 %v1115_v17, %v1469_v2  ;;  %1410 = vmatprep.mubr.msk.bf16.mxu1 %vm516_vm1, %v379_v19  ;;  %v1055_v30 = vunpack.c.l.bf16 %v1275_v18  ;;  %v1278_v14 = vld [vmem:[%s2082_s0 + $0x70] sm:$0xff]  }
  0x31   :  { %v342_v28 = vmax.f32 %v278_v20, 0.0  ;;  %v209_v29 = vmul.f32 %v1116_v22, %v1469_v2  ;;  %v1056_v31 = vunpack.c.h.bf16 %v1275_v18  ;;  %v248_v32 = vadd.f32 %v1480_v8, %v177_v25 }
  0x32   :  { %1379 = vmatmul.mubr.msk.bf16.gmra.mrb[16].mxu0 %vm516_vm1, %v364_v24  ;;  %v311_v33 = vmax.f32 %v247_v26, 0.0  ;;  %v279_v34 = vadd.f32 %v1480_v8, %v208_v27  ;;  %v1119_v35 = vunpack.c.l.bf16 %v1291_v23  ;;  %v178_v39 = vmul.f32 %v1055_v30, %v1469_v2 }
  0x33   :  { %v380_v37 = vpack.c.bf16 %v342_v28, %v341_v21  ;;  %v280_v38 = vadd.f32 %v1480_v8, %v209_v29  ;;  %v179_v40 = vmul.f32 %v1056_v31, %v1469_v2  ;;  %v312_v41 = vmax.f32 %v248_v32, 0.0 }
  0x34   :  { %v343_v42 = vmax.f32 %v279_v34, 0.0  ;;  %v1120_v43 = vunpack.c.h.bf16 %v1291_v23  ;;  %v210_v44 = vmul.f32 %v1119_v35, %v1469_v2  ;;  %v249_v46 = vadd.f32 %v1480_v8, %v178_v39  ;;  %v1294_v23 = vld [vmem:[%s2082_s0 + $0xf0] sm:$0xff]  }
  0x35   :  { %1411 = vmatmul.mubr.msk.bf16.gmra.mrb[16].mxu1 %vm516_vm1, %v380_v37  ;;  %v344_v45 = vmax.f32 %v280_v38, 0.0  ;;  %v250_v47 = vadd.f32 %v1480_v8, %v179_v40  ;;  %v1059_v48 = vunpack.c.l.bf16 %v1276_v36  ;;  %v365_v50 = vpack.c.bf16 %v312_v41, %v311_v33  ;;  %v1295_v41 = vld [vmem:[%s2082_s0 + $0xf8] sm:$0xff]  }
  0x36   :  { %v211_v51 = vmul.f32 %v1120_v43, %v1469_v2  ;;  %v281_v52 = vadd.f32 %v1480_v8, %v210_v44  ;;  %v1060_v53 = vunpack.c.h.bf16 %v1276_v36  ;;  %v313_v56 = vmax.f32 %v249_v46, 0.0  ;;  %v1279_v36 = vld [vmem:[%s2082_s0 + $0x78] sm:$0xff]  }
  0x37   :  { %v381_v55 = vpack.c.bf16 %v344_v45, %v343_v42  ;;  %v314_v57 = vmax.f32 %v250_v47, 0.0  ;;  %v180_v58 = vmul.f32 %v1059_v48, %v1469_v2  ;;  %1382 = vmatprep.mubr.msk.bf16.mxu0 %vm516_vm1, %v365_v50  ;;  %v1123_v62 = vunpack.c.l.bf16 %v1292_v49 }
  0x38   :  { %v282_v59 = vadd.f32 %v1480_v8, %v211_v51  ;;  %v345_v60 = vmax.f32 %v281_v52, 0.0  ;;  %v181_v61 = vmul.f32 %v1060_v53, %v1469_v2  ;;  %v1124_v3 = vunpack.c.h.bf16 %v1292_v49 }
  0x39   :  { %1414 = vmatprep.mubr.msk.bf16.mxu1 %vm516_vm1, %v381_v55  ;;  %v366_v0 = vpack.c.bf16 %v314_v57, %v313_v56  ;;  %v251_v1 = vadd.f32 %v1480_v8, %v180_v58  ;;  %v1063_v4 = vunpack.c.l.bf16 %v1277_v54  ;;  %v212_v7 = vmul.f32 %v1123_v62, %v1469_v2 }
  0x3a   :  { %v346_v5 = vmax.f32 %v282_v59, 0.0  ;;  %v252_v6 = vadd.f32 %v1480_v8, %v181_v61  ;;  %v1064_v9 = vunpack.c.h.bf16 %v1277_v54  ;;  %v213_v11 = vmul.f32 %v1124_v3, %v1469_v2 }
  0x3b   :  { %1383 = vmatmul.mubr.msk.bf16.gmra.mrb[20].mxu0 %vm516_vm1, %v366_v0  ;;  %v315_v10 = vmax.f32 %v251_v1, 0.0  ;;  %v182_v12 = vmul.f32 %v1063_v4, %v1469_v2  ;;  %v1127_v13 = vunpack.c.l.bf16 %v1293_v63  ;;  %v283_v17 = vadd.f32 %v1480_v8, %v212_v7 }
  0x3c   :  { %v382_v15 = vpack.c.bf16 %v346_v5, %v345_v60  ;;  %v316_v16 = vmax.f32 %v252_v6, 0.0  ;;  %v183_v18 = vmul.f32 %v1064_v9, %v1469_v2  ;;  %v284_v19 = vadd.f32 %v1480_v8, %v213_v11 }
  0x3d   :  { %v253_v20 = vadd.f32 %v1480_v8, %v182_v12  ;;  %v1128_v21 = vunpack.c.h.bf16 %v1293_v63  ;;  %v214_v22 = vmul.f32 %v1127_v13, %v1469_v2  ;;  %v347_v25 = vmax.f32 %v283_v17, 0.0 }
  0x3e   :  { %1415 = vmatmul.mubr.msk.bf16.gmra.mrb[20].mxu1 %vm516_vm1, %v382_v15  ;;  %v367_v24 = vpack.c.bf16 %v316_v16, %v315_v10  ;;  %v254_v26 = vadd.f32 %v1480_v8, %v183_v18  ;;  %v1067_v27 = vunpack.c.l.bf16 %v1278_v14  ;;  %v348_v28 = vmax.f32 %v284_v19, 0.0  ;;  %v1311_v15 = vld [vmem:[%s2085_s4 + $0x80] sm:$0xff]  }
  0x3f   :  { %v317_v29 = vmax.f32 %v253_v20, 0.0  ;;  %v215_v30 = vmul.f32 %v1128_v21, %v1469_v2  ;;  %v285_v31 = vadd.f32 %v1480_v8, %v214_v22  ;;  %v1068_v33 = vunpack.c.h.bf16 %v1278_v14  ;;  %v1312_v14 = vld [vmem:[%s2085_s4 + $0x88] sm:$0xff]  }
  0x40   :  { %1386 = vmatprep.mubr.msk.bf16.mxu0 %vm516_vm1, %v367_v24  ;;  %v318_v32 = vmax.f32 %v254_v26, 0.0  ;;  %v184_v34 = vmul.f32 %v1067_v27, %v1469_v2  ;;  %v1131_v35 = vunpack.c.l.bf16 %v1294_v23  ;;  %v383_v37 = vpack.c.bf16 %v348_v28, %v347_v25 }
  0x41   :  { %v286_v38 = vadd.f32 %v1480_v8, %v215_v30  ;;  %v349_v39 = vmax.f32 %v285_v31, 0.0  ;;  %v1132_v40 = vunpack.c.h.bf16 %v1294_v23  ;;  %v185_v43 = vmul.f32 %v1068_v33, %v1469_v2 }
  0x42   :  { %v368_v42 = vpack.c.bf16 %v318_v32, %v317_v29  ;;  %v255_v44 = vadd.f32 %v1480_v8, %v184_v34  ;;  %v216_v45 = vmul.f32 %v1131_v35, %v1469_v2  ;;  %1418 = vmatprep.mubr.msk.bf16.mxu1 %vm516_vm1, %v383_v37  ;;  %v1071_v48 = vunpack.c.l.bf16 %v1279_v36 }
  0x43   :  { %v350_v46 = vmax.f32 %v286_v38, 0.0  ;;  %v217_v47 = vmul.f32 %v1132_v40, %v1469_v2  ;;  %v1072_v49 = vunpack.c.h.bf16 %v1279_v36  ;;  %v256_v50 = vadd.f32 %v1480_v8, %v185_v43  ;;  %v1313_v43 = vld [vmem:[%s2085_s4 + $0x90] sm:$0xff]  }
  0x44   :  { %1387 = vmatmul.mubr.msk.bf16.gmra.mrb[24].mxu0 %vm516_vm1, %v368_v42  ;;  %v319_v51 = vmax.f32 %v255_v44, 0.0  ;;  %v287_v52 = vadd.f32 %v1480_v8, %v216_v45  ;;  %v1135_v53 = vunpack.c.l.bf16 %v1295_v41  ;;  %v186_v56 = vmul.f32 %v1071_v48, %v1469_v2  ;;  %v1297_v42 = vld [vmem:[%s2085_s4 + $0x10] sm:$0xff]  }
  0x45   :  { %v384_v54 = vpack.c.bf16 %v350_v46, %v349_v39  ;;  %v288_v55 = vadd.f32 %v1480_v8, %v217_v47  ;;  %v187_v57 = vmul.f32 %v1072_v49, %v1469_v2  ;;  %v320_v58 = vmax.f32 %v256_v50, 0.0  ;;  %v1298_v39 = vld [vmem:[%s2085_s4 + $0x18] sm:$0xff]  }
  0x46   :  { %v351_v59 = vmax.f32 %v287_v52, 0.0  ;;  %v1136_v60 = vunpack.c.h.bf16 %v1295_v41  ;;  %v218_v61 = vmul.f32 %v1135_v53, %v1469_v2  ;;  %v257_v63 = vadd.f32 %v1480_v8, %v186_v56  ;;  %v1314_v41 = vld [vmem:[%s2085_s4 + $0x98] sm:$0xff]  }
  0x47   :  { %1419 = vmatmul.mubr.msk.bf16.gmra.mrb[24].mxu1 %vm516_vm1, %v384_v54  ;;  %v352_v62 = vmax.f32 %v288_v55, 0.0  ;;  %v258_v0 = vadd.f32 %v1480_v8, %v187_v57  ;;  %v369_v1 = vpack.c.bf16 %v320_v58, %v319_v51  ;;  %v1207_v17 = vunpack.c.l.bf16 %v1312_v14 }
  0x48   :  { %v219_v3 = vmul.f32 %v1136_v60, %v1469_v2  ;;  %v289_v4 = vadd.f32 %v1480_v8, %v218_v61  ;;  %v321_v6 = vmax.f32 %v257_v63, 0.0  ;;  %v1296_v2 = vld [vmem:[%s2085_s4 + $0x8] sm:$0xff]   ;;  %v1203_v19 = vunpack.c.l.bf16 %v1311_v15 }
  0x49   :  { %v385_v5 = vpack.c.bf16 %v352_v62, %v351_v59  ;;  %v322_v7 = vmax.f32 %v258_v0, 0.0  ;;  %1390 = vmatprep.mubr.msk.bf16.mxu0 %vm516_vm1, %v369_v1  ;;  %v1143_v16 = vunpack.c.l.bf16 %v1296_v2  ;;  %v1144_v20 = vunpack.c.h.bf16 %v1296_v2  ;;  %v1300_v0 = vld [vmem:[%s2085_s4 + $0x28] sm:$0xff]  }
  0x4a   :  { %v290_v9 = vadd.f32 %v1480_v8, %v219_v3  ;;  %v353_v10 = vmax.f32 %v289_v4, 0.0  ;;  %v1138_v8 = vld [vmem:[%s2085_s4] sm:$0xff]   ;;  %v1208_v22 = vunpack.c.h.bf16 %v1312_v14  ;;  %v1204_v27 = vunpack.c.h.bf16 %v1311_v15 }
  0x4b   :  { %1422 = vmatprep.mubr.msk.bf16.mxu1 %vm516_vm1, %v385_v5  ;;  %v370_v11 = vpack.c.bf16 %v322_v7, %v321_v6  ;;  %v1139_v18 = vunpack.c.l.bf16 %v1138_v8  ;;  %v1140_v23 = vunpack.c.h.bf16 %v1138_v8  ;;  %v1151_v44 = vunpack.c.l.bf16 %v1298_v39  ;;  %v1299_v5 = vld [vmem:[%s2085_s4 + $0x20] sm:$0xff]   ;;  %v1316_v7 = vld [vmem:[%s2085_s4 + $0xa8] sm:$0xff]  }
  0x4c   :  { %v354_v12 = vmax.f32 %v290_v9, 0.0  ;;  %v1215_v45 = vunpack.c.l.bf16 %v1314_v41  ;;  %v1147_v46 = vunpack.c.l.bf16 %v1297_v42  ;;  %v1211_v47 = vunpack.c.l.bf16 %v1313_v43 }
  0x4d   :  { %1391 = vmatmul.mubr.msk.bf16.gmra.mrb[28].mxu0 %vm516_vm1, %v370_v11  ;;  %v1152_v48 = vunpack.c.h.bf16 %v1298_v39  ;;  %v1216_v50 = vunpack.c.h.bf16 %v1314_v41  ;;  %v1148_v51 = vunpack.c.h.bf16 %v1297_v42  ;;  %v1212_v55 = vunpack.c.h.bf16 %v1313_v43 }
  0x4e   :  { %v386_v13 = vpack.c.bf16 %v354_v12, %v353_v10  ;;  %v1159_v9 = vunpack.c.l.bf16 %v1300_v0  ;;  %v1315_v10 = vld [vmem:[%s2085_s4 + $0xa0] sm:$0xff]   ;;  %v1155_v11 = vunpack.c.l.bf16 %v1299_v5  ;;  %v1223_v12 = vunpack.c.l.bf16 %v1316_v7 }
  0x4f   :  { %v1219_v14 = vunpack.c.l.bf16 %v1315_v10  ;;  %v1156_v8 = vunpack.c.h.bf16 %v1299_v5 }
  0x50   :  { %1423 = vmatmul.mubr.msk.bf16.gmra.mrb[28].mxu1 %vm516_vm1, %v386_v13  ;;  %v1160_v13 = vunpack.c.h.bf16 %v1300_v0 }
  0xe1   :  { %v1364_v21 = vpop.f32.mrb[0].mxu0 }
  0xe2   :  { %v660_v24 = vadd.f32 %v1364_v21, %v1143_v16  ;;  %v651_v26 = vpop.f32.mrb[1].mxu0  ;;  %v1220_v21 = vunpack.c.h.bf16 %v1315_v10 }
  0xe3   :  { %v1396_v25 = vpop.f32.mrb[0].mxu1  ;;  %v652_v29 = vadd.f32 %v1139_v18, %v651_v26  ;;  %v1365_v31 = vpop.f32.mrb[2].mxu0  ;;  %v1302_v26 = vld [vmem:[%s2085_s4 + $0x38] sm:$0xff]  }
  0xe4   :  { %v788_v28 = vadd.f32 %v1396_v25, %v1207_v17  ;;  %v779_v30 = vpop.f32.mrb[1].mxu1  ;;  %909 = vst.msk [vmem:[%s2086_s5 + $0x10] sm:$0xff] %vm906_vm2, %v660_v24  ;;  %v663_v33 = vadd.f32 %v1365_v31, %v1144_v20  ;;  %v654_v35 = vpop.f32.mrb[3].mxu0  ;;  %v1224_v17 = vunpack.c.h.bf16 %v1316_v7 }
  0xe5   :  { %v780_v32 = vadd.f32 %v1203_v19, %v779_v30  ;;  %v1397_v34 = vpop.f32.mrb[2].mxu1  ;;  %907 = vst.msk [vmem:[%s2086_s5] sm:$0xff] %vm906_vm2, %v652_v29  ;;  %v655_v37 = vadd.f32 %v1140_v23, %v654_v35  ;;  %v1301_v30 = vld [vmem:[%s2085_s4 + $0x30] sm:$0xff]   ;;  %v1318_v35 = vld [vmem:[%s2085_s4 + $0xb8] sm:$0xff]  }
  0xe6   :  { %941 = vst.msk [vmem:[%s2086_s5 + $0x110] sm:$0xff] %vm906_vm2, %v788_v28  ;;  %v791_v36 = vadd.f32 %v1397_v34, %v1208_v22  ;;  %v782_v38 = vpop.f32.mrb[3].mxu1  ;;  %910 = vst.msk [vmem:[%s2086_s5 + $0x18] sm:$0xff] %vm906_vm2, %v663_v33  ;;  %v1167_v34 = vunpack.c.l.bf16 %v1302_v26  ;;  %v1164_v41 = vunpack.c.h.bf16 %v1301_v30 }
  0xe7   :  { %939 = vst.msk [vmem:[%s2086_s5 + $0x100] sm:$0xff] %vm906_vm2, %v780_v32  ;;  %v783_v40 = vadd.f32 %v1204_v27, %v782_v38  ;;  %908 = vst.msk [vmem:[%s2086_s5 + $0x8] sm:$0xff] %vm906_vm2, %v655_v37  ;;  %v1317_v37 = vld [vmem:[%s2085_s4 + $0xb0] sm:$0xff]   ;;  %v1168_v38 = vunpack.c.h.bf16 %v1302_v26  ;;  %v1322_v26 = vld [vmem:[%s2085_s4 + $0xd8] sm:$0xff]  }
  0xe8   :  { %942 = vst.msk [vmem:[%s2086_s5 + $0x118] sm:$0xff] %vm906_vm2, %v791_v36  ;;  %v1163_v36 = vunpack.c.l.bf16 %v1301_v30 }
  0xe9   :  { %940 = vst.msk [vmem:[%s2086_s5 + $0x108] sm:$0xff] %vm906_vm2, %v783_v40  ;;  %v1231_v40 = vunpack.c.l.bf16 %v1318_v35 }
  0xea   :  { %v1368_v49 = vpop.f32.mrb[4].mxu0 }
  0xeb   :  { %v676_v52 = vadd.f32 %v1368_v49, %v1151_v44  ;;  %v1400_v53 = vpop.f32.mrb[4].mxu1  ;;  %v667_v54 = vpop.f32.mrb[5].mxu0  ;;  %v1227_v44 = vunpack.c.l.bf16 %v1317_v37 }
  0xec   :  { %v804_v56 = vadd.f32 %v1400_v53, %v1215_v45  ;;  %v668_v57 = vadd.f32 %v1147_v46, %v667_v54  ;;  %v795_v58 = vpop.f32.mrb[5].mxu1  ;;  %v1369_v59 = vpop.f32.mrb[6].mxu0 }
  0xed   :  { %913 = vst.msk [vmem:[%s2086_s5 + $0x30] sm:$0xff] %vm906_vm2, %v676_v52  ;;  %v796_v60 = vadd.f32 %v1211_v47, %v795_v58  ;;  %v679_v61 = vadd.f32 %v1369_v59, %v1152_v48  ;;  %v1401_v62 = vpop.f32.mrb[6].mxu1  ;;  %v670_v63 = vpop.f32.mrb[7].mxu0  ;;  %v1232_v47 = vunpack.c.h.bf16 %v1318_v35  ;;  %v1304_v52 = vld [vmem:[%s2085_s4 + $0x48] sm:$0xff]  }
  0xee   :  { %945 = vst.msk [vmem:[%s2086_s5 + $0x130] sm:$0xff] %vm906_vm2, %v804_v56  ;;  %911 = vst.msk [vmem:[%s2086_s5 + $0x20] sm:$0xff] %vm906_vm2, %v668_v57  ;;  %v807_v1 = vadd.f32 %v1401_v62, %v1216_v50  ;;  %v671_v3 = vadd.f32 %v1148_v51, %v670_v63  ;;  %v798_v4 = vpop.f32.mrb[7].mxu1  ;;  %v1228_v51 = vunpack.c.h.bf16 %v1317_v37  ;;  %v1303_v56 = vld [vmem:[%s2085_s4 + $0x40] sm:$0xff]   ;;  %v1320_v62 = vld [vmem:[%s2085_s4 + $0xc8] sm:$0xff]  }
  0xef   :  { %943 = vst.msk [vmem:[%s2086_s5 + $0x120] sm:$0xff] %vm906_vm2, %v796_v60  ;;  %914 = vst.msk [vmem:[%s2086_s5 + $0x38] sm:$0xff] %vm906_vm2, %v679_v61  ;;  %v799_v6 = vadd.f32 %v1212_v55, %v798_v4  ;;  %v1175_v61 = vunpack.c.l.bf16 %v1304_v52  ;;  %v1171_v0 = vunpack.c.l.bf16 %v1303_v56  ;;  %v1239_v5 = vunpack.c.l.bf16 %v1320_v62 }
  0xf0   :  { %946 = vst.msk [vmem:[%s2086_s5 + $0x138] sm:$0xff] %vm906_vm2, %v807_v1  ;;  %912 = vst.msk [vmem:[%s2086_s5 + $0x28] sm:$0xff] %vm906_vm2, %v671_v3  ;;  %v1319_v1 = vld [vmem:[%s2085_s4 + $0xc0] sm:$0xff]   ;;  %v1176_v3 = vunpack.c.h.bf16 %v1304_v52 }
  0xf1   :  { %944 = vst.msk [vmem:[%s2086_s5 + $0x128] sm:$0xff] %vm906_vm2, %v799_v6  ;;  %v1172_v6 = vunpack.c.h.bf16 %v1303_v56  ;;  %v1235_v10 = vunpack.c.l.bf16 %v1319_v1 }
  0xf3   :  { %v1372_v2 = vpop.f32.mrb[8].mxu0 }
  0xf4   :  { %v692_v15 = vadd.f32 %v1372_v2, %v1159_v9  ;;  %v683_v16 = vpop.f32.mrb[9].mxu0 }
  0xf5   :  { %v1404_v18 = vpop.f32.mrb[8].mxu1  ;;  %v684_v19 = vadd.f32 %v1155_v11, %v683_v16  ;;  %v1373_v20 = vpop.f32.mrb[10].mxu0  ;;  %v1306_v16 = vld [vmem:[%s2085_s4 + $0x58] sm:$0xff]  }
  0xf6   :  { %917 = vst.msk [vmem:[%s2086_s5 + $0x50] sm:$0xff] %vm906_vm2, %v692_v15  ;;  %v820_v22 = vadd.f32 %v1404_v18, %v1223_v12  ;;  %v811_v23 = vpop.f32.mrb[9].mxu1  ;;  %v695_v24 = vadd.f32 %v1373_v20, %v1160_v13  ;;  %v686_v25 = vpop.f32.mrb[11].mxu0  ;;  %v1240_v13 = vunpack.c.h.bf16 %v1320_v62  ;;  %v1236_v15 = vunpack.c.h.bf16 %v1319_v1  ;;  %v1305_v20 = vld [vmem:[%s2085_s4 + $0x50] sm:$0xff]  }
  0xf7   :  { %915 = vst.msk [vmem:[%s2086_s5 + $0x40] sm:$0xff] %vm906_vm2, %v684_v19  ;;  %v812_v27 = vadd.f32 %v1219_v14, %v811_v23  ;;  %v1405_v28 = vpop.f32.mrb[10].mxu1  ;;  %v687_v29 = vadd.f32 %v1156_v8, %v686_v25  ;;  %v1183_v25 = vunpack.c.l.bf16 %v1306_v16  ;;  %v1184_v30 = vunpack.c.h.bf16 %v1306_v16 }
  0xf8   :  { %949 = vst.msk [vmem:[%s2086_s5 + $0x150] sm:$0xff] %vm906_vm2, %v820_v22  ;;  %918 = vst.msk [vmem:[%s2086_s5 + $0x58] sm:$0xff] %vm906_vm2, %v695_v24  ;;  %v823_v31 = vadd.f32 %v1405_v28, %v1224_v17  ;;  %v814_v32 = vpop.f32.mrb[11].mxu1  ;;  %v1179_v28 = vunpack.c.l.bf16 %v1305_v20 }
  0xf9   :  { %947 = vst.msk [vmem:[%s2086_s5 + $0x140] sm:$0xff] %vm906_vm2, %v812_v27  ;;  %916 = vst.msk [vmem:[%s2086_s5 + $0x48] sm:$0xff] %vm906_vm2, %v687_v29  ;;  %v815_v33 = vadd.f32 %v1220_v21, %v814_v32  ;;  %v1321_v29 = vld [vmem:[%s2085_s4 + $0xd0] sm:$0xff]   ;;  %v1247_v32 = vunpack.c.l.bf16 %v1322_v26 }
  0xfa   :  { %950 = vst.msk [vmem:[%s2086_s5 + $0x158] sm:$0xff] %vm906_vm2, %v823_v31 }
  0xfb   :  { %948 = vst.msk [vmem:[%s2086_s5 + $0x148] sm:$0xff] %vm906_vm2, %v815_v33  ;;  %v1180_v33 = vunpack.c.h.bf16 %v1305_v20 }
  0xfc   :  { %v1376_v39 = vpop.f32.mrb[12].mxu0 }
  0xfd   :  { %v708_v42 = vadd.f32 %v1376_v39, %v1167_v34  ;;  %v699_v43 = vpop.f32.mrb[13].mxu0  ;;  %v1248_v39 = vunpack.c.h.bf16 %v1322_v26 }
  0xfe   :  { %v700_v45 = vadd.f32 %v1163_v36, %v699_v43  ;;  %v1377_v46 = vpop.f32.mrb[14].mxu0  ;;  %v1243_v36 = vunpack.c.l.bf16 %v1321_v29  ;;  %v1244_v43 = vunpack.c.h.bf16 %v1321_v29 }
  0xff   :  { %921 = vst.msk [vmem:[%s2086_s5 + $0x70] sm:$0xff] %vm906_vm2, %v708_v42  ;;  %v1408_v48 = vpop.f32.mrb[12].mxu1  ;;  %v711_v49 = vadd.f32 %v1377_v46, %v1168_v38  ;;  %v702_v50 = vpop.f32.mrb[15].mxu0 }
 0x100   :  { %v836_v53 = vadd.f32 %v1408_v48, %v1231_v40  ;;  %919 = vst.msk [vmem:[%s2086_s5 + $0x60] sm:$0xff] %vm906_vm2, %v700_v45  ;;  %v827_v54 = vpop.f32.mrb[13].mxu1  ;;  %v703_v55 = vadd.f32 %v1164_v41, %v702_v50  ;;  %v1307_v48 = vld [vmem:[%s2085_s4 + $0x60] sm:$0xff]  }
 0x101   :  { %v828_v57 = vadd.f32 %v1227_v44, %v827_v54  ;;  %922 = vst.msk [vmem:[%s2086_s5 + $0x78] sm:$0xff] %vm906_vm2, %v711_v49  ;;  %v1409_v58 = vpop.f32.mrb[14].mxu1  ;;  %v1308_v44 = vld [vmem:[%s2085_s4 + $0x68] sm:$0xff]   ;;  %v1187_v56 = vunpack.c.l.bf16 %v1307_v48 }
 0x102   :  { %953 = vst.msk [vmem:[%s2086_s5 + $0x170] sm:$0xff] %vm906_vm2, %v836_v53  ;;  %v839_v59 = vadd.f32 %v1409_v58, %v1232_v47  ;;  %920 = vst.msk [vmem:[%s2086_s5 + $0x68] sm:$0xff] %vm906_vm2, %v703_v55  ;;  %v830_v60 = vpop.f32.mrb[15].mxu1  ;;  %v1191_v53 = vunpack.c.l.bf16 %v1308_v44  ;;  %v1324_v54 = vld [vmem:[%s2085_s4 + $0xe8] sm:$0xff]   ;;  %v1192_v58 = vunpack.c.h.bf16 %v1308_v44 }
 0x103   :  { %951 = vst.msk [vmem:[%s2086_s5 + $0x160] sm:$0xff] %vm906_vm2, %v828_v57  ;;  %v831_v63 = vadd.f32 %v1228_v51, %v830_v60  ;;  %v1323_v57 = vld [vmem:[%s2085_s4 + $0xe0] sm:$0xff]   ;;  %v1255_v60 = vunpack.c.l.bf16 %v1324_v54 }
 0x104   :  { %954 = vst.msk [vmem:[%s2086_s5 + $0x178] sm:$0xff] %vm906_vm2, %v839_v59 }
 0x105   :  { %952 = vst.msk [vmem:[%s2086_s5 + $0x168] sm:$0xff] %vm906_vm2, %v831_v63  ;;  %v1380_v4 = vpop.f32.mrb[16].mxu0 }
 0x106   :  { %v724_v7 = vadd.f32 %v1380_v4, %v1175_v61  ;;  %v715_v9 = vpop.f32.mrb[17].mxu0  ;;  %v1188_v61 = vunpack.c.h.bf16 %v1307_v48  ;;  %v1256_v4 = vunpack.c.h.bf16 %v1324_v54 }
 0x107   :  { %v716_v11 = vadd.f32 %v1171_v0, %v715_v9  ;;  %v1381_v12 = vpop.f32.mrb[18].mxu0  ;;  %v1251_v0 = vunpack.c.l.bf16 %v1323_v57  ;;  %v1252_v9 = vunpack.c.h.bf16 %v1323_v57 }
 0x108   :  { %925 = vst.msk [vmem:[%s2086_s5 + $0x90] sm:$0xff] %vm906_vm2, %v724_v7  ;;  %v1412_v2 = vpop.f32.mrb[16].mxu1  ;;  %v727_v14 = vadd.f32 %v1381_v12, %v1176_v3  ;;  %v718_v8 = vpop.f32.mrb[19].mxu0 }
 0x109   :  { %v852_v17 = vadd.f32 %v1412_v2, %v1239_v5  ;;  %923 = vst.msk [vmem:[%s2086_s5 + $0x80] sm:$0xff] %vm906_vm2, %v716_v11  ;;  %v843_v18 = vpop.f32.mrb[17].mxu1  ;;  %v719_v19 = vadd.f32 %v1172_v6, %v718_v8  ;;  %v1309_v2 = vld [vmem:[%s2085_s4 + $0x70] sm:$0xff]  }
 0x10a   :  { %v844_v21 = vadd.f32 %v1235_v10, %v843_v18  ;;  %926 = vst.msk [vmem:[%s2086_s5 + $0x98] sm:$0xff] %vm906_vm2, %v727_v14  ;;  %v1413_v22 = vpop.f32.mrb[18].mxu1  ;;  %v1310_v10 = vld [vmem:[%s2085_s4 + $0x78] sm:$0xff]   ;;  %v1195_v20 = vunpack.c.l.bf16 %v1309_v2 }
 0x10b   :  { %957 = vst.msk [vmem:[%s2086_s5 + $0x190] sm:$0xff] %vm906_vm2, %v852_v17  ;;  %v855_v23 = vadd.f32 %v1413_v22, %v1240_v13  ;;  %924 = vst.msk [vmem:[%s2086_s5 + $0x88] sm:$0xff] %vm906_vm2, %v719_v19  ;;  %v846_v24 = vpop.f32.mrb[19].mxu1  ;;  %v1199_v17 = vunpack.c.l.bf16 %v1310_v10  ;;  %v1326_v18 = vld [vmem:[%s2085_s4 + $0xf8] sm:$0xff]   ;;  %v1200_v22 = vunpack.c.h.bf16 %v1310_v10 }
 0x10c   :  { %955 = vst.msk [vmem:[%s2086_s5 + $0x180] sm:$0xff] %vm906_vm2, %v844_v21  ;;  %v847_v27 = vadd.f32 %v1236_v15, %v846_v24  ;;  %v1325_v21 = vld [vmem:[%s2085_s4 + $0xf0] sm:$0xff]   ;;  %v1263_v24 = vunpack.c.l.bf16 %v1326_v18 }
 0x10d   :  { %958 = vst.msk [vmem:[%s2086_s5 + $0x198] sm:$0xff] %vm906_vm2, %v855_v23 }
 0x10e   :  { %956 = vst.msk [vmem:[%s2086_s5 + $0x188] sm:$0xff] %vm906_vm2, %v847_v27  ;;  %v1384_v31 = vpop.f32.mrb[20].mxu0 }
 0x10f   :  { %v740_v34 = vadd.f32 %v1384_v31, %v1183_v25  ;;  %v731_v35 = vpop.f32.mrb[21].mxu0  ;;  %v1196_v25 = vunpack.c.h.bf16 %v1309_v2  ;;  %v1264_v31 = vunpack.c.h.bf16 %v1326_v18 }
 0x110   :  { %v732_v37 = vadd.f32 %v1179_v28, %v731_v35  ;;  %v1385_v38 = vpop.f32.mrb[22].mxu0  ;;  %v1259_v28 = vunpack.c.l.bf16 %v1325_v21  ;;  %v1260_v35 = vunpack.c.h.bf16 %v1325_v21 }
 0x111   :  { %929 = vst.msk [vmem:[%s2086_s5 + $0xb0] sm:$0xff] %vm906_vm2, %v740_v34  ;;  %v1416_v40 = vpop.f32.mrb[20].mxu1  ;;  %v743_v41 = vadd.f32 %v1385_v38, %v1184_v30  ;;  %v734_v42 = vpop.f32.mrb[23].mxu0 }
 0x112   :  { %v868_v45 = vadd.f32 %v1416_v40, %v1247_v32  ;;  %927 = vst.msk [vmem:[%s2086_s5 + $0xa0] sm:$0xff] %vm906_vm2, %v732_v37  ;;  %v859_v46 = vpop.f32.mrb[21].mxu1  ;;  %v735_v47 = vadd.f32 %v1180_v33, %v734_v42 }
 0x113   :  { %v860_v49 = vadd.f32 %v1243_v36, %v859_v46  ;;  %930 = vst.msk [vmem:[%s2086_s5 + $0xb8] sm:$0xff] %vm906_vm2, %v743_v41  ;;  %v1417_v50 = vpop.f32.mrb[22].mxu1 }
 0x114   :  { %961 = vst.msk [vmem:[%s2086_s5 + $0x1b0] sm:$0xff] %vm906_vm2, %v868_v45  ;;  %v871_v51 = vadd.f32 %v1417_v50, %v1248_v39  ;;  %928 = vst.msk [vmem:[%s2086_s5 + $0xa8] sm:$0xff] %vm906_vm2, %v735_v47  ;;  %v862_v52 = vpop.f32.mrb[23].mxu1 }
 0x115   :  { %959 = vst.msk [vmem:[%s2086_s5 + $0x1a0] sm:$0xff] %vm906_vm2, %v860_v49  ;;  %v863_v55 = vadd.f32 %v1244_v43, %v862_v52 }
 0x116   :  { %962 = vst.msk [vmem:[%s2086_s5 + $0x1b8] sm:$0xff] %vm906_vm2, %v871_v51 }
 0x117   :  { %960 = vst.msk [vmem:[%s2086_s5 + $0x1a8] sm:$0xff] %vm906_vm2, %v863_v55  ;;  %v1388_v59 = vpop.f32.mrb[24].mxu0 }
 0x118   :  { %v756_v62 = vadd.f32 %v1388_v59, %v1191_v53  ;;  %v747_v63 = vpop.f32.mrb[25].mxu0 }
 0x119   :  { %v748_v1 = vadd.f32 %v1187_v56, %v747_v63  ;;  %v1389_v3 = vpop.f32.mrb[26].mxu0 }
 0x11a   :  { %933 = vst.msk [vmem:[%s2086_s5 + $0xd0] sm:$0xff] %vm906_vm2, %v756_v62  ;;  %v1420_v5 = vpop.f32.mrb[24].mxu1  ;;  %v759_v6 = vadd.f32 %v1389_v3, %v1192_v58  ;;  %v750_v7 = vpop.f32.mrb[27].mxu0 }
 0x11b   :  { %v884_v11 = vadd.f32 %v1420_v5, %v1255_v60  ;;  %931 = vst.msk [vmem:[%s2086_s5 + $0xc0] sm:$0xff] %vm906_vm2, %v748_v1  ;;  %v875_v12 = vpop.f32.mrb[25].mxu1  ;;  %v751_v13 = vadd.f32 %v1188_v61, %v750_v7 }
 0x11c   :  { %v876_v14 = vadd.f32 %v1251_v0, %v875_v12  ;;  %934 = vst.msk [vmem:[%s2086_s5 + $0xd8] sm:$0xff] %vm906_vm2, %v759_v6  ;;  %v1421_v8 = vpop.f32.mrb[26].mxu1 }
 0x11d   :  { %965 = vst.msk [vmem:[%s2086_s5 + $0x1d0] sm:$0xff] %vm906_vm2, %v884_v11  ;;  %v887_v15 = vadd.f32 %v1421_v8, %v1256_v4  ;;  %932 = vst.msk [vmem:[%s2086_s5 + $0xc8] sm:$0xff] %vm906_vm2, %v751_v13  ;;  %v878_v16 = vpop.f32.mrb[27].mxu1 }
 0x11e   :  { %963 = vst.msk [vmem:[%s2086_s5 + $0x1c0] sm:$0xff] %vm906_vm2, %v876_v14  ;;  %v879_v19 = vadd.f32 %v1252_v9, %v878_v16 }
 0x11f   :  { %966 = vst.msk [vmem:[%s2086_s5 + $0x1d8] sm:$0xff] %vm906_vm2, %v887_v15 }
 0x120   :  { %964 = vst.msk [vmem:[%s2086_s5 + $0x1c8] sm:$0xff] %vm906_vm2, %v879_v19  ;;  %v1392_v23 = vpop.f32.mrb[28].mxu0 }
 0x121   :  { %v772_v26 = vadd.f32 %v1392_v23, %v1199_v17  ;;  %v763_v27 = vpop.f32.mrb[29].mxu0 }
 0x122   :  { %v764_v29 = vadd.f32 %v1195_v20, %v763_v27  ;;  %v1393_v30 = vpop.f32.mrb[30].mxu0 }
 0x123   :  { %937 = vst.msk [vmem:[%s2086_s5 + $0xf0] sm:$0xff] %vm906_vm2, %v772_v26  ;;  %v1424_v32 = vpop.f32.mrb[28].mxu1  ;;  %v775_v33 = vadd.f32 %v1393_v30, %v1200_v22  ;;  %v766_v34 = vpop.f32.mrb[31].mxu0 }
 0x124   :  { %v900_v36 = vadd.f32 %v1424_v32, %v1263_v24  ;;  %935 = vst.msk [vmem:[%s2086_s5 + $0xe0] sm:$0xff] %vm906_vm2, %v764_v29  ;;  %v891_v37 = vpop.f32.mrb[29].mxu1  ;;  %v767_v38 = vadd.f32 %v1196_v25, %v766_v34 }
 0x125   :  { %v892_v39 = vadd.f32 %v1259_v28, %v891_v37  ;;  %938 = vst.msk [vmem:[%s2086_s5 + $0xf8] sm:$0xff] %vm906_vm2, %v775_v33  ;;  %v1425_v40 = vpop.f32.mrb[30].mxu1 }
 0x126   :  { %969 = vst.msk [vmem:[%s2086_s5 + $0x1f0] sm:$0xff] %vm906_vm2, %v900_v36  ;;  %v903_v41 = vadd.f32 %v1425_v40, %v1264_v31  ;;  %936 = vst.msk [vmem:[%s2086_s5 + $0xe8] sm:$0xff] %vm906_vm2, %v767_v38  ;;  %v894_v42 = vpop.f32.mrb[31].mxu1 }
 0x127   :  { %967 = vst.msk [vmem:[%s2086_s5 + $0x1e0] sm:$0xff] %vm906_vm2, %v892_v39  ;;  %v895_v43 = vadd.f32 %v1260_v35, %v894_v42 }
 0x128   :  { %970 = vst.msk [vmem:[%s2086_s5 + $0x1f8] sm:$0xff] %vm906_vm2, %v903_v41 }
 0x129   :  { %968 = vst.msk [vmem:[%s2086_s5 + $0x1e8] sm:$0xff] %vm906_vm2, %v895_v43 }

// kernel: preact_bottleneck.4
= control target key start
LH: loop header
LB: loop body
LE: loop exit
PB: predicated region body
PF: predicated region fallthrough
CT: control target
= control target key end

     0   :  { %vm420_vm0 = vcmask 1041408   ;;  %vm323_vm1 = vcmask 31744   ;;  %vm969_vm2 = vcmask 27648   ;;  %vm1751_vm3 = vcmask 1040384   ;;  %s3097_s3 = inlined_call_operand.vmem [shape: bf16[4,4], index: 3, kind: input, shape index: {}]   ;;  %s3098_s0 = inlined_call_operand.vmem [shape: f32[512,4], index: 0, kind: input, shape index: {}]   ;;  %s3099_s1 = inlined_call_operand.vmem [shape: f32[1,4], index: 1, kind: input, shape index: {}]   ;;  %s3100_s2 = inlined_call_operand.vmem [shape: f32[1,4], index: 2, kind: input, shape index: {}]   ;;  %s3101_s4 = inlined_call_operand.vmem [shape: bf16[512,4], index: 4, kind: output, shape index: {0}]   ;;  %s3102_s5 = inlined_call_operand.vmem [shape: f32[1,2,4], index: 5, kind: output, shape index: {1}]  }
   0x1   :  { %v322_v0 = vld [vmem:[%s3097_s3] sm:$0x3]  ;;  %v21_v2 = vld [vmem:[%s3098_s0 + $0x8] sm:$0xff]  ;;  %v22_v6 = vld [vmem:[%s3098_s0 + $0x10] sm:$0xff]  ;;  %vm1753_vm4 = vcmask 25600  }
   0x2   :  { %v20_v1 = vld [vmem:[%s3098_s0] sm:$0xff]  ;;  %2026 = vmatprep.subr.msk.bf16.mxu0 %vm420_vm0, %v322_v0  ;;  %v422_v3 = vsel %vm420_vm0, %v322_v0, 0  ;;  %2027 = vmatprep.subr.msk.bf16.mxu1 %vm420_vm0, %v322_v0  ;;  %v23_v9 = vld [vmem:[%s3098_s0 + $0x18] sm:$0xff]  ;;  %v25_v12 = vld [vmem:[%s3098_s0 + $0x28] sm:$0xff] }
   0x3   :  { %v2070_v4 = vld [vmem:[%s3099_s1] ss:$0 sm:$0xff]  ;;  %1959 = vmatpush3.bf16.msra.mxu0 %v422_v3  ;;  %2025 = vmatpush3.bf16.msra.mxu1 %v422_v3  ;;  %v26_v16 = vld [vmem:[%s3098_s0 + $0x30] sm:$0xff]  ;;  %v27_v17 = vld [vmem:[%s3098_s0 + $0x38] sm:$0xff] }
   0x4   :  { %v2075_v5 = vld [vmem:[%s3100_s2] ss:$0 sm:$0xff]  ;;  %v91_v7 = vmul.f32 %v2070_v4, %v20_v1  ;;  %v92_v8 = vmul.f32 %v2070_v4, %v21_v2  ;;  %v93_v10 = vmul.f32 %v2070_v4, %v22_v6  ;;  %v94_v13 = vmul.f32 %v2070_v4, %v23_v9  ;;  %v29_v27 = vld [vmem:[%s3098_s0 + $0x48] sm:$0xff]  ;;  %v30_v32 = vld [vmem:[%s3098_s0 + $0x50] sm:$0xff] }
   0x5   :  { %v24_v11 = vld [vmem:[%s3098_s0 + $0x20] sm:$0xff]  ;;  %v96_v15 = vmul.f32 %v2070_v4, %v25_v12  ;;  %v97_v21 = vmul.f32 %v2070_v4, %v26_v16  ;;  %v98_v25 = vmul.f32 %v2070_v4, %v27_v17  ;;  %v31_v37 = vld [vmem:[%s3098_s0 + $0x58] sm:$0xff]  ;;  %v100_v41 = vmul.f32 %v2070_v4, %v29_v27  ;;  %v33_v42 = vld [vmem:[%s3098_s0 + $0x68] sm:$0xff] }
   0x6   :  { %v95_v14 = vmul.f32 %v2070_v4, %v24_v11  ;;  %v162_v18 = vadd.f32 %v2075_v5, %v91_v7  ;;  %v163_v19 = vadd.f32 %v2075_v5, %v92_v8  ;;  %v164_v20 = vadd.f32 %v2075_v5, %v93_v10  ;;  %v28_v26 = vld [vmem:[%s3098_s0 + $0x40] sm:$0xff]  ;;  %v34_v46 = vld [vmem:[%s3098_s0 + $0x70] sm:$0xff]  ;;  %v35_v55 = vld [vmem:[%s3098_s0 + $0x78] sm:$0xff] }
   0x7   :  { %v165_v22 = vadd.f32 %v2075_v5, %v94_v13  ;;  %v167_v24 = vadd.f32 %v2075_v5, %v96_v15  ;;  %v168_v31 = vadd.f32 %v2075_v5, %v97_v21  ;;  %v169_v36 = vadd.f32 %v2075_v5, %v98_v25  ;;  %v32_v38 = vld [vmem:[%s3098_s0 + $0x60] sm:$0xff]  ;;  %v37_v60 = vld [vmem:[%s3098_s0 + $0x88] sm:$0xff]  ;;  %v38_v0 = vld [vmem:[%s3098_s0 + $0x90] sm:$0xff] }
   0x8   :  { %v166_v23 = vadd.f32 %v2075_v5, %v95_v14  ;;  %v226_v28 = vmax.f32 %v162_v18, 0.0  ;;  %v227_v29 = vmax.f32 %v163_v19, 0.0  ;;  %v228_v30 = vmax.f32 %v164_v20, 0.0  ;;  %v36_v56 = vld [vmem:[%s3098_s0 + $0x80] sm:$0xff]  ;;  %v39_v1 = vld [vmem:[%s3098_s0 + $0x98] sm:$0xff]  ;;  %v41_v10 = vld [vmem:[%s3098_s0 + $0xa8] sm:$0xff] }
   0x9   :  { %v229_v33 = vmax.f32 %v165_v22, 0.0  ;;  %v231_v35 = vmax.f32 %v167_v24, 0.0  ;;  %v99_v40 = vmul.f32 %v2070_v4, %v28_v26  ;;  %v101_v45 = vmul.f32 %v2070_v4, %v30_v32  ;;  %v40_v6 = vld [vmem:[%s3098_s0 + $0xa0] sm:$0xff]  ;;  %v42_v15 = vld [vmem:[%s3098_s0 + $0xb0] sm:$0xff]  ;;  %v43_v20 = vld [vmem:[%s3098_s0 + $0xb8] sm:$0xff] }
   0xa   :  { %v230_v34 = vmax.f32 %v166_v23, 0.0  ;;  %v290_v39 = vpack.c.bf16 %v227_v29, %v226_v28  ;;  %v171_v48 = vadd.f32 %v2075_v5, %v100_v41  ;;  %v102_v49 = vmul.f32 %v2070_v4, %v31_v37  ;;  %v44_v25 = vld [vmem:[%s3098_s0 + $0xc0] sm:$0xff]  ;;  %v45_v29 = vld [vmem:[%s3098_s0 + $0xc8] sm:$0xff] }
   0xb   :  { %v291_v43 = vpack.c.bf16 %v229_v33, %v228_v30  ;;  %v170_v47 = vadd.f32 %v2075_v5, %v99_v40  ;;  %v103_v50 = vmul.f32 %v2070_v4, %v32_v38  ;;  %v232_v51 = vmax.f32 %v168_v31, 0.0  ;;  %v46_v33 = vld [vmem:[%s3098_s0 + $0xd0] sm:$0xff] }
   0xc   :  { %v292_v44 = vpack.c.bf16 %v231_v35, %v230_v34  ;;  %1960 = vmatprep.mubr.msk.bf16.mxu0 %vm323_vm1, %v290_v39  ;;  %v233_v52 = vmax.f32 %v169_v36, 0.0  ;;  %v172_v53 = vadd.f32 %v2075_v5, %v101_v45  ;;  %v104_v54 = vmul.f32 %v2070_v4, %v33_v42  ;;  %v47_v42 = vld [vmem:[%s3098_s0 + $0xd8] sm:$0xff] }
   0xd   :  { %1961 = vmatmul.mubr.msk.bf16.vlgmr.msra.gmra.mrb[0].mxu0 %vm323_vm1, %v291_v43  ;;  %v234_v57 = vmax.f32 %v170_v47, 0.0  ;;  %v235_v58 = vmax.f32 %v171_v48, 0.0  ;;  %v105_v59 = vmul.f32 %v2070_v4, %v34_v46  ;;  %v173_v61 = vadd.f32 %v2075_v5, %v102_v49  ;;  %v48_v47 = vld [vmem:[%s3098_s0 + $0xe0] sm:$0xff] }
   0xe   :  { %1964 = vmatprep.mubr.msk.bf16.mxu0 %vm323_vm1, %v292_v44  ;;  %v174_v62 = vadd.f32 %v2075_v5, %v103_v50  ;;  %v175_v63 = vadd.f32 %v2075_v5, %v104_v54  ;;  %v106_v2 = vmul.f32 %v2070_v4, %v35_v55  ;;  %v107_v3 = vmul.f32 %v2070_v4, %v36_v56  ;;  %v52_v54 = vld [vmem:[%s3098_s0 + $0x100] sm:$0xff]  ;;  %v49_v56 = vld [vmem:[%s3098_s0 + $0xe8] sm:$0xff] }
   0xf   :  { %v293_v7 = vpack.c.bf16 %v233_v52, %v232_v51  ;;  %v236_v8 = vmax.f32 %v172_v53, 0.0  ;;  %v108_v9 = vmul.f32 %v2070_v4, %v37_v60  ;;  %v294_v11 = vpack.c.bf16 %v235_v58, %v234_v57  ;;  %v53_v58 = vld [vmem:[%s3098_s0 + $0x108] sm:$0xff] }
  0x10   :  { %v176_v12 = vadd.f32 %v2075_v5, %v105_v59  ;;  %v109_v13 = vmul.f32 %v2070_v4, %v38_v0  ;;  %v110_v14 = vmul.f32 %v2070_v4, %v39_v1  ;;  %v237_v16 = vmax.f32 %v173_v61, 0.0  ;;  %v55_v0 = vld [vmem:[%s3098_s0 + $0x118] sm:$0xff] }
  0x11   :  { %v238_v17 = vmax.f32 %v174_v62, 0.0  ;;  %v239_v18 = vmax.f32 %v175_v63, 0.0  ;;  %v111_v19 = vmul.f32 %v2070_v4, %v40_v6  ;;  %v177_v21 = vadd.f32 %v2075_v5, %v106_v2  ;;  %v54_v63 = vld [vmem:[%s3098_s0 + $0x110] sm:$0xff] }
  0x12   :  { %v178_v22 = vadd.f32 %v2075_v5, %v107_v3  ;;  %v179_v23 = vadd.f32 %v2075_v5, %v108_v9  ;;  %v112_v24 = vmul.f32 %v2070_v4, %v41_v10  ;;  %v180_v26 = vadd.f32 %v2075_v5, %v109_v13  ;;  %v50_v6 = vld [vmem:[%s3098_s0 + $0xf0] sm:$0xff]  ;;  %v57_v13 = vld [vmem:[%s3098_s0 + $0x128] sm:$0xff] }
  0x13   :  { %v181_v27 = vadd.f32 %v2075_v5, %v110_v14  ;;  %v113_v28 = vmul.f32 %v2070_v4, %v42_v15  ;;  %v182_v30 = vadd.f32 %v2075_v5, %v111_v19  ;;  %v114_v32 = vmul.f32 %v2070_v4, %v43_v20 }
  0x14   :  { %v183_v31 = vadd.f32 %v2075_v5, %v112_v24  ;;  %v295_v34 = vpack.c.bf16 %v237_v16, %v236_v8  ;;  %v296_v35 = vpack.c.bf16 %v239_v18, %v238_v17  ;;  %v240_v36 = vmax.f32 %v176_v12, 0.0  ;;  %v56_v8 = vld [vmem:[%s3098_s0 + $0x120] sm:$0xff]  ;;  %v58_v18 = vld [vmem:[%s3098_s0 + $0x130] sm:$0xff] }
  0x15   :  { %1965 = vmatmul.mubr.msk.bf16.gmra.mrb[4].mxu0 %vm323_vm1, %v293_v7  ;;  %v115_v37 = vmul.f32 %v2070_v4, %v44_v25  ;;  %v241_v38 = vmax.f32 %v177_v21, 0.0  ;;  %v242_v39 = vmax.f32 %v178_v22, 0.0  ;;  %v243_v40 = vmax.f32 %v179_v23, 0.0  ;;  %v59_v23 = vld [vmem:[%s3098_s0 + $0x138] sm:$0xff] }
  0x16   :  { %1968 = vmatprep.mubr.msk.bf16.mxu0 %vm323_vm1, %v294_v11  ;;  %v116_v41 = vmul.f32 %v2070_v4, %v45_v29  ;;  %v244_v43 = vmax.f32 %v180_v26, 0.0  ;;  %v245_v44 = vmax.f32 %v181_v27, 0.0  ;;  %v2209_v45 = vadd.f32 %v2075_v5, %v113_v28  ;;  %v60_v28 = vld [vmem:[%s3098_s0 + $0x140] sm:$0xff] }
  0x17   :  { %v117_v46 = vmul.f32 %v2070_v4, %v46_v33  ;;  %v246_v48 = vmax.f32 %v182_v30, 0.0  ;;  %v247_v49 = vmax.f32 %v183_v31, 0.0  ;;  %v2216_v50 = vadd.f32 %v2075_v5, %v114_v32  ;;  %v61_v33 = vld [vmem:[%s3098_s0 + $0x148] sm:$0xff] }
  0x18   :  { %v2219_v51 = vadd.f32 %v2075_v5, %v115_v37  ;;  %v2222_v52 = vadd.f32 %v2075_v5, %v116_v41  ;;  %v118_v53 = vmul.f32 %v2070_v4, %v47_v42  ;;  %v297_v55 = vpack.c.bf16 %v241_v38, %v240_v36  ;;  %v62_v38 = vld [vmem:[%s3098_s0 + $0x150] sm:$0xff] }
  0x19   :  { %v119_v57 = vmul.f32 %v2070_v4, %v48_v47  ;;  %v298_v59 = vpack.c.bf16 %v243_v40, %v242_v39  ;;  %v2236_v60 = vpack.c.bf16 %v245_v44, %v244_v43  ;;  %v248_v61 = vmax.f32 %v2209_v45, 0.0  ;;  %v63_v39 = vld [vmem:[%s3098_s0 + $0x158] sm:$0xff]  ;;  %v64_v44 = vld [vmem:[%s3098_s0 + $0x160] sm:$0xff] }
  0x1a   :  { %v2240_v62 = vadd.f32 %v2075_v5, %v117_v46  ;;  %v2249_v1 = vpack.c.bf16 %v247_v49, %v246_v48  ;;  %v249_v2 = vmax.f32 %v2216_v50, 0.0  ;;  %v250_v3 = vmax.f32 %v2219_v51, 0.0  ;;  %v75_v45 = vld [vmem:[%s3098_s0 + $0x1b8] sm:$0xff] }
  0x1b   :  { %v123_v7 = vmul.f32 %v2070_v4, %v52_v54  ;;  %v251_v9 = vmax.f32 %v2222_v52, 0.0  ;;  %v2262_v10 = vadd.f32 %v2075_v5, %v118_v53  ;;  %v120_v11 = vmul.f32 %v2070_v4, %v49_v56  ;;  %v65_v53 = vld [vmem:[%s3098_s0 + $0x168] sm:$0xff] }
  0x1c   :  { %v124_v12 = vmul.f32 %v2070_v4, %v53_v58  ;;  %v2270_v14 = vadd.f32 %v2075_v5, %v119_v57  ;;  %v125_v16 = vmul.f32 %v2070_v4, %v54_v63  ;;  %v126_v17 = vmul.f32 %v2070_v4, %v55_v0  ;;  %v66_v58 = vld [vmem:[%s3098_s0 + $0x170] sm:$0xff] }
  0x1d   :  { %1969 = vmatmul.mubr.msk.bf16.gmra.mrb[8].mxu0 %vm323_vm1, %v295_v34  ;;  %v194_v15 = vadd.f32 %v2075_v5, %v123_v7  ;;  %v252_v19 = vmax.f32 %v2240_v62, 0.0  ;;  %v121_v20 = vmul.f32 %v2070_v4, %v50_v6  ;;  %v127_v22 = vmul.f32 %v2070_v4, %v56_v8  ;;  %v67_v8 = vld [vmem:[%s3098_s0 + $0x178] sm:$0xff]  ;;  %v72_v62 = vld [vmem:[%s3098_s0 + $0x1a0] sm:$0xff] }
  0x1e   :  { %1972 = vmatprep.mubr.msk.bf16.mxu0 %vm323_vm1, %v296_v35  ;;  %v195_v21 = vadd.f32 %v2075_v5, %v124_v12  ;;  %v196_v25 = vadd.f32 %v2075_v5, %v125_v16  ;;  %v197_v26 = vadd.f32 %v2075_v5, %v126_v17  ;;  %v128_v27 = vmul.f32 %v2070_v4, %v57_v13  ;;  %v68_v16 = vld [vmem:[%s3098_s0 + $0x180] sm:$0xff] }
  0x1f   :  { %v258_v24 = vmax.f32 %v194_v15, 0.0  ;;  %v2292_v29 = vadd.f32 %v2075_v5, %v120_v11  ;;  %v198_v31 = vadd.f32 %v2075_v5, %v127_v22  ;;  %v129_v32 = vmul.f32 %v2070_v4, %v58_v18 }
  0x20   :  { %v259_v30 = vmax.f32 %v195_v21, 0.0  ;;  %v260_v34 = vmax.f32 %v196_v25, 0.0  ;;  %v261_v35 = vmax.f32 %v197_v26, 0.0  ;;  %v199_v36 = vadd.f32 %v2075_v5, %v128_v27  ;;  %v69_v27 = vld [vmem:[%s3098_s0 + $0x188] sm:$0xff] }
  0x21   :  { %v130_v37 = vmul.f32 %v2070_v4, %v59_v23  ;;  %v262_v41 = vmax.f32 %v198_v31, 0.0  ;;  %v200_v42 = vadd.f32 %v2075_v5, %v129_v32  ;;  %v131_v43 = vmul.f32 %v2070_v4, %v60_v28 }
  0x22   :  { %v306_v40 = vpack.c.bf16 %v259_v30, %v258_v24  ;;  %v307_v46 = vpack.c.bf16 %v261_v35, %v260_v34  ;;  %v263_v47 = vmax.f32 %v199_v36, 0.0  ;;  %v132_v49 = vmul.f32 %v2070_v4, %v61_v33  ;;  %v70_v36 = vld [vmem:[%s3098_s0 + $0x190] sm:$0xff] }
  0x23   :  { %v201_v48 = vadd.f32 %v2075_v5, %v130_v37  ;;  %v264_v54 = vmax.f32 %v200_v42, 0.0  ;;  %v133_v56 = vmul.f32 %v2070_v4, %v62_v38  ;;  %v134_v57 = vmul.f32 %v2070_v4, %v63_v39 }
  0x24   :  { %1992 = vmatprep.mubr.msk.bf16.mxu1 %vm323_vm1, %v306_v40  ;;  %v308_v63 = vpack.c.bf16 %v263_v47, %v262_v41  ;;  %v203_v6 = vadd.f32 %v2075_v5, %v132_v49  ;;  %v135_v7 = vmul.f32 %v2070_v4, %v64_v44  ;;  %v136_v15 = vmul.f32 %v2070_v4, %v65_v53  ;;  %v71_v40 = vld [vmem:[%s3098_s0 + $0x198] sm:$0xff]  ;;  %v73_v41 = vld [vmem:[%s3098_s0 + $0x1a8] sm:$0xff]  ;;  %v78_v49 = vld [vmem:[%s3098_s0 + $0x1d0] sm:$0xff] }
  0x25   :  { %1973 = vmatmul.mubr.msk.bf16.gmra.mrb[12].mxu0 %vm323_vm1, %v297_v55  ;;  %v202_v55 = vadd.f32 %v2075_v5, %v131_v43  ;;  %1993 = vmatmul.mubr.msk.bf16.vlgmr.msra.gmra.mrb[0].mxu1 %vm323_vm1, %v307_v46  ;;  %v265_v0 = vmax.f32 %v201_v48, 0.0  ;;  %v204_v12 = vadd.f32 %v2075_v5, %v133_v56  ;;  %v205_v13 = vadd.f32 %v2075_v5, %v134_v57  ;;  %v77_v43 = vld [vmem:[%s3098_s0 + $0x1c8] sm:$0xff]  ;;  %v79_v53 = vld [vmem:[%s3098_s0 + $0x1d8] sm:$0xff] }
  0x26   :  { %1976 = vmatprep.mubr.msk.bf16.mxu0 %vm323_vm1, %v298_v59  ;;  %v51_v59 = vld [vmem:[%s3098_s0 + $0xf8] sm:$0xff]  ;;  %v253_v17 = vmax.f32 %v2262_v10, 0.0  ;;  %1996 = vmatprep.mubr.msk.bf16.mxu1 %vm323_vm1, %v308_v63  ;;  %v267_v18 = vmax.f32 %v203_v6, 0.0  ;;  %v206_v21 = vadd.f32 %v2075_v5, %v135_v7  ;;  %v137_v22 = vmul.f32 %v2070_v4, %v66_v58  ;;  %v80_v58 = vld [vmem:[%s3098_s0 + $0x1e0] sm:$0xff]  ;;  %v81_v7 = vld [vmem:[%s3098_s0 + $0x1e8] sm:$0xff] }
  0x27   :  { %v266_v11 = vmax.f32 %v202_v55, 0.0  ;;  %v254_v23 = vmax.f32 %v2270_v14, 0.0  ;;  %v122_v24 = vmul.f32 %v2070_v4, %v51_v59  ;;  %v207_v25 = vadd.f32 %v2075_v5, %v136_v15  ;;  %v82_v15 = vld [vmem:[%s3098_s0 + $0x1f0] sm:$0xff] }
  0x28   :  { %v138_v26 = vmul.f32 %v2070_v4, %v67_v8  ;;  %v255_v10 = vmax.f32 %v2292_v29, 0.0  ;;  %v2354_v28 = vadd.f32 %v2075_v5, %v121_v20  ;;  %v309_v30 = vpack.c.bf16 %v265_v0, %v264_v54 }
  0x29   :  { %v139_v31 = vmul.f32 %v2070_v4, %v68_v16  ;;  %v310_v14 = vpack.c.bf16 %v267_v18, %v266_v11  ;;  %v268_v32 = vmax.f32 %v204_v12, 0.0  ;;  %v269_v33 = vmax.f32 %v205_v13, 0.0 }
  0x2a   :  { %v2360_v34 = vadd.f32 %v2075_v5, %v137_v22  ;;  %v270_v35 = vmax.f32 %v206_v21, 0.0  ;;  %v271_v29 = vmax.f32 %v207_v25, 0.0  ;;  %v140_v20 = vmul.f32 %v2070_v4, %v69_v27  ;;  %v83_v22 = vld [vmem:[%s3098_s0 + $0x1f8] sm:$0xff] }
  0x2b   :  { %v301_v37 = vpack.c.bf16 %v249_v2, %v248_v61  ;;  %v2381_v38 = vpack.c.bf16 %v253_v17, %v252_v19  ;;  %v2384_v39 = vadd.f32 %v2075_v5, %v138_v26  ;;  %v2392_v50 = vpack.c.bf16 %v255_v10, %v254_v23  ;;  %v76_v2 = vld [vmem:[%s3098_s0 + $0x1c0] sm:$0xff] }
  0x2c   :  { %v2395_v51 = vadd.f32 %v2075_v5, %v122_v24  ;;  %v256_v52 = vmax.f32 %v2354_v28, 0.0  ;;  %v2400_v61 = vadd.f32 %v2075_v5, %v139_v31  ;;  %v141_v19 = vmul.f32 %v2070_v4, %v70_v36 }
  0x2d   :  { %1977 = vmatmul.mubr.msk.bf16.gmra.mrb[16].mxu0 %vm323_vm1, %v2236_v60  ;;  %v74_v60 = vld [vmem:[%s3098_s0 + $0x1b0] sm:$0xff]  ;;  %1997 = vmatmul.mubr.msk.bf16.gmra.mrb[4].mxu1 %vm323_vm1, %v309_v30  ;;  %v312_v44 = vpack.c.bf16 %v271_v29, %v270_v35  ;;  %v211_v46 = vadd.f32 %v2075_v5, %v140_v20  ;;  %v142_v47 = vmul.f32 %v2070_v4, %v71_v40  ;;  %v273_v54 = vmax.f32 %v2384_v39, 0.0 }
  0x2e   :  { %1980 = vmatprep.mubr.msk.bf16.mxu0 %vm323_vm1, %v2249_v1  ;;  %v302_v1 = vpack.c.bf16 %v251_v9, %v250_v3  ;;  %2000 = vmatprep.mubr.msk.bf16.mxu1 %vm323_vm1, %v310_v14  ;;  %v311_v3 = vpack.c.bf16 %v269_v33, %v268_v32  ;;  %v272_v9 = vmax.f32 %v2360_v34, 0.0  ;;  %v145_v42 = vmul.f32 %v2070_v4, %v74_v60 }
  0x2f   :  { %v146_v48 = vmul.f32 %v2070_v4, %v75_v45  ;;  %v143_v55 = vmul.f32 %v2070_v4, %v72_v62  ;;  %v147_v57 = vmul.f32 %v2070_v4, %v76_v2  ;;  %v274_v59 = vmax.f32 %v2400_v61, 0.0 }
  0x30   :  { %v216_v56 = vadd.f32 %v2075_v5, %v145_v42  ;;  %v144_v63 = vmul.f32 %v2070_v4, %v73_v41  ;;  %v148_v6 = vmul.f32 %v2070_v4, %v77_v43  ;;  %v149_v12 = vmul.f32 %v2070_v4, %v78_v49 }
  0x31   :  { %v217_v0 = vadd.f32 %v2075_v5, %v146_v48  ;;  %v218_v11 = vadd.f32 %v2075_v5, %v147_v57  ;;  %v150_v13 = vmul.f32 %v2070_v4, %v79_v53  ;;  %v275_v16 = vmax.f32 %v211_v46, 0.0 }
  0x32   :  { %v280_v8 = vmax.f32 %v216_v56, 0.0  ;;  %v219_v18 = vadd.f32 %v2075_v5, %v148_v6  ;;  %v151_v21 = vmul.f32 %v2070_v4, %v80_v58  ;;  %v220_v24 = vadd.f32 %v2075_v5, %v149_v12 }
  0x33   :  { %v281_v17 = vmax.f32 %v217_v0, 0.0  ;;  %v282_v23 = vmax.f32 %v218_v11, 0.0  ;;  %v221_v25 = vadd.f32 %v2075_v5, %v150_v13  ;;  %v152_v26 = vmul.f32 %v2070_v4, %v81_v7 }
  0x34   :  { %v283_v10 = vmax.f32 %v219_v18, 0.0  ;;  %v222_v30 = vadd.f32 %v2075_v5, %v151_v21  ;;  %v153_v31 = vmul.f32 %v2070_v4, %v82_v15  ;;  %v284_v14 = vmax.f32 %v220_v24, 0.0 }
  0x35   :  { %1981 = vmatmul.mubr.msk.bf16.gmra.mrb[20].mxu0 %vm323_vm1, %v301_v37  ;;  %2001 = vmatmul.mubr.msk.bf16.gmra.mrb[8].mxu1 %vm323_vm1, %v311_v3  ;;  %v317_v27 = vpack.c.bf16 %v281_v17, %v280_v8  ;;  %v285_v32 = vmax.f32 %v221_v25, 0.0  ;;  %v223_v33 = vadd.f32 %v2075_v5, %v152_v26  ;;  %v154_v34 = vmul.f32 %v2070_v4, %v83_v22 }
  0x36   :  { %1984 = vmatprep.mubr.msk.bf16.mxu0 %vm323_vm1, %v302_v1  ;;  %2004 = vmatprep.mubr.msk.bf16.mxu1 %vm323_vm1, %v312_v44  ;;  %v257_v35 = vmax.f32 %v2395_v51, 0.0  ;;  %v318_v29 = vpack.c.bf16 %v283_v10, %v282_v23  ;;  %v286_v20 = vmax.f32 %v222_v30, 0.0  ;;  %v224_v36 = vadd.f32 %v2075_v5, %v153_v31 }
  0x37   :  { %v212_v60 = vadd.f32 %v2075_v5, %v141_v19  ;;  %v319_v37 = vpack.c.bf16 %v285_v32, %v284_v14  ;;  %v287_v1 = vmax.f32 %v223_v33, 0.0  ;;  %v225_v39 = vadd.f32 %v2075_v5, %v154_v34 }
  0x38   :  { %v313_v40 = vpack.c.bf16 %v273_v54, %v272_v9  ;;  %v213_v45 = vadd.f32 %v2075_v5, %v142_v47  ;;  %v214_v61 = vadd.f32 %v2075_v5, %v143_v55  ;;  %v288_v62 = vmax.f32 %v224_v36, 0.0 }
  0x39   :  { %v314_v4 = vpack.c.bf16 %v275_v16, %v274_v59  ;;  %v215_v51 = vadd.f32 %v2075_v5, %v144_v63  ;;  %v320_v2 = vpack.c.bf16 %v287_v1, %v286_v20  ;;  %v289_v3 = vmax.f32 %v225_v39, 0.0 }
  0x3a   :  { %v276_v9 = vmax.f32 %v212_v60, 0.0  ;;  %v277_v41 = vmax.f32 %v213_v45, 0.0  ;;  %v305_v42 = vpack.c.bf16 %v257_v35, %v256_v52  ;;  %v278_v43 = vmax.f32 %v214_v61, 0.0 }
  0x3b   :  { %v321_v19 = vpack.c.bf16 %v289_v3, %v288_v62 }
  0x3c   :  { %v315_v44 = vpack.c.bf16 %v277_v41, %v276_v9 }
  0x3d   :  { %1985 = vmatmul.mubr.msk.bf16.gmra.mrb[24].mxu0 %vm323_vm1, %v2381_v38  ;;  %2005 = vmatmul.mubr.msk.bf16.gmra.mrb[12].mxu1 %vm323_vm1, %v313_v40  ;;  %v279_v38 = vmax.f32 %v215_v51, 0.0 }
  0x3e   :  { %1988 = vmatprep.mubr.msk.bf16.mxu0 %vm323_vm1, %v2392_v50  ;;  %2008 = vmatprep.mubr.msk.bf16.mxu1 %vm323_vm1, %v314_v4 }
  0x3f   :  { %v316_v5 = vpack.c.bf16 %v279_v38, %v278_v43 }
  0x45   :  { %1989 = vmatmul.mubr.msk.bf16.gmra.mrb[28].mxu0 %vm323_vm1, %v305_v42  ;;  %2009 = vmatmul.mubr.msk.bf16.gmra.mrb[16].mxu1 %vm323_vm1, %v315_v44 }
  0x46   :  { %2012 = vmatprep.mubr.msk.bf16.mxu1 %vm323_vm1, %v316_v5 }
  0x4d   :  { %2013 = vmatmul.mubr.msk.bf16.gmra.mrb[20].mxu1 %vm323_vm1, %v317_v27 }
  0x4e   :  { %2016 = vmatprep.mubr.msk.bf16.mxu1 %vm323_vm1, %v318_v29 }
  0x55   :  { %2017 = vmatmul.mubr.msk.bf16.gmra.mrb[24].mxu1 %vm323_vm1, %v319_v37 }
  0x56   :  { %2020 = vmatprep.mubr.msk.bf16.mxu1 %vm323_vm1, %v320_v2 }
  0x5d   :  { %2021 = vmatmul.mubr.msk.bf16.gmra.mrb[28].mxu1 %vm323_vm1, %v321_v19 }
  0xe0   :  { %v1962_v28 = vpop.f32.mrb[0].mxu0 }
  0xe1   :  { %v1863_v50 = vpack.c.bf16 %v1962_v28, %v1962_v28  ;;  %v458_v52 = vpop.f32.mrb[1].mxu0  ;;  %v1556_v49 = vmul.f32 %v1962_v28, %v1962_v28  ;;  %v1424_v0 = vsel %vm323_vm1, %v1962_v28, 0.0 }
  0xe2   :  { %v1861_v46 = vpack.c.bf16 %v458_v52, %v458_v52  ;;  %v1554_v47 = vmul.f32 %v458_v52, %v458_v52  ;;  %v1963_v48 = vpop.f32.mrb[2].mxu0  ;;  %v1421_v55 = vsel %vm323_vm1, %v458_v52, 0.0 }
  0xe3   :  { %972 = vst.msk [vmem:[%s3101_s4 + $0x8] sm:$0xf] %vm969_vm2, %v1863_v50  ;;  %v1864_v53 = vpack.c.bf16 %v1963_v48, %v1963_v48  ;;  %v461_v54 = vpop.f32.mrb[3].mxu0  ;;  %v1557_v59 = vmul.f32 %v1963_v48, %v1963_v48  ;;  %v1621_v12 = vsel %vm323_vm1, %v1556_v49, 0.0  ;;  %v1426_v15 = vsel %vm323_vm1, %v1963_v48, 0.0 }
  0xe4   :  { %970 = vst.msk [vmem:[%s3101_s4] sm:$0xf] %vm969_vm2, %v1861_v46  ;;  %v1862_v56 = vpack.c.bf16 %v461_v54, %v461_v54  ;;  %v1422_v57 = vsel %vm323_vm1, %v461_v54, 0.0  ;;  %v1555_v58 = vmul.f32 %v461_v54, %v461_v54  ;;  %v1618_v6 = vsel %vm323_vm1, %v1554_v47, 0.0 }
  0xe5   :  { %973 = vst.msk [vmem:[%s3101_s4 + $0xc] sm:$0xf] %vm969_vm2, %v1864_v53  ;;  %v1423_v63 = vadd.f32 %v1422_v57, %v1421_v55  ;;  %v1623_v16 = vsel %vm323_vm1, %v1557_v59, 0.0 }
  0xe6   :  { %971 = vst.msk [vmem:[%s3101_s4 + $0x4] sm:$0xf] %vm969_vm2, %v1862_v56  ;;  %v1619_v7 = vsel %vm323_vm1, %v1555_v58, 0.0 }
  0xe7   :  { %v1425_v8 = vadd.f32 %v1424_v0, %v1423_v63  ;;  %v1620_v11 = vadd.f32 %v1619_v7, %v1618_v6 }
  0xe8   :  { %v1966_v13 = vpop.f32.mrb[4].mxu0 }
  0xe9   :  { %v1622_v17 = vadd.f32 %v1621_v12, %v1620_v11  ;;  %v1867_v18 = vpack.c.bf16 %v1966_v13, %v1966_v13  ;;  %v474_v21 = vpop.f32.mrb[5].mxu0  ;;  %v1427_v23 = vadd.f32 %v1426_v15, %v1425_v8  ;;  %v1560_v33 = vmul.f32 %v1966_v13, %v1966_v13 }
  0xea   :  { %v1865_v22 = vpack.c.bf16 %v474_v21, %v474_v21  ;;  %v1428_v24 = vsel %vm323_vm1, %v474_v21, 0.0  ;;  %v1558_v25 = vmul.f32 %v474_v21, %v474_v21  ;;  %v1967_v26 = vpop.f32.mrb[6].mxu0  ;;  %v1432_v36 = vsel %vm323_vm1, %v1966_v13, 0.0 }
  0xeb   :  { %976 = vst.msk [vmem:[%s3101_s4 + $0x18] sm:$0xf] %vm969_vm2, %v1867_v18  ;;  %v1624_v27 = vadd.f32 %v1623_v16, %v1622_v17  ;;  %v1868_v10 = vpack.c.bf16 %v1967_v26, %v1967_v26  ;;  %v477_v30 = vpop.f32.mrb[7].mxu0  ;;  %v1429_v31 = vadd.f32 %v1428_v24, %v1427_v23  ;;  %v1561_v60 = vmul.f32 %v1967_v26, %v1967_v26 }
  0xec   :  { %974 = vst.msk [vmem:[%s3101_s4 + $0x10] sm:$0xf] %vm969_vm2, %v1865_v22  ;;  %v1625_v14 = vsel %vm323_vm1, %v1558_v25, 0.0  ;;  %v1866_v32 = vpack.c.bf16 %v477_v30, %v477_v30  ;;  %v1430_v35 = vsel %vm323_vm1, %v477_v30, 0.0  ;;  %v1559_v29 = vmul.f32 %v477_v30, %v477_v30 }
  0xed   :  { %v1626_v34 = vadd.f32 %v1625_v14, %v1624_v27  ;;  %977 = vst.msk [vmem:[%s3101_s4 + $0x1c] sm:$0xf] %vm969_vm2, %v1868_v10  ;;  %v1431_v20 = vadd.f32 %v1430_v35, %v1429_v31  ;;  %v1629_v45 = vsel %vm323_vm1, %v1560_v33, 0.0  ;;  %v1434_v61 = vsel %vm323_vm1, %v1967_v26, 0.0 }
  0xee   :  { %975 = vst.msk [vmem:[%s3101_s4 + $0x14] sm:$0xf] %vm969_vm2, %v1866_v32  ;;  %v1627_v37 = vsel %vm323_vm1, %v1559_v29, 0.0  ;;  %v1631_v41 = vsel %vm323_vm1, %v1561_v60, 0.0 }
  0xef   :  { %v1433_v1 = vadd.f32 %v1432_v36, %v1431_v20  ;;  %v1628_v39 = vadd.f32 %v1627_v37, %v1626_v34 }
  0xf0   :  { %v1970_v40 = vpop.f32.mrb[8].mxu0 }
  0xf1   :  { %v1871_v62 = vpack.c.bf16 %v1970_v40, %v1970_v40  ;;  %v490_v4 = vpop.f32.mrb[9].mxu0  ;;  %v1630_v51 = vadd.f32 %v1629_v45, %v1628_v39  ;;  %v1435_v3 = vadd.f32 %v1434_v61, %v1433_v1  ;;  %v1564_v50 = vmul.f32 %v1970_v40, %v1970_v40 }
  0xf2   :  { %v1869_v2 = vpack.c.bf16 %v490_v4, %v490_v4  ;;  %v1436_v19 = vsel %vm323_vm1, %v490_v4, 0.0  ;;  %v1971_v9 = vpop.f32.mrb[10].mxu0  ;;  %v1562_v42 = vmul.f32 %v490_v4, %v490_v4  ;;  %v1440_v53 = vsel %vm323_vm1, %v1970_v40, 0.0 }
  0xf3   :  { %980 = vst.msk [vmem:[%s3101_s4 + $0x28] sm:$0xf] %vm969_vm2, %v1871_v62  ;;  %v1872_v43 = vpack.c.bf16 %v1971_v9, %v1971_v9  ;;  %v493_v38 = vpop.f32.mrb[11].mxu0  ;;  %v1437_v44 = vadd.f32 %v1436_v19, %v1435_v3  ;;  %v1632_v5 = vadd.f32 %v1631_v41, %v1630_v51  ;;  %v1565_v54 = vmul.f32 %v1971_v9, %v1971_v9 }
  0xf4   :  { %978 = vst.msk [vmem:[%s3101_s4 + $0x20] sm:$0xf] %vm969_vm2, %v1869_v2  ;;  %v1870_v28 = vpack.c.bf16 %v493_v38, %v493_v38  ;;  %v1633_v52 = vsel %vm323_vm1, %v1562_v42, 0.0  ;;  %v1438_v46 = vsel %vm323_vm1, %v493_v38, 0.0  ;;  %v1563_v47 = vmul.f32 %v493_v38, %v493_v38 }
  0xf5   :  { %981 = vst.msk [vmem:[%s3101_s4 + $0x2c] sm:$0xf] %vm969_vm2, %v1872_v43  ;;  %v1634_v48 = vadd.f32 %v1633_v52, %v1632_v5  ;;  %v1439_v49 = vadd.f32 %v1438_v46, %v1437_v44  ;;  %v1637_v59 = vsel %vm323_vm1, %v1564_v50, 0.0  ;;  %v1442_v63 = vsel %vm323_vm1, %v1971_v9, 0.0 }
  0xf6   :  { %979 = vst.msk [vmem:[%s3101_s4 + $0x24] sm:$0xf] %vm969_vm2, %v1870_v28  ;;  %v1635_v55 = vsel %vm323_vm1, %v1563_v47, 0.0  ;;  %v1639_v15 = vsel %vm323_vm1, %v1565_v54, 0.0 }
  0xf7   :  { %v1441_v56 = vadd.f32 %v1440_v53, %v1439_v49  ;;  %v1636_v57 = vadd.f32 %v1635_v55, %v1634_v48 }
  0xf8   :  { %v1974_v58 = vpop.f32.mrb[12].mxu0  ;;  %v2563_v21 = vpop.f32.mrb[0].mxu1 }
  0xf9   :  { %v1875_v0 = vpack.c.bf16 %v1974_v58, %v1974_v58  ;;  %v506_v6 = vpop.f32.mrb[13].mxu0  ;;  %v1638_v7 = vadd.f32 %v1637_v59, %v1636_v57  ;;  %v1443_v11 = vadd.f32 %v1442_v63, %v1441_v56  ;;  %v1568_v22 = vmul.f32 %v1974_v58, %v1974_v58  ;;  %v2569_v26 = vpop.f32.mrb[1].mxu1 }
  0xfa   :  { %v1873_v8 = vpack.c.bf16 %v506_v6, %v506_v6  ;;  %v1444_v12 = vsel %vm323_vm1, %v506_v6, 0.0  ;;  %v1975_v13 = vpop.f32.mrb[14].mxu0  ;;  %v1566_v16 = vmul.f32 %v506_v6, %v506_v6  ;;  %v1895_v31 = vpack.c.bf16 %v2563_v21, %v2563_v21  ;;  %v2579_v14 = vpop.f32.mrb[2].mxu1 }
  0xfb   :  { %984 = vst.msk [vmem:[%s3101_s4 + $0x38] sm:$0xf] %vm969_vm2, %v1875_v0  ;;  %v1876_v17 = vpack.c.bf16 %v1975_v13, %v1975_v13  ;;  %v509_v18 = vpop.f32.mrb[15].mxu0  ;;  %v1445_v23 = vadd.f32 %v1444_v12, %v1443_v11  ;;  %v1640_v24 = vadd.f32 %v1639_v15, %v1638_v7  ;;  %v2585_v34 = vpop.f32.mrb[3].mxu1  ;;  %v1448_v35 = vsel %vm323_vm1, %v1974_v58, 0.0 }
  0xfc   :  { %982 = vst.msk [vmem:[%s3101_s4 + $0x30] sm:$0xf] %vm969_vm2, %v1873_v8  ;;  %v1874_v25 = vpack.c.bf16 %v509_v18, %v509_v18  ;;  %v1641_v27 = vsel %vm323_vm1, %v1566_v16, 0.0  ;;  %v1446_v10 = vsel %vm323_vm1, %v509_v18, 0.0  ;;  %v1567_v30 = vmul.f32 %v509_v18, %v509_v18  ;;  %1004 = vst.msk [vmem:[%s3101_s4 + $0x88] sm:$0xf] %vm969_vm2, %v1895_v31 }
  0xfd   :  { %985 = vst.msk [vmem:[%s3101_s4 + $0x3c] sm:$0xf] %vm969_vm2, %v1876_v17  ;;  %v1642_v32 = vadd.f32 %v1641_v27, %v1640_v24  ;;  %v1447_v33 = vadd.f32 %v1446_v10, %v1445_v23  ;;  %v1569_v29 = vmul.f32 %v1975_v13, %v1975_v13  ;;  %v1893_v36 = vpack.c.bf16 %v2569_v26, %v2569_v26 }
  0xfe   :  { %983 = vst.msk [vmem:[%s3101_s4 + $0x34] sm:$0xf] %vm969_vm2, %v1874_v25  ;;  %v1643_v20 = vsel %vm323_vm1, %v1567_v30, 0.0  ;;  %v1896_v39 = vpack.c.bf16 %v2579_v14, %v2579_v14  ;;  %v1645_v40 = vsel %vm323_vm1, %v1568_v22, 0.0  ;;  %v1450_v45 = vsel %vm323_vm1, %v1975_v13, 0.0 }
  0xff   :  { %v1449_v60 = vadd.f32 %v1448_v35, %v1447_v33  ;;  %v1644_v37 = vadd.f32 %v1643_v20, %v1642_v32  ;;  %1002 = vst.msk [vmem:[%s3101_s4 + $0x80] sm:$0xf] %vm969_vm2, %v1893_v36  ;;  %v1647_v9 = vsel %vm323_vm1, %v1569_v29, 0.0  ;;  %v1894_v59 = vpack.c.bf16 %v2585_v34, %v2585_v34 }
 0x100   :  { %v1978_v1 = vpop.f32.mrb[16].mxu0  ;;  %1005 = vst.msk [vmem:[%s3101_s4 + $0x8c] sm:$0xf] %vm969_vm2, %v1896_v39  ;;  %v2613_v38 = vpop.f32.mrb[4].mxu1 }
 0x101   :  { %v1879_v61 = vpack.c.bf16 %v1978_v1, %v1978_v1  ;;  %v522_v62 = vpop.f32.mrb[17].mxu0  ;;  %v1646_v4 = vadd.f32 %v1645_v40, %v1644_v37  ;;  %v1451_v2 = vadd.f32 %v1450_v45, %v1449_v60  ;;  %v2619_v50 = vpop.f32.mrb[5].mxu1  ;;  %v1572_v52 = vmul.f32 %v1978_v1, %v1978_v1  ;;  %1003 = vst.msk [vmem:[%s3101_s4 + $0x84] sm:$0xf] %vm969_vm2, %v1894_v59 }
 0x102   :  { %v1877_v51 = vpack.c.bf16 %v522_v62, %v522_v62  ;;  %v1452_v3 = vsel %vm323_vm1, %v522_v62, 0.0  ;;  %v1979_v19 = vpop.f32.mrb[18].mxu0  ;;  %v1570_v41 = vmul.f32 %v522_v62, %v522_v62  ;;  %v2627_v49 = vpop.f32.mrb[6].mxu1  ;;  %v1456_v56 = vsel %vm323_vm1, %v1978_v1, 0.0 }
 0x103   :  { %988 = vst.msk [vmem:[%s3101_s4 + $0x48] sm:$0xf] %vm969_vm2, %v1879_v61  ;;  %v1880_v42 = vpack.c.bf16 %v1979_v19, %v1979_v19  ;;  %v525_v43 = vpop.f32.mrb[19].mxu0  ;;  %v1453_v44 = vadd.f32 %v1452_v3, %v1451_v2  ;;  %v1648_v5 = vadd.f32 %v1647_v9, %v1646_v4  ;;  %v2633_v55 = vpop.f32.mrb[7].mxu1  ;;  %v1573_v57 = vmul.f32 %v1979_v19, %v1979_v19 }
 0x104   :  { %986 = vst.msk [vmem:[%s3101_s4 + $0x40] sm:$0xf] %vm969_vm2, %v1877_v51  ;;  %v1878_v28 = vpack.c.bf16 %v525_v43, %v525_v43  ;;  %v1649_v46 = vsel %vm323_vm1, %v1570_v41, 0.0  ;;  %v1454_v47 = vsel %vm323_vm1, %v525_v43, 0.0  ;;  %v1571_v48 = vmul.f32 %v525_v43, %v525_v43 }
 0x105   :  { %989 = vst.msk [vmem:[%s3101_s4 + $0x4c] sm:$0xf] %vm969_vm2, %v1880_v42  ;;  %v1650_v53 = vadd.f32 %v1649_v46, %v1648_v5  ;;  %v1455_v54 = vadd.f32 %v1454_v47, %v1453_v44  ;;  %v1899_v7 = vpack.c.bf16 %v2613_v38, %v2613_v38  ;;  %v1653_v8 = vsel %vm323_vm1, %v1572_v52, 0.0 }
 0x106   :  { %987 = vst.msk [vmem:[%s3101_s4 + $0x44] sm:$0xf] %vm969_vm2, %v1878_v28  ;;  %v1651_v58 = vsel %vm323_vm1, %v1571_v48, 0.0  ;;  %v1458_v11 = vsel %vm323_vm1, %v1979_v19, 0.0  ;;  %v1655_v23 = vsel %vm323_vm1, %v1573_v57, 0.0  ;;  %v1897_v62 = vpack.c.bf16 %v2619_v50, %v2619_v50 }
 0x107   :  { %v1457_v63 = vadd.f32 %v1456_v56, %v1455_v54  ;;  %v1652_v0 = vadd.f32 %v1651_v58, %v1650_v53  ;;  %1008 = vst.msk [vmem:[%s3101_s4 + $0x98] sm:$0xf] %vm969_vm2, %v1899_v7  ;;  %v1900_v3 = vpack.c.bf16 %v2627_v49, %v2627_v49 }
 0x108   :  { %v1982_v6 = vpop.f32.mrb[20].mxu0  ;;  %v2657_v10 = vpop.f32.mrb[8].mxu1  ;;  %1006 = vst.msk [vmem:[%s3101_s4 + $0x90] sm:$0xf] %vm969_vm2, %v1897_v62 }
 0x109   :  { %v1883_v12 = vpack.c.bf16 %v1982_v6, %v1982_v6  ;;  %v538_v13 = vpop.f32.mrb[21].mxu0  ;;  %v1654_v15 = vadd.f32 %v1653_v8, %v1652_v0  ;;  %v1459_v17 = vadd.f32 %v1458_v11, %v1457_v63  ;;  %v2663_v33 = vpop.f32.mrb[9].mxu1  ;;  %v1576_v35 = vmul.f32 %v1982_v6, %v1982_v6  ;;  %1009 = vst.msk [vmem:[%s3101_s4 + $0x9c] sm:$0xf] %vm969_vm2, %v1900_v3 }
 0x10a   :  { %v1881_v16 = vpack.c.bf16 %v538_v13, %v538_v13  ;;  %v1460_v18 = vsel %vm323_vm1, %v538_v13, 0.0  ;;  %v1983_v22 = vpop.f32.mrb[22].mxu0  ;;  %v1574_v24 = vmul.f32 %v538_v13, %v538_v13  ;;  %v2671_v60 = vpop.f32.mrb[10].mxu1  ;;  %v1464_v40 = vsel %vm323_vm1, %v1982_v6, 0.0 }
 0x10b   :  { %992 = vst.msk [vmem:[%s3101_s4 + $0x58] sm:$0xf] %vm969_vm2, %v1883_v12  ;;  %v1884_v25 = vpack.c.bf16 %v1983_v22, %v1983_v22  ;;  %v541_v27 = vpop.f32.mrb[23].mxu0  ;;  %v1461_v30 = vadd.f32 %v1460_v18, %v1459_v17  ;;  %v1656_v31 = vadd.f32 %v1655_v23, %v1654_v15  ;;  %v2677_v39 = vpop.f32.mrb[11].mxu1  ;;  %v1577_v45 = vmul.f32 %v1983_v22, %v1983_v22 }
 0x10c   :  { %990 = vst.msk [vmem:[%s3101_s4 + $0x50] sm:$0xf] %vm969_vm2, %v1881_v16  ;;  %v1882_v32 = vpack.c.bf16 %v541_v27, %v541_v27  ;;  %v1657_v29 = vsel %vm323_vm1, %v1574_v24, 0.0  ;;  %v1462_v20 = vsel %vm323_vm1, %v541_v27, 0.0  ;;  %v1575_v36 = vmul.f32 %v541_v27, %v541_v27 }
 0x10d   :  { %993 = vst.msk [vmem:[%s3101_s4 + $0x5c] sm:$0xf] %vm969_vm2, %v1884_v25  ;;  %v1658_v37 = vadd.f32 %v1657_v29, %v1656_v31  ;;  %v1463_v1 = vadd.f32 %v1462_v20, %v1461_v30  ;;  %v1661_v19 = vsel %vm323_vm1, %v1576_v35, 0.0  ;;  %v1466_v9 = vsel %vm323_vm1, %v1983_v22, 0.0 }
 0x10e   :  { %991 = vst.msk [vmem:[%s3101_s4 + $0x54] sm:$0xf] %vm969_vm2, %v1882_v32  ;;  %v1659_v61 = vsel %vm323_vm1, %v1575_v36, 0.0  ;;  %v1663_v46 = vsel %vm323_vm1, %v1577_v45, 0.0  ;;  %v1898_v18 = vpack.c.bf16 %v2633_v55, %v2633_v55  ;;  %v1903_v25 = vpack.c.bf16 %v2657_v10, %v2657_v10 }
 0x10f   :  { %v1465_v4 = vadd.f32 %v1464_v40, %v1463_v1  ;;  %v1660_v51 = vadd.f32 %v1659_v61, %v1658_v37 }
 0x110   :  { %v1986_v2 = vpop.f32.mrb[24].mxu0  ;;  %v2701_v54 = vpop.f32.mrb[12].mxu1  ;;  %1007 = vst.msk [vmem:[%s3101_s4 + $0x94] sm:$0xf] %vm969_vm2, %v1898_v18  ;;  %1012 = vst.msk [vmem:[%s3101_s4 + $0xa8] sm:$0xf] %vm969_vm2, %v1903_v25 }
 0x111   :  { %v1887_v41 = vpack.c.bf16 %v1986_v2, %v1986_v2  ;;  %v554_v42 = vpop.f32.mrb[25].mxu0  ;;  %v1662_v43 = vadd.f32 %v1661_v19, %v1660_v51  ;;  %v1467_v5 = vadd.f32 %v1466_v9, %v1465_v4  ;;  %v2707_v59 = vpop.f32.mrb[13].mxu1  ;;  %v1580_v63 = vmul.f32 %v1986_v2, %v1986_v2 }
 0x112   :  { %v1885_v44 = vpack.c.bf16 %v554_v42, %v554_v42  ;;  %v1468_v28 = vsel %vm323_vm1, %v554_v42, 0.0  ;;  %v1987_v52 = vpop.f32.mrb[26].mxu0  ;;  %v1578_v47 = vmul.f32 %v554_v42, %v554_v42  ;;  %v2715_v8 = vpop.f32.mrb[14].mxu1  ;;  %v1472_v15 = vsel %vm323_vm1, %v1986_v2, 0.0 }
 0x113   :  { %996 = vst.msk [vmem:[%s3101_s4 + $0x68] sm:$0xf] %vm969_vm2, %v1887_v41  ;;  %v1888_v48 = vpack.c.bf16 %v1987_v52, %v1987_v52  ;;  %v557_v53 = vpop.f32.mrb[27].mxu0  ;;  %v1469_v56 = vadd.f32 %v1468_v28, %v1467_v5  ;;  %v1664_v57 = vadd.f32 %v1663_v46, %v1662_v43  ;;  %v2721_v13 = vpop.f32.mrb[15].mxu1  ;;  %v1581_v16 = vmul.f32 %v1987_v52, %v1987_v52 }
 0x114   :  { %994 = vst.msk [vmem:[%s3101_s4 + $0x60] sm:$0xf] %vm969_vm2, %v1885_v44  ;;  %v1886_v58 = vpack.c.bf16 %v557_v53, %v557_v53  ;;  %v1665_v0 = vsel %vm323_vm1, %v1578_v47, 0.0  ;;  %v1470_v6 = vsel %vm323_vm1, %v557_v53, 0.0  ;;  %v1579_v7 = vmul.f32 %v557_v53, %v557_v53 }
 0x115   :  { %997 = vst.msk [vmem:[%s3101_s4 + $0x6c] sm:$0xf] %vm969_vm2, %v1888_v48  ;;  %v1666_v11 = vadd.f32 %v1665_v0, %v1664_v57  ;;  %v1471_v12 = vadd.f32 %v1470_v6, %v1469_v56  ;;  %v1669_v27 = vsel %vm323_vm1, %v1580_v63, 0.0  ;;  %v1474_v30 = vsel %vm323_vm1, %v1987_v52, 0.0 }
 0x116   :  { %995 = vst.msk [vmem:[%s3101_s4 + $0x64] sm:$0xf] %vm969_vm2, %v1886_v58  ;;  %v1667_v17 = vsel %vm323_vm1, %v1579_v7, 0.0  ;;  %v1671_v1 = vsel %vm323_vm1, %v1581_v16, 0.0  ;;  %v1586_v28 = vmul.f32 %v2569_v26, %v2569_v26  ;;  %v1901_v53 = vpack.c.bf16 %v2663_v33, %v2663_v33 }
 0x117   :  { %v1473_v22 = vadd.f32 %v1472_v15, %v1471_v12  ;;  %v1668_v23 = vadd.f32 %v1667_v17, %v1666_v11  ;;  %v1904_v58 = vpack.c.bf16 %v2671_v60, %v2671_v60  ;;  %v1484_v6 = vsel %vm323_vm1, %v2569_v26, 0.0 }
 0x118   :  { %v1990_v24 = vpop.f32.mrb[28].mxu0  ;;  %v2745_v62 = vpop.f32.mrb[16].mxu1  ;;  %1010 = vst.msk [vmem:[%s3101_s4 + $0xa0] sm:$0xf] %vm969_vm2, %v1901_v53  ;;  %v1902_v7 = vpack.c.bf16 %v2677_v39, %v2677_v39  ;;  %v1681_v16 = vsel %vm323_vm1, %v1586_v28, 0.0  ;;  %v1587_v26 = vmul.f32 %v2585_v34, %v2585_v34  ;;  %v1907_v17 = vpack.c.bf16 %v2701_v54, %v2701_v54 }
 0x119   :  { %v1891_v31 = vpack.c.bf16 %v1990_v24, %v1990_v24  ;;  %v570_v32 = vpop.f32.mrb[29].mxu0  ;;  %v1670_v35 = vadd.f32 %v1669_v27, %v1668_v23  ;;  %v1475_v20 = vadd.f32 %v1474_v30, %v1473_v22  ;;  %v2751_v3 = vpop.f32.mrb[17].mxu1  ;;  %v1584_v19 = vmul.f32 %v1990_v24, %v1990_v24  ;;  %1013 = vst.msk [vmem:[%s3101_s4 + $0xac] sm:$0xf] %vm969_vm2, %v1904_v58 }
 0x11a   :  { %v1889_v29 = vpack.c.bf16 %v570_v32, %v570_v32  ;;  %v1476_v36 = vsel %vm323_vm1, %v570_v32, 0.0  ;;  %v1991_v37 = vpop.f32.mrb[30].mxu0  ;;  %v1582_v40 = vmul.f32 %v570_v32, %v570_v32  ;;  %v2759_v43 = vpop.f32.mrb[18].mxu1  ;;  %v1480_v46 = vsel %vm323_vm1, %v1990_v24, 0.0  ;;  %1011 = vst.msk [vmem:[%s3101_s4 + $0xa4] sm:$0xf] %vm969_vm2, %v1902_v7 }
 0x11b   :  { %1000 = vst.msk [vmem:[%s3101_s4 + $0x78] sm:$0xf] %vm969_vm2, %v1891_v31  ;;  %v1892_v45 = vpack.c.bf16 %v1991_v37, %v1991_v37  ;;  %v573_v61 = vpop.f32.mrb[31].mxu0  ;;  %v1477_v4 = vadd.f32 %v1476_v36, %v1475_v20  ;;  %v1672_v51 = vadd.f32 %v1671_v1, %v1670_v35  ;;  %v2767_v52 = vpop.f32.mrb[19].mxu1  ;;  %v1585_v47 = vmul.f32 %v1991_v37, %v1991_v37 }
 0x11c   :  { %998 = vst.msk [vmem:[%s3101_s4 + $0x70] sm:$0xf] %vm969_vm2, %v1889_v29  ;;  %v1890_v2 = vpack.c.bf16 %v573_v61, %v573_v61  ;;  %v1673_v9 = vsel %vm323_vm1, %v1582_v40, 0.0  ;;  %v1478_v41 = vsel %vm323_vm1, %v573_v61, 0.0  ;;  %v1583_v42 = vmul.f32 %v573_v61, %v573_v61  ;;  %1016 = vst.msk [vmem:[%s3101_s4 + $0xb8] sm:$0xf] %vm969_vm2, %v1907_v17 }
 0x11d   :  { %1001 = vst.msk [vmem:[%s3101_s4 + $0x7c] sm:$0xf] %vm969_vm2, %v1892_v45  ;;  %v1674_v44 = vadd.f32 %v1673_v9, %v1672_v51  ;;  %v1479_v5 = vadd.f32 %v1478_v41, %v1477_v4  ;;  %v1677_v63 = vsel %vm323_vm1, %v1584_v19, 0.0  ;;  %v1482_v0 = vsel %vm323_vm1, %v1991_v37, 0.0 }
 0x11e   :  { %999 = vst.msk [vmem:[%s3101_s4 + $0x74] sm:$0xf] %vm969_vm2, %v1890_v2  ;;  %v1675_v48 = vsel %vm323_vm1, %v1583_v42, 0.0  ;;  %v1679_v15 = vsel %vm323_vm1, %v1585_v47, 0.0  ;;  %v1905_v24 = vpack.c.bf16 %v2707_v59, %v2707_v59  ;;  %v1588_v27 = vmul.f32 %v2563_v21, %v2563_v21 }
 0x11f   :  { %v1481_v56 = vadd.f32 %v1480_v46, %v1479_v5  ;;  %v1676_v57 = vadd.f32 %v1675_v48, %v1674_v44  ;;  %v1486_v30 = vsel %vm323_vm1, %v2585_v34, 0.0  ;;  %v1908_v31 = vpack.c.bf16 %v2715_v8, %v2715_v8 }
 0x120   :  { %v2799_v18 = vpop.f32.mrb[20].mxu1  ;;  %v1488_v35 = vsel %vm323_vm1, %v2563_v21, 0.0  ;;  %1014 = vst.msk [vmem:[%s3101_s4 + $0xb0] sm:$0xf] %vm969_vm2, %v1905_v24  ;;  %v1589_v36 = vmul.f32 %v2579_v14, %v2579_v14  ;;  %v1683_v37 = vsel %vm323_vm1, %v1587_v26, 0.0  ;;  %v1590_v1 = vmul.f32 %v2619_v50, %v2619_v50 }
 0x121   :  { %v1678_v11 = vadd.f32 %v1677_v63, %v1676_v57  ;;  %v1483_v12 = vadd.f32 %v1482_v0, %v1481_v56  ;;  %v2803_v25 = vpop.f32.mrb[21].mxu1  ;;  %1017 = vst.msk [vmem:[%s3101_s4 + $0xbc] sm:$0xf] %vm969_vm2, %v1908_v31  ;;  %v1906_v21 = vpack.c.bf16 %v2721_v13, %v2721_v13  ;;  %v1911_v61 = vpack.c.bf16 %v2745_v62, %v2745_v62 }
 0x122   :  { %v2815_v32 = vpop.f32.mrb[22].mxu1  ;;  %v1685_v4 = vsel %vm323_vm1, %v1588_v27, 0.0  ;;  %v1490_v51 = vsel %vm323_vm1, %v2579_v14, 0.0  ;;  %v1492_v2 = vsel %vm323_vm1, %v2619_v50, 0.0  ;;  %v1909_v19 = vpack.c.bf16 %v2751_v3, %v2751_v3 }
 0x123   :  { %v1485_v22 = vadd.f32 %v1484_v6, %v1483_v12  ;;  %v1680_v23 = vadd.f32 %v1679_v15, %v1678_v11  ;;  %v2823_v34 = vpop.f32.mrb[23].mxu1  ;;  %1015 = vst.msk [vmem:[%s3101_s4 + $0xb4] sm:$0xf] %vm969_vm2, %v1906_v21  ;;  %1020 = vst.msk [vmem:[%s3101_s4 + $0xc8] sm:$0xf] %vm969_vm2, %v1911_v61  ;;  %v1687_v14 = vsel %vm323_vm1, %v1589_v36, 0.0  ;;  %v1591_v50 = vmul.f32 %v2633_v55, %v2633_v55 }
 0x124   :  { %v1689_v42 = vsel %vm323_vm1, %v1590_v1, 0.0  ;;  %1018 = vst.msk [vmem:[%s3101_s4 + $0xc0] sm:$0xf] %vm969_vm2, %v1909_v19  ;;  %v1912_v44 = vpack.c.bf16 %v2759_v43, %v2759_v43  ;;  %v1910_v47 = vpack.c.bf16 %v2767_v52, %v2767_v52  ;;  %v1592_v53 = vmul.f32 %v2613_v38, %v2613_v38 }
 0x125   :  { %v1682_v29 = vadd.f32 %v1681_v16, %v1680_v23  ;;  %v1487_v20 = vadd.f32 %v1486_v30, %v1485_v22  ;;  %v1494_v56 = vsel %vm323_vm1, %v2633_v55, 0.0  ;;  %v1915_v57 = vpack.c.bf16 %v2799_v18, %v2799_v18 }
 0x126   :  { %1021 = vst.msk [vmem:[%s3101_s4 + $0xcc] sm:$0xf] %vm969_vm2, %v1912_v44  ;;  %v1496_v63 = vsel %vm323_vm1, %v2613_v38, 0.0  ;;  %1019 = vst.msk [vmem:[%s3101_s4 + $0xc4] sm:$0xf] %vm969_vm2, %v1910_v47  ;;  %v1593_v7 = vmul.f32 %v2627_v49, %v2627_v49  ;;  %v1691_v11 = vsel %vm323_vm1, %v1591_v50, 0.0  ;;  %v1594_v12 = vmul.f32 %v2663_v33, %v2663_v33 }
 0x127   :  { %v1489_v40 = vadd.f32 %v1488_v35, %v1487_v20  ;;  %v1684_v45 = vadd.f32 %v1683_v37, %v1682_v29  ;;  %1024 = vst.msk [vmem:[%s3101_s4 + $0xd8] sm:$0xf] %vm969_vm2, %v1915_v57  ;;  %v1913_v38 = vpack.c.bf16 %v2803_v25, %v2803_v25  ;;  %v1916_v26 = vpack.c.bf16 %v2815_v32, %v2815_v32 }
 0x128   :  { %v2863_v5 = vpop.f32.mrb[24].mxu1  ;;  %v1693_v17 = vsel %vm323_vm1, %v1592_v53, 0.0  ;;  %v1498_v22 = vsel %vm323_vm1, %v2627_v49, 0.0  ;;  %v1500_v23 = vsel %vm323_vm1, %v2663_v33, 0.0  ;;  %v1914_v24 = vpack.c.bf16 %v2823_v34, %v2823_v34 }
 0x129   :  { %v1686_v9 = vadd.f32 %v1685_v4, %v1684_v45  ;;  %v1491_v41 = vadd.f32 %v1490_v51, %v1489_v40  ;;  %v2867_v48 = vpop.f32.mrb[25].mxu1  ;;  %1022 = vst.msk [vmem:[%s3101_s4 + $0xd0] sm:$0xf] %vm969_vm2, %v1913_v38  ;;  %1025 = vst.msk [vmem:[%s3101_s4 + $0xdc] sm:$0xf] %vm969_vm2, %v1916_v26  ;;  %v1695_v49 = vsel %vm323_vm1, %v1593_v7, 0.0  ;;  %v1595_v33 = vmul.f32 %v2677_v39, %v2677_v39 }
 0x12a   :  { %v2879_v58 = vpop.f32.mrb[26].mxu1  ;;  %v1697_v31 = vsel %vm323_vm1, %v1594_v12, 0.0  ;;  %1023 = vst.msk [vmem:[%s3101_s4 + $0xd4] sm:$0xf] %vm969_vm2, %v1914_v24  ;;  %v1919_v35 = vpack.c.bf16 %v2863_v5, %v2863_v5  ;;  %v1917_v37 = vpack.c.bf16 %v2867_v48, %v2867_v48  ;;  %v1596_v21 = vmul.f32 %v2657_v10, %v2657_v10 }
 0x12b   :  { %v1493_v28 = vadd.f32 %v1492_v2, %v1491_v41  ;;  %v1688_v46 = vadd.f32 %v1687_v14, %v1686_v9  ;;  %v2887_v55 = vpop.f32.mrb[27].mxu1  ;;  %v1502_v40 = vsel %vm323_vm1, %v2677_v39, 0.0  ;;  %v1920_v45 = vpack.c.bf16 %v2879_v58, %v2879_v58 }
 0x12c   :  { %1028 = vst.msk [vmem:[%s3101_s4 + $0xe8] sm:$0xf] %vm969_vm2, %v1919_v35  ;;  %v1504_v4 = vsel %vm323_vm1, %v2657_v10, 0.0  ;;  %1026 = vst.msk [vmem:[%s3101_s4 + $0xe0] sm:$0xf] %vm969_vm2, %v1917_v37  ;;  %v1597_v19 = vmul.f32 %v2671_v60, %v2671_v60  ;;  %v1699_v9 = vsel %vm323_vm1, %v1595_v33, 0.0  ;;  %v1598_v41 = vmul.f32 %v2707_v59, %v2707_v59 }
 0x12d   :  { %v1690_v0 = vadd.f32 %v1689_v42, %v1688_v46  ;;  %v1495_v6 = vadd.f32 %v1494_v56, %v1493_v28  ;;  %1029 = vst.msk [vmem:[%s3101_s4 + $0xec] sm:$0xf] %vm969_vm2, %v1920_v45  ;;  %v1918_v10 = vpack.c.bf16 %v2887_v55, %v2887_v55  ;;  %v1701_v44 = vsel %vm323_vm1, %v1596_v21, 0.0 }
 0x12e   :  { %v1506_v28 = vsel %vm323_vm1, %v2671_v60, 0.0  ;;  %v1508_v46 = vsel %vm323_vm1, %v2707_v59, 0.0  ;;  %v1703_v60 = vsel %vm323_vm1, %v1597_v19, 0.0  ;;  %v1705_v57 = vsel %vm323_vm1, %v1598_v41, 0.0 }
 0x12f   :  { %v1497_v15 = vadd.f32 %v1496_v63, %v1495_v6  ;;  %v1692_v16 = vadd.f32 %v1691_v11, %v1690_v0  ;;  %1027 = vst.msk [vmem:[%s3101_s4 + $0xe4] sm:$0xf] %vm969_vm2, %v1918_v10  ;;  %v1599_v59 = vmul.f32 %v2721_v13, %v2721_v13  ;;  %v1600_v11 = vmul.f32 %v2701_v54, %v2701_v54 }
 0x130   :  { %v2927_v29 = vpop.f32.mrb[28].mxu1  ;;  %v1510_v12 = vsel %vm323_vm1, %v2721_v13, 0.0  ;;  %v1601_v26 = vmul.f32 %v2715_v8, %v2715_v8  ;;  %v1603_v35 = vmul.f32 %v2767_v52, %v2767_v52  ;;  %v1604_v37 = vmul.f32 %v2745_v62, %v2745_v62 }
 0x131   :  { %v1694_v27 = vadd.f32 %v1693_v17, %v1692_v16  ;;  %v1499_v30 = vadd.f32 %v1498_v22, %v1497_v15  ;;  %v2931_v1 = vpop.f32.mrb[29].mxu1  ;;  %v1923_v50 = vpack.c.bf16 %v2927_v29, %v2927_v29  ;;  %v1512_v16 = vsel %vm323_vm1, %v2701_v54, 0.0 }
 0x132   :  { %v2943_v61 = vpop.f32.mrb[30].mxu1  ;;  %v1921_v47 = vpack.c.bf16 %v2931_v1, %v2931_v1  ;;  %v1707_v13 = vsel %vm323_vm1, %v1599_v59, 0.0  ;;  %v1602_v17 = vmul.f32 %v2751_v3, %v2751_v3  ;;  %v1709_v24 = vsel %vm323_vm1, %v1600_v11, 0.0 }
 0x133   :  { %v1501_v20 = vadd.f32 %v1500_v23, %v1499_v30  ;;  %v1696_v36 = vadd.f32 %v1695_v49, %v1694_v27  ;;  %v2951_v39 = vpop.f32.mrb[31].mxu1  ;;  %1032 = vst.msk [vmem:[%s3101_s4 + $0xf8] sm:$0xf] %vm969_vm2, %v1923_v50  ;;  %v1924_v63 = vpack.c.bf16 %v2943_v61, %v2943_v61  ;;  %v1514_v27 = vsel %vm323_vm1, %v2715_v8, 0.0 }
 0x134   :  { %1030 = vst.msk [vmem:[%s3101_s4 + $0xf0] sm:$0xf] %vm969_vm2, %v1921_v47  ;;  %v1922_v7 = vpack.c.bf16 %v2951_v39, %v2951_v39  ;;  %v1516_v30 = vsel %vm323_vm1, %v2751_v3, 0.0  ;;  %v1713_v33 = vsel %vm323_vm1, %v1602_v17, 0.0  ;;  %v1518_v8 = vsel %vm323_vm1, %v2767_v52, 0.0 }
 0x135   :  { %v1698_v51 = vadd.f32 %v1697_v31, %v1696_v36  ;;  %v1503_v2 = vadd.f32 %v1502_v40, %v1501_v20  ;;  %1033 = vst.msk [vmem:[%s3101_s4 + $0xfc] sm:$0xf] %vm969_vm2, %v1924_v63  ;;  %v1711_v31 = vsel %vm323_vm1, %v1601_v26, 0.0  ;;  %v1520_v3 = vsel %vm323_vm1, %v2745_v62, 0.0 }
 0x136   :  { %1031 = vst.msk [vmem:[%s3101_s4 + $0xf4] sm:$0xf] %vm969_vm2, %v1922_v7  ;;  %v1605_v45 = vmul.f32 %v2759_v43, %v2759_v43  ;;  %v1522_v52 = vsel %vm323_vm1, %v2759_v43, 0.0  ;;  %v1524_v41 = vsel %vm323_vm1, %v2803_v25, 0.0  ;;  %v1607_v50 = vmul.f32 %v2823_v34, %v2823_v34 }
 0x137   :  { %v1505_v14 = vadd.f32 %v1504_v4, %v1503_v2  ;;  %v1700_v42 = vadd.f32 %v1699_v9, %v1698_v51  ;;  %v1715_v4 = vsel %vm323_vm1, %v1603_v35, 0.0  ;;  %v1606_v51 = vmul.f32 %v2803_v25, %v2803_v25 }
 0x138   :  { %v1717_v9 = vsel %vm323_vm1, %v1604_v37, 0.0  ;;  %v1526_v43 = vsel %vm323_vm1, %v2823_v34, 0.0  ;;  %v1528_v25 = vsel %vm323_vm1, %v2799_v18, 0.0  ;;  %v1530_v34 = vsel %vm323_vm1, %v2815_v32, 0.0 }
 0x139   :  { %v1702_v53 = vadd.f32 %v1701_v44, %v1700_v42  ;;  %v1507_v56 = vadd.f32 %v1506_v28, %v1505_v14  ;;  %v1719_v14 = vsel %vm323_vm1, %v1605_v45, 0.0  ;;  %v1721_v42 = vsel %vm323_vm1, %v1606_v51, 0.0 }
 0x13a   :  { %v1612_v26 = vmul.f32 %v2863_v5, %v2863_v5 }
 0x13b   :  { %v1509_v0 = vadd.f32 %v1508_v46, %v1507_v56  ;;  %v1704_v6 = vadd.f32 %v1703_v60, %v1702_v53  ;;  %v1608_v46 = vmul.f32 %v2799_v18, %v2799_v18  ;;  %v1609_v56 = vmul.f32 %v2815_v32, %v2815_v32 }
 0x13c   :  { %v1723_v60 = vsel %vm323_vm1, %v1607_v50, 0.0  ;;  %v1534_v32 = vsel %vm323_vm1, %v2887_v55, 0.0 }
 0x13d   :  { %v1706_v38 = vadd.f32 %v1705_v57, %v1704_v6  ;;  %v1511_v15 = vadd.f32 %v1510_v12, %v1509_v0  ;;  %v1610_v57 = vmul.f32 %v2867_v48, %v2867_v48  ;;  %v1725_v0 = vsel %vm323_vm1, %v1608_v46, 0.0 }
 0x13e   :  { %v1532_v6 = vsel %vm323_vm1, %v2867_v48, 0.0  ;;  %v1727_v11 = vsel %vm323_vm1, %v1609_v56, 0.0  ;;  %v1536_v48 = vsel %vm323_vm1, %v2863_v5, 0.0 }
 0x13f   :  { %v1513_v22 = vadd.f32 %v1512_v16, %v1511_v15  ;;  %v1708_v23 = vadd.f32 %v1707_v13, %v1706_v38  ;;  %v1729_v12 = vsel %vm323_vm1, %v1610_v57, 0.0  ;;  %v1611_v38 = vmul.f32 %v2887_v55, %v2887_v55 }
 0x140   :  { %v1538_v55 = vsel %vm323_vm1, %v2879_v58, 0.0 }
 0x141   :  { %v1710_v49 = vadd.f32 %v1709_v24, %v1708_v23  ;;  %v1515_v54 = vadd.f32 %v1514_v27, %v1513_v22  ;;  %v1613_v22 = vmul.f32 %v2879_v58, %v2879_v58  ;;  %v1731_v23 = vsel %vm323_vm1, %v1611_v38, 0.0 }
 0x142   :  { %v1614_v24 = vmul.f32 %v2931_v1, %v2931_v1  ;;  %v1542_v58 = vsel %vm323_vm1, %v2951_v39, 0.0 }
 0x143   :  { %v1517_v20 = vadd.f32 %v1516_v30, %v1515_v54  ;;  %v1712_v36 = vadd.f32 %v1711_v31, %v1710_v49  ;;  %v1733_v49 = vsel %vm323_vm1, %v1612_v26, 0.0  ;;  %v1540_v54 = vsel %vm323_vm1, %v2931_v1, 0.0 }
 0x144   :  { %v1737_v35 = vsel %vm323_vm1, %v1614_v24, 0.0  ;;  %v1544_v1 = vsel %vm323_vm1, %v2927_v29, 0.0 }
 0x145   :  { %v1714_v21 = vadd.f32 %v1713_v33, %v1712_v36  ;;  %v1519_v40 = vadd.f32 %v1518_v8, %v1517_v20  ;;  %v1735_v33 = vsel %vm323_vm1, %v1613_v22, 0.0  ;;  %v1615_v20 = vmul.f32 %v2951_v39, %v2951_v39 }
 0x146   :  { %v1616_v8 = vmul.f32 %v2927_v29, %v2927_v29 }
 0x147   :  { %v1521_v2 = vadd.f32 %v1520_v3, %v1519_v40  ;;  %v1716_v19 = vadd.f32 %v1715_v4, %v1714_v21  ;;  %v1617_v3 = vmul.f32 %v2943_v61, %v2943_v61  ;;  %v1739_v45 = vsel %vm323_vm1, %v1615_v20, 0.0 }
 0x149   :  { %v1718_v10 = vadd.f32 %v1717_v9, %v1716_v19  ;;  %v1523_v62 = vadd.f32 %v1522_v52, %v1521_v2  ;;  %v1741_v2 = vsel %vm323_vm1, %v1616_v8, 0.0  ;;  %v1546_v19 = vsel %vm323_vm1, %v2943_v61, 0.0 }
 0x14a   :  { %v1743_v39 = vsel %vm323_vm1, %v1617_v3, 0.0 }
 0x14b   :  { %v1525_v44 = vadd.f32 %v1524_v41, %v1523_v62  ;;  %v1720_v28 = vadd.f32 %v1719_v14, %v1718_v10 }
 0x14d   :  { %v1722_v47 = vadd.f32 %v1721_v42, %v1720_v28  ;;  %v1527_v53 = vadd.f32 %v1526_v43, %v1525_v44 }
 0x14f   :  { %v1529_v59 = vadd.f32 %v1528_v25, %v1527_v53  ;;  %v1724_v63 = vadd.f32 %v1723_v60, %v1722_v47 }
 0x151   :  { %v1726_v7 = vadd.f32 %v1725_v0, %v1724_v63  ;;  %v1531_v18 = vadd.f32 %v1530_v34, %v1529_v59 }
 0x153   :  { %v1533_v15 = vadd.f32 %v1532_v6, %v1531_v18  ;;  %v1728_v16 = vadd.f32 %v1727_v11, %v1726_v7 }
 0x155   :  { %v1730_v13 = vadd.f32 %v1729_v12, %v1728_v16  ;;  %v1535_v17 = vadd.f32 %v1534_v32, %v1533_v15 }
 0x157   :  { %v1537_v27 = vadd.f32 %v1536_v48, %v1535_v17  ;;  %v1732_v30 = vadd.f32 %v1731_v23, %v1730_v13 }
 0x159   :  { %v1734_v31 = vadd.f32 %v1733_v49, %v1732_v30  ;;  %v1539_v5 = vadd.f32 %v1538_v55, %v1537_v27 }
 0x15b   :  { %v1541_v36 = vadd.f32 %v1540_v54, %v1539_v5  ;;  %v1736_v37 = vadd.f32 %v1735_v33, %v1734_v31 }
 0x15d   :  { %v1738_v21 = vadd.f32 %v1737_v35, %v1736_v37  ;;  %v1543_v40 = vadd.f32 %v1542_v58, %v1541_v36 }
 0x15f   :  { %v1545_v4 = vadd.f32 %v1544_v1, %v1543_v40  ;;  %v1740_v51 = vadd.f32 %v1739_v45, %v1738_v21 }
 0x161   :  { %v1547_v9 = vadd.f32 %v1546_v19, %v1545_v4  ;;  %v1742_v52 = vadd.f32 %v1741_v2, %v1740_v51 }
 0x163   :  { %v1548_v41 = vrot.slane %v1547_v9, 4  ;;  %v1744_v10 = vadd.f32 %v1743_v39, %v1742_v52 }
 0x165   :  { %v1549_v62 = vadd.f32 %v1548_v41, %v1547_v9  ;;  %v1745_v29 = vrot.slane %v1744_v10, 4 }
 0x167   :  { %v1550_v14 = vrot.slane %v1549_v62, 2  ;;  %v1746_v42 = vadd.f32 %v1745_v29, %v1744_v10 }
 0x169   :  { %v1551_v50 = vadd.f32 %v1550_v14, %v1549_v62  ;;  %v1747_v44 = vrot.slane %v1746_v42, 2 }
 0x16b   :  { %v1552_v28 = vrot.slane %v1551_v50, 1  ;;  %v1748_v46 = vadd.f32 %v1747_v44, %v1746_v42 }
 0x16d   :  { %v1749_v43 = vrot.slane %v1748_v46, 1  ;;  %v1553_v47 = vadd.f32 %v1552_v28, %v1551_v50 }
 0x16f   :  { %v1750_v53 = vadd.f32 %v1749_v43, %v1748_v46 }
 0x171   :  { %v1752_v61 = vsel %vm1751_vm3, %v1553_v47, %v1750_v53 }
 0x172   :  { %1754 = vst.msk [vmem:[%s3102_s5] sm:$0x3] %vm1753_vm4, %v1752_v61 }

// kernel: preact_bottleneck.6
= control target key start
LH: loop header
LB: loop body
LE: loop exit
PB: predicated region body
PF: predicated region fallthrough
CT: control target
= control target key end

     0   :  { %vm2714_vm0 = vcmask 1041408   ;;  %vm1190_vm1 = vcmask 27648   ;;  %vm1198_vm2 = vcmask 24576   ;;  %v13882_v4 = vmov 0   ;;  %v1193_v61 = vld [vmem:[#allocation2 + $0xc] sm:$0xf]  ;;  %s17733_s3 = inlined_call_operand.vmem [shape: bf16[9,4,4], index: 3, kind: input, shape index: {}]   ;;  %s17734_s0 = inlined_call_operand.vmem [shape: bf16[2,16,16,4], index: 0, kind: input, shape index: {}]   ;;  %s17735_s1 = inlined_call_operand.vmem [shape: f32[1,4], index: 1, kind: input, shape index: {}]   ;;  %s17736_s2 = inlined_call_operand.vmem [shape: f32[1,4], index: 2, kind: input, shape index: {}]   ;;  %s17737_s4 = inlined_call_operand.vmem [shape: bf16[2,16,16,4], index: 4, kind: output, shape index: {0}]   ;;  %s17738_s5 = inlined_call_operand.vmem [shape: f32[1,2,4], index: 5, kind: output, shape index: {1}]  }
   0x1   :  { %v11145_v0 = vld [vmem:[%s17733_s3 + $0x2] sm:$0x3]  ;;  %v11436_v1 = vld [vmem:[%s17733_s3 + $0x8] sm:$0x3]  ;;  %1420 = vst.msk [vmem:[#allocation2] sm:$0xf] %vm1190_vm1, %v13882_v4 }
   0x2   :  { %13581 = vmatprep.subr.msk.bf16.mxu1 %vm2714_vm0, %v11145_v0  ;;  %13585 = vmatprep.subr.msk.bf16.mxu0 %vm2714_vm0, %v11436_v1  ;;  %v2716_v2 = vsel %vm2714_vm0, %v11145_v0, 0  ;;  %v13923_v3 = vsel %vm2714_vm0, %v11436_v1, 0  ;;  %1421 = vst.msk [vmem:[#allocation2 + $0x4] sm:$0xf] %vm1190_vm1, %v13882_v4  ;;  %1424 = vst.msk [vmem:[#allocation2 + $0xd8] sm:$0xf] %vm1190_vm1, %v13882_v4 }
   0x3   :  { %17771 = vst [vmem:[#allocation3_spill] sm:$0xff] %v13923_v3  ;;  %1423 = vst.msk [vmem:[#allocation2 + $0x8] sm:$0x1] %vm1198_vm2, %v13882_v4  ;;  %12474 = vmatpush3.bf16.msra.mxu1 %v2716_v2  ;;  %12738 = vmatpush3.bf16.msra.mxu0 %v13923_v3  ;;  %v12018_v5 = vld [vmem:[%s17734_s0] sm:$0xff]   ;;  %vm546_vm3 = vsmask.f32 256 }
   0x4   :  { %1425 = vst.msk [vmem:[#allocation2 + $0xdc] sm:$0xf] %vm1190_vm1, %v13882_v4  ;;  %1428 = vst.msk [vmem:[#allocation2 + $0xcc] sm:$0xf] %vm1190_vm1, %v13882_v4  ;;  %v13944_v6 = vld [vmem:[%s17735_s1] ss:$0 sm:$0xff]  ;;  %v12019_v7 = vunpack.c.l.bf16 %v12018_v5  ;;  %v12020_v8 = vunpack.c.h.bf16 %v12018_v5 }
   0x5   :  { %1426 = vst.msk [vmem:[#allocation2 + $0xe0] sm:$0x1] %vm1198_vm2, %v13882_v4  ;;  %1430 = vst.msk [vmem:[#allocation2 + $0xd4] sm:$0x1] %vm1198_vm2, %v13882_v4  ;;  %v13949_v9 = vld [vmem:[%s17736_s2] ss:$0 sm:$0xff] }
   0x6   :  { %1429 = vst.msk [vmem:[#allocation2 + $0xd0] sm:$0xf] %vm1190_vm1, %v13882_v4  ;;  %1431 = vst.msk [vmem:[#allocation2 + $0x1a4] sm:$0xf] %vm1190_vm1, %v13882_v4  ;;  %v13954_v10 = vld [vmem:[%s17733_s3] sm:$0x3]  ;;  %v155_v11 = vmul.f32 %v12019_v7, %v13944_v6  ;;  %v156_v12 = vmul.f32 %v12020_v8, %v13944_v6 }
   0x7   :  { %1432 = vst.msk [vmem:[#allocation2 + $0x1a8] sm:$0xf] %vm1190_vm1, %v13882_v4  ;;  %vm1191_vm4 = vsmask.f32 7938  ;;  %13582 = vmatprep.subr.msk.bf16.mxu1 %vm2714_vm0, %v13954_v10  ;;  %v13963_v13 = vld [vmem:[%s17733_s3 + $0xa] sm:$0x3]  ;;  %vm13981_vm6 = vmand %vm1198_vm2, %vm546_vm3 }
   0x8   :  { %1433 = vst.msk [vmem:[#allocation2 + $0x1ac] sm:$0x1] %vm1198_vm2, %v13882_v4  ;;  %v12145_v14 = vld [vmem:[%s17734_s0 + $0x8] sm:$0xff]   ;;  %vm13970_vm5 = vmand %vm1198_vm2, %vm1191_vm4  ;;  %v17772_v15 = vmov 0  ;;  %13587 = vmatprep.subr.msk.bf16.mxu0 %vm2714_vm0, %v13963_v13  ;;  %v12146_v18 = vld [vmem:[%s17734_s0 + $0x10] sm:$0xff]   ;;  %v226_v20 = vadd.f32 %v13949_v9, %v155_v11  ;;  %v227_v21 = vadd.f32 %v13949_v9, %v156_v12  ;;  %vm2617_vm11 = vcmask 31744  }
   0x9   :  { %v17773_v15 = vsel %vm13970_vm5, 4294967295, %v17772_v15  ;;  %v12023_v16 = vunpack.c.l.bf16 %v12145_v14  ;;  %v12024_v17 = vunpack.c.h.bf16 %v12145_v14  ;;  %vm547_vm7 = vsmask.f32 4368  ;;  %v12147_v24 = vld [vmem:[%s17734_s0 + $0x18] sm:$0xff]   ;;  %v1434_v25 = vld [vmem:[#allocation2] sm:$0x1]  ;;  %vm14010_vm10 = vmand %vm1190_vm1, %vm1191_vm4 }
   0xa   :  { %17774 = vst [vmem:[#allocation4_spill] sm:$0xff] %v17773_v15  ;;  %v12027_v22 = vunpack.c.l.bf16 %v12146_v18  ;;  %v12028_v23 = vunpack.c.h.bf16 %v12146_v18  ;;  %v1543_v26 = vld [vmem:[#allocation2 + $0x8] sm:$0x1]  ;;  %v1652_v27 = vld [vmem:[#allocation2 + $0x4] sm:$0xf]  ;;  %v12031_v30 = vunpack.c.l.bf16 %v12147_v24  ;;  %v1435_v31 = vsel %vm13981_vm6, 0, %v1434_v25  ;;  %vm14017_vm12 = vmor %vm546_vm3, %vm547_vm7 }
   0xb   :  { %vm1748_vm8 = vsmask.f32 3328  ;;  %vm1749_vm9 = vsmask.f32 7440  ;;  %v157_v28 = vmul.f32 %v12023_v16, %v13944_v6  ;;  %v158_v29 = vmul.f32 %v12024_v17, %v13944_v6  ;;  %1436 = vst [vmem:[#allocation2] sm:$0x1] %v1435_v31 }
   0xc   :  { %v1544_v32 = vsel %vm13970_vm5, 0, %v1543_v26  ;;  %v1761_v33 = vshll.u32 %v1652_v27, 16  ;;  %v1765_v34 = vshrl.u32 %v1652_v27, 16  ;;  %v290_v35 = vmax.f32 %v226_v20, 0.0  ;;  %v1200_v17 = vld [vmem:[#allocation2 + $0x14] sm:$0x1]  ;;  %vm14024_vm13 = vmor %vm1748_vm8, %vm1749_vm9 }
   0xd   :  { %1545 = vst [vmem:[#allocation2 + $0x8] sm:$0x1] %v1544_v32  ;;  %v291_v36 = vmax.f32 %v227_v21, 0.0  ;;  %v228_v37 = vadd.f32 %v13949_v9, %v157_v28  ;;  %v229_v38 = vadd.f32 %v13949_v9, %v158_v29  ;;  %v159_v41 = vmul.f32 %v12027_v22, %v13944_v6  ;;  %v15649_v19 = vld [vmem:[#allocation2 + $0xdc] sm:$0xf] }
   0xe   :  { %v13998_v39 = vrot.slane %v1761_v33, 5  ;;  %v1767_v40 = vrot.slane %v1765_v34, 4  ;;  %v160_v42 = vmul.f32 %v12028_v23, %v13944_v6  ;;  %v11889_v43 = vpack.c.bf16 %v290_v35, %v290_v35  ;;  %v1203_v33 = vld [vmem:[#allocation2 + $0x18] sm:$0xf] }
   0xf   :  { %v11890_v44 = vpack.c.bf16 %v291_v36, %v291_v36  ;;  %v292_v45 = vmax.f32 %v228_v37, 0.0  ;;  %v293_v46 = vmax.f32 %v229_v38, 0.0  ;;  %v230_v48 = vadd.f32 %v13949_v9, %v159_v41 }
  0x10   :  { %v1768_v47 = vor.u32 %v1767_v40, %v13998_v39  ;;  %v231_v49 = vadd.f32 %v13949_v9, %v160_v42  ;;  %v12032_v50 = vunpack.c.h.bf16 %v12147_v24  ;;  %v550_v51 = vshrl.u32 %v11889_v43, 16 }
  0x11   :  { %v553_v52 = vshll.u32 %v11889_v43, 16  ;;  %v558_v53 = vshrl.u32 %v11890_v44, 16  ;;  %v161_v54 = vmul.f32 %v12031_v30, %v13944_v6  ;;  %v561_v56 = vshll.u32 %v11890_v44, 16 }
  0x12   :  { %v14006_v55 = vrot.slane %v1768_v47, 4  ;;  %v11891_v57 = vpack.c.bf16 %v292_v45, %v292_v45  ;;  %v294_v58 = vmax.f32 %v230_v48, 0.0  ;;  %v552_v59 = vrot.slane %v550_v51, 7  ;;  %v1651_v0 = vld [vmem:[#allocation2] sm:$0xf] }
  0x13   :  { %v560_v60 = vrot.slane %v558_v53, 7  ;;  %v11892_v62 = vpack.c.bf16 %v293_v46, %v293_v46  ;;  %v295_v63 = vmax.f32 %v231_v49, 0.0  ;;  %v162_v8 = vmul.f32 %v12032_v50, %v13944_v6  ;;  %v1207_v45 = vld [vmem:[#allocation2 + $0x20] sm:$0x1] }
  0x14   :  { %v1716_v1 = vld [vmem:[#allocation2 + $0x8] sm:$0x1]  ;;  %v567_v4 = vshrl.u32 %v11891_v57, 16  ;;  %v570_v5 = vshll.u32 %v11891_v57, 16  ;;  %v11893_v7 = vpack.c.bf16 %v294_v58, %v294_v58  ;;  %v1752_v11 = vshrl.u32 %v1651_v0, 16  ;;  %v12148_v57 = vld [vmem:[%s17734_s0 + $0x20] sm:$0xff]  }
  0x15   :  { %v1755_v12 = vshll.u32 %v1651_v0, 16  ;;  %v1771_v14 = vshll.u32 %v1716_v1, 16  ;;  %v232_v18 = vadd.f32 %v13949_v9, %v161_v54  ;;  %v555_v21 = vor.u32 %v553_v52, %v552_v59 }
  0x16   :  { %v556_v22 = vrot.slane %v552_v59, 4  ;;  %v563_v23 = vor.u32 %v561_v56, %v560_v60  ;;  %v565_v24 = vrot.slane %v560_v60, 4  ;;  %v1754_v25 = vrot.slane %v1752_v11, 4 }
  0x17   :  { %v1757_v26 = vrot.slane %v1755_v12, 5  ;;  %v1773_v27 = vrot.slane %v1771_v14, 5  ;;  %v569_v28 = vrot.slane %v567_v4, 7  ;;  %v1194_v30 = vsel %vm14010_vm10, %v555_v21, %v1193_v61 }
  0x18   :  { %v564_v29 = vsel %vm14017_vm12, %v556_v22, %v563_v23  ;;  %v1201_v31 = vsel %vm13981_vm6, %v565_v24, %v1200_v17  ;;  %v575_v32 = vshrl.u32 %v11892_v62, 16  ;;  %1195 = vst [vmem:[#allocation2 + $0xc] sm:$0xf] %v1194_v30  ;;  %v578_v40 = vshll.u32 %v11892_v62, 16 }
  0x19   :  { %v1758_v34 = vor.u32 %v1757_v26, %v1754_v25  ;;  %v1774_v35 = vsel %vm14024_vm13, %v14006_v55, %v1773_v27  ;;  %1197 = vst.msk [vmem:[#allocation2 + $0x10] sm:$0xf] %vm1190_vm1, %v564_v29  ;;  %1202 = vst [vmem:[#allocation2 + $0x14] sm:$0x1] %v1201_v31  ;;  %v572_v36 = vor.u32 %v570_v5, %v569_v28  ;;  %v573_v37 = vrot.slane %v569_v28, 4 }
  0x1a   :  { %v577_v38 = vrot.slane %v575_v32, 7  ;;  %v11894_v41 = vpack.c.bf16 %v295_v63, %v295_v63  ;;  %v584_v42 = vshrl.u32 %v11893_v7, 16  ;;  %v587_v46 = vshll.u32 %v11893_v7, 16  ;;  %v1210_v55 = vld [vmem:[#allocation2 + $0x24] sm:$0xf]  ;;  %v14066_v63 = vld [vmem:[%s17734_s0 + $0x28] sm:$0xff]  }
  0x1b   :  { %v1759_v43 = vrot.slane %v1758_v34, 4  ;;  %v1204_v44 = vsel %vm14010_vm10, %v572_v36, %v1203_v33  ;;  %v14041_v47 = vadd.f32 %v13949_v9, %v162_v8  ;;  %v14048_v53 = vsel %vm2714_vm0, %v13954_v10, 0  ;;  %v1214_v7 = vld [vmem:[#allocation2 + $0x2c] sm:$0x1] }
  0x1c   :  { %v580_v48 = vor.u32 %v578_v40, %v577_v38  ;;  %v582_v49 = vrot.slane %v577_v38, 4  ;;  %1205 = vst [vmem:[#allocation2 + $0x18] sm:$0xf] %v1204_v44  ;;  %v586_v50 = vrot.slane %v584_v42, 7  ;;  %v592_v51 = vshrl.u32 %v11894_v41, 16 }
  0x1d   :  { %v1764_v52 = vsel %vm14024_vm13, %v1759_v43, %v13998_v39  ;;  %v14052_v54 = vsel %vm2714_vm0, %v13963_v13, 0  ;;  %v296_v56 = vmax.f32 %v232_v18, 0.0  ;;  %v595_v61 = vshll.u32 %v11894_v41, 16 }
  0x1e   :  { %v11146_v58 = vcombine.low %v1764_v52, %v1774_v35  ;;  %v581_v59 = vsel %vm14017_vm12, %v573_v37, %v580_v48  ;;  %v1208_v39 = vsel %vm13981_vm6, %v582_v49, %v1207_v45  ;;  %v589_v60 = vor.u32 %v587_v46, %v586_v50 }
  0x1f   :  { %1206 = vst.msk [vmem:[#allocation2 + $0x1c] sm:$0xf] %vm1190_vm1, %v581_v59  ;;  %1209 = vst [vmem:[#allocation2 + $0x20] sm:$0x1] %v1208_v39  ;;  %v590_v10 = vrot.slane %v586_v50, 4  ;;  %v594_v13 = vrot.slane %v592_v51, 7  ;;  %v14071_v8 = vpack.c.bf16 %v296_v56, %v296_v56  ;;  %v12035_v11 = vunpack.c.l.bf16 %v12148_v57 }
  0x20   :  { %v297_v62 = vmax.f32 %v14041_v47, 0.0  ;;  %12475 = vmatprep.mubr.msk.bf16.mxu1 %vm2617_vm11, %v11146_v58  ;;  %v1437_v0 = vld [vmem:[#allocation2 + $0xc] sm:$0x1]  ;;  %v1546_v1 = vld [vmem:[#allocation2 + $0x14] sm:$0x1]  ;;  %v1211_v5 = vsel %vm14010_vm10, %v589_v60, %v1210_v55  ;;  %v12036_v12 = vunpack.c.h.bf16 %v12148_v57  ;;  %v12039_v26 = vunpack.c.l.bf16 %v14066_v63 }
  0x21   :  { %v1654_v4 = vld [vmem:[#allocation2 + $0x10] sm:$0xf]  ;;  %v1438_v14 = vsel %vm13981_vm6, 0, %v1437_v0  ;;  %v1547_v17 = vsel %vm13970_vm5, 0, %v1546_v1  ;;  %1212 = vst [vmem:[#allocation2 + $0x24] sm:$0xf] %v1211_v5  ;;  %v597_v30 = vor.u32 %v595_v61, %v594_v13  ;;  %v163_v45 = vmul.f32 %v12035_v11, %v13944_v6 }
  0x22   :  { %v1785_v18 = vshll.u32 %v1654_v4, 16  ;;  %v1789_v21 = vshrl.u32 %v1654_v4, 16  ;;  %v14077_v22 = vld [vmem:[#allocation2 + $0x10] sm:$0xf]  ;;  %1439 = vst [vmem:[#allocation2 + $0xc] sm:$0x1] %v1438_v14  ;;  %v164_v46 = vmul.f32 %v12036_v12, %v13944_v6  ;;  %v12040_v47 = vunpack.c.h.bf16 %v14066_v63 }
  0x23   :  { %1548 = vst [vmem:[#allocation2 + $0x14] sm:$0x1] %v1547_v17  ;;  %v5212_v23 = vshll.u32 %v14077_v22, 16  ;;  %v5216_v24 = vshrl.u32 %v14077_v22, 16  ;;  %v6650_v25 = vrot.slane %v14077_v22, 5  ;;  %v599_v31 = vrot.slane %v594_v13, 4 }
  0x24   :  { %v14083_v27 = vrot.slane %v1785_v18, 5  ;;  %v1791_v28 = vrot.slane %v1789_v21, 4  ;;  %v1440_v29 = vld [vmem:[#allocation2 + $0x18] sm:$0x1]  ;;  %v601_v35 = vshrl.u32 %v14071_v8, 16  ;;  %v598_v37 = vsel %vm14017_vm12, %v590_v10, %v597_v30 }
  0x25   :  { %v14085_v32 = vrot.slane %v5212_v23, 5  ;;  %v5218_v33 = vrot.slane %v5216_v24, 4  ;;  %v1441_v34 = vsel %vm13981_vm6, 0, %v1440_v29  ;;  %v1215_v38 = vsel %vm13981_vm6, %v599_v31, %v1214_v7  ;;  %1213 = vst.msk [vmem:[#allocation2 + $0x28] sm:$0xf] %vm1190_vm1, %v598_v37 }
  0x26   :  { %v1792_v36 = vor.u32 %v1791_v28, %v14083_v27  ;;  %1442 = vst [vmem:[#allocation2 + $0x18] sm:$0x1] %v1441_v34  ;;  %v604_v40 = vshll.u32 %v14071_v8, 16  ;;  %v1549_v42 = vld [vmem:[#allocation2 + $0x20] sm:$0x1]  ;;  %v14112_v60 = vpack.c.bf16 %v297_v62, %v297_v62  ;;  %v14115_v10 = vadd.f32 %v13949_v9, %v163_v45 }
  0x27   :  { %v5219_v41 = vor.u32 %v5218_v33, %v14085_v32  ;;  %v14097_v43 = vld [vmem:[#allocation2 + $0x1c] sm:$0xf]  ;;  %1216 = vst [vmem:[#allocation2 + $0x2c] sm:$0x1] %v1215_v38  ;;  %v1550_v49 = vsel %vm13970_vm5, 0, %v1549_v42  ;;  %v14118_v13 = vadd.f32 %v13949_v9, %v164_v46  ;;  %v14121_v61 = vmul.f32 %v12039_v26, %v13944_v6 }
  0x28   :  { %v14099_v44 = vld [vmem:[#allocation2 + $0x1c] sm:$0xf]  ;;  %v1793_v48 = vrot.slane %v1792_v36, 4  ;;  %v5236_v50 = vshll.u32 %v14097_v43, 16  ;;  %v5240_v51 = vshrl.u32 %v14097_v43, 16  ;;  %v6657_v55 = vrot.slane %v14097_v43, 5 }
  0x29   :  { %v5220_v52 = vrot.slane %v5219_v41, 4  ;;  %1551 = vst [vmem:[#allocation2 + $0x20] sm:$0x1] %v1550_v49  ;;  %v1809_v56 = vshll.u32 %v14099_v44, 16  ;;  %v1813_v57 = vshrl.u32 %v14099_v44, 16  ;;  %v14126_v5 = vmul.f32 %v12040_v47, %v13944_v6 }
  0x2a   :  { %v1653_v58 = vld [vmem:[#allocation2 + $0xc] sm:$0xf]  ;;  %v1717_v59 = vld [vmem:[#allocation2 + $0x14] sm:$0x1]  ;;  %v5238_v23 = vrot.slane %v5236_v50, 5  ;;  %v5242_v34 = vrot.slane %v5240_v51, 4 }
  0x2b   :  { %v5106_v39 = vld [vmem:[#allocation2 + $0xc] sm:$0xf]  ;;  %v1776_v63 = vshrl.u32 %v1653_v58, 16  ;;  %v1779_v0 = vshll.u32 %v1653_v58, 16  ;;  %v1795_v1 = vshll.u32 %v1717_v59, 16  ;;  %v14138_v45 = vrot.slane %v6657_v55, 4 }
  0x2c   :  { %v14123_v4 = vld [vmem:[#allocation2 + $0x14] sm:$0x1]  ;;  %v5203_v7 = vshrl.u32 %v5106_v39, 16  ;;  %v5206_v62 = vshll.u32 %v5106_v39, 16  ;;  %v5243_v49 = vor.u32 %v5242_v34, %v5238_v23  ;;  %vm3651_vm14 = vcmask 1042432  }
  0x2d   :  { %v5222_v11 = vshll.u32 %v14123_v4, 16  ;;  %v6653_v12 = vrot.slane %v14123_v4, 5  ;;  %v1778_v14 = vrot.slane %v1776_v63, 4  ;;  %v1781_v17 = vrot.slane %v1779_v0, 5  ;;  %v5109_v21 = vld [vmem:[#allocation2 + $0x18] sm:$0xf] }
  0x2e   :  { %v1797_v18 = vrot.slane %v1795_v1, 5  ;;  %v5205_v24 = vrot.slane %v5203_v7, 4  ;;  %v5208_v26 = vrot.slane %v5206_v62, 5  ;;  %v5227_v29 = vshrl.u32 %v5109_v21, 16  ;;  %v1655_v36 = vld [vmem:[#allocation2 + $0x18] sm:$0xf] }
  0x2f   :  { %v5224_v28 = vrot.slane %v5222_v11, 5  ;;  %v1782_v30 = vor.u32 %v1781_v17, %v1778_v14  ;;  %v5230_v33 = vshll.u32 %v5109_v21, 16  ;;  %v1800_v59 = vshrl.u32 %v1655_v36, 16  ;;  %v1552_v63 = vld [vmem:[#allocation2 + $0x2c] sm:$0x1] }
  0x30   :  { %v1798_v31 = vsel %vm14024_vm13, %v1793_v48, %v1797_v18  ;;  %v5209_v37 = vor.u32 %v5208_v26, %v5205_v24  ;;  %v14134_v41 = vld [vmem:[#allocation2 + $0x20] sm:$0x1]  ;;  %v5229_v42 = vrot.slane %v5227_v29, 4  ;;  %v1443_v48 = vld [vmem:[#allocation2 + $0x24] sm:$0x1]  ;;  %v1803_v39 = vshll.u32 %v1655_v36, 16 }
  0x31   :  { %v5225_v38 = vsel %vm14024_vm13, %v5220_v52, %v5224_v28  ;;  %v1783_v46 = vrot.slane %v1782_v30, 4  ;;  %v5232_v47 = vrot.slane %v5230_v33, 5  ;;  %v5246_v50 = vshll.u32 %v14134_v41, 16  ;;  %v1658_v52 = vld [vmem:[#allocation2 + $0x28] sm:$0xf] }
  0x32   :  { %v5210_v58 = vrot.slane %v5209_v37, 4  ;;  %v6660_v51 = vrot.slane %v14134_v41, 5  ;;  %v5244_v7 = vrot.slane %v5243_v49, 4  ;;  %v1718_v11 = vld [vmem:[#allocation2 + $0x20] sm:$0x1]  ;;  %v1802_v18 = vrot.slane %v1800_v59, 4 }
  0x33   :  { %v1788_v0 = vsel %vm14024_vm13, %v1783_v46, %v14083_v27  ;;  %v5233_v1 = vor.u32 %v5232_v47, %v5229_v42  ;;  %v5248_v62 = vrot.slane %v5246_v50, 5  ;;  %v1805_v21 = vrot.slane %v1803_v39, 5  ;;  %v5113_v24 = vld [vmem:[#allocation2 + $0x28] sm:$0xf] }
  0x34   :  { %v11147_v14 = vcombine.low %v1788_v0, %v1798_v31  ;;  %v5215_v17 = vsel %vm14024_vm13, %v5210_v58, %v14085_v32  ;;  %v1811_v30 = vrot.slane %v1809_v56, 5  ;;  %v1815_v33 = vrot.slane %v1813_v57, 4  ;;  %v1217_v0 = vld [vmem:[#allocation2 + $0x30] sm:$0xf] }
  0x35   :  { %v11437_v26 = vcombine.low %v5215_v17, %v5225_v38  ;;  %v5234_v28 = vrot.slane %v5233_v1, 4  ;;  %v5249_v29 = vsel %vm14024_vm13, %v5244_v7, %v5248_v62  ;;  %v1806_v27 = vor.u32 %v1805_v21, %v1802_v18  ;;  %v1221_v17 = vld [vmem:[#allocation2 + $0x38] sm:$0x1] }
  0x36   :  { %12476 = vmatmul.mubr.msk.bf16.vlgmr.msra.gmra.mrb[0].mxu1 %vm2617_vm11, %v11147_v14  ;;  %v1819_v31 = vshll.u32 %v1718_v11, 16  ;;  %v1444_v34 = vsel %vm13981_vm6, 0, %v1443_v48  ;;  %v1553_v56 = vsel %vm13970_vm5, 0, %v1552_v63  ;;  %v1833_v36 = vshll.u32 %v1658_v52, 16 }
  0x37   :  { %12739 = vmatprep.mubr.msk.bf16.mxu0 %vm2617_vm11, %v11437_v26  ;;  %12540 = vmatpush3.bf16.msra.mxu1 %v14048_v53  ;;  %v5239_v32 = vsel %vm14024_vm13, %v5234_v28, %v5238_v23  ;;  %1445 = vst [vmem:[#allocation2 + $0x24] sm:$0x1] %v1444_v34  ;;  %v1837_v37 = vshrl.u32 %v1658_v52, 16  ;;  %v1807_v44 = vrot.slane %v1806_v27, 4  ;;  %v1816_v57 = vor.u32 %v1815_v33, %v1811_v30 }
  0x38   :  { %v11438_v38 = vcombine.low %v5239_v32, %v5249_v29  ;;  %v1821_v42 = vrot.slane %v1819_v31, 5  ;;  %1554 = vst [vmem:[#allocation2 + $0x2c] sm:$0x1] %v1553_v56  ;;  %v14161_v46 = vrot.slane %v1833_v36, 5  ;;  %v5260_v49 = vshll.u32 %v5113_v24, 16 }
  0x39   :  { %v1839_v47 = vrot.slane %v1837_v37, 4  ;;  %v5264_v50 = vshrl.u32 %v5113_v24, 16  ;;  %v1812_v53 = vsel %vm14024_vm13, %v1807_v44, %v1811_v30  ;;  %v1817_v23 = vrot.slane %v1816_v57, 4 }
  0x3a   :  { %12740 = vmatmul.mubr.msk.bf16.vlgmr.msra.gmra.mrb[0].mxu0 %vm2617_vm11, %v11438_v38  ;;  %v603_v48 = vrot.slane %v601_v35, 7  ;;  %v609_v58 = vshrl.u32 %v14112_v60, 16  ;;  %v14171_v39 = vrot.slane %v5260_v49, 5  ;;  %v612_v52 = vshll.u32 %v14112_v60, 16 }
  0x3b   :  { %12804 = vmatpush3.bf16.msra.mxu0 %v14052_v54  ;;  %v1840_v59 = vor.u32 %v1839_v47, %v14161_v46  ;;  %v5266_v63 = vrot.slane %v5264_v50, 4  ;;  %v1822_v1 = vsel %vm14024_vm13, %v1817_v23, %v1821_v42  ;;  %v298_v18 = vmax.f32 %v14115_v10, 0.0 }
  0x3c   :  { %v606_v7 = vor.u32 %v604_v40, %v603_v48  ;;  %v607_v62 = vrot.slane %v603_v48, 4  ;;  %v611_v35 = vrot.slane %v609_v58, 7  ;;  %v11148_v11 = vcombine.low %v1812_v53, %v1822_v1 }
  0x3d   :  { %v1841_v14 = vrot.slane %v1840_v59, 4  ;;  %v5267_v54 = vor.u32 %v5266_v63, %v14171_v39  ;;  %v299_v29 = vmax.f32 %v14118_v13, 0.0  ;;  %v11897_v33 = vpack.c.bf16 %v298_v18, %v298_v18 }
  0x3e   :  { %v1657_v21 = vld [vmem:[#allocation2 + $0x24] sm:$0xf]  ;;  %v614_v26 = vor.u32 %v612_v52, %v611_v35  ;;  %v616_v60 = vrot.slane %v611_v35, 4  ;;  %v1218_v28 = vsel %vm14010_vm10, %v606_v7, %v1217_v0  ;;  %12479 = vmatprep.mubr.msk.bf16.mxu1 %vm2617_vm11, %v11148_v11  ;;  %v236_v10 = vadd.f32 %v13949_v9, %v14121_v61  ;;  %v1224_v7 = vld [vmem:[#allocation2 + $0x3c] sm:$0xf] }
  0x3f   :  { %v5112_v24 = vld [vmem:[#allocation2 + $0x24] sm:$0xf]  ;;  %v1719_v8 = vld [vmem:[#allocation2 + $0x2c] sm:$0x1]  ;;  %v1824_v40 = vshrl.u32 %v1657_v21, 16  ;;  %v1827_v30 = vshll.u32 %v1657_v21, 16  ;;  %v11898_v50 = vpack.c.bf16 %v299_v29, %v299_v29  ;;  %v237_v59 = vadd.f32 %v13949_v9, %v14126_v5 }
  0x40   :  { %v5114_v27 = vld [vmem:[#allocation2 + $0x2c] sm:$0x1]  ;;  %1219 = vst [vmem:[#allocation2 + $0x30] sm:$0xf] %v1218_v28  ;;  %v1843_v31 = vshll.u32 %v1719_v8, 16  ;;  %v5251_v34 = vshrl.u32 %v5112_v24, 16  ;;  %v615_v13 = vsel %vm14017_vm12, %v607_v62, %v614_v26  ;;  %v1222_v47 = vsel %vm13981_vm6, %v616_v60, %v1221_v17 }
  0x41   :  { %v5254_v32 = vshll.u32 %v5112_v24, 16  ;;  %v5268_v56 = vrot.slane %v5267_v54, 4  ;;  %v1826_v36 = vrot.slane %v1824_v40, 4  ;;  %v1829_v37 = vrot.slane %v1827_v30, 5  ;;  %1220 = vst.msk [vmem:[#allocation2 + $0x34] sm:$0xf] %vm1190_vm1, %v615_v13 }
  0x42   :  { %v5270_v38 = vshll.u32 %v5114_v27, 16  ;;  %v1845_v44 = vrot.slane %v1843_v31, 5  ;;  %v5253_v57 = vrot.slane %v5251_v34, 4  ;;  %1223 = vst [vmem:[#allocation2 + $0x38] sm:$0x1] %v1222_v47  ;;  %v618_v53 = vshrl.u32 %v11897_v33, 16 }
  0x43   :  { %v5256_v42 = vrot.slane %v5254_v32, 5  ;;  %v1830_v49 = vor.u32 %v1829_v37, %v1826_v36  ;;  %v621_v58 = vshll.u32 %v11897_v33, 16  ;;  %v626_v1 = vshrl.u32 %v11898_v50, 16  ;;  %v14200_v62 = vld [vmem:[%s17734_s0 + $0x30] sm:$0xff]   ;;  %v1228_v29 = vld [vmem:[#allocation2 + $0x44] sm:$0x1] }
  0x44   :  { %v5272_v61 = vrot.slane %v5270_v38, 5  ;;  %v1846_v23 = vsel %vm14024_vm13, %v1841_v14, %v1845_v44  ;;  %v620_v0 = vrot.slane %v618_v53, 7  ;;  %v629_v14 = vshll.u32 %v11898_v50, 16  ;;  %v13754_v3 = vld [vmem:[#allocation2 + $0x2c] sm:$0x1] }
  0x45   :  { %v5257_v48 = vor.u32 %v5256_v42, %v5253_v57  ;;  %v1831_v63 = vrot.slane %v1830_v49, 4  ;;  %v300_v54 = vmax.f32 %v236_v10, 0.0  ;;  %v301_v17 = vmax.f32 %v237_v59, 0.0 }
  0x46   :  { %v5273_v52 = vsel %vm14024_vm13, %v5268_v56, %v5272_v61  ;;  %v623_v21 = vor.u32 %v621_v58, %v620_v0  ;;  %v624_v24 = vrot.slane %v620_v0, 4  ;;  %v628_v28 = vrot.slane %v626_v1, 7 }
  0x47   :  { %v5258_v35 = vrot.slane %v5257_v48, 4  ;;  %v1446_v11 = vld [vmem:[#allocation2 + $0x30] sm:$0x1]  ;;  %v1836_v5 = vsel %vm14024_vm13, %v1831_v63, %v14161_v46  ;;  %v11899_v8 = vpack.c.bf16 %v300_v54, %v300_v54  ;;  %v11900_v33 = vpack.c.bf16 %v301_v17, %v301_v17  ;;  %v1231_v63 = vld [vmem:[#allocation2 + $0x48] sm:$0xf] }
  0x48   :  { %v1447_v18 = vsel %vm13981_vm6, 0, %v1446_v11  ;;  %v11149_v26 = vcombine.low %v1836_v5, %v1846_v23  ;;  %v5116_v30 = vld [vmem:[#allocation2 + $0x34] sm:$0xf]  ;;  %v1225_v46 = vsel %vm14010_vm10, %v623_v21, %v1224_v7  ;;  %v12043_v10 = vunpack.c.l.bf16 %v14200_v62 }
  0x49   :  { %v5263_v60 = vsel %vm14024_vm13, %v5258_v35, %v14171_v39  ;;  %1448 = vst [vmem:[#allocation2 + $0x30] sm:$0x1] %v1447_v18  ;;  %v1660_v27 = vld [vmem:[#allocation2 + $0x34] sm:$0xf]  ;;  %v1555_v31 = vld [vmem:[#allocation2 + $0x38] sm:$0x1]  ;;  %v631_v37 = vor.u32 %v629_v14, %v628_v28  ;;  %v12044_v35 = vunpack.c.h.bf16 %v14200_v62 }
  0x4a   :  { %v11439_v40 = vcombine.low %v5263_v60, %v5273_v52  ;;  %12480 = vmatmul.mubr.msk.bf16.gmra.mrb[4].mxu1 %vm2617_vm11, %v11149_v26  ;;  %v5284_v34 = vshll.u32 %v5116_v30, 16  ;;  %v5288_v32 = vshrl.u32 %v5116_v30, 16  ;;  %v1857_v56 = vshll.u32 %v1660_v27, 16  ;;  %1226 = vst [vmem:[#allocation2 + $0x3c] sm:$0xf] %v1225_v46 }
  0x4b   :  { %v1861_v39 = vshrl.u32 %v1660_v27, 16  ;;  %v1556_v36 = vsel %vm13970_vm5, 0, %v1555_v31  ;;  %v633_v38 = vrot.slane %v628_v28, 4  ;;  %v635_v13 = vshrl.u32 %v11899_v8, 16  ;;  %v1235_v18 = vld [vmem:[#allocation2 + $0x50] sm:$0x1] }
  0x4c   :  { %12743 = vmatprep.mubr.msk.bf16.mxu0 %vm2617_vm11, %v11439_v40  ;;  %1557 = vst [vmem:[#allocation2 + $0x38] sm:$0x1] %v1556_v36  ;;  %v14217_v44 = vrot.slane %v5284_v34, 5  ;;  %v5290_v57 = vrot.slane %v5288_v32, 4  ;;  %v14219_v42 = vrot.slane %v1857_v56, 5  ;;  %v632_v49 = vsel %vm14017_vm12, %v624_v24, %v631_v37 }
  0x4d   :  { %v1863_v47 = vrot.slane %v1861_v39, 4  ;;  %v1229_v61 = vsel %vm13981_vm6, %v633_v38, %v1228_v29  ;;  %v637_v50 = vrot.slane %v635_v13, 7  ;;  %v638_v53 = vshll.u32 %v11899_v8, 16  ;;  %1227 = vst.msk [vmem:[#allocation2 + $0x40] sm:$0xf] %vm1190_vm1, %v632_v49 }
  0x4e   :  { %v5291_v23 = vor.u32 %v5290_v57, %v14217_v44  ;;  %1230 = vst [vmem:[#allocation2 + $0x44] sm:$0x1] %v1229_v61  ;;  %v643_v58 = vshrl.u32 %v11900_v33, 16  ;;  %v646_v59 = vshll.u32 %v11900_v33, 16  ;;  %v167_v11 = vmul.f32 %v12043_v10, %v13944_v6 }
  0x4f   :  { %v1864_v48 = vor.u32 %v1863_v47, %v14219_v42  ;;  %v640_v1 = vor.u32 %v638_v53, %v637_v50  ;;  %v641_v7 = vrot.slane %v637_v50, 4  ;;  %v168_v31 = vmul.f32 %v12044_v35, %v13944_v6 }
  0x50   :  { %v5115_v52 = vld [vmem:[#allocation2 + $0x30] sm:$0xf]  ;;  %v5292_v17 = vrot.slane %v5291_v23, 4  ;;  %v645_v60 = vrot.slane %v643_v58, 7  ;;  %v238_v39 = vadd.f32 %v13949_v9, %v167_v11  ;;  %v14249_v23 = vld [vmem:[%s17734_s0 + $0x38] sm:$0xff]   ;;  %vm3652_vm15 = vcmask 1046532  }
  0x51   :  { %v1659_v0 = vld [vmem:[#allocation2 + $0x30] sm:$0xf]  ;;  %v5275_v14 = vshrl.u32 %v5115_v52, 16  ;;  %v5278_v54 = vshll.u32 %v5115_v52, 16  ;;  %v1865_v24 = vrot.slane %v1864_v48, 4  ;;  %v1232_v28 = vsel %vm14010_vm10, %v640_v1, %v1231_v63  ;;  %vm14721_vm2 = vmor %vm3651_vm14, %vm3652_vm15 }
  0x52   :  { %v1848_v5 = vshrl.u32 %v1659_v0, 16  ;;  %v1851_v21 = vshll.u32 %v1659_v0, 16  ;;  %v1449_v26 = vld [vmem:[#allocation2 + $0x3c] sm:$0x1]  ;;  %1233 = vst [vmem:[#allocation2 + $0x48] sm:$0xf] %v1232_v28  ;;  %v648_v33 = vor.u32 %v646_v59, %v645_v60  ;;  %v14241_v49 = vadd.f32 %v13949_v9, %v168_v31 }
  0x53   :  { %v5277_v29 = vrot.slane %v5275_v14, 4  ;;  %v5280_v8 = vrot.slane %v5278_v54, 5  ;;  %v1450_v62 = vsel %vm13981_vm6, 0, %v1449_v26  ;;  %v5117_v30 = vld [vmem:[#allocation2 + $0x38] sm:$0x1]  ;;  %v650_v10 = vrot.slane %v645_v60, 4 }
  0x54   :  { %v1850_v40 = vrot.slane %v1848_v5, 4  ;;  %v1720_v27 = vld [vmem:[#allocation2 + $0x38] sm:$0x1]  ;;  %v1853_v46 = vrot.slane %v1851_v21, 5  ;;  %1451 = vst [vmem:[#allocation2 + $0x3c] sm:$0x1] %v1450_v62  ;;  %v649_v57 = vsel %vm14017_vm12, %v641_v7, %v648_v33  ;;  %v12047_v60 = vunpack.c.l.bf16 %v14249_v23 }
  0x55   :  { %v5281_v34 = vor.u32 %v5280_v8, %v5277_v29  ;;  %v5294_v32 = vshll.u32 %v5117_v30, 16  ;;  %v1867_v56 = vshll.u32 %v1720_v27, 16  ;;  %v1558_v37 = vld [vmem:[#allocation2 + $0x44] sm:$0x1]  ;;  %v1662_v38 = vld [vmem:[#allocation2 + $0x40] sm:$0xf]  ;;  %v1236_v47 = vsel %vm13981_vm6, %v650_v10, %v1235_v18 }
  0x56   :  { %v1854_v36 = vor.u32 %v1853_v46, %v1850_v40  ;;  %v5119_v13 = vld [vmem:[#allocation2 + $0x40] sm:$0xf]  ;;  %v1559_v53 = vsel %vm13970_vm5, 0, %v1558_v37  ;;  %1234 = vst.msk [vmem:[#allocation2 + $0x4c] sm:$0xf] %vm1190_vm1, %v649_v57  ;;  %v1881_v58 = vshll.u32 %v1662_v38, 16  ;;  %v12048_v37 = vunpack.c.h.bf16 %v14249_v23 }
  0x57   :  { %v5282_v61 = vrot.slane %v5281_v34, 4  ;;  %v5296_v6 = vrot.slane %v5294_v32, 5  ;;  %v1869_v50 = vrot.slane %v1867_v56, 5  ;;  %1237 = vst [vmem:[#allocation2 + $0x50] sm:$0x1] %v1236_v47  ;;  %v1885_v59 = vshrl.u32 %v1662_v38, 16 }
  0x58   :  { %v1855_v48 = vrot.slane %v1854_v36, 4  ;;  %1560 = vst [vmem:[#allocation2 + $0x44] sm:$0x1] %v1559_v53  ;;  %v5308_v9 = vshll.u32 %v5119_v13, 16  ;;  %v5312_v1 = vshrl.u32 %v5119_v13, 16  ;;  %v1883_v11 = vrot.slane %v1881_v58, 5 }
  0x59   :  { %v5287_v63 = vsel %vm14024_vm13, %v5282_v61, %v14217_v44  ;;  %v5297_v52 = vsel %vm14024_vm13, %v5292_v17, %v5296_v6  ;;  %v1870_v0 = vsel %vm14024_vm13, %v1865_v24, %v1869_v50  ;;  %v1887_v14 = vrot.slane %v1885_v59, 4  ;;  %v1452_v54 = vld [vmem:[#allocation2 + $0x48] sm:$0x1] }
  0x5a   :  { %v11440_v7 = vcombine.low %v5287_v63, %v5297_v52  ;;  %v1860_v35 = vsel %vm14024_vm13, %v1855_v48, %v14219_v42  ;;  %v5310_v26 = vrot.slane %v5308_v9, 5  ;;  %v5314_v44 = vrot.slane %v5312_v1, 4 }
  0x5b   :  { %v11150_v5 = vcombine.low %v1860_v35, %v1870_v0  ;;  %v1661_v18 = vld [vmem:[#allocation2 + $0x3c] sm:$0xf]  ;;  %v1888_v28 = vor.u32 %v1887_v14, %v1883_v11  ;;  %v1453_v40 = vsel %vm13981_vm6, 0, %v1452_v54  ;;  %v302_v62 = vmax.f32 %v238_v39, 0.0 }
  0x5c   :  { %v5118_v21 = vld [vmem:[#allocation2 + $0x3c] sm:$0xf]  ;;  %12744 = vmatmul.mubr.msk.bf16.gmra.mrb[4].mxu0 %vm2617_vm11, %v11440_v7  ;;  %v1872_v17 = vshrl.u32 %v1661_v18, 16  ;;  %v1875_v24 = vshll.u32 %v1661_v18, 16  ;;  %v5315_v42 = vor.u32 %v5314_v44, %v5310_v26  ;;  %1454 = vst [vmem:[#allocation2 + $0x48] sm:$0x1] %v1453_v40 }
  0x5d   :  { %v5299_v29 = vshrl.u32 %v5118_v21, 16  ;;  %12483 = vmatprep.mubr.msk.bf16.mxu1 %vm2617_vm11, %v11150_v5  ;;  %v5302_v8 = vshll.u32 %v5118_v21, 16  ;;  %v1889_v46 = vrot.slane %v1888_v28, 4  ;;  %v14266_v36 = vpack.c.bf16 %v302_v62, %v302_v62  ;;  %v5122_v47 = vld [vmem:[#allocation2 + $0x4c] sm:$0xf] }
  0x5e   :  { %v1874_v30 = vrot.slane %v1872_v17, 4  ;;  %v1877_v27 = vrot.slane %v1875_v24, 5  ;;  %v1561_v10 = vld [vmem:[#allocation2 + $0x50] sm:$0x1]  ;;  %v5316_v56 = vrot.slane %v5315_v42, 4  ;;  %v5332_v6 = vshll.u32 %v5122_v47, 16 }
  0x5f   :  { %v5301_v33 = vrot.slane %v5299_v29, 4  ;;  %v1721_v31 = vld [vmem:[#allocation2 + $0x44] sm:$0x1]  ;;  %v5304_v32 = vrot.slane %v5302_v8, 5  ;;  %v1562_v39 = vsel %vm13970_vm5, 0, %v1561_v10  ;;  %v5336_v50 = vshrl.u32 %v5122_v47, 16 }
  0x60   :  { %v5120_v34 = vld [vmem:[#allocation2 + $0x44] sm:$0x1]  ;;  %v1878_v38 = vor.u32 %v1877_v27, %v1874_v30  ;;  %v1891_v13 = vshll.u32 %v1721_v31, 16  ;;  %1563 = vst [vmem:[#allocation2 + $0x50] sm:$0x1] %v1562_v39  ;;  %v303_v48 = vmax.f32 %v14241_v49, 0.0 }
  0x61   :  { %v5318_v57 = vshll.u32 %v5120_v34, 16  ;;  %v5305_v61 = vor.u32 %v5304_v32, %v5301_v33  ;;  %v1664_v53 = vld [vmem:[#allocation2 + $0x4c] sm:$0xf]  ;;  %v5334_v0 = vrot.slane %v5332_v6, 5  ;;  %v5338_v1 = vrot.slane %v5336_v50, 4 }
  0x62   :  { %v1879_v58 = vrot.slane %v1878_v38, 4  ;;  %v1893_v59 = vrot.slane %v1891_v13, 5  ;;  %v1905_v63 = vshll.u32 %v1664_v53, 16  ;;  %v1909_v7 = vshrl.u32 %v1664_v53, 16  ;;  %v14285_v10 = vld [vmem:[%s17735_s1] ss:$0 sm:$0xff] }
  0x63   :  { %v5320_v9 = vrot.slane %v5318_v57, 5  ;;  %v5306_v52 = vrot.slane %v5305_v61, 4  ;;  %v5121_v21 = vld [vmem:[#allocation2 + $0x48] sm:$0xf]  ;;  %v5339_v44 = vor.u32 %v5338_v1, %v5334_v0  ;;  %v11902_v30 = vpack.c.bf16 %v303_v48, %v303_v48 }
  0x64   :  { %v1884_v35 = vsel %vm14024_vm13, %v1879_v58, %v1883_v11  ;;  %v1894_v14 = vsel %vm14024_vm13, %v1889_v46, %v1893_v59  ;;  %v1907_v5 = vrot.slane %v1905_v63, 5  ;;  %v1663_v17 = vld [vmem:[#allocation2 + $0x48] sm:$0xf]  ;;  %v1911_v24 = vrot.slane %v1909_v7, 4 }
  0x65   :  { %v5321_v54 = vsel %vm14024_vm13, %v5316_v56, %v5320_v9  ;;  %v11151_v18 = vcombine.low %v1884_v35, %v1894_v14  ;;  %v5311_v49 = vsel %vm14024_vm13, %v5306_v52, %v5310_v26  ;;  %v5323_v29 = vshrl.u32 %v5121_v21, 16 }
  0x66   :  { %v11441_v28 = vcombine.low %v5311_v49, %v5321_v54  ;;  %v5326_v8 = vshll.u32 %v5121_v21, 16  ;;  %v1896_v42 = vshrl.u32 %v1663_v17, 16  ;;  %v5340_v11 = vrot.slane %v5339_v44, 4  ;;  %v12152_v49 = vld [vmem:[%s17734_s0 + $0x40] sm:$0xff]  }
  0x67   :  { %12484 = vmatmul.mubr.msk.bf16.gmra.mrb[8].mxu1 %vm2617_vm11, %v11151_v18  ;;  %v1899_v40 = vshll.u32 %v1663_v17, 16  ;;  %v1912_v62 = vor.u32 %v1911_v24, %v1907_v5  ;;  %v5123_v27 = vld [vmem:[#allocation2 + $0x50] sm:$0x1]  ;;  %v5325_v46 = vrot.slane %v5323_v29, 4  ;;  %v169_v31 = vmul.f32 %v14285_v10, %v12047_v60  ;;  %v14296_v60 = vld [vmem:[%s17736_s2] ss:$0 sm:$0xff] }
  0x68   :  { %12747 = vmatprep.mubr.msk.bf16.mxu0 %vm2617_vm11, %v11441_v28  ;;  %v5328_v33 = vrot.slane %v5326_v8, 5  ;;  %v1722_v26 = vld [vmem:[#allocation2 + $0x50] sm:$0x1]  ;;  %v170_v34 = vmul.f32 %v14285_v10, %v12048_v37  ;;  %v5342_v32 = vshll.u32 %v5123_v27, 16  ;;  %v1898_v56 = vrot.slane %v1896_v42, 4 }
  0x69   :  { %v1901_v38 = vrot.slane %v1899_v40, 5  ;;  %v1913_v13 = vrot.slane %v1912_v62, 4  ;;  %v1915_v39 = vshll.u32 %v1722_v26, 16  ;;  %v652_v47 = vshrl.u32 %v14266_v36, 16  ;;  %v1242_v18 = vld [vmem:[#allocation2 + $0x5c] sm:$0x1] }
  0x6a   :  { %v5329_v57 = vor.u32 %v5328_v33, %v5325_v46  ;;  %v655_v61 = vshll.u32 %v14266_v36, 16  ;;  %v5344_v6 = vrot.slane %v5342_v32, 5  ;;  %v660_v53 = vshrl.u32 %v11902_v30, 16  ;;  %v1238_v36 = vld [vmem:[#allocation2 + $0x54] sm:$0xf] }
  0x6b   :  { %v1902_v50 = vor.u32 %v1901_v38, %v1898_v56  ;;  %v663_v48 = vshll.u32 %v11902_v30, 16  ;;  %v1917_v23 = vrot.slane %v1915_v39, 5  ;;  %v654_v59 = vrot.slane %v652_v47, 7 }
  0x6c   :  { %v5330_v58 = vrot.slane %v5329_v57, 4  ;;  %v240_v37 = vadd.f32 %v14296_v60, %v169_v31  ;;  %v5345_v9 = vsel %vm14024_vm13, %v5340_v11, %v5344_v6  ;;  %v662_v52 = vrot.slane %v660_v53, 7  ;;  %v12154_v11 = vld [vmem:[%s17734_s0 + $0x50] sm:$0xff]  }
  0x6d   :  { %v1903_v63 = vrot.slane %v1902_v50, 4  ;;  %v241_v1 = vadd.f32 %v14296_v60, %v170_v34  ;;  %v1918_v35 = vsel %vm14024_vm13, %v1913_v13, %v1917_v23  ;;  %v657_v14 = vor.u32 %v655_v61, %v654_v59 }
  0x6e   :  { %v5335_v7 = vsel %vm14024_vm13, %v5330_v58, %v5334_v0  ;;  %v658_v54 = vrot.slane %v654_v59, 4  ;;  %v665_v17 = vor.u32 %v663_v48, %v662_v52  ;;  %v667_v24 = vrot.slane %v662_v52, 4  ;;  %v12153_v0 = vld [vmem:[%s17734_s0 + $0x48] sm:$0xff]   ;;  %v1245_v59 = vld [vmem:[#allocation2 + $0x60] sm:$0xf] }
  0x6f   :  { %v11442_v21 = vcombine.low %v5335_v7, %v5345_v9  ;;  %v1908_v44 = vsel %vm14024_vm13, %v1903_v63, %v1907_v5  ;;  %v1239_v29 = vsel %vm14010_vm10, %v657_v14, %v1238_v36  ;;  %v304_v8 = vmax.f32 %v240_v37, 0.0 }
  0x70   :  { %v11152_v28 = vcombine.low %v1908_v44, %v1918_v35  ;;  %v305_v42 = vmax.f32 %v241_v1, 0.0  ;;  %v666_v5 = vsel %vm14017_vm12, %v658_v54, %v665_v17  ;;  %1240 = vst [vmem:[#allocation2 + $0x54] sm:$0xf] %v1239_v29  ;;  %v1243_v40 = vsel %vm13981_vm6, %v667_v24, %v1242_v18  ;;  %v1249_v54 = vld [vmem:[#allocation2 + $0x68] sm:$0x1] }
  0x71   :  { %12748 = vmatmul.mubr.msk.bf16.gmra.mrb[8].mxu0 %vm2617_vm11, %v11442_v21  ;;  %v12051_v62 = vunpack.c.l.bf16 %v12152_v49  ;;  %v12052_v30 = vunpack.c.h.bf16 %v12152_v49  ;;  %1241 = vst.msk [vmem:[#allocation2 + $0x58] sm:$0xf] %vm1190_vm1, %v666_v5  ;;  %1244 = vst [vmem:[#allocation2 + $0x5c] sm:$0x1] %v1243_v40  ;;  %v11903_v27 = vpack.c.bf16 %v304_v8, %v304_v8  ;;  %v12055_v33 = vunpack.c.l.bf16 %v12153_v0 }
  0x72   :  { %12487 = vmatprep.mubr.msk.bf16.mxu1 %vm2617_vm11, %v11152_v28  ;;  %v11904_v46 = vpack.c.bf16 %v305_v42, %v305_v42  ;;  %v12056_v26 = vunpack.c.h.bf16 %v12153_v0  ;;  %v12059_v32 = vunpack.c.l.bf16 %v12154_v11  ;;  %v12060_v56 = vunpack.c.h.bf16 %v12154_v11 }
  0x73   :  { %v171_v31 = vmul.f32 %v14285_v10, %v12051_v62  ;;  %v172_v34 = vmul.f32 %v14285_v10, %v12052_v30  ;;  %v669_v38 = vshrl.u32 %v11903_v27, 16  ;;  %v672_v13 = vshll.u32 %v11903_v27, 16 }
  0x74   :  { %v677_v57 = vshrl.u32 %v11904_v46, 16  ;;  %v680_v39 = vshll.u32 %v11904_v46, 16  ;;  %v173_v6 = vmul.f32 %v14285_v10, %v12055_v33  ;;  %v174_v50 = vmul.f32 %v14285_v10, %v12056_v26 }
  0x75   :  { %v242_v47 = vadd.f32 %v14296_v60, %v171_v31  ;;  %v243_v61 = vadd.f32 %v14296_v60, %v172_v34  ;;  %v671_v53 = vrot.slane %v669_v38, 7  ;;  %v175_v58 = vmul.f32 %v14285_v10, %v12059_v32 }
  0x76   :  { %v679_v48 = vrot.slane %v677_v57, 7  ;;  %v176_v23 = vmul.f32 %v14285_v10, %v12060_v56  ;;  %v244_v63 = vadd.f32 %v14296_v60, %v173_v6  ;;  %v245_v52 = vadd.f32 %v14296_v60, %v174_v50  ;;  %v1252_v6 = vld [vmem:[#allocation2 + $0x6c] sm:$0xf] }
  0x77   :  { %v306_v37 = vmax.f32 %v242_v47, 0.0  ;;  %v307_v9 = vmax.f32 %v243_v61, 0.0  ;;  %v1455_v36 = vld [vmem:[#allocation2 + $0x54] sm:$0x1]  ;;  %v674_v1 = vor.u32 %v672_v13, %v671_v53  ;;  %v675_v7 = vrot.slane %v671_v53, 4 }
  0x78   :  { %v682_v35 = vor.u32 %v680_v39, %v679_v48  ;;  %v684_v14 = vrot.slane %v679_v48, 4  ;;  %v1456_v18 = vsel %vm13981_vm6, 0, %v1455_v36  ;;  %v1564_v49 = vld [vmem:[#allocation2 + $0x5c] sm:$0x1]  ;;  %v1666_v21 = vld [vmem:[#allocation2 + $0x58] sm:$0xf]  ;;  %v14361_v50 = vadd.f32 %v14296_v60, %v175_v58 }
  0x79   :  { %v11905_v44 = vpack.c.bf16 %v306_v37, %v306_v37  ;;  %v11906_v17 = vpack.c.bf16 %v307_v9, %v307_v9  ;;  %v308_v24 = vmax.f32 %v244_v63, 0.0  ;;  %1457 = vst [vmem:[#allocation2 + $0x54] sm:$0x1] %v1456_v18  ;;  %v1565_v0 = vsel %vm13970_vm5, 0, %v1564_v49  ;;  %v5125_v8 = vld [vmem:[#allocation2 + $0x58] sm:$0xf] }
  0x7a   :  { %v1929_v28 = vshll.u32 %v1666_v21, 16  ;;  %v1933_v29 = vshrl.u32 %v1666_v21, 16  ;;  %v683_v42 = vsel %vm14017_vm12, %v675_v7, %v682_v35  ;;  %1566 = vst [vmem:[#allocation2 + $0x5c] sm:$0x1] %v1565_v0  ;;  %v5356_v11 = vshll.u32 %v5125_v8, 16  ;;  %v14357_v39 = vld [vmem:[%s17734_s0 + $0x58] sm:$0xff]  }
  0x7b   :  { %v5360_v5 = vshrl.u32 %v5125_v8, 16  ;;  %v1246_v40 = vsel %vm14010_vm10, %v674_v1, %v1245_v59  ;;  %1248 = vst.msk [vmem:[#allocation2 + $0x64] sm:$0xf] %vm1190_vm1, %v683_v42  ;;  %v1250_v62 = vsel %vm13981_vm6, %v684_v14, %v1249_v54  ;;  %v686_v46 = vshrl.u32 %v11905_v44, 16 }
  0x7c   :  { %v14347_v30 = vrot.slane %v1929_v28, 5  ;;  %v1935_v27 = vrot.slane %v1933_v29, 4  ;;  %1247 = vst [vmem:[#allocation2 + $0x60] sm:$0xf] %v1246_v40  ;;  %1251 = vst [vmem:[#allocation2 + $0x68] sm:$0x1] %v1250_v62  ;;  %v14352_v57 = vpack.c.bf16 %v308_v24, %v308_v24  ;;  %v14364_v53 = vadd.f32 %v14296_v60, %v176_v23 }
  0x7d   :  { %v689_v33 = vshll.u32 %v11905_v44, 16  ;;  %v14349_v26 = vrot.slane %v5356_v11, 5  ;;  %v5362_v31 = vrot.slane %v5360_v5, 4  ;;  %v694_v34 = vshrl.u32 %v11906_v17, 16  ;;  %v1256_v5 = vld [vmem:[#allocation2 + $0x74] sm:$0x1] }
  0x7e   :  { %v697_v32 = vshll.u32 %v11906_v17, 16  ;;  %v1936_v56 = vor.u32 %v1935_v27, %v14347_v30  ;;  %v688_v38 = vrot.slane %v686_v46, 7  ;;  %v309_v13 = vmax.f32 %v245_v52, 0.0 }
  0x7f   :  { %v5363_v47 = vor.u32 %v5362_v31, %v14349_v26  ;;  %v696_v61 = vrot.slane %v694_v34, 7  ;;  %v12063_v35 = vunpack.c.l.bf16 %v14357_v39  ;;  %v12064_v49 = vunpack.c.h.bf16 %v14357_v39  ;;  %v12156_v39 = vld [vmem:[%s17734_s0 + $0x60] sm:$0xff]  }
  0x80   :  { %v1937_v48 = vrot.slane %v1936_v56, 4  ;;  %v691_v59 = vor.u32 %v689_v33, %v688_v38  ;;  %v692_v37 = vrot.slane %v688_v38, 4  ;;  %v14366_v9 = vpack.c.bf16 %v309_v13, %v309_v13  ;;  %v1665_v63 = vld [vmem:[#allocation2 + $0x54] sm:$0xf] }
  0x81   :  { %v5124_v52 = vld [vmem:[#allocation2 + $0x54] sm:$0xf]  ;;  %v5364_v36 = vrot.slane %v5363_v47, 4  ;;  %v699_v1 = vor.u32 %v697_v32, %v696_v61  ;;  %v701_v7 = vrot.slane %v696_v61, 4  ;;  %v1723_v14 = vld [vmem:[#allocation2 + $0x5c] sm:$0x1] }
  0x82   :  { %v1920_v54 = vshrl.u32 %v1665_v63, 16  ;;  %v1923_v18 = vshll.u32 %v1665_v63, 16  ;;  %v5126_v58 = vld [vmem:[#allocation2 + $0x5c] sm:$0x1]  ;;  %v1253_v23 = vsel %vm14010_vm10, %v691_v59, %v1252_v6  ;;  %v1939_v21 = vshll.u32 %v1723_v14, 16 }
  0x83   :  { %v5347_v44 = vshrl.u32 %v5124_v52, 16  ;;  %v5350_v17 = vshll.u32 %v5124_v52, 16  ;;  %v5366_v24 = vshll.u32 %v5126_v58, 16  ;;  %v1458_v0 = vld [vmem:[#allocation2 + $0x60] sm:$0x1]  ;;  %v700_v11 = vsel %vm14017_vm12, %v692_v37, %v699_v1 }
  0x84   :  { %1254 = vst [vmem:[#allocation2 + $0x6c] sm:$0xf] %v1253_v23  ;;  %v1922_v28 = vrot.slane %v1920_v54, 4  ;;  %v1925_v29 = vrot.slane %v1923_v18, 5  ;;  %v1459_v8 = vsel %vm13981_vm6, 0, %v1458_v0  ;;  %v1941_v40 = vrot.slane %v1939_v21, 5 }
  0x85   :  { %v1567_v42 = vld [vmem:[#allocation2 + $0x68] sm:$0x1]  ;;  %v5349_v62 = vrot.slane %v5347_v44, 4  ;;  %v5352_v27 = vrot.slane %v5350_v17, 5  ;;  %v5368_v46 = vrot.slane %v5366_v24, 5  ;;  %v1257_v54 = vsel %vm13981_vm6, %v701_v7, %v1256_v5 }
  0x86   :  { %1460 = vst [vmem:[#allocation2 + $0x60] sm:$0x1] %v1459_v8  ;;  %v5128_v33 = vld [vmem:[#allocation2 + $0x64] sm:$0xf]  ;;  %1255 = vst.msk [vmem:[#allocation2 + $0x70] sm:$0xf] %vm1190_vm1, %v700_v11  ;;  %v1926_v31 = vor.u32 %v1925_v29, %v1922_v28  ;;  %v1942_v13 = vsel %vm14024_vm13, %v1937_v48, %v1941_v40 }
  0x87   :  { %v1568_v34 = vsel %vm13970_vm5, 0, %v1567_v42  ;;  %v5380_v32 = vshll.u32 %v5128_v33, 16  ;;  %v5384_v56 = vshrl.u32 %v5128_v33, 16  ;;  %v1668_v38 = vld [vmem:[#allocation2 + $0x64] sm:$0xf]  ;;  %v5353_v47 = vor.u32 %v5352_v27, %v5349_v62 }
  0x88   :  { %v5369_v61 = vsel %vm14024_vm13, %v5364_v36, %v5368_v46  ;;  %1569 = vst [vmem:[#allocation2 + $0x68] sm:$0x1] %v1568_v34  ;;  %v1953_v6 = vshll.u32 %v1668_v38, 16  ;;  %v1927_v59 = vrot.slane %v1926_v31, 4  ;;  %v1957_v52 = vshrl.u32 %v1668_v38, 16 }
  0x89   :  { %v14383_v37 = vrot.slane %v5380_v32, 5  ;;  %v5386_v63 = vrot.slane %v5384_v56, 4  ;;  %v5354_v1 = vrot.slane %v5353_v47, 4  ;;  %v703_v18 = vshrl.u32 %v14352_v57, 16  ;;  %1258 = vst [vmem:[#allocation2 + $0x74] sm:$0x1] %v1257_v54 }
  0x8a   :  { %v14385_v14 = vrot.slane %v1953_v6, 5  ;;  %v1932_v48 = vsel %vm14024_vm13, %v1927_v59, %v14347_v30  ;;  %v1959_v58 = vrot.slane %v1957_v52, 4  ;;  %v706_v21 = vshll.u32 %v14352_v57, 16  ;;  %v1259_v52 = vld [vmem:[#allocation2 + $0x78] sm:$0xf] }
  0x8b   :  { %v5387_v36 = vor.u32 %v5386_v63, %v14383_v37  ;;  %v1461_v23 = vld [vmem:[#allocation2 + $0x6c] sm:$0x1]  ;;  %v11153_v44 = vcombine.low %v1932_v48, %v1942_v13  ;;  %v5359_v17 = vsel %vm14024_vm13, %v5354_v1, %v14349_v26  ;;  %v14400_v24 = vrot.slane %v703_v18, 7 }
  0x8c   :  { %v1462_v7 = vsel %vm13981_vm6, 0, %v1461_v23  ;;  %v11443_v0 = vcombine.low %v5359_v17, %v5369_v61  ;;  %v1960_v8 = vor.u32 %v1959_v58, %v14385_v14  ;;  %v711_v42 = vshrl.u32 %v14366_v9, 16 }
  0x8d   :  { %v5127_v28 = vld [vmem:[#allocation2 + $0x60] sm:$0xf]  ;;  %v5388_v30 = vrot.slane %v5387_v36, 4  ;;  %1463 = vst [vmem:[#allocation2 + $0x6c] sm:$0x1] %v1462_v7  ;;  %12488 = vmatmul.mubr.msk.bf16.gmra.mrb[12].mxu1 %vm2617_vm11, %v11153_v44  ;;  %v708_v31 = vor.u32 %v706_v21, %v14400_v24  ;;  %v14410_v34 = vmul.f32 %v14285_v10, %v12063_v35 }
  0x8e   :  { %v1667_v29 = vld [vmem:[#allocation2 + $0x60] sm:$0xf]  ;;  %v5371_v57 = vshrl.u32 %v5127_v28, 16  ;;  %v5374_v11 = vshll.u32 %v5127_v28, 16  ;;  %v1670_v40 = vld [vmem:[#allocation2 + $0x70] sm:$0xf]  ;;  %12751 = vmatprep.mubr.msk.bf16.mxu0 %vm2617_vm11, %v11443_v0 }
  0x8f   :  { %v1944_v5 = vshrl.u32 %v1667_v29, 16  ;;  %v1947_v26 = vshll.u32 %v1667_v29, 16  ;;  %v5129_v62 = vld [vmem:[#allocation2 + $0x68] sm:$0x1]  ;;  %v1961_v46 = vrot.slane %v1960_v8, 4  ;;  %v1977_v33 = vshll.u32 %v1670_v40, 16 }
  0x90   :  { %v1724_v27 = vld [vmem:[#allocation2 + $0x68] sm:$0x1]  ;;  %v5373_v32 = vrot.slane %v5371_v57, 4  ;;  %v5376_v56 = vrot.slane %v5374_v11, 5  ;;  %v5390_v38 = vshll.u32 %v5129_v62, 16  ;;  %v1981_v63 = vshrl.u32 %v1670_v40, 16 }
  0x91   :  { %v1946_v13 = vrot.slane %v1944_v5, 4  ;;  %v5131_v47 = vld [vmem:[#allocation2 + $0x70] sm:$0xf]  ;;  %v1949_v61 = vrot.slane %v1947_v26, 5  ;;  %v1963_v6 = vshll.u32 %v1724_v27, 16  ;;  %v14412_v59 = vrot.slane %v1977_v33, 5 }
  0x92   :  { %v5377_v1 = vor.u32 %v5376_v56, %v5373_v32  ;;  %v5392_v54 = vrot.slane %v5390_v38, 5  ;;  %v1570_v18 = vld [vmem:[#allocation2 + $0x74] sm:$0x1]  ;;  %v5404_v48 = vshll.u32 %v5131_v47, 16  ;;  %v5408_v36 = vshrl.u32 %v5131_v47, 16 }
  0x93   :  { %v1950_v58 = vor.u32 %v1949_v61, %v1946_v13  ;;  %v1965_v23 = vrot.slane %v1963_v6, 5  ;;  %v1571_v35 = vsel %vm13970_vm5, 0, %v1570_v18  ;;  %v1983_v21 = vrot.slane %v1981_v63, 4  ;;  %v1263_v63 = vld [vmem:[#allocation2 + $0x80] sm:$0x1] }
  0x94   :  { %v5378_v44 = vrot.slane %v5377_v1, 4  ;;  %v5393_v17 = vsel %vm14024_vm13, %v5388_v30, %v5392_v54  ;;  %1572 = vst [vmem:[#allocation2 + $0x74] sm:$0x1] %v1571_v35  ;;  %v1669_v7 = vld [vmem:[#allocation2 + $0x6c] sm:$0xf]  ;;  %v14418_v28 = vrot.slane %v5404_v48, 5  ;;  %v1260_v29 = vsel %vm14010_vm10, %v708_v31, %v1259_v52 }
  0x95   :  { %v5130_v0 = vld [vmem:[#allocation2 + $0x6c] sm:$0xf]  ;;  %v1951_v8 = vrot.slane %v1950_v58, 4  ;;  %v1966_v57 = vsel %vm14024_vm13, %v1961_v46, %v1965_v23  ;;  %v1968_v11 = vshrl.u32 %v1669_v7, 16  ;;  %v1971_v5 = vshll.u32 %v1669_v7, 16 }
  0x96   :  { %1261 = vst [vmem:[#allocation2 + $0x78] sm:$0xf] %v1260_v29  ;;  %v5383_v26 = vsel %vm14024_vm13, %v5378_v44, %v14383_v37  ;;  %v1984_v30 = vor.u32 %v1983_v21, %v14412_v59  ;;  %v5395_v40 = vshrl.u32 %v5130_v0, 16  ;;  %v5398_v62 = vshll.u32 %v5130_v0, 16  ;;  %v15606_v2 = vld [vmem:[#allocation2 + $0x70] sm:$0xf] }
  0x97   :  { %v11444_v27 = vcombine.low %v5383_v26, %v5393_v17  ;;  %v1956_v33 = vsel %vm14024_vm13, %v1951_v8, %v14385_v14  ;;  %v1970_v31 = vrot.slane %v1968_v11, 4  ;;  %v1973_v32 = vrot.slane %v1971_v5, 5  ;;  %v13713_v16 = vld [vmem:[#allocation2 + $0x6c] sm:$0xf] }
  0x98   :  { %v11154_v56 = vcombine.low %v1956_v33, %v1966_v57  ;;  %v1985_v46 = vrot.slane %v1984_v30, 4  ;;  %v5397_v38 = vrot.slane %v5395_v40, 4  ;;  %v5400_v13 = vrot.slane %v5398_v62, 5  ;;  %v14467_v62 = vld [vmem:[%s17734_s0 + $0x68] sm:$0xff]  }
  0x99   :  { %12752 = vmatmul.mubr.msk.bf16.gmra.mrb[12].mxu0 %vm2617_vm11, %v11444_v27  ;;  %v1974_v47 = vor.u32 %v1973_v32, %v1970_v31  ;;  %v5410_v61 = vrot.slane %v5408_v36, 4  ;;  %v709_v37 = vrot.slane %v14400_v24, 4  ;;  %v713_v6 = vrot.slane %v711_v42, 7 }
  0x9a   :  { %12491 = vmatprep.mubr.msk.bf16.mxu1 %vm2617_vm11, %v11154_v56  ;;  %v5401_v52 = vor.u32 %v5400_v13, %v5397_v38  ;;  %v714_v1 = vshll.u32 %v14366_v9, 16  ;;  %v310_v14 = vmax.f32 %v14361_v50, 0.0  ;;  %v311_v54 = vmax.f32 %v14364_v53, 0.0 }
  0x9b   :  { %v1725_v18 = vld [vmem:[#allocation2 + $0x74] sm:$0x1]  ;;  %v1975_v48 = vrot.slane %v1974_v47, 4  ;;  %v5411_v23 = vor.u32 %v5410_v61, %v14418_v28  ;;  %v718_v35 = vrot.slane %v713_v6, 4  ;;  %v178_v24 = vmul.f32 %v14285_v10, %v12064_v49 }
  0x9c   :  { %v5132_v58 = vld [vmem:[#allocation2 + $0x74] sm:$0x1]  ;;  %v1987_v42 = vshll.u32 %v1725_v18, 16  ;;  %v5402_v36 = vrot.slane %v5401_v52, 4  ;;  %v716_v44 = vor.u32 %v714_v1, %v713_v6  ;;  %v11909_v8 = vpack.c.bf16 %v310_v14, %v310_v14 }
  0x9d   :  { %v5414_v21 = vshll.u32 %v5132_v58, 16  ;;  %v1464_v17 = vld [vmem:[#allocation2 + $0x78] sm:$0x1]  ;;  %v1980_v50 = vsel %vm14024_vm13, %v1975_v48, %v14412_v59  ;;  %v5412_v53 = vrot.slane %v5411_v23, 4  ;;  %v1264_v9 = vsel %vm13981_vm6, %v718_v35, %v1263_v63 }
  0x9e   :  { %v1465_v7 = vsel %vm13981_vm6, 0, %v1464_v17  ;;  %v1989_v49 = vrot.slane %v1987_v42, 5  ;;  %v5407_v0 = vsel %vm14024_vm13, %v5402_v36, %v14418_v28  ;;  %v717_v59 = vsel %vm14017_vm12, %v709_v37, %v716_v44  ;;  %1265 = vst [vmem:[#allocation2 + $0x80] sm:$0x1] %v1264_v9 }
  0x9f   :  { %v5416_v29 = vrot.slane %v5414_v21, 5  ;;  %1466 = vst [vmem:[#allocation2 + $0x78] sm:$0x1] %v1465_v7  ;;  %1262 = vst.msk [vmem:[#allocation2 + $0x7c] sm:$0xf] %vm1190_vm1, %v717_v59  ;;  %v11910_v57 = vpack.c.bf16 %v311_v54, %v311_v54  ;;  %v248_v11 = vadd.f32 %v14296_v60, %v14410_v34  ;;  %v249_v5 = vadd.f32 %v14296_v60, %v178_v24 }
  0xa0   :  { %v1990_v26 = vsel %vm14024_vm13, %v1985_v46, %v1989_v49  ;;  %v12067_v30 = vunpack.c.l.bf16 %v12156_v39  ;;  %v12068_v40 = vunpack.c.h.bf16 %v12156_v39  ;;  %v720_v31 = vshrl.u32 %v11909_v8, 16  ;;  %v11598_v46 = vld [vmem:[%s17733_s3 + $0xc] sm:$0x3] }
  0xa1   :  { %v5417_v28 = vsel %vm14024_vm13, %v5412_v53, %v5416_v29  ;;  %v11155_v27 = vcombine.low %v1980_v50, %v1990_v26  ;;  %v723_v32 = vshll.u32 %v11909_v8, 16  ;;  %v728_v34 = vshrl.u32 %v11910_v57, 16  ;;  %13588 = vmatprep.subr.msk.bf16.mxu0 %vm2714_vm0, %v11598_v46  ;;  %v1266_v8 = vld [vmem:[#allocation2 + $0x84] sm:$0xf] }
  0xa2   :  { %v11445_v33 = vcombine.low %v5407_v0, %v5417_v28  ;;  %v731_v56 = vshll.u32 %v11910_v57, 16  ;;  %v312_v38 = vmax.f32 %v248_v11, 0.0  ;;  %v313_v13 = vmax.f32 %v249_v5, 0.0  ;;  %v1270_v28 = vld [vmem:[#allocation2 + $0x8c] sm:$0x1] }
  0xa3   :  { %12492 = vmatmul.mubr.msk.bf16.gmra.mrb[16].mxu1 %vm2617_vm11, %v11155_v27  ;;  %v722_v47 = vrot.slane %v720_v31, 7  ;;  %v179_v61 = vmul.f32 %v14285_v10, %v12067_v30  ;;  %v180_v37 = vmul.f32 %v14285_v10, %v12068_v40  ;;  %v12071_v6 = vunpack.c.l.bf16 %v14467_v62 }
  0xa4   :  { %12755 = vmatprep.mubr.msk.bf16.mxu0 %vm2617_vm11, %v11445_v33  ;;  %v730_v63 = vrot.slane %v728_v34, 7  ;;  %v14477_v52 = vpack.c.bf16 %v312_v38, %v312_v38  ;;  %v14479_v1 = vpack.c.bf16 %v313_v13, %v313_v13  ;;  %v12072_v14 = vunpack.c.h.bf16 %v14467_v62 }
  0xa5   :  { %v1573_v54 = vld [vmem:[#allocation2 + $0x80] sm:$0x1]  ;;  %v725_v58 = vor.u32 %v723_v32, %v722_v47  ;;  %v14484_v23 = vadd.f32 %v14296_v60, %v179_v61  ;;  %v14487_v35 = vadd.f32 %v14296_v60, %v180_v37  ;;  %v14490_v24 = vmul.f32 %v14285_v10, %v12071_v6 }
  0xa6   :  { %v5133_v18 = vld [vmem:[#allocation2 + $0x78] sm:$0xf]  ;;  %v1574_v42 = vsel %vm13970_vm5, 0, %v1573_v54  ;;  %v5134_v36 = vld [vmem:[#allocation2 + $0x7c] sm:$0xf]  ;;  %v726_v39 = vrot.slane %v722_v47, 4  ;;  %v733_v62 = vor.u32 %v731_v56, %v730_v63 }
  0xa7   :  { %v1671_v48 = vld [vmem:[#allocation2 + $0x78] sm:$0xf]  ;;  %v5419_v21 = vshrl.u32 %v5133_v18, 16  ;;  %v5422_v44 = vshll.u32 %v5133_v18, 16  ;;  %1575 = vst [vmem:[#allocation2 + $0x80] sm:$0x1] %v1574_v42  ;;  %v1267_v34 = vsel %vm14010_vm10, %v725_v58, %v1266_v8  ;;  %v182_v42 = vmul.f32 %v14285_v10, %v12072_v14 }
  0xa8   :  { %v1992_v17 = vshrl.u32 %v1671_v48, 16  ;;  %v5428_v50 = vshll.u32 %v5134_v36, 16  ;;  %v5432_v53 = vshrl.u32 %v5134_v36, 16  ;;  %v1672_v9 = vld [vmem:[#allocation2 + $0x7c] sm:$0xf]  ;;  %v1995_v7 = vshll.u32 %v1671_v48, 16 }
  0xa9   :  { %v5421_v49 = vrot.slane %v5419_v21, 4  ;;  %v5424_v0 = vrot.slane %v5422_v44, 5  ;;  %v2001_v59 = vshll.u32 %v1672_v9, 16  ;;  %v2005_v26 = vshrl.u32 %v1672_v9, 16  ;;  %1268 = vst [vmem:[#allocation2 + $0x84] sm:$0xf] %v1267_v34 }
  0xaa   :  { %v1994_v29 = vrot.slane %v1992_v17, 4  ;;  %v5430_v57 = vrot.slane %v5428_v50, 5  ;;  %v5434_v11 = vrot.slane %v5432_v53, 4  ;;  %v1997_v5 = vrot.slane %v1995_v7, 5  ;;  %v1273_v50 = vld [vmem:[#allocation2 + $0x90] sm:$0xf] }
  0xab   :  { %v5425_v30 = vor.u32 %v5424_v0, %v5421_v49  ;;  %v2003_v40 = vrot.slane %v2001_v59, 5  ;;  %v735_v27 = vrot.slane %v730_v63, 4  ;;  %v2007_v32 = vrot.slane %v2005_v26, 4  ;;  %v1277_v8 = vld [vmem:[#allocation2 + $0x98] sm:$0x1] }
  0xac   :  { %v5435_v33 = vor.u32 %v5434_v11, %v5430_v57  ;;  %v1998_v31 = vor.u32 %v1997_v5, %v1994_v29  ;;  %v734_v13 = vsel %vm14017_vm12, %v726_v39, %v733_v62  ;;  %v737_v47 = vshrl.u32 %v14477_v52, 16 }
  0xad   :  { %v5426_v38 = vrot.slane %v5425_v30, 4  ;;  %v1271_v46 = vsel %vm13981_vm6, %v735_v27, %v1270_v28  ;;  %v2008_v56 = vor.u32 %v2007_v32, %v2003_v40  ;;  %1269 = vst.msk [vmem:[#allocation2 + $0x88] sm:$0xf] %vm1190_vm1, %v734_v13  ;;  %v740_v6 = vshll.u32 %v14477_v52, 16 }
  0xae   :  { %v5436_v61 = vrot.slane %v5435_v33, 4  ;;  %v1999_v37 = vrot.slane %v1998_v31, 4  ;;  %1272 = vst [vmem:[#allocation2 + $0x8c] sm:$0x1] %v1271_v46  ;;  %v5135_v63 = vld [vmem:[#allocation2 + $0x80] sm:$0x1] }
  0xaf   :  { %v5431_v54 = vsel %vm14024_vm13, %v5426_v38, %v5430_v57  ;;  %v1726_v18 = vld [vmem:[#allocation2 + $0x80] sm:$0x1]  ;;  %v739_v48 = vrot.slane %v737_v47, 7  ;;  %v745_v58 = vshrl.u32 %v14479_v1, 16  ;;  %v5438_v36 = vshll.u32 %v5135_v63, 16  ;;  %v14532_v38 = vld [vmem:[%s17734_s0 + $0x70] sm:$0xff]  }
  0xb0   :  { %v2004_v21 = vsel %vm14024_vm13, %v1999_v37, %v2003_v40  ;;  %v2009_v44 = vrot.slane %v2008_v56, 4  ;;  %v2011_v17 = vshll.u32 %v1726_v18, 16  ;;  %v748_v7 = vshll.u32 %v14479_v1, 16  ;;  %v1467_v5 = vld [vmem:[#allocation2 + $0x84] sm:$0x1] }
  0xb1   :  { %v742_v53 = vor.u32 %v740_v6, %v739_v48  ;;  %v743_v9 = vrot.slane %v739_v48, 4  ;;  %v747_v52 = vrot.slane %v745_v58, 7  ;;  %v5440_v39 = vrot.slane %v5438_v36, 5 }
  0xb2   :  { %v2013_v49 = vrot.slane %v2011_v17, 5  ;;  %v314_v0 = vmax.f32 %v14484_v23, 0.0  ;;  %v315_v29 = vmax.f32 %v14487_v35, 0.0  ;;  %v252_v57 = vadd.f32 %v14296_v60, %v14490_v24 }
  0xb3   :  { %v750_v59 = vor.u32 %v748_v7, %v747_v52  ;;  %v752_v10 = vrot.slane %v747_v52, 4  ;;  %v1274_v14 = vsel %vm14010_vm10, %v742_v53, %v1273_v50  ;;  %v5441_v11 = vsel %vm14024_vm13, %v5436_v61, %v5440_v39  ;;  %v1284_v39 = vld [vmem:[#allocation2 + $0xa4] sm:$0x1] }
  0xb4   :  { %v2014_v1 = vsel %vm14024_vm13, %v2009_v44, %v2013_v49  ;;  %1275 = vst [vmem:[#allocation2 + $0x90] sm:$0xf] %v1274_v14  ;;  %v11913_v23 = vpack.c.bf16 %v314_v0, %v314_v0  ;;  %v11914_v26 = vpack.c.bf16 %v315_v29, %v315_v29  ;;  %v11446_v35 = vcombine.low %v5431_v54, %v5441_v11  ;;  %v1674_v62 = vld [vmem:[#allocation2 + $0x88] sm:$0xf]  ;;  %v1280_v44 = vld [vmem:[#allocation2 + $0x9c] sm:$0xf] }
  0xb5   :  { %v11156_v28 = vcombine.low %v2004_v21, %v2014_v1  ;;  %v1468_v30 = vsel %vm13981_vm6, 0, %v1467_v5  ;;  %v1576_v40 = vld [vmem:[#allocation2 + $0x8c] sm:$0x1]  ;;  %v751_v24 = vsel %vm14017_vm12, %v743_v9, %v750_v59  ;;  %v2025_v33 = vshll.u32 %v1674_v62, 16  ;;  %v5137_v32 = vld [vmem:[#allocation2 + $0x88] sm:$0xf] }
  0xb6   :  { %1469 = vst [vmem:[#allocation2 + $0x84] sm:$0x1] %v1468_v30  ;;  %v1577_v27 = vsel %vm13970_vm5, 0, %v1576_v40  ;;  %v2029_v31 = vshrl.u32 %v1674_v62, 16  ;;  %1276 = vst.msk [vmem:[#allocation2 + $0x94] sm:$0xf] %vm1190_vm1, %v751_v24  ;;  %v1278_v34 = vsel %vm13981_vm6, %v752_v10, %v1277_v8  ;;  %12756 = vmatmul.mubr.msk.bf16.gmra.mrb[16].mxu0 %vm2617_vm11, %v11446_v35  ;;  %v253_v58 = vadd.f32 %v14296_v60, %v182_v42 }
  0xb7   :  { %12495 = vmatprep.mubr.msk.bf16.mxu1 %vm2617_vm11, %v11156_v28  ;;  %1578 = vst [vmem:[#allocation2 + $0x8c] sm:$0x1] %v1577_v27  ;;  %v5452_v13 = vshll.u32 %v5137_v32, 16  ;;  %v5456_v46 = vshrl.u32 %v5137_v32, 16  ;;  %1279 = vst [vmem:[#allocation2 + $0x98] sm:$0x1] %v1278_v34  ;;  %v12075_v50 = vunpack.c.l.bf16 %v14532_v38 }
  0xb8   :  { %v754_v47 = vshrl.u32 %v11913_v23, 16  ;;  %v757_v61 = vshll.u32 %v11913_v23, 16  ;;  %v14536_v37 = vrot.slane %v2025_v33, 5  ;;  %v2031_v56 = vrot.slane %v2029_v31, 4 }
  0xb9   :  { %v762_v6 = vshrl.u32 %v11914_v26, 16  ;;  %v765_v63 = vshll.u32 %v11914_v26, 16  ;;  %v14538_v54 = vrot.slane %v5452_v13, 5  ;;  %v5458_v18 = vrot.slane %v5456_v46, 4 }
  0xba   :  { %v756_v48 = vrot.slane %v754_v47, 7  ;;  %v2032_v36 = vor.u32 %v2031_v56, %v14536_v37  ;;  %v316_v17 = vmax.f32 %v252_v57, 0.0  ;;  %v317_v49 = vmax.f32 %v253_v58, 0.0 }
  0xbb   :  { %v764_v21 = vrot.slane %v762_v6, 7  ;;  %v5459_v53 = vor.u32 %v5458_v18, %v14538_v54  ;;  %v1470_v9 = vld [vmem:[#allocation2 + $0x90] sm:$0x1] }
  0xbc   :  { %v759_v52 = vor.u32 %v757_v61, %v756_v48  ;;  %v760_v7 = vrot.slane %v756_v48, 4  ;;  %v2033_v0 = vrot.slane %v2032_v36, 4  ;;  %v1471_v29 = vsel %vm13981_vm6, 0, %v1470_v9 }
  0xbd   :  { %v767_v59 = vor.u32 %v765_v63, %v764_v21  ;;  %v769_v60 = vrot.slane %v764_v21, 4  ;;  %v1673_v42 = vld [vmem:[#allocation2 + $0x84] sm:$0xf]  ;;  %v5460_v14 = vrot.slane %v5459_v53, 4  ;;  %1472 = vst [vmem:[#allocation2 + $0x90] sm:$0x1] %v1471_v29  ;;  %v14548_v57 = vpack.c.bf16 %v316_v17, %v316_v17 }
  0xbe   :  { %v5136_v10 = vld [vmem:[#allocation2 + $0x84] sm:$0xf]  ;;  %v1281_v8 = vsel %vm14010_vm10, %v759_v52, %v1280_v44  ;;  %v14550_v11 = vpack.c.bf16 %v317_v49, %v317_v49  ;;  %v1727_v1 = vld [vmem:[#allocation2 + $0x8c] sm:$0x1]  ;;  %v2016_v5 = vshrl.u32 %v1673_v42, 16  ;;  %v2019_v23 = vshll.u32 %v1673_v42, 16 }
  0xbf   :  { %v5138_v26 = vld [vmem:[#allocation2 + $0x8c] sm:$0x1]  ;;  %v768_v35 = vsel %vm14017_vm12, %v760_v7, %v767_v59  ;;  %1282 = vst [vmem:[#allocation2 + $0x9c] sm:$0xf] %v1281_v8  ;;  %v1285_v28 = vsel %vm13981_vm6, %v769_v60, %v1284_v39  ;;  %v2035_v30 = vshll.u32 %v1727_v1, 16  ;;  %v5443_v40 = vshrl.u32 %v5136_v10, 16 }
  0xc0   :  { %v5446_v62 = vshll.u32 %v5136_v10, 16  ;;  %v5462_v24 = vshll.u32 %v5138_v26, 16  ;;  %v1579_v27 = vld [vmem:[#allocation2 + $0x98] sm:$0x1]  ;;  %1283 = vst.msk [vmem:[#allocation2 + $0xa0] sm:$0xf] %vm1190_vm1, %v768_v35 }
  0xc1   :  { %1286 = vst [vmem:[#allocation2 + $0xa4] sm:$0x1] %v1285_v28  ;;  %v2018_v33 = vrot.slane %v2016_v5, 4  ;;  %v2021_v31 = vrot.slane %v2019_v23, 5  ;;  %v1580_v32 = vsel %vm13970_vm5, 0, %v1579_v27  ;;  %v771_v13 = vshrl.u32 %v14548_v57, 16 }
  0xc2   :  { %v5140_v34 = vld [vmem:[#allocation2 + $0x94] sm:$0xf]  ;;  %v2037_v46 = vrot.slane %v2035_v30, 5  ;;  %v5445_v47 = vrot.slane %v5443_v40, 4  ;;  %v5448_v61 = vrot.slane %v5446_v62, 5  ;;  %v5464_v56 = vrot.slane %v5462_v24, 5 }
  0xc3   :  { %1581 = vst [vmem:[#allocation2 + $0x98] sm:$0x1] %v1580_v32  ;;  %v1676_v6 = vld [vmem:[#allocation2 + $0x94] sm:$0xf]  ;;  %v2022_v63 = vor.u32 %v2021_v31, %v2018_v33  ;;  %v5476_v18 = vshll.u32 %v5140_v34, 16  ;;  %v5480_v48 = vshrl.u32 %v5140_v34, 16 }
  0xc4   :  { %v2049_v58 = vshll.u32 %v1676_v6, 16  ;;  %v2038_v36 = vsel %vm14024_vm13, %v2033_v0, %v2037_v46  ;;  %v5449_v21 = vor.u32 %v5448_v61, %v5445_v47  ;;  %v5465_v44 = vsel %vm14024_vm13, %v5460_v14, %v5464_v56  ;;  %v5139_v9 = vld [vmem:[#allocation2 + $0x90] sm:$0xf] }
  0xc5   :  { %v2053_v17 = vshrl.u32 %v1676_v6, 16  ;;  %v2023_v53 = vrot.slane %v2022_v63, 4  ;;  %v5478_v52 = vrot.slane %v5476_v18, 5  ;;  %v5482_v7 = vrot.slane %v5480_v48, 4  ;;  %v1675_v60 = vld [vmem:[#allocation2 + $0x90] sm:$0xf] }
  0xc6   :  { %v2051_v39 = vrot.slane %v2049_v58, 5  ;;  %v5450_v49 = vrot.slane %v5449_v21, 4  ;;  %v5467_v29 = vshrl.u32 %v5139_v9, 16  ;;  %v5470_v59 = vshll.u32 %v5139_v9, 16  ;;  %v1473_v5 = vld [vmem:[#allocation2 + $0x9c] sm:$0x1] }
  0xc7   :  { %v2055_v42 = vrot.slane %v2053_v17, 4  ;;  %v2028_v10 = vsel %vm14024_vm13, %v2023_v53, %v14536_v37  ;;  %v5483_v0 = vor.u32 %v5482_v7, %v5478_v52  ;;  %v2040_v8 = vshrl.u32 %v1675_v60, 16  ;;  %v1678_v30 = vld [vmem:[#allocation2 + $0xa0] sm:$0xf] }
  0xc8   :  { %v2043_v1 = vshll.u32 %v1675_v60, 16  ;;  %v11157_v14 = vcombine.low %v2028_v10, %v2038_v36  ;;  %v5455_v23 = vsel %vm14024_vm13, %v5450_v49, %v14538_v54  ;;  %v5469_v26 = vrot.slane %v5467_v29, 4  ;;  %v1582_v28 = vld [vmem:[#allocation2 + $0xa4] sm:$0x1]  ;;  %v5143_v47 = vld [vmem:[#allocation2 + $0xa0] sm:$0xf] }
  0xc9   :  { %v5472_v35 = vrot.slane %v5470_v59, 5  ;;  %v11447_v40 = vcombine.low %v5455_v23, %v5465_v44  ;;  %v5484_v24 = vrot.slane %v5483_v0, 4  ;;  %v2042_v33 = vrot.slane %v2040_v8, 4 }
  0xca   :  { %v5141_v62 = vld [vmem:[#allocation2 + $0x98] sm:$0x1]  ;;  %v2056_v31 = vor.u32 %v2055_v42, %v2051_v39  ;;  %12496 = vmatmul.mubr.msk.bf16.gmra.mrb[20].mxu1 %vm2617_vm11, %v11157_v14  ;;  %v2045_v34 = vrot.slane %v2043_v1, 5  ;;  %v1474_v61 = vsel %vm13981_vm6, 0, %v1473_v5  ;;  %v1583_v56 = vsel %vm13970_vm5, 0, %v1582_v28 }
  0xcb   :  { %v1728_v27 = vld [vmem:[#allocation2 + $0x98] sm:$0x1]  ;;  %v5473_v37 = vor.u32 %v5472_v35, %v5469_v26  ;;  %v5486_v32 = vshll.u32 %v5141_v62, 16  ;;  %12759 = vmatprep.mubr.msk.bf16.mxu0 %vm2617_vm11, %v11447_v40  ;;  %v2073_v6 = vshll.u32 %v1678_v30, 16  ;;  %1475 = vst [vmem:[#allocation2 + $0x9c] sm:$0x1] %v1474_v61 }
  0xcc   :  { %v2059_v46 = vshll.u32 %v1728_v27, 16  ;;  %v2057_v54 = vrot.slane %v2056_v31, 4  ;;  %v2046_v48 = vor.u32 %v2045_v34, %v2042_v33  ;;  %1584 = vst [vmem:[#allocation2 + $0xa4] sm:$0x1] %v1583_v56  ;;  %v2077_v21 = vshrl.u32 %v1678_v30, 16  ;;  %v12159_v5 = vld [vmem:[%s17734_s0 + $0x78] sm:$0xff]  }
  0xcd   :  { %v5474_v63 = vrot.slane %v5473_v37, 4  ;;  %v5488_v18 = vrot.slane %v5486_v32, 5  ;;  %v14576_v36 = vrot.slane %v2073_v6, 5  ;;  %v5500_v44 = vshll.u32 %v5143_v47, 16  ;;  %v1287_v1 = vld [vmem:[#allocation2 + $0xa8] sm:$0xf] }
  0xce   :  { %v2061_v58 = vrot.slane %v2059_v46, 5  ;;  %v5504_v17 = vshrl.u32 %v5143_v47, 16  ;;  %v2047_v7 = vrot.slane %v2046_v48, 4  ;;  %v2079_v59 = vrot.slane %v2077_v21, 4  ;;  %v14604_v33 = vld [vmem:[%s17735_s1] ss:$0 sm:$0xff] }
  0xcf   :  { %v5479_v53 = vsel %vm14024_vm13, %v5474_v63, %v5478_v52  ;;  %v5489_v9 = vsel %vm14024_vm13, %v5484_v24, %v5488_v18  ;;  %v14584_v60 = vrot.slane %v5500_v44, 5  ;;  %v773_v0 = vrot.slane %v771_v13, 7 }
  0xd0   :  { %v2062_v49 = vsel %vm14024_vm13, %v2057_v54, %v2061_v58  ;;  %v11448_v29 = vcombine.low %v5479_v53, %v5489_v9  ;;  %v5506_v42 = vrot.slane %v5504_v17, 4  ;;  %v2052_v10 = vsel %vm14024_vm13, %v2047_v7, %v2051_v39  ;;  %v1488_v53 = vld [vmem:[#allocation2 + $0xd8] sm:$0x1] }
  0xd1   :  { %v774_v52 = vshll.u32 %v14548_v57, 16  ;;  %v779_v8 = vshrl.u32 %v14550_v11, 16  ;;  %v11158_v14 = vcombine.low %v2052_v10, %v2062_v49  ;;  %v2080_v23 = vor.u32 %v2079_v59, %v14576_v36  ;;  %v1291_v57 = vld [vmem:[#allocation2 + $0xb0] sm:$0x1] }
  0xd2   :  { %12760 = vmatmul.mubr.msk.bf16.gmra.mrb[20].mxu0 %vm2617_vm11, %v11448_v29  ;;  %v5507_v26 = vor.u32 %v5506_v42, %v14584_v60  ;;  %v782_v39 = vshll.u32 %v14550_v11, 16  ;;  %v777_v13 = vrot.slane %v773_v0, 4  ;;  %v12076_v30 = vunpack.c.h.bf16 %v14532_v38  ;;  %v1677_v40 = vld [vmem:[#allocation2 + $0x9c] sm:$0xf]  ;;  %v14622_v42 = vld [vmem:[%s17736_s2] ss:$0 sm:$0xff] }
  0xd3   :  { %v776_v35 = vor.u32 %v774_v52, %v773_v0  ;;  %v781_v28 = vrot.slane %v779_v8, 7  ;;  %12499 = vmatprep.mubr.msk.bf16.mxu1 %vm2617_vm11, %v11158_v14  ;;  %v1729_v62 = vld [vmem:[#allocation2 + $0xa4] sm:$0x1]  ;;  %v2081_v24 = vrot.slane %v2080_v23, 4  ;;  %v183_v11 = vmul.f32 %v14604_v33, %v12075_v50  ;;  %v5142_v46 = vld [vmem:[#allocation2 + $0x9c] sm:$0xf] }
  0xd4   :  { %v5508_v27 = vrot.slane %v5507_v26, 4  ;;  %v12079_v31 = vunpack.c.l.bf16 %v12159_v5  ;;  %v2064_v37 = vshrl.u32 %v1677_v40, 16  ;;  %v2067_v32 = vshll.u32 %v1677_v40, 16  ;;  %v5144_v54 = vld [vmem:[#allocation2 + $0xa4] sm:$0x1] }
  0xd5   :  { %v2083_v34 = vshll.u32 %v1729_v62, 16  ;;  %v784_v47 = vor.u32 %v782_v39, %v781_v28  ;;  %v5491_v61 = vshrl.u32 %v5142_v46, 16  ;;  %v5494_v56 = vshll.u32 %v5142_v46, 16  ;;  %v1597_v8 = vld [vmem:[#allocation2 + $0xe0] sm:$0x1] }
  0xd6   :  { %v786_v6 = vrot.slane %v781_v28, 4  ;;  %v1288_v63 = vsel %vm14010_vm10, %v776_v35, %v1287_v1  ;;  %v2066_v18 = vrot.slane %v2064_v37, 4  ;;  %v2069_v48 = vrot.slane %v2067_v32, 5  ;;  %v14626_v1 = vld [vmem:[#allocation2 + $0xdc] sm:$0xf] }
  0xd7   :  { %v2085_v58 = vrot.slane %v2083_v34, 5  ;;  %v5510_v21 = vshll.u32 %v5144_v54, 16  ;;  %1289 = vst [vmem:[#allocation2 + $0xa8] sm:$0xf] %v1288_v63  ;;  %v5493_v38 = vrot.slane %v5491_v61, 4  ;;  %v5496_v50 = vrot.slane %v5494_v56, 5 }
  0xd8   :  { %v785_v44 = vsel %vm14017_vm12, %v777_v13, %v784_v47  ;;  %v1292_v17 = vsel %vm13981_vm6, %v786_v6, %v1291_v57  ;;  %v2070_v9 = vor.u32 %v2069_v48, %v2066_v18  ;;  %v184_v29 = vmul.f32 %v14604_v33, %v12076_v30 }
  0xd9   :  { %v2086_v7 = vsel %vm14024_vm13, %v2081_v24, %v2085_v58  ;;  %v5512_v49 = vrot.slane %v5510_v21, 5  ;;  %1290 = vst.msk [vmem:[#allocation2 + $0xac] sm:$0xf] %vm1190_vm1, %v785_v44  ;;  %1293 = vst [vmem:[#allocation2 + $0xb0] sm:$0x1] %v1292_v17  ;;  %v5497_v59 = vor.u32 %v5496_v50, %v5493_v38  ;;  %v254_v10 = vadd.f32 %v14622_v42, %v183_v11  ;;  %v14644_v24 = vld [vmem:[%s17734_s0 + $0x80] sm:$0xff]  }
  0xda   :  { %v12080_v0 = vunpack.c.h.bf16 %v12159_v5  ;;  %v185_v52 = vmul.f32 %v14604_v33, %v12079_v31  ;;  %v2071_v14 = vrot.slane %v2070_v9, 4  ;;  %v255_v26 = vadd.f32 %v14622_v42, %v184_v29 }
  0xdb   :  { %v5513_v23 = vsel %vm14024_vm13, %v5508_v27, %v5512_v49  ;;  %v1489_v39 = vsel %vm13981_vm6, 0, %v1488_v53  ;;  %v5498_v35 = vrot.slane %v5497_v59, 4  ;;  %v318_v13 = vmax.f32 %v254_v10, 0.0  ;;  %v14649_v27 = vld [vmem:[%s17734_s0 + $0x88] sm:$0xff]  }
  0xdc   :  { %v186_v28 = vmul.f32 %v14604_v33, %v12080_v0  ;;  %v256_v5 = vadd.f32 %v14622_v42, %v185_v52  ;;  %1490 = vst [vmem:[#allocation2 + $0xd8] sm:$0x1] %v1489_v39  ;;  %v2076_v57 = vsel %vm14024_vm13, %v2071_v14, %v14576_v36  ;;  %v319_v30 = vmax.f32 %v255_v26, 0.0 }
  0xdd   :  { %v1598_v40 = vsel %vm13970_vm5, 0, %v1597_v8  ;;  %v2145_v62 = vshll.u32 %v14626_v1, 16  ;;  %v11159_v11 = vcombine.low %v2076_v57, %v2086_v7  ;;  %v5503_v36 = vsel %vm14024_vm13, %v5498_v35, %v14584_v60 }
  0xde   :  { %v1476_v31 = vld [vmem:[#allocation2 + $0xa8] sm:$0x1]  ;;  %v11917_v37 = vpack.c.bf16 %v318_v13, %v318_v13  ;;  %v257_v32 = vadd.f32 %v14622_v42, %v186_v28  ;;  %1599 = vst [vmem:[#allocation2 + $0xe0] sm:$0x1] %v1598_v40  ;;  %v11449_v34 = vcombine.low %v5503_v36, %v5513_v23  ;;  %v11918_v47 = vpack.c.bf16 %v319_v30, %v319_v30  ;;  %v1294_v30 = vld [vmem:[#allocation2 + $0xb4] sm:$0xf] }
  0xdf   :  { %v1477_v46 = vsel %vm13981_vm6, 0, %v1476_v31  ;;  %v320_v54 = vmax.f32 %v256_v5, 0.0  ;;  %12500 = vmatmul.mubr.msk.bf16.gmra.mrb[24].mxu1 %vm2617_vm11, %v11159_v11  ;;  %v12083_v63 = vunpack.c.l.bf16 %v14644_v24  ;;  %v12084_v60 = vunpack.c.h.bf16 %v14644_v24  ;;  %v1298_v40 = vld [vmem:[#allocation2 + $0xbc] sm:$0x1] }
  0xe0   :  { %1478 = vst [vmem:[#allocation2 + $0xa8] sm:$0x1] %v1477_v46  ;;  %v1585_v61 = vld [vmem:[#allocation2 + $0xb0] sm:$0x1]  ;;  %v5146_v56 = vld [vmem:[#allocation2 + $0xac] sm:$0xf]  ;;  %v12087_v18 = vunpack.c.l.bf16 %v14649_v27  ;;  %v12088_v48 = vunpack.c.h.bf16 %v14649_v27  ;;  %12763 = vmatprep.mubr.msk.bf16.mxu0 %vm2617_vm11, %v11449_v34 }
  0xe1   :  { %v1680_v6 = vld [vmem:[#allocation2 + $0xac] sm:$0xf]  ;;  %v1586_v58 = vsel %vm13970_vm5, 0, %v1585_v61  ;;  %v5524_v21 = vshll.u32 %v5146_v56, 16  ;;  %v5528_v38 = vshrl.u32 %v5146_v56, 16  ;;  %v788_v17 = vshrl.u32 %v11917_v37, 16 }
  0xe2   :  { %v2097_v50 = vshll.u32 %v1680_v6, 16  ;;  %1587 = vst [vmem:[#allocation2 + $0xb0] sm:$0x1] %v1586_v58  ;;  %v2101_v44 = vshrl.u32 %v1680_v6, 16  ;;  %v791_v53 = vshll.u32 %v11917_v37, 16  ;;  %v796_v9 = vshrl.u32 %v11918_v47, 16 }
  0xe3   :  { %v14665_v7 = vrot.slane %v5524_v21, 5  ;;  %v5530_v49 = vrot.slane %v5528_v38, 4  ;;  %v799_v59 = vshll.u32 %v11918_v47, 16  ;;  %v1683_v10 = vld [vmem:[#allocation2 + $0xd8] sm:$0xf]  ;;  %v790_v52 = vrot.slane %v788_v17, 7 }
  0xe4   :  { %v14667_v29 = vrot.slane %v2097_v50, 5  ;;  %v2103_v0 = vrot.slane %v2101_v44, 4  ;;  %v798_v8 = vrot.slane %v796_v9, 7  ;;  %v321_v14 = vmax.f32 %v257_v32, 0.0 }
  0xe5   :  { %v5531_v23 = vor.u32 %v5530_v49, %v14665_v7  ;;  %v11919_v26 = vpack.c.bf16 %v320_v54, %v320_v54  ;;  %v2136_v39 = vshrl.u32 %v1683_v10, 16  ;;  %v2139_v35 = vshll.u32 %v1683_v10, 16 }
  0xe6   :  { %v2104_v13 = vor.u32 %v2103_v0, %v14667_v29  ;;  %v793_v28 = vor.u32 %v791_v53, %v790_v52  ;;  %v794_v5 = vrot.slane %v790_v52, 4  ;;  %v801_v57 = vor.u32 %v799_v59, %v798_v8 }
  0xe7   :  { %v5145_v11 = vld [vmem:[#allocation2 + $0xa8] sm:$0xf]  ;;  %v5532_v36 = vrot.slane %v5531_v23, 4  ;;  %v803_v37 = vrot.slane %v798_v8, 4  ;;  %v11920_v34 = vpack.c.bf16 %v321_v14, %v321_v14  ;;  %v14672_v46 = vmul.f32 %v14604_v33, %v12083_v63 }
  0xe8   :  { %v1679_v31 = vld [vmem:[#allocation2 + $0xa8] sm:$0xf]  ;;  %v5515_v32 = vshrl.u32 %v5145_v11, 16  ;;  %v5518_v47 = vshll.u32 %v5145_v11, 16  ;;  %v2105_v58 = vrot.slane %v2104_v13, 4  ;;  %v802_v21 = vsel %vm14017_vm12, %v794_v5, %v801_v57 }
  0xe9   :  { %v2088_v54 = vshrl.u32 %v1679_v31, 16  ;;  %v2091_v61 = vshll.u32 %v1679_v31, 16  ;;  %v5147_v56 = vld [vmem:[#allocation2 + $0xb0] sm:$0x1]  ;;  %v1295_v38 = vsel %vm14010_vm10, %v793_v28, %v1294_v30  ;;  %v1299_v50 = vsel %vm13981_vm6, %v803_v37, %v1298_v40  ;;  %1297 = vst.msk [vmem:[#allocation2 + $0xb8] sm:$0xf] %vm1190_vm1, %v802_v21 }
  0xea   :  { %v1730_v6 = vld [vmem:[#allocation2 + $0xb0] sm:$0x1]  ;;  %v5517_v44 = vrot.slane %v5515_v32, 4  ;;  %v5520_v17 = vrot.slane %v5518_v47, 5  ;;  %v5534_v63 = vshll.u32 %v5147_v56, 16  ;;  %v805_v59 = vshrl.u32 %v11919_v26, 16 }
  0xeb   :  { %v2090_v53 = vrot.slane %v2088_v54, 4  ;;  %1296 = vst [vmem:[#allocation2 + $0xb4] sm:$0xf] %v1295_v38  ;;  %1300 = vst [vmem:[#allocation2 + $0xbc] sm:$0x1] %v1299_v50  ;;  %v2093_v9 = vrot.slane %v2091_v61, 5 }
  0xec   :  { %v2107_v49 = vshll.u32 %v1730_v6, 16  ;;  %v808_v10 = vshll.u32 %v11919_v26, 16  ;;  %v5521_v0 = vor.u32 %v5520_v17, %v5517_v44  ;;  %v5536_v52 = vrot.slane %v5534_v63, 5  ;;  %v1301_v11 = vld [vmem:[#allocation2 + $0xc0] sm:$0xf] }
  0xed   :  { %v813_v8 = vshrl.u32 %v11920_v34, 16  ;;  %v816_v14 = vshll.u32 %v11920_v34, 16  ;;  %v2094_v23 = vor.u32 %v2093_v9, %v2090_v53  ;;  %v807_v28 = vrot.slane %v805_v59, 7  ;;  %v1732_v50 = vld [vmem:[#allocation2 + $0xe0] sm:$0x1] }
  0xee   :  { %v2109_v13 = vrot.slane %v2107_v49, 5  ;;  %v2138_v5 = vrot.slane %v2136_v39, 4  ;;  %v5522_v57 = vrot.slane %v5521_v0, 4  ;;  %v5537_v30 = vsel %vm14024_vm13, %v5532_v36, %v5536_v52  ;;  %v1305_v39 = vld [vmem:[#allocation2 + $0xc8] sm:$0x1] }
  0xef   :  { %v815_v40 = vrot.slane %v813_v8, 7  ;;  %v2141_v31 = vrot.slane %v2139_v35, 5  ;;  %v2095_v37 = vrot.slane %v2094_v23, 4  ;;  %v810_v26 = vor.u32 %v808_v10, %v807_v28 }
  0xf0   :  { %v2110_v32 = vsel %vm14024_vm13, %v2105_v58, %v2109_v13  ;;  %v811_v47 = vrot.slane %v807_v28, 4  ;;  %v5527_v34 = vsel %vm14024_vm13, %v5522_v57, %v14665_v7  ;;  %v1682_v38 = vld [vmem:[#allocation2 + $0xb8] sm:$0xf]  ;;  %v188_v7 = vmul.f32 %v14604_v33, %v12084_v60 }
  0xf1   :  { %v818_v54 = vor.u32 %v816_v14, %v815_v40  ;;  %v820_v61 = vrot.slane %v815_v40, 4  ;;  %v2142_v56 = vor.u32 %v2141_v31, %v2138_v5  ;;  %v11450_v6 = vcombine.low %v5527_v34, %v5537_v30  ;;  %v6520_v40 = vld [vmem:[#allocation2 + $0xc] sm:$0xe] }
  0xf2   :  { %v2100_v36 = vsel %vm14024_vm13, %v2095_v37, %v14667_v29  ;;  %v1479_v35 = vld [vmem:[#allocation2 + $0xb4] sm:$0x1]  ;;  %v1588_v21 = vld [vmem:[#allocation2 + $0xbc] sm:$0x1]  ;;  %v1302_v58 = vsel %vm14010_vm10, %v810_v26, %v1301_v11  ;;  %v2121_v53 = vshll.u32 %v1682_v38, 16  ;;  %v2125_v9 = vshrl.u32 %v1682_v38, 16 }
  0xf3   :  { %v11160_v44 = vcombine.low %v2100_v36, %v2110_v32  ;;  %v1480_v17 = vsel %vm13981_vm6, 0, %v1479_v35  ;;  %v1589_v63 = vsel %vm13970_vm5, 0, %v1588_v21  ;;  %v5149_v29 = vld [vmem:[#allocation2 + $0xb8] sm:$0xf]  ;;  %1303 = vst [vmem:[#allocation2 + $0xc0] sm:$0xf] %v1302_v58  ;;  %12764 = vmatmul.mubr.msk.bf16.gmra.mrb[24].mxu0 %vm2617_vm11, %v11450_v6  ;;  %v819_v24 = vsel %vm14017_vm12, %v811_v47, %v818_v54 }
  0xf4   :  { %1481 = vst [vmem:[#allocation2 + $0xb4] sm:$0x1] %v1480_v17  ;;  %1590 = vst [vmem:[#allocation2 + $0xbc] sm:$0x1] %v1589_v63  ;;  %v5548_v49 = vshll.u32 %v5149_v29, 16  ;;  %v5552_v59 = vshrl.u32 %v5149_v29, 16  ;;  %v1306_v10 = vsel %vm13981_vm6, %v820_v61, %v1305_v39  ;;  %v258_v57 = vadd.f32 %v14622_v42, %v14672_v46 }
  0xf5   :  { %12503 = vmatprep.mubr.msk.bf16.mxu1 %vm2617_vm11, %v11160_v44  ;;  %v14704_v60 = vrot.slane %v2121_v53, 5  ;;  %1304 = vst.msk [vmem:[#allocation2 + $0xc4] sm:$0xf] %vm1190_vm1, %v819_v24  ;;  %v2143_v0 = vrot.slane %v2142_v56, 4  ;;  %v2147_v52 = vrot.slane %v2145_v62, 5  ;;  %v2127_v8 = vrot.slane %v2125_v9, 4 }
  0xf6   :  { %v14711_v14 = vrot.slane %v5548_v49, 5  ;;  %v5554_v23 = vrot.slane %v5552_v59, 4  ;;  %1307 = vst [vmem:[#allocation2 + $0xc8] sm:$0x1] %v1306_v10  ;;  %v2149_v13 = vshrl.u32 %v14626_v1, 16  ;;  %v2155_v5 = vshll.u32 %v1732_v50, 16 }
  0xf7   :  { %v2148_v28 = vsel %vm14024_vm13, %v2143_v0, %v2147_v52  ;;  %v259_v30 = vadd.f32 %v14622_v42, %v188_v7  ;;  %v2128_v11 = vor.u32 %v2127_v8, %v14704_v60  ;;  %v322_v32 = vmax.f32 %v258_v57, 0.0 }
  0xf8   :  { %v5555_v62 = vor.u32 %v5554_v23, %v14711_v14  ;;  %v2151_v31 = vrot.slane %v2149_v13, 4  ;;  %v2157_v37 = vrot.slane %v2155_v5, 5  ;;  %v11501_v46 = vrot.slane %v6520_v40, 9 }
  0xf9   :  { %v323_v26 = vmax.f32 %v259_v30, 0.0  ;;  %v2129_v1 = vrot.slane %v2128_v11, 4  ;;  %v11921_v36 = vpack.c.bf16 %v322_v32, %v322_v32  ;;  %v14730_v21 = vsel %vm14721_vm2, %v14138_v45, %v6660_v51 }
  0xfa   :  { %v5556_v47 = vrot.slane %v5555_v62, 4  ;;  %v1482_v34 = vld [vmem:[#allocation2 + $0xc0] sm:$0x1]  ;;  %v2152_v54 = vor.u32 %v2151_v31, %v2147_v52  ;;  %v14735_v38 = vmul.f32 %v14604_v33, %v12087_v18 }
  0xfb   :  { %v1681_v39 = vld [vmem:[#allocation2 + $0xb4] sm:$0xf]  ;;  %v1731_v56 = vld [vmem:[#allocation2 + $0xbc] sm:$0x1]  ;;  %v11922_v35 = vpack.c.bf16 %v323_v26, %v323_v26  ;;  %v1483_v41 = vsel %vm13981_vm6, 0, %v1482_v34  ;;  %v822_v32 = vshrl.u32 %v11921_v36, 16 }
  0xfc   :  { %v5148_v6 = vld [vmem:[#allocation2 + $0xb4] sm:$0xf]  ;;  %v2112_v58 = vshrl.u32 %v1681_v39, 16  ;;  %v2115_v50 = vshll.u32 %v1681_v39, 16  ;;  %v2131_v7 = vshll.u32 %v1731_v56, 16  ;;  %v2153_v9 = vrot.slane %v2152_v54, 4 }
  0xfd   :  { %v5150_v44 = vld [vmem:[#allocation2 + $0xbc] sm:$0x1]  ;;  %v5539_v17 = vshrl.u32 %v5148_v6, 16  ;;  %v5542_v63 = vshll.u32 %v5148_v6, 16  ;;  %v1591_v29 = vld [vmem:[#allocation2 + $0xc8] sm:$0x1]  ;;  %v260_v43 = vadd.f32 %v14622_v42, %v14735_v38 }
  0xfe   :  { %v5558_v53 = vshll.u32 %v5150_v44, 16  ;;  %v2114_v49 = vrot.slane %v2112_v58, 4  ;;  %v2117_v45 = vrot.slane %v2115_v50, 5  ;;  %v2133_v51 = vrot.slane %v2131_v7, 5  ;;  %1484 = vst [vmem:[#allocation2 + $0xc0] sm:$0x1] %v1483_v41 }
  0xff   :  { %v5541_v59 = vrot.slane %v5539_v17, 4  ;;  %v5152_v24 = vld [vmem:[#allocation2 + $0xc4] sm:$0xf]  ;;  %v5544_v18 = vrot.slane %v5542_v63, 5  ;;  %v1592_v0 = vsel %vm13970_vm5, 0, %v1591_v29  ;;  %v2158_v5 = vsel %vm14024_vm13, %v2153_v9, %v2157_v37 }
 0x100   :  { %v5560_v10 = vrot.slane %v5558_v53, 5  ;;  %v5572_v52 = vshll.u32 %v5152_v24, 16  ;;  %v2118_v8 = vor.u32 %v2117_v45, %v2114_v49  ;;  %v2134_v23 = vsel %vm14024_vm13, %v2129_v1, %v2133_v51  ;;  %1593 = vst [vmem:[#allocation2 + $0xc8] sm:$0x1] %v1592_v0  ;;  %v6521_v34 = vld [vmem:[#allocation2 + $0x18] sm:$0xe] }
 0x101   :  { %v5576_v13 = vshrl.u32 %v5152_v24, 16  ;;  %v5545_v57 = vor.u32 %v5544_v18, %v5541_v59  ;;  %v11162_v11 = vcombine.low %v2148_v28, %v2158_v5  ;;  %v825_v26 = vshll.u32 %v11921_v36, 16  ;;  %v1308_v6 = vld [vmem:[#allocation2 + $0xe4] sm:$0xf]  ;;  %v1312_v58 = vld [vmem:[#allocation2 + $0xec] sm:$0x1] }
 0x102   :  { %v5561_v30 = vsel %vm14024_vm13, %v5556_v47, %v5560_v10  ;;  %v14747_v40 = vrot.slane %v5572_v52, 5  ;;  %v2119_v62 = vrot.slane %v2118_v8, 4  ;;  %v830_v39 = vshrl.u32 %v11922_v35, 16  ;;  %v12162_v59 = vld [vmem:[%s17734_s0 + $0x90] sm:$0xff]   ;;  %v6522_v52 = vld [vmem:[#allocation2 + $0x24] sm:$0xe] }
 0x103   :  { %v5578_v31 = vrot.slane %v5576_v13, 4  ;;  %v5546_v54 = vrot.slane %v5545_v57, 4  ;;  %v833_v1 = vshll.u32 %v11922_v35, 16  ;;  %v14753_v37 = vsel %vm14721_vm2, %v11501_v46, %v6650_v25 }
 0x104   :  { %v2124_v47 = vsel %vm14024_vm13, %v2119_v62, %v14704_v60  ;;  %v824_v56 = vrot.slane %v822_v32, 7  ;;  %v6652_v36 = vrot.slane %v6650_v25, 4  ;;  %v832_v46 = vrot.slane %v830_v39, 7  ;;  %v13661_v39 = vld [vmem:[#allocation2 + $0x28] sm:$0xf] }
 0x105   :  { %v5579_v28 = vor.u32 %v5578_v31, %v14747_v40  ;;  %v11161_v50 = vcombine.low %v2124_v47, %v2134_v23  ;;  %v5551_v35 = vsel %vm14024_vm13, %v5546_v54, %v14711_v14  ;;  %v5151_v7 = vld [vmem:[#allocation2 + $0xc0] sm:$0xf]  ;;  %v11502_v44 = vrot.slane %v6521_v34, 9  ;;  %v13660_v23 = vld [vmem:[%s17733_s3 + $0xc] sm:$0x3] }
 0x106   :  { %v11451_v17 = vcombine.low %v5551_v35, %v5561_v30  ;;  %v5563_v63 = vshrl.u32 %v5151_v7, 16  ;;  %v5566_v53 = vshll.u32 %v5151_v7, 16  ;;  %v827_v29 = vor.u32 %v825_v26, %v824_v56 }
 0x107   :  { %v5580_v60 = vrot.slane %v5579_v28, 4  ;;  %12504 = vmatmul.mubr.msk.bf16.gmra.mrb[28].mxu1 %vm2617_vm11, %v11161_v50  ;;  %v5153_v41 = vld [vmem:[#allocation2 + $0xc8] sm:$0x1]  ;;  %v828_v9 = vrot.slane %v824_v56, 4  ;;  %v835_v49 = vor.u32 %v833_v1, %v832_v46  ;;  %v837_v22 = vrot.slane %v832_v46, 4  ;;  %v14812_v28 = vld [vmem:[%s17734_s0 + $0x98] sm:$0xff]  }
 0x108   :  { %12767 = vmatprep.mubr.msk.bf16.mxu0 %vm2617_vm11, %v11451_v17  ;;  %v5565_v25 = vrot.slane %v5563_v63, 4  ;;  %v5568_v45 = vrot.slane %v5566_v53, 5  ;;  %v5582_v51 = vshll.u32 %v5153_v41, 16  ;;  %12507 = vmatprep.mubr.msk.bf16.mxu1 %vm2617_vm11, %v11162_v11  ;;  %v6654_v14 = vsel %vm14721_vm2, %v6652_v36, %v6653_v12  ;;  %v13662_v1 = vld [vmem:[#allocation2 + $0x2c] sm:$0x1]  ;;  %v14817_v56 = vld [vmem:[%s17734_s0 + $0xa0] sm:$0xff]  }
 0x109   :  { %v836_v24 = vsel %vm14017_vm12, %v828_v9, %v835_v49  ;;  %v1309_v18 = vsel %vm14010_vm10, %v827_v29, %v1308_v6  ;;  %v1313_v10 = vsel %vm13981_vm6, %v837_v22, %v1312_v58  ;;  %v11534_v0 = vcombine.low %v14753_v37, %v6654_v14  ;;  %v14823_v46 = vld [vmem:[#allocation2 + $0x34] sm:$0xf] }
 0x10a   :  { %v5569_v4 = vor.u32 %v5568_v45, %v5565_v25  ;;  %v5584_v8 = vrot.slane %v5582_v51, 5  ;;  %1310 = vst [vmem:[#allocation2 + $0xe4] sm:$0xf] %v1309_v18  ;;  %1311 = vst.msk [vmem:[#allocation2 + $0xe8] sm:$0xf] %vm1190_vm1, %v836_v24  ;;  %v14786_v12 = vsel %vm14721_vm2, %v11502_v44, %v6657_v55  ;;  %v14792_v13 = vsel %vm2714_vm0, %v13660_v23, 0 }
 0x10b   :  { %1314 = vst [vmem:[#allocation2 + $0xec] sm:$0x1] %v1313_v10  ;;  %v11535_v5 = vcombine.low %v14786_v12, %v14730_v21  ;;  %v190_v57 = vmul.f32 %v14604_v33, %v12088_v48  ;;  %v12091_v30 = vunpack.c.l.bf16 %v12162_v59  ;;  %v6523_v55 = vld [vmem:[#allocation2 + $0x30] sm:$0xe]  ;;  %v12092_v31 = vunpack.c.h.bf16 %v12162_v59 }
 0x10c   :  { %v5570_v11 = vrot.slane %v5569_v4, 4  ;;  %v5585_v62 = vsel %vm14024_vm13, %v5580_v60, %v5584_v8  ;;  %v11503_v32 = vrot.slane %v6522_v52, 9  ;;  %v324_v34 = vmax.f32 %v260_v43, 0.0 }
 0x10d   :  { %v261_v26 = vadd.f32 %v14622_v42, %v190_v57  ;;  %v191_v54 = vmul.f32 %v14604_v33, %v12091_v30  ;;  %v6664_v27 = vrot.slane %v13661_v39, 5  ;;  %v192_v38 = vmul.f32 %v14604_v33, %v12092_v31  ;;  %v1315_v30 = vld [vmem:[#allocation2 + $0xf0] sm:$0xf] }
 0x10e   :  { %v5575_v48 = vsel %vm14024_vm13, %v5570_v11, %v14747_v40  ;;  %v6667_v37 = vrot.slane %v13662_v1, 5  ;;  %v11504_v47 = vrot.slane %v6523_v55, 9  ;;  %v11923_v36 = vpack.c.bf16 %v324_v34, %v324_v34  ;;  %v1319_v55 = vld [vmem:[#allocation2 + $0xf8] sm:$0x1] }
 0x10f   :  { %v11452_v6 = vcombine.low %v5575_v48, %v5585_v62  ;;  %v325_v58 = vmax.f32 %v261_v26, 0.0  ;;  %v262_v40 = vadd.f32 %v14622_v42, %v191_v54  ;;  %v263_v50 = vadd.f32 %v14622_v42, %v192_v38 }
 0x110   :  { %v6665_v35 = vsel %vm14721_vm2, %v11503_v32, %v6664_v27  ;;  %v6666_v7 = vrot.slane %v6664_v27, 4  ;;  %v6671_v44 = vrot.slane %v14823_v46, 5  ;;  %v12095_v41 = vunpack.c.l.bf16 %v14812_v28 }
 0x111   :  { %12768 = vmatmul.mubr.msk.bf16.gmra.mrb[28].mxu0 %vm2617_vm11, %v11452_v6  ;;  %v1491_v17 = vld [vmem:[#allocation2 + $0xe4] sm:$0x1]  ;;  %v1686_v53 = vld [vmem:[#allocation2 + $0xe8] sm:$0xf]  ;;  %v11924_v60 = vpack.c.bf16 %v325_v58, %v325_v58  ;;  %v12096_v29 = vunpack.c.h.bf16 %v14812_v28  ;;  %v12099_v9 = vunpack.c.l.bf16 %v14817_v56  ;;  %v839_v51 = vshrl.u32 %v11923_v36, 16 }
 0x112   :  { %v1600_v63 = vld [vmem:[#allocation2 + $0xec] sm:$0x1]  ;;  %v1492_v49 = vsel %vm13981_vm6, 0, %v1491_v17  ;;  %v2169_v25 = vshll.u32 %v1686_v53, 16  ;;  %v2173_v45 = vshrl.u32 %v1686_v53, 16  ;;  %12805 = vmatprep.mubr.msk.bf16.mxu0 %vm2617_vm11, %v11534_v0  ;;  %v842_v14 = vshll.u32 %v11923_v36, 16 }
 0x113   :  { %v1601_v22 = vsel %vm13970_vm5, 0, %v1600_v63  ;;  %1493 = vst [vmem:[#allocation2 + $0xe4] sm:$0x1] %v1492_v49  ;;  %v847_v59 = vshrl.u32 %v11924_v60, 16  ;;  %v850_v24 = vshll.u32 %v11924_v60, 16  ;;  %v326_v52 = vmax.f32 %v262_v40, 0.0 }
 0x114   :  { %1602 = vst [vmem:[#allocation2 + $0xec] sm:$0x1] %v1601_v22  ;;  %v14835_v18 = vrot.slane %v2169_v25, 5  ;;  %v2175_v10 = vrot.slane %v2173_v45, 4  ;;  %v327_v4 = vmax.f32 %v263_v50, 0.0  ;;  %v841_v8 = vrot.slane %v839_v51, 7 }
 0x115   :  { %v849_v23 = vrot.slane %v847_v59, 7  ;;  %v6668_v57 = vsel %vm14721_vm2, %v6666_v7, %v6667_v37  ;;  %v14841_v43 = vsel %vm14721_vm2, %v11504_v47, %v6671_v44  ;;  %v11925_v11 = vpack.c.bf16 %v326_v52, %v326_v52  ;;  %v1322_v6 = vld [vmem:[#allocation2 + $0xfc] sm:$0xf]  ;;  %v1326_v58 = vld [vmem:[#allocation2 + $0x104] sm:$0x1]  ;;  %v12165_v59 = vld [vmem:[%s17734_s0 + $0xa8] sm:$0xff]  }
 0x116   :  { %v2176_v0 = vor.u32 %v2175_v10, %v14835_v18  ;;  %v11926_v62 = vpack.c.bf16 %v327_v4, %v327_v4  ;;  %v11536_v31 = vcombine.low %v6665_v35, %v6668_v57  ;;  %v844_v32 = vor.u32 %v842_v14, %v841_v8  ;;  %v13664_v45 = vld [vmem:[#allocation2 + $0x38] sm:$0x1] }
 0x117   :  { %v845_v26 = vrot.slane %v841_v8, 4  ;;  %v852_v34 = vor.u32 %v850_v24, %v849_v23  ;;  %v854_v54 = vrot.slane %v849_v23, 4  ;;  %v856_v27 = vshrl.u32 %v11925_v11, 16 }
 0x118   :  { %v14844_v39 = vrot.slane %v2176_v0, 4  ;;  %v859_v48 = vshll.u32 %v11925_v11, 16  ;;  %v864_v38 = vshrl.u32 %v11926_v62, 16  ;;  %v1316_v37 = vsel %vm14010_vm10, %v844_v32, %v1315_v30 }
 0x119   :  { %12806 = vmatmul.mubr.msk.bf16.vlgmr.msra.gmra.mrb[0].mxu0 %vm2617_vm11, %v11535_v5  ;;  %v853_v1 = vsel %vm14017_vm12, %v845_v26, %v852_v34  ;;  %v1320_v47 = vsel %vm13981_vm6, %v854_v54, %v1319_v55  ;;  %v867_v28 = vshll.u32 %v11926_v62, 16  ;;  %1317 = vst [vmem:[#allocation2 + $0xf0] sm:$0xf] %v1316_v37  ;;  %v858_v21 = vrot.slane %v856_v27, 7 }
 0x11a   :  { %v1685_v36 = vld [vmem:[#allocation2 + $0xe4] sm:$0xf]  ;;  %12870 = vmatpush3.bf16.msra.mxu0 %v14792_v13  ;;  %1318 = vst.msk [vmem:[#allocation2 + $0xf4] sm:$0xf] %vm1190_vm1, %v853_v1  ;;  %1321 = vst [vmem:[#allocation2 + $0xf8] sm:$0x1] %v1320_v47  ;;  %12809 = vmatprep.mubr.msk.bf16.mxu0 %vm2617_vm11, %v11536_v31  ;;  %v193_v5 = vmul.f32 %v14604_v33, %v12095_v41  ;;  %v194_v50 = vmul.f32 %v14604_v33, %v12096_v29  ;;  %v12100_v57 = vunpack.c.h.bf16 %v14817_v56 }
 0x11b   :  { %v1733_v40 = vld [vmem:[#allocation2 + $0xec] sm:$0x1]  ;;  %v866_v12 = vrot.slane %v864_v38, 7  ;;  %v2160_v35 = vshrl.u32 %v1685_v36, 16  ;;  %v2163_v7 = vshll.u32 %v1685_v36, 16  ;;  %v6673_v17 = vrot.slane %v6671_v44, 4 }
 0x11c   :  { %v2179_v46 = vshll.u32 %v1733_v40, 16  ;;  %v861_v63 = vor.u32 %v859_v48, %v858_v21  ;;  %v862_v53 = vrot.slane %v858_v21, 4  ;;  %v6674_v51 = vrot.slane %v13664_v45, 5  ;;  %v14895_v38 = vld [vmem:[%s17734_s0 + $0xb0] sm:$0xff]   ;;  %v14900_v40 = vld [vmem:[#allocation2 + $0x3c] sm:$0xe] }
 0x11d   :  { %v869_v60 = vor.u32 %v867_v28, %v866_v12  ;;  %v871_v13 = vrot.slane %v866_v12, 4  ;;  %v2162_v49 = vrot.slane %v2160_v35, 4  ;;  %v2165_v22 = vrot.slane %v2163_v7, 5 }
 0x11e   :  { %v2181_v25 = vrot.slane %v2179_v46, 5  ;;  %v1323_v41 = vsel %vm14010_vm10, %v861_v63, %v1322_v6  ;;  %v264_v44 = vadd.f32 %v14622_v42, %v193_v5  ;;  %v6675_v52 = vsel %vm14721_vm2, %v6673_v17, %v6674_v51 }
 0x11f   :  { %v870_v14 = vsel %vm14017_vm12, %v862_v53, %v869_v60  ;;  %v1327_v29 = vsel %vm13981_vm6, %v871_v13, %v1326_v58  ;;  %v2166_v24 = vor.u32 %v2165_v22, %v2162_v49  ;;  %1324 = vst [vmem:[#allocation2 + $0xfc] sm:$0xf] %v1323_v41  ;;  %v265_v4 = vadd.f32 %v14622_v42, %v194_v50  ;;  %v1329_v13 = vld [vmem:[#allocation2 + $0x108] sm:$0xf] }
 0x120   :  { %v2182_v10 = vsel %vm14024_vm13, %v14844_v39, %v2181_v25  ;;  %1325 = vst.msk [vmem:[#allocation2 + $0x100] sm:$0xf] %vm1190_vm1, %v870_v14  ;;  %1328 = vst [vmem:[#allocation2 + $0x104] sm:$0x1] %v1327_v29  ;;  %v11537_v8 = vcombine.low %v14841_v43, %v6675_v52  ;;  %v328_v23 = vmax.f32 %v264_v44, 0.0  ;;  %v195_v0 = vmul.f32 %v14604_v33, %v12099_v9 }
 0x121   :  { %v2167_v30 = vrot.slane %v2166_v24, 4  ;;  %v1494_v55 = vld [vmem:[#allocation2 + $0xf0] sm:$0x1]  ;;  %v1603_v11 = vld [vmem:[#allocation2 + $0xf8] sm:$0x1]  ;;  %v329_v62 = vmax.f32 %v265_v4, 0.0  ;;  %v12103_v31 = vunpack.c.l.bf16 %v12165_v59  ;;  %v12104_v32 = vunpack.c.h.bf16 %v12165_v59 }
 0x122   :  { %v1495_v26 = vsel %vm13981_vm6, 0, %v1494_v55  ;;  %v1604_v34 = vsel %vm13970_vm5, 0, %v1603_v11  ;;  %v1688_v43 = vld [vmem:[#allocation2 + $0xf4] sm:$0xf]  ;;  %12810 = vmatmul.mubr.msk.bf16.gmra.mrb[4].mxu0 %vm2617_vm11, %v11537_v8  ;;  %v11927_v54 = vpack.c.bf16 %v328_v23, %v328_v23  ;;  %v196_v56 = vmul.f32 %v14604_v33, %v12100_v57  ;;  %v1333_v25 = vld [vmem:[#allocation2 + $0x110] sm:$0x1] }
 0x123   :  { %v2172_v9 = vsel %vm14024_vm13, %v2167_v30, %v14835_v18  ;;  %1496 = vst [vmem:[#allocation2 + $0xf0] sm:$0x1] %v1495_v26  ;;  %1605 = vst [vmem:[#allocation2 + $0xf8] sm:$0x1] %v1604_v34  ;;  %v2193_v39 = vshll.u32 %v1688_v43, 16  ;;  %v2197_v27 = vshrl.u32 %v1688_v43, 16  ;;  %v11928_v48 = vpack.c.bf16 %v329_v62, %v329_v62 }
 0x124   :  { %v11163_v1 = vcombine.low %v2172_v9, %v2182_v10  ;;  %v873_v37 = vshrl.u32 %v11927_v54, 16  ;;  %v876_v47 = vshll.u32 %v11927_v54, 16  ;;  %v266_v28 = vadd.f32 %v14622_v42, %v195_v0 }
 0x125   :  { %v14898_v6 = vrot.slane %v2193_v39, 5  ;;  %v2199_v58 = vrot.slane %v2197_v27, 4  ;;  %v881_v36 = vshrl.u32 %v11928_v48, 16  ;;  %v884_v18 = vshll.u32 %v11928_v48, 16 }
 0x126   :  { %12508 = vmatmul.mubr.msk.bf16.gmra.mrb[32].mxu1 %vm2617_vm11, %v11163_v1  ;;  %v1497_v21 = vld [vmem:[#allocation2 + $0xfc] sm:$0x1]  ;;  %v267_v50 = vadd.f32 %v14622_v42, %v196_v56  ;;  %v14905_v35 = vmul.f32 %v14604_v33, %v12103_v31  ;;  %v14908_v7 = vmul.f32 %v14604_v33, %v12104_v32  ;;  %v12107_v46 = vunpack.c.l.bf16 %v14895_v38  ;;  %v13665_v1 = vld [vmem:[#allocation2 + $0x40] sm:$0xf] }
 0x127   :  { %v1606_v12 = vld [vmem:[#allocation2 + $0x104] sm:$0x1]  ;;  %v1690_v5 = vld [vmem:[#allocation2 + $0x100] sm:$0xf]  ;;  %v2200_v17 = vor.u32 %v2199_v58, %v14898_v6  ;;  %v1498_v63 = vsel %vm13981_vm6, 0, %v1497_v21  ;;  %v875_v49 = vrot.slane %v873_v37, 7 }
 0x128   :  { %v1607_v53 = vsel %vm13970_vm5, 0, %v1606_v12  ;;  %v2217_v60 = vshll.u32 %v1690_v5, 16  ;;  %1499 = vst [vmem:[#allocation2 + $0xfc] sm:$0x1] %v1498_v63  ;;  %v2221_v42 = vshrl.u32 %v1690_v5, 16  ;;  %v883_v22 = vrot.slane %v881_v36, 7 }
 0x129   :  { %1608 = vst [vmem:[#allocation2 + $0x104] sm:$0x1] %v1607_v53  ;;  %v330_v33 = vmax.f32 %v266_v28, 0.0  ;;  %v2201_v45 = vrot.slane %v2200_v17, 4  ;;  %v331_v14 = vmax.f32 %v267_v50, 0.0  ;;  %v11505_v41 = vrot.slane %v14900_v40, 9 }
 0x12a   :  { %v14916_v51 = vrot.slane %v2217_v60, 5  ;;  %v1687_v29 = vld [vmem:[#allocation2 + $0xf0] sm:$0xf]  ;;  %v1734_v44 = vld [vmem:[#allocation2 + $0xf8] sm:$0x1]  ;;  %v2223_v59 = vrot.slane %v2221_v42, 4  ;;  %v878_v24 = vor.u32 %v876_v47, %v875_v49  ;;  %v886_v52 = vor.u32 %v884_v18, %v883_v22 }
 0x12b   :  { %v879_v10 = vrot.slane %v875_v49, 4  ;;  %v2184_v4 = vshrl.u32 %v1687_v29, 16  ;;  %v2187_v8 = vshll.u32 %v1687_v29, 16  ;;  %v2203_v23 = vshll.u32 %v1734_v44, 16  ;;  %v13666_v47 = vld [vmem:[#allocation2 + $0x44] sm:$0x1] }
 0x12c   :  { %v888_v57 = vrot.slane %v883_v22, 4  ;;  %v2224_v0 = vor.u32 %v2223_v59, %v14916_v51  ;;  %v1330_v55 = vsel %vm14010_vm10, %v878_v24, %v1329_v13  ;;  %v11929_v11 = vpack.c.bf16 %v330_v33, %v330_v33  ;;  %v1336_v21 = vld [vmem:[#allocation2 + $0x114] sm:$0xf]  ;;  %v6525_v24 = vld [vmem:[#allocation2 + $0x48] sm:$0xe] }
 0x12d   :  { %v887_v30 = vsel %vm14017_vm12, %v879_v10, %v886_v52  ;;  %v2186_v62 = vrot.slane %v2184_v4, 4  ;;  %v2189_v31 = vrot.slane %v2187_v8, 5  ;;  %v2205_v32 = vrot.slane %v2203_v23, 5  ;;  %1331 = vst [vmem:[#allocation2 + $0x108] sm:$0xf] %v1330_v55 }
 0x12e   :  { %1332 = vst.msk [vmem:[#allocation2 + $0x10c] sm:$0xf] %vm1190_vm1, %v887_v30  ;;  %v1334_v26 = vsel %vm13981_vm6, %v888_v57, %v1333_v25  ;;  %v14927_v34 = vrot.slane %v2224_v0, 4  ;;  %v11930_v43 = vpack.c.bf16 %v331_v14, %v331_v14  ;;  %v890_v54 = vshrl.u32 %v11929_v11, 16  ;;  %v1340_v25 = vld [vmem:[#allocation2 + $0x11c] sm:$0x1] }
 0x12f   :  { %1335 = vst [vmem:[#allocation2 + $0x110] sm:$0x1] %v1334_v26  ;;  %v893_v56 = vshll.u32 %v11929_v11, 16  ;;  %v2190_v9 = vor.u32 %v2189_v31, %v2186_v62  ;;  %v2206_v39 = vsel %vm14024_vm13, %v2201_v45, %v2205_v32  ;;  %v1689_v27 = vld [vmem:[#allocation2 + $0xfc] sm:$0xf]  ;;  %v6678_v37 = vrot.slane %v13665_v1, 5 }
 0x130   :  { %v1735_v48 = vld [vmem:[#allocation2 + $0x104] sm:$0x1]  ;;  %v6681_v28 = vrot.slane %v13666_v47, 5  ;;  %v2208_v58 = vshrl.u32 %v1689_v27, 16  ;;  %v2211_v36 = vshll.u32 %v1689_v27, 16  ;;  %v892_v40 = vrot.slane %v890_v54, 7 }
 0x131   :  { %v2227_v18 = vshll.u32 %v1735_v48, 16  ;;  %v2191_v12 = vrot.slane %v2190_v9, 4  ;;  %v898_v5 = vshrl.u32 %v11930_v43, 16  ;;  %v901_v50 = vshll.u32 %v11930_v43, 16  ;;  %v13667_v43 = vld [vmem:[#allocation2 + $0x4c] sm:$0xf] }
 0x132   :  { %v6679_v17 = vsel %vm14721_vm2, %v11505_v41, %v6678_v37  ;;  %v2210_v63 = vrot.slane %v2208_v58, 4  ;;  %v2213_v53 = vrot.slane %v2211_v36, 5  ;;  %v895_v13 = vor.u32 %v893_v56, %v892_v40  ;;  %v14958_v56 = vld [vmem:[#allocation2 + $0x54] sm:$0xe]  ;;  %v13668_v27 = vld [vmem:[#allocation2 + $0x50] sm:$0x1] }
 0x133   :  { %v2229_v60 = vrot.slane %v2227_v18, 5  ;;  %v2196_v42 = vsel %vm14024_vm13, %v2191_v12, %v14898_v6  ;;  %v896_v49 = vrot.slane %v892_v40, 4  ;;  %v900_v22 = vrot.slane %v898_v5, 7  ;;  %v14980_v40 = vld [vmem:[%s17735_s1] ss:$0 sm:$0xff] }
 0x134   :  { %v6680_v33 = vrot.slane %v6678_v37, 4  ;;  %v11164_v45 = vcombine.low %v2196_v42, %v2206_v39  ;;  %v2214_v14 = vor.u32 %v2213_v53, %v2210_v63  ;;  %v1500_v44 = vld [vmem:[#allocation2 + $0x108] sm:$0x1]  ;;  %v1337_v59 = vsel %vm14010_vm10, %v895_v13, %v1336_v21 }
 0x135   :  { %v2230_v29 = vsel %vm14024_vm13, %v14927_v34, %v2229_v60  ;;  %v1692_v41 = vld [vmem:[#allocation2 + $0x10c] sm:$0xf]  ;;  %v1501_v10 = vsel %vm13981_vm6, 0, %v1500_v44  ;;  %v903_v8 = vor.u32 %v901_v50, %v900_v22  ;;  %1338 = vst [vmem:[#allocation2 + $0x114] sm:$0xf] %v1337_v59  ;;  %v905_v0 = vrot.slane %v900_v22, 4 }
 0x136   :  { %v1609_v6 = vld [vmem:[#allocation2 + $0x110] sm:$0x1]  ;;  %v2241_v52 = vshll.u32 %v1692_v41, 16  ;;  %v2245_v4 = vshrl.u32 %v1692_v41, 16  ;;  %12511 = vmatprep.mubr.msk.bf16.mxu1 %vm2617_vm11, %v11164_v45  ;;  %v2215_v23 = vrot.slane %v2214_v14, 4  ;;  %v6682_v30 = vsel %vm14721_vm2, %v6680_v33, %v6681_v28 }
 0x137   :  { %1502 = vst [vmem:[#allocation2 + $0x108] sm:$0x1] %v1501_v10  ;;  %v1610_v57 = vsel %vm13970_vm5, 0, %v1609_v6  ;;  %v904_v62 = vsel %vm14017_vm12, %v896_v49, %v903_v8  ;;  %v11538_v31 = vcombine.low %v6679_v17, %v6682_v30  ;;  %v1341_v26 = vsel %vm13981_vm6, %v905_v0, %v1340_v25  ;;  %v14989_v17 = vld [vmem:[#allocation2 + $0x58] sm:$0xf] }
 0x138   :  { %1611 = vst [vmem:[#allocation2 + $0x110] sm:$0x1] %v1610_v57  ;;  %v14948_v55 = vrot.slane %v2241_v52, 5  ;;  %v2247_v11 = vrot.slane %v2245_v4, 4  ;;  %v2220_v32 = vsel %vm14024_vm13, %v2215_v23, %v14916_v51  ;;  %1339 = vst.msk [vmem:[#allocation2 + $0x118] sm:$0xf] %vm1190_vm1, %v904_v62  ;;  %v12108_v58 = vunpack.c.h.bf16 %v14895_v38 }
 0x139   :  { %v11506_v34 = vrot.slane %v6525_v24, 9  ;;  %v6685_v54 = vrot.slane %v13667_v43, 5  ;;  %v11165_v9 = vcombine.low %v2220_v32, %v2230_v29  ;;  %1342 = vst [vmem:[#allocation2 + $0x11c] sm:$0x1] %v1341_v26  ;;  %12813 = vmatprep.mubr.msk.bf16.mxu0 %vm2617_vm11, %v11538_v31  ;;  %v6688_v48 = vrot.slane %v13668_v27, 5 }
 0x13a   :  { %v2248_v39 = vor.u32 %v2247_v11, %v14948_v55  ;;  %v14965_v51 = vld [vmem:[%s17736_s2] ss:$0 sm:$0xff]  ;;  %v11507_v21 = vrot.slane %v14958_v56, 9  ;;  %v200_v50 = vmul.f32 %v14980_v40, %v12108_v58  ;;  %v6692_v63 = vrot.slane %v14989_v17, 5 }
 0x13b   :  { %v268_v1 = vadd.f32 %v14965_v51, %v14905_v35  ;;  %v6686_v37 = vsel %vm14721_vm2, %v11506_v34, %v6685_v54  ;;  %v6687_v47 = vrot.slane %v6685_v54, 4  ;;  %v269_v28 = vadd.f32 %v14965_v51, %v14908_v7  ;;  %12512 = vmatmul.mubr.msk.bf16.gmra.mrb[36].mxu1 %vm2617_vm11, %v11165_v9  ;;  %v1343_v4 = vld [vmem:[#allocation2 + $0x120] sm:$0xf]  ;;  %v1347_v9 = vld [vmem:[#allocation2 + $0x128] sm:$0x1] }
 0x13c   :  { %v14975_v36 = vrot.slane %v2248_v39, 4  ;;  %v199_v35 = vmul.f32 %v14980_v40, %v12107_v46  ;;  %v1503_v12 = vld [vmem:[#allocation2 + $0x114] sm:$0x1]  ;;  %v271_v33 = vadd.f32 %v14965_v51, %v200_v50 }
 0x13d   :  { %v332_v18 = vmax.f32 %v268_v1, 0.0  ;;  %v6689_v7 = vsel %vm14721_vm2, %v6687_v47, %v6688_v48  ;;  %v333_v5 = vmax.f32 %v269_v28, 0.0  ;;  %v1504_v60 = vsel %vm13981_vm6, 0, %v1503_v12 }
 0x13e   :  { %v1691_v53 = vld [vmem:[#allocation2 + $0x108] sm:$0xf]  ;;  %v11539_v38 = vcombine.low %v6686_v37, %v6689_v7  ;;  %v270_v46 = vadd.f32 %v14965_v51, %v199_v35  ;;  %1505 = vst [vmem:[#allocation2 + $0x114] sm:$0x1] %v1504_v60  ;;  %v335_v39 = vmax.f32 %v271_v33, 0.0  ;;  %v6693_v28 = vsel %vm14721_vm2, %v11507_v21, %v6692_v63 }
 0x13f   :  { %v11931_v13 = vpack.c.bf16 %v332_v18, %v332_v18  ;;  %v1736_v42 = vld [vmem:[#allocation2 + $0x110] sm:$0x1]  ;;  %v2232_v49 = vshrl.u32 %v1691_v53, 16  ;;  %v2235_v22 = vshll.u32 %v1691_v53, 16  ;;  %v11932_v25 = vpack.c.bf16 %v333_v5, %v333_v5  ;;  %v1694_v14 = vld [vmem:[#allocation2 + $0x118] sm:$0xf] }
 0x140   :  { %v2251_v45 = vshll.u32 %v1736_v42, 16  ;;  %12814 = vmatmul.mubr.msk.bf16.gmra.mrb[8].mxu0 %vm2617_vm11, %v11539_v38  ;;  %v334_v41 = vmax.f32 %v270_v46, 0.0  ;;  %v1612_v10 = vld [vmem:[#allocation2 + $0x11c] sm:$0x1]  ;;  %v2265_v6 = vshll.u32 %v1694_v14, 16  ;;  %v2269_v52 = vshrl.u32 %v1694_v14, 16 }
 0x141   :  { %v907_v29 = vshrl.u32 %v11931_v13, 16  ;;  %v910_v44 = vshll.u32 %v11931_v13, 16  ;;  %v2234_v59 = vrot.slane %v2232_v49, 4  ;;  %v2237_v24 = vrot.slane %v2235_v22, 5  ;;  %v6527_v53 = vld [vmem:[#allocation2 + $0x60] sm:$0xe] }
 0x142   :  { %v2253_v8 = vrot.slane %v2251_v45, 5  ;;  %v1613_v23 = vsel %vm13970_vm5, 0, %v1612_v10  ;;  %v915_v0 = vshrl.u32 %v11932_v25, 16  ;;  %v14999_v11 = vrot.slane %v2265_v6, 5  ;;  %v13672_v22 = vld [vmem:[#allocation2 + $0x5c] sm:$0x1] }
 0x143   :  { %v909_v57 = vrot.slane %v907_v29, 7  ;;  %v2238_v30 = vor.u32 %v2237_v24, %v2234_v59  ;;  %1614 = vst [vmem:[#allocation2 + $0x11c] sm:$0x1] %v1613_v23  ;;  %v2271_v62 = vrot.slane %v2269_v52, 4  ;;  %v918_v31 = vshll.u32 %v11932_v25, 16 }
 0x144   :  { %v2254_v32 = vsel %vm14024_vm13, %v14975_v36, %v2253_v8  ;;  %v917_v43 = vrot.slane %v915_v0, 7  ;;  %v11933_v27 = vpack.c.bf16 %v334_v41, %v334_v41  ;;  %v11934_v50 = vpack.c.bf16 %v335_v39, %v335_v39  ;;  %v1350_v41 = vld [vmem:[#allocation2 + $0x12c] sm:$0xf]  ;;  %v13673_v24 = vld [vmem:[#allocation2 + $0x64] sm:$0xf] }
 0x145   :  { %v912_v26 = vor.u32 %v910_v44, %v909_v57  ;;  %v913_v34 = vrot.slane %v909_v57, 4  ;;  %v2239_v54 = vrot.slane %v2238_v30, 4  ;;  %v2272_v56 = vor.u32 %v2271_v62, %v14999_v11  ;;  %v1693_v48 = vld [vmem:[#allocation2 + $0x114] sm:$0xf]  ;;  %v13674_v6 = vld [vmem:[#allocation2 + $0x68] sm:$0x1] }
 0x146   :  { %v920_v1 = vor.u32 %v918_v31, %v917_v43  ;;  %v922_v37 = vrot.slane %v917_v43, 4  ;;  %v2256_v36 = vshrl.u32 %v1693_v48, 16  ;;  %v2259_v18 = vshll.u32 %v1693_v48, 16 }
 0x147   :  { %v1344_v47 = vsel %vm14010_vm10, %v912_v26, %v1343_v4  ;;  %v2244_v58 = vsel %vm14024_vm13, %v2239_v54, %v14948_v55  ;;  %v2273_v35 = vrot.slane %v2272_v56, 4  ;;  %v924_v21 = vshrl.u32 %v11933_v27, 16  ;;  %v12168_v56 = vld [vmem:[%s17734_s0 + $0xc0] sm:$0xff]  }
 0x148   :  { %1345 = vst [vmem:[#allocation2 + $0x120] sm:$0xf] %v1344_v47  ;;  %v11166_v12 = vcombine.low %v2244_v58, %v2254_v32  ;;  %v921_v7 = vsel %vm14017_vm12, %v913_v34, %v920_v1  ;;  %v1348_v5 = vsel %vm13981_vm6, %v922_v37, %v1347_v9  ;;  %v2258_v60 = vrot.slane %v2256_v36, 4  ;;  %v12167_v32 = vld [vmem:[%s17734_s0 + $0xb8] sm:$0xff]   ;;  %v6528_v36 = vld [vmem:[#allocation2 + $0x6c] sm:$0xe] }
 0x149   :  { %v2261_v38 = vrot.slane %v2259_v18, 5  ;;  %1346 = vst.msk [vmem:[#allocation2 + $0x124] sm:$0xf] %vm1190_vm1, %v921_v7  ;;  %1349 = vst [vmem:[#allocation2 + $0x128] sm:$0x1] %v1348_v5  ;;  %v927_v55 = vshll.u32 %v11933_v27, 16  ;;  %v12111_v58 = vunpack.c.l.bf16 %v12167_v32  ;;  %v12116_v7 = vunpack.c.h.bf16 %v12168_v56 }
 0x14a   :  { %12515 = vmatprep.mubr.msk.bf16.mxu1 %vm2617_vm11, %v11166_v12  ;;  %v1737_v13 = vld [vmem:[#allocation2 + $0x11c] sm:$0x1]  ;;  %v932_v46 = vshrl.u32 %v11934_v50, 16  ;;  %v935_v42 = vshll.u32 %v11934_v50, 16  ;;  %v6694_v49 = vrot.slane %v6692_v63, 4  ;;  %v6695_v25 = vrot.slane %v13672_v22, 5 }
 0x14b   :  { %v2262_v33 = vor.u32 %v2261_v38, %v2258_v60  ;;  %v2275_v45 = vshll.u32 %v1737_v13, 16  ;;  %v926_v14 = vrot.slane %v924_v21, 7  ;;  %v11508_v29 = vrot.slane %v6527_v53, 9  ;;  %v1354_v63 = vld [vmem:[#allocation2 + $0x134] sm:$0x1] }
 0x14c   :  { %v934_v44 = vrot.slane %v932_v46, 7  ;;  %v6696_v59 = vsel %vm14721_vm2, %v6694_v49, %v6695_v25  ;;  %v6699_v10 = vrot.slane %v13673_v24, 5  ;;  %v6702_v52 = vrot.slane %v13674_v6, 5  ;;  %v15055_v38 = vld [vmem:[#allocation2 + $0x78] sm:$0xe] }
 0x14d   :  { %v2263_v4 = vrot.slane %v2262_v33, 4  ;;  %v2277_v8 = vrot.slane %v2275_v45, 5  ;;  %v929_v23 = vor.u32 %v927_v55, %v926_v14  ;;  %v930_v17 = vrot.slane %v926_v14, 4  ;;  %v15068_v25 = vld [vmem:[#allocation2 + $0x70] sm:$0xf] }
 0x14e   :  { %v937_v0 = vor.u32 %v935_v42, %v934_v44  ;;  %v939_v30 = vrot.slane %v934_v44, 4  ;;  %v11540_v62 = vcombine.low %v6693_v28, %v6696_v59  ;;  %v6700_v31 = vsel %vm14721_vm2, %v11508_v29, %v6699_v10  ;;  %v15063_v42 = vld [vmem:[%s17734_s0 + $0xc8] sm:$0xff]   ;;  %v15071_v45 = vld [vmem:[#allocation2 + $0x74] sm:$0x1] }
 0x14f   :  { %v1506_v57 = vld [vmem:[#allocation2 + $0x120] sm:$0x1]  ;;  %v2268_v26 = vsel %vm14024_vm13, %v2263_v4, %v14999_v11  ;;  %v2278_v34 = vsel %vm14024_vm13, %v2273_v35, %v2277_v8  ;;  %v1351_v54 = vsel %vm14010_vm10, %v929_v23, %v1350_v41  ;;  %v6701_v1 = vrot.slane %v6699_v10, 4 }
 0x150   :  { %v1507_v43 = vsel %vm13981_vm6, 0, %v1506_v57  ;;  %v11167_v9 = vcombine.low %v2268_v26, %v2278_v34  ;;  %v1615_v39 = vld [vmem:[#allocation2 + $0x128] sm:$0x1]  ;;  %v1696_v27 = vld [vmem:[#allocation2 + $0x124] sm:$0xf]  ;;  %v938_v11 = vsel %vm14017_vm12, %v930_v17, %v937_v0  ;;  %v1355_v48 = vsel %vm13981_vm6, %v939_v30, %v1354_v63  ;;  %12817 = vmatprep.mubr.msk.bf16.mxu0 %vm2617_vm11, %v11540_v62 }
 0x151   :  { %1508 = vst [vmem:[#allocation2 + $0x120] sm:$0x1] %v1507_v43  ;;  %1352 = vst [vmem:[#allocation2 + $0x12c] sm:$0xf] %v1351_v54  ;;  %v1616_v37 = vsel %vm13970_vm5, 0, %v1615_v39  ;;  %v2289_v47 = vshll.u32 %v1696_v27, 16  ;;  %v6703_v18 = vsel %vm14721_vm2, %v6701_v1, %v6702_v52  ;;  %v12112_v35 = vunpack.c.h.bf16 %v12167_v32 }
 0x152   :  { %v2293_v28 = vshrl.u32 %v1696_v27, 16  ;;  %1353 = vst.msk [vmem:[#allocation2 + $0x130] sm:$0xf] %vm1190_vm1, %v938_v11  ;;  %1356 = vst [vmem:[#allocation2 + $0x134] sm:$0x1] %v1355_v48  ;;  %12516 = vmatmul.mubr.msk.bf16.gmra.mrb[40].mxu1 %vm2617_vm11, %v11167_v9  ;;  %v12115_v12 = vunpack.c.l.bf16 %v12168_v56  ;;  %v11541_v53 = vcombine.low %v6700_v31, %v6703_v18  ;;  %v201_v60 = vmul.f32 %v14980_v40, %v12111_v58 }
 0x153   :  { %1617 = vst [vmem:[#allocation2 + $0x128] sm:$0x1] %v1616_v37  ;;  %v15052_v5 = vrot.slane %v2289_v47, 5  ;;  %v202_v21 = vmul.f32 %v14980_v40, %v12112_v35  ;;  %v204_v13 = vmul.f32 %v14980_v40, %v12116_v7  ;;  %v11509_v46 = vrot.slane %v6528_v36, 9  ;;  %v11306_v39 = vld [vmem:[%s17733_s3 + $0x4] sm:$0x3] }
 0x154   :  { %v2295_v50 = vrot.slane %v2293_v28, 4  ;;  %v203_v55 = vmul.f32 %v14980_v40, %v12115_v12  ;;  %12818 = vmatmul.mubr.msk.bf16.gmra.mrb[12].mxu0 %vm2617_vm11, %v11541_v53  ;;  %v272_v22 = vadd.f32 %v14965_v51, %v201_v60  ;;  %v6706_v33 = vrot.slane %v15068_v25, 5  ;;  %13583 = vmatprep.subr.msk.bf16.mxu1 %vm2714_vm0, %v11306_v39  ;;  %v1364_v39 = vld [vmem:[#allocation2 + $0x144] sm:$0xf] }
 0x155   :  { %v6709_v14 = vrot.slane %v15071_v45, 5  ;;  %v273_v29 = vadd.f32 %v14965_v51, %v202_v21  ;;  %v275_v41 = vadd.f32 %v14965_v51, %v204_v13  ;;  %v11510_v59 = vrot.slane %v15055_v38, 9 }
 0x156   :  { %v2296_v49 = vor.u32 %v2295_v50, %v15052_v5  ;;  %v274_v44 = vadd.f32 %v14965_v51, %v203_v55  ;;  %v336_v52 = vmax.f32 %v272_v22, 0.0  ;;  %v15082_v4 = vsel %vm14721_vm2, %v11509_v46, %v6706_v33  ;;  %v1361_v22 = vld [vmem:[#allocation2 + $0x140] sm:$0x1] }
 0x157   :  { %v12119_v8 = vunpack.c.l.bf16 %v15063_v42  ;;  %v337_v0 = vmax.f32 %v273_v29, 0.0  ;;  %v12120_v34 = vunpack.c.h.bf16 %v15063_v42  ;;  %v339_v58 = vmax.f32 %v275_v41, 0.0 }
 0x158   :  { %v1695_v24 = vld [vmem:[#allocation2 + $0x120] sm:$0xf]  ;;  %v2297_v10 = vrot.slane %v2296_v49, 4  ;;  %v1509_v6 = vld [vmem:[#allocation2 + $0x12c] sm:$0x1]  ;;  %v11935_v32 = vpack.c.bf16 %v336_v52, %v336_v52  ;;  %v338_v26 = vmax.f32 %v274_v44, 0.0 }
 0x159   :  { %v2280_v23 = vshrl.u32 %v1695_v24, 16  ;;  %v2283_v17 = vshll.u32 %v1695_v24, 16  ;;  %v1510_v63 = vsel %vm13981_vm6, 0, %v1509_v6  ;;  %v1618_v57 = vld [vmem:[#allocation2 + $0x134] sm:$0x1]  ;;  %v11936_v11 = vpack.c.bf16 %v337_v0, %v337_v0 }
 0x15a   :  { %v1738_v30 = vld [vmem:[#allocation2 + $0x128] sm:$0x1]  ;;  %1511 = vst [vmem:[#allocation2 + $0x12c] sm:$0x1] %v1510_v63  ;;  %v1619_v62 = vsel %vm13970_vm5, 0, %v1618_v57  ;;  %v941_v48 = vshrl.u32 %v11935_v32, 16  ;;  %v11937_v53 = vpack.c.bf16 %v338_v26, %v338_v26  ;;  %v11938_v60 = vpack.c.bf16 %v339_v58, %v339_v58 }
 0x15b   :  { %v1698_v31 = vld [vmem:[#allocation2 + $0x130] sm:$0xf]  ;;  %v2282_v43 = vrot.slane %v2280_v23, 4  ;;  %v2285_v54 = vrot.slane %v2283_v17, 5  ;;  %v2299_v56 = vshll.u32 %v1738_v30, 16  ;;  %v944_v1 = vshll.u32 %v11935_v32, 16 }
 0x15c   :  { %1620 = vst [vmem:[#allocation2 + $0x134] sm:$0x1] %v1619_v62  ;;  %v2313_v9 = vshll.u32 %v1698_v31, 16  ;;  %v2317_v27 = vshrl.u32 %v1698_v31, 16  ;;  %v943_v18 = vrot.slane %v941_v48, 7  ;;  %v949_v35 = vshrl.u32 %v11936_v11, 16 }
 0x15d   :  { %v2286_v37 = vor.u32 %v2285_v54, %v2282_v43  ;;  %v2301_v47 = vrot.slane %v2299_v56, 5  ;;  %v952_v12 = vshll.u32 %v11936_v11, 16  ;;  %v1357_v49 = vld [vmem:[#allocation2 + $0x138] sm:$0xf]  ;;  %v958_v41 = vshrl.u32 %v11937_v53, 16 }
 0x15e   :  { %v15094_v28 = vrot.slane %v2313_v9, 5  ;;  %v2319_v36 = vrot.slane %v2317_v27, 4  ;;  %v946_v55 = vor.u32 %v944_v1, %v943_v18  ;;  %v947_v13 = vrot.slane %v943_v18, 4  ;;  %v1368_v27 = vld [vmem:[#allocation2 + $0x14c] sm:$0x1] }
 0x15f   :  { %v2287_v7 = vrot.slane %v2286_v37, 4  ;;  %v2302_v50 = vsel %vm14024_vm13, %v2297_v10, %v2301_v47  ;;  %v951_v46 = vrot.slane %v949_v35, 7  ;;  %v961_v24 = vshll.u32 %v11937_v53, 16  ;;  %v13677_v18 = vld [vmem:[#allocation2 + $0x7c] sm:$0xf] }
 0x160   :  { %v2320_v21 = vor.u32 %v2319_v36, %v15094_v28  ;;  %v966_v6 = vshrl.u32 %v11938_v60, 16  ;;  %v1358_v62 = vsel %vm14010_vm10, %v946_v55, %v1357_v49  ;;  %v969_v9 = vshll.u32 %v11938_v60, 16  ;;  %v13678_v53 = vld [vmem:[#allocation2 + $0x80] sm:$0x1] }
 0x161   :  { %v2292_v29 = vsel %vm14024_vm13, %v2287_v7, %v15052_v5  ;;  %v1697_v44 = vld [vmem:[#allocation2 + $0x12c] sm:$0xf]  ;;  %v954_v0 = vor.u32 %v952_v12, %v951_v46  ;;  %v956_v30 = vrot.slane %v951_v46, 4  ;;  %1359 = vst [vmem:[#allocation2 + $0x138] sm:$0xf] %v1358_v62  ;;  %v960_v5 = vrot.slane %v958_v41, 7 }
 0x162   :  { %v11168_v52 = vcombine.low %v2292_v29, %v2302_v50  ;;  %v2304_v10 = vshrl.u32 %v1697_v44, 16  ;;  %v2307_v17 = vshll.u32 %v1697_v44, 16  ;;  %v2321_v63 = vrot.slane %v2320_v21, 4  ;;  %v12170_v21 = vld [vmem:[%s17734_s0 + $0xd0] sm:$0xff]  }
 0x163   :  { %v1739_v23 = vld [vmem:[#allocation2 + $0x134] sm:$0x1]  ;;  %v968_v26 = vrot.slane %v966_v6, 7  ;;  %v955_v54 = vsel %vm14017_vm12, %v947_v13, %v954_v0  ;;  %v1362_v56 = vsel %vm13981_vm6, %v956_v30, %v1361_v22  ;;  %v963_v48 = vor.u32 %v961_v24, %v960_v5 }
 0x164   :  { %v2323_v57 = vshll.u32 %v1739_v23, 16  ;;  %12519 = vmatprep.mubr.msk.bf16.mxu1 %vm2617_vm11, %v11168_v52  ;;  %v2306_v31 = vrot.slane %v2304_v10, 4  ;;  %v2309_v32 = vrot.slane %v2307_v17, 5  ;;  %1360 = vst.msk [vmem:[#allocation2 + $0x13c] sm:$0xf] %vm1190_vm1, %v955_v54  ;;  %v964_v1 = vrot.slane %v960_v5, 4 }
 0x165   :  { %1363 = vst [vmem:[#allocation2 + $0x140] sm:$0x1] %v1362_v56  ;;  %v973_v37 = vrot.slane %v968_v26, 4  ;;  %v971_v58 = vor.u32 %v969_v9, %v968_v26  ;;  %v6708_v36 = vrot.slane %v6706_v33, 4  ;;  %v6713_v35 = vrot.slane %v13677_v18, 5 }
 0x166   :  { %v2325_v43 = vrot.slane %v2323_v57, 5  ;;  %v2310_v11 = vor.u32 %v2309_v32, %v2306_v31  ;;  %v1365_v7 = vsel %vm14010_vm10, %v963_v48, %v1364_v39  ;;  %v6716_v60 = vrot.slane %v13678_v53, 5  ;;  %v15157_v17 = vld [vmem:[#allocation2 + $0x88] sm:$0xf]  ;;  %v1371_v53 = vld [vmem:[#allocation2 + $0x150] sm:$0xf] }
 0x167   :  { %v1369_v50 = vsel %vm13981_vm6, %v973_v37, %v1368_v27  ;;  %v972_v55 = vsel %vm14017_vm12, %v964_v1, %v971_v58  ;;  %1366 = vst [vmem:[#allocation2 + $0x144] sm:$0xf] %v1365_v7  ;;  %v6710_v25 = vsel %vm14721_vm2, %v6708_v36, %v6709_v14  ;;  %v6714_v33 = vsel %vm14721_vm2, %v11510_v59, %v6713_v35  ;;  %v6530_v14 = vld [vmem:[#allocation2 + $0x84] sm:$0xe] }
 0x168   :  { %v2326_v47 = vsel %vm14024_vm13, %v2321_v63, %v2325_v43  ;;  %v2311_v12 = vrot.slane %v2310_v11, 4  ;;  %1370 = vst [vmem:[#allocation2 + $0x14c] sm:$0x1] %v1369_v50  ;;  %v6715_v13 = vrot.slane %v6713_v35, 4  ;;  %1367 = vst.msk [vmem:[#allocation2 + $0x148] sm:$0xf] %vm1190_vm1, %v972_v55  ;;  %v11542_v49 = vcombine.low %v15082_v4, %v6710_v25 }
 0x169   :  { %v205_v45 = vmul.f32 %v14980_v40, %v12119_v8  ;;  %v206_v38 = vmul.f32 %v14980_v40, %v12120_v34  ;;  %v1512_v59 = vld [vmem:[#allocation2 + $0x138] sm:$0x1]  ;;  %v12123_v44 = vunpack.c.l.bf16 %v12170_v21  ;;  %v11511_v10 = vrot.slane %v6530_v14, 9 }
 0x16a   :  { %v2316_v46 = vsel %vm14024_vm13, %v2311_v12, %v15094_v28  ;;  %v6717_v29 = vsel %vm14721_vm2, %v6715_v13, %v6716_v60  ;;  %v12124_v28 = vunpack.c.h.bf16 %v12170_v21  ;;  %v1513_v41 = vsel %vm13981_vm6, 0, %v1512_v59  ;;  %12821 = vmatprep.mubr.msk.bf16.mxu0 %vm2617_vm11, %v11542_v49  ;;  %v15152_v34 = vld [vmem:[%s17734_s0 + $0xd8] sm:$0xff]  }
 0x16b   :  { %v11169_v22 = vcombine.low %v2316_v46, %v2326_v47  ;;  %v11543_v4 = vcombine.low %v6714_v33, %v6717_v29  ;;  %v276_v8 = vadd.f32 %v14965_v51, %v205_v45  ;;  %v277_v42 = vadd.f32 %v14965_v51, %v206_v38  ;;  %1514 = vst [vmem:[#allocation2 + $0x138] sm:$0x1] %v1513_v41  ;;  %v1700_v6 = vld [vmem:[#allocation2 + $0x13c] sm:$0xf] }
 0x16c   :  { %v1621_v24 = vld [vmem:[#allocation2 + $0x140] sm:$0x1]  ;;  %v207_v52 = vmul.f32 %v14980_v40, %v12123_v44  ;;  %v208_v23 = vmul.f32 %v14980_v40, %v12124_v28  ;;  %v6720_v63 = vrot.slane %v15157_v17, 5  ;;  %v2337_v0 = vshll.u32 %v1700_v6, 16  ;;  %v1375_v44 = vld [vmem:[#allocation2 + $0x158] sm:$0x1] }
 0x16d   :  { %12520 = vmatmul.mubr.msk.bf16.gmra.mrb[44].mxu1 %vm2617_vm11, %v11169_v22  ;;  %v1622_v57 = vsel %vm13970_vm5, 0, %v1621_v24  ;;  %v2341_v30 = vshrl.u32 %v1700_v6, 16  ;;  %12822 = vmatmul.mubr.msk.bf16.gmra.mrb[16].mxu0 %vm2617_vm11, %v11543_v4  ;;  %v340_v62 = vmax.f32 %v276_v8, 0.0  ;;  %v341_v31 = vmax.f32 %v277_v42, 0.0 }
 0x16e   :  { %1623 = vst [vmem:[#allocation2 + $0x140] sm:$0x1] %v1622_v57  ;;  %v278_v32 = vadd.f32 %v14965_v51, %v207_v52  ;;  %v279_v5 = vadd.f32 %v14965_v51, %v208_v23  ;;  %v15169_v26 = vsel %vm14721_vm2, %v11511_v10, %v6720_v63  ;;  %v15171_v43 = vrot.slane %v2337_v0, 5  ;;  %v1515_v56 = vld [vmem:[#allocation2 + $0x144] sm:$0x1] }
 0x16f   :  { %v2343_v54 = vrot.slane %v2341_v30, 4  ;;  %v1624_v9 = vld [vmem:[#allocation2 + $0x14c] sm:$0x1]  ;;  %v11939_v39 = vpack.c.bf16 %v340_v62, %v340_v62  ;;  %v12127_v27 = vunpack.c.l.bf16 %v15152_v34  ;;  %v1516_v11 = vsel %vm13981_vm6, 0, %v1515_v56  ;;  %v1702_v1 = vld [vmem:[#allocation2 + $0x148] sm:$0xf] }
 0x170   :  { %v1625_v48 = vsel %vm13970_vm5, 0, %v1624_v9  ;;  %v11940_v37 = vpack.c.bf16 %v341_v31, %v341_v31  ;;  %v342_v47 = vmax.f32 %v278_v32, 0.0  ;;  %1517 = vst [vmem:[#allocation2 + $0x144] sm:$0x1] %v1516_v11  ;;  %v2361_v36 = vshll.u32 %v1702_v1, 16 }
 0x171   :  { %v2344_v58 = vor.u32 %v2343_v54, %v15171_v43  ;;  %1626 = vst [vmem:[#allocation2 + $0x14c] sm:$0x1] %v1625_v48  ;;  %v2365_v18 = vshrl.u32 %v1702_v1, 16  ;;  %v975_v35 = vshrl.u32 %v11939_v39, 16  ;;  %v978_v12 = vshll.u32 %v11939_v39, 16 }
 0x172   :  { %v983_v7 = vshrl.u32 %v11940_v37, 16  ;;  %v986_v50 = vshll.u32 %v11940_v37, 16  ;;  %v343_v60 = vmax.f32 %v279_v5, 0.0  ;;  %v1699_v21 = vld [vmem:[#allocation2 + $0x138] sm:$0xf]  ;;  %v15179_v25 = vrot.slane %v2361_v36, 5 }
 0x173   :  { %v2345_v55 = vrot.slane %v2344_v58, 4  ;;  %v2367_v33 = vrot.slane %v2365_v18, 4  ;;  %v977_v13 = vrot.slane %v975_v35, 7  ;;  %v2328_v46 = vshrl.u32 %v1699_v21, 16  ;;  %v1378_v9 = vld [vmem:[#allocation2 + $0x15c] sm:$0xf] }
 0x174   :  { %v2331_v49 = vshll.u32 %v1699_v21, 16  ;;  %v985_v45 = vrot.slane %v983_v7, 7  ;;  %v11941_v38 = vpack.c.bf16 %v342_v47, %v342_v47  ;;  %v11942_v28 = vpack.c.bf16 %v343_v60, %v343_v60  ;;  %v6531_v37 = vld [vmem:[#allocation2 + $0x90] sm:$0xe] }
 0x175   :  { %v1740_v14 = vld [vmem:[#allocation2 + $0x140] sm:$0x1]  ;;  %v2368_v22 = vor.u32 %v2367_v33, %v15179_v25  ;;  %v980_v59 = vor.u32 %v978_v12, %v977_v13  ;;  %v981_v29 = vrot.slane %v977_v13, 4  ;;  %v2330_v41 = vrot.slane %v2328_v46, 4 }
 0x176   :  { %v2333_v4 = vrot.slane %v2331_v49, 5  ;;  %v2347_v8 = vshll.u32 %v1740_v14, 16  ;;  %v988_v42 = vor.u32 %v986_v50, %v985_v45  ;;  %v990_v6 = vrot.slane %v985_v45, 4  ;;  %v13680_v45 = vld [vmem:[#allocation2 + $0x8c] sm:$0x1] }
 0x177   :  { %v15182_v24 = vrot.slane %v2368_v22, 4  ;;  %v1372_v52 = vsel %vm14010_vm10, %v980_v59, %v1371_v53  ;;  %v992_v23 = vshrl.u32 %v11941_v38, 16  ;;  %v1701_v0 = vld [vmem:[#allocation2 + $0x144] sm:$0xf]  ;;  %v995_v31 = vshll.u32 %v11941_v38, 16 }
 0x178   :  { %v2334_v10 = vor.u32 %v2333_v4, %v2330_v41  ;;  %v2349_v57 = vrot.slane %v2347_v8, 5  ;;  %v1741_v30 = vld [vmem:[#allocation2 + $0x14c] sm:$0x1]  ;;  %v989_v62 = vsel %vm14017_vm12, %v981_v29, %v988_v42  ;;  %1373 = vst [vmem:[#allocation2 + $0x150] sm:$0xf] %v1372_v52  ;;  %v2352_v32 = vshrl.u32 %v1701_v0, 16 }
 0x179   :  { %v2355_v5 = vshll.u32 %v1701_v0, 16  ;;  %v2371_v54 = vshll.u32 %v1741_v30, 16  ;;  %1374 = vst.msk [vmem:[#allocation2 + $0x154] sm:$0xf] %vm1190_vm1, %v989_v62  ;;  %v1376_v56 = vsel %vm13981_vm6, %v990_v6, %v1375_v44  ;;  %v994_v48 = vrot.slane %v992_v23, 7  ;;  %v12172_v42 = vld [vmem:[%s17734_s0 + $0xe0] sm:$0xff]  }
 0x17a   :  { %v2335_v39 = vrot.slane %v2334_v10, 4  ;;  %v2350_v11 = vsel %vm14024_vm13, %v2345_v55, %v2349_v57  ;;  %1377 = vst [vmem:[#allocation2 + $0x158] sm:$0x1] %v1376_v56  ;;  %v1000_v1 = vshrl.u32 %v11942_v28, 16  ;;  %v2354_v47 = vrot.slane %v2352_v32, 4 }
 0x17b   :  { %v2357_v58 = vrot.slane %v2355_v5, 5  ;;  %v2373_v36 = vrot.slane %v2371_v54, 5  ;;  %v1003_v18 = vshll.u32 %v11942_v28, 16  ;;  %v997_v12 = vor.u32 %v995_v31, %v994_v48  ;;  %v1382_v55 = vld [vmem:[#allocation2 + $0x164] sm:$0x1] }
 0x17c   :  { %v2340_v35 = vsel %vm14024_vm13, %v2335_v39, %v15171_v43  ;;  %v998_v7 = vrot.slane %v994_v48, 4  ;;  %v1002_v50 = vrot.slane %v1000_v1, 7  ;;  %v6722_v33 = vrot.slane %v6720_v63, 4  ;;  %v13681_v59 = vld [vmem:[#allocation2 + $0x94] sm:$0xf] }
 0x17d   :  { %v11170_v53 = vcombine.low %v2340_v35, %v2350_v11  ;;  %v2358_v60 = vor.u32 %v2357_v58, %v2354_v47  ;;  %v2374_v21 = vsel %vm14024_vm13, %v15182_v24, %v2373_v36  ;;  %v1379_v49 = vsel %vm14010_vm10, %v997_v12, %v1378_v9  ;;  %v13682_v44 = vld [vmem:[#allocation2 + $0x98] sm:$0x1]  ;;  %v6532_v57 = vld [vmem:[#allocation2 + $0x9c] sm:$0xe]  ;;  %v15244_v36 = vld [vmem:[#allocation2 + $0xa0] sm:$0xf] }
 0x17e   :  { %v1005_v13 = vor.u32 %v1003_v18, %v1002_v50  ;;  %v1007_v46 = vrot.slane %v1002_v50, 4  ;;  %v6723_v43 = vrot.slane %v13680_v45, 5  ;;  %1380 = vst [vmem:[#allocation2 + $0x15c] sm:$0xf] %v1379_v49  ;;  %v11512_v22 = vrot.slane %v6531_v37, 9 }
 0x17f   :  { %12523 = vmatprep.mubr.msk.bf16.mxu1 %vm2617_vm11, %v11170_v53  ;;  %v2359_v38 = vrot.slane %v2358_v60, 4  ;;  %v1518_v14 = vld [vmem:[#allocation2 + $0x150] sm:$0x1]  ;;  %v6727_v29 = vrot.slane %v13681_v59, 5  ;;  %v6730_v28 = vrot.slane %v13682_v44, 5  ;;  %v12128_v5 = vunpack.c.h.bf16 %v15152_v34  ;;  %v15240_v34 = vld [vmem:[%s17734_s0 + $0xe8] sm:$0xff]  }
 0x180   :  { %v1519_v17 = vsel %vm13981_vm6, 0, %v1518_v14  ;;  %v1704_v63 = vld [vmem:[#allocation2 + $0x154] sm:$0xf]  ;;  %v1006_v41 = vsel %vm14017_vm12, %v998_v7, %v1005_v13  ;;  %v1383_v4 = vsel %vm13981_vm6, %v1007_v46, %v1382_v55  ;;  %v6724_v8 = vsel %vm14721_vm2, %v6722_v33, %v6723_v43  ;;  %v15247_v35 = vld [vmem:[#allocation2 + $0xa4] sm:$0x1] }
 0x181   :  { %v2364_v24 = vsel %vm14024_vm13, %v2359_v38, %v15179_v25  ;;  %1520 = vst [vmem:[#allocation2 + $0x150] sm:$0x1] %v1519_v17  ;;  %v1627_v6 = vld [vmem:[#allocation2 + $0x158] sm:$0x1]  ;;  %v2385_v52 = vshll.u32 %v1704_v63, 16  ;;  %v2389_v23 = vshrl.u32 %v1704_v63, 16  ;;  %v11544_v10 = vcombine.low %v15169_v26, %v6724_v8 }
 0x182   :  { %1381 = vst.msk [vmem:[#allocation2 + $0x160] sm:$0xf] %vm1190_vm1, %v1006_v41  ;;  %1384 = vst [vmem:[#allocation2 + $0x164] sm:$0x1] %v1383_v4  ;;  %v11171_v0 = vcombine.low %v2364_v24, %v2374_v21  ;;  %v1628_v30 = vsel %vm13970_vm5, 0, %v1627_v6  ;;  %v6728_v62 = vsel %vm14721_vm2, %v11512_v22, %v6727_v29  ;;  %v6729_v31 = vrot.slane %v6727_v29, 4 }
 0x183   :  { %1629 = vst [vmem:[#allocation2 + $0x158] sm:$0x1] %v1628_v30  ;;  %v15224_v25 = vrot.slane %v2385_v52, 5  ;;  %v2391_v32 = vrot.slane %v2389_v23, 4  ;;  %12825 = vmatprep.mubr.msk.bf16.mxu0 %vm2617_vm11, %v11544_v10  ;;  %v209_v26 = vmul.f32 %v14980_v40, %v12127_v27  ;;  %v12131_v56 = vunpack.c.l.bf16 %v12172_v42 }
 0x184   :  { %12524 = vmatmul.mubr.msk.bf16.gmra.mrb[48].mxu1 %vm2617_vm11, %v11171_v0  ;;  %v6731_v54 = vsel %vm14721_vm2, %v6729_v31, %v6730_v28  ;;  %v12132_v9 = vunpack.c.h.bf16 %v12172_v42  ;;  %v11513_v39 = vrot.slane %v6532_v57, 9  ;;  %v210_v1 = vmul.f32 %v14980_v40, %v12128_v5  ;;  %v1385_v31 = vld [vmem:[#allocation2 + $0x168] sm:$0xf] }
 0x185   :  { %v2392_v11 = vor.u32 %v2391_v32, %v15224_v25  ;;  %v11545_v48 = vcombine.low %v6728_v62, %v6731_v54  ;;  %v280_v37 = vadd.f32 %v14965_v51, %v209_v26  ;;  %v1521_v27 = vld [vmem:[#allocation2 + $0x15c] sm:$0x1]  ;;  %v211_v47 = vmul.f32 %v14980_v40, %v12131_v56 }
 0x186   :  { %v212_v58 = vmul.f32 %v14980_v40, %v12132_v9  ;;  %v6734_v18 = vrot.slane %v15244_v36, 5  ;;  %v6737_v12 = vrot.slane %v15247_v35, 5  ;;  %v1522_v50 = vsel %vm13981_vm6, 0, %v1521_v27 }
 0x187   :  { %v2393_v7 = vrot.slane %v2392_v11, 4  ;;  %12826 = vmatmul.mubr.msk.bf16.gmra.mrb[20].mxu0 %vm2617_vm11, %v11545_v48  ;;  %v281_v53 = vadd.f32 %v14965_v51, %v210_v1  ;;  %v344_v60 = vmax.f32 %v280_v37, 0.0  ;;  %1523 = vst [vmem:[#allocation2 + $0x15c] sm:$0x1] %v1522_v50  ;;  %v282_v33 = vadd.f32 %v14965_v51, %v211_v47 }
 0x188   :  { %v1703_v21 = vld [vmem:[#allocation2 + $0x150] sm:$0xf]  ;;  %v283_v13 = vadd.f32 %v14965_v51, %v212_v58  ;;  %v15260_v46 = vsel %vm14721_vm2, %v11513_v39, %v6734_v18  ;;  %v12135_v49 = vunpack.c.l.bf16 %v15240_v34 }
 0x189   :  { %v1630_v40 = vld [vmem:[#allocation2 + $0x164] sm:$0x1]  ;;  %v1706_v55 = vld [vmem:[#allocation2 + $0x160] sm:$0xf]  ;;  %v2376_v45 = vshrl.u32 %v1703_v21, 16  ;;  %v2379_v43 = vshll.u32 %v1703_v21, 16  ;;  %v11943_v44 = vpack.c.bf16 %v344_v60, %v344_v60 }
 0x18a   :  { %v1631_v38 = vsel %vm13970_vm5, 0, %v1630_v40  ;;  %v2409_v14 = vshll.u32 %v1706_v55, 16  ;;  %v1742_v22 = vld [vmem:[#allocation2 + $0x158] sm:$0x1]  ;;  %v2413_v59 = vshrl.u32 %v1706_v55, 16  ;;  %v345_v29 = vmax.f32 %v281_v53, 0.0 }
 0x18b   :  { %1632 = vst [vmem:[#allocation2 + $0x164] sm:$0x1] %v1631_v38  ;;  %v346_v51 = vmax.f32 %v282_v33, 0.0  ;;  %v2378_v28 = vrot.slane %v2376_v45, 4  ;;  %v2381_v17 = vrot.slane %v2379_v43, 5  ;;  %v2395_v63 = vshll.u32 %v1742_v22, 16 }
 0x18c   :  { %v15265_v41 = vrot.slane %v2409_v14, 5  ;;  %v2415_v4 = vrot.slane %v2413_v59, 4  ;;  %v11944_v8 = vpack.c.bf16 %v345_v29, %v345_v29  ;;  %v1009_v42 = vshrl.u32 %v11943_v44, 16  ;;  %v1392_v45 = vld [vmem:[#allocation2 + $0x174] sm:$0xf] }
 0x18d   :  { %v1012_v24 = vshll.u32 %v11943_v44, 16  ;;  %v2382_v6 = vor.u32 %v2381_v17, %v2378_v28  ;;  %v2397_v52 = vrot.slane %v2395_v63, 5  ;;  %v347_v23 = vmax.f32 %v283_v13, 0.0  ;;  %v6533_v22 = vld [vmem:[#allocation2 + $0xa8] sm:$0xe] }
 0x18e   :  { %v11945_v10 = vpack.c.bf16 %v346_v51, %v346_v51  ;;  %v2416_v57 = vor.u32 %v2415_v4, %v15265_v41  ;;  %v1011_v0 = vrot.slane %v1009_v42, 7  ;;  %v1017_v30 = vshrl.u32 %v11944_v8, 16  ;;  %v1705_v26 = vld [vmem:[#allocation2 + $0x15c] sm:$0xf] }
 0x18f   :  { %v1020_v62 = vshll.u32 %v11944_v8, 16  ;;  %v2383_v32 = vrot.slane %v2382_v6, 4  ;;  %v2398_v5 = vsel %vm14024_vm13, %v2393_v7, %v2397_v52  ;;  %v11946_v54 = vpack.c.bf16 %v347_v23, %v347_v23  ;;  %v1389_v7 = vld [vmem:[#allocation2 + $0x170] sm:$0x1]  ;;  %v1396_v4 = vld [vmem:[#allocation2 + $0x17c] sm:$0x1] }
 0x190   :  { %v1026_v56 = vshrl.u32 %v11945_v10, 16  ;;  %v2400_v9 = vshrl.u32 %v1705_v26, 16  ;;  %v2403_v39 = vshll.u32 %v1705_v26, 16  ;;  %v2417_v11 = vrot.slane %v2416_v57, 4  ;;  %v13685_v6 = vld [vmem:[#allocation2 + $0xac] sm:$0xf] }
 0x191   :  { %v1014_v48 = vor.u32 %v1012_v24, %v1011_v0  ;;  %v2388_v1 = vsel %vm14024_vm13, %v2383_v32, %v15224_v25  ;;  %v1015_v27 = vrot.slane %v1011_v0, 4  ;;  %v1019_v47 = vrot.slane %v1017_v30, 7  ;;  %v13686_v23 = vld [vmem:[#allocation2 + $0xb0] sm:$0x1]  ;;  %v15290_v57 = vld [vmem:[%s17733_s3 + $0xe] sm:$0x3] }
 0x192   :  { %v1743_v37 = vld [vmem:[#allocation2 + $0x164] sm:$0x1]  ;;  %v1028_v58 = vrot.slane %v1026_v56, 7  ;;  %v11172_v50 = vcombine.low %v2388_v1, %v2398_v5  ;;  %v2402_v53 = vrot.slane %v2400_v9, 4  ;;  %v2405_v60 = vrot.slane %v2403_v39, 5  ;;  %13589 = vmatprep.subr.msk.bf16.mxu0 %vm2714_vm0, %v15290_v57 }
 0x193   :  { %v2419_v21 = vshll.u32 %v1743_v37, 16  ;;  %v1022_v40 = vor.u32 %v1020_v62, %v1019_v47  ;;  %v1024_v55 = vrot.slane %v1019_v47, 4  ;;  %v1386_v33 = vsel %vm14010_vm10, %v1014_v48, %v1385_v31  ;;  %v12174_v62 = vld [vmem:[%s17734_s0 + $0xf0] sm:$0xff]   ;;  %v15315_v56 = vld [vmem:[%s17735_s1] ss:$0 sm:$0xff] }
 0x194   :  { %v1029_v13 = vshll.u32 %v11945_v10, 16  ;;  %12527 = vmatprep.mubr.msk.bf16.mxu1 %vm2617_vm11, %v11172_v50  ;;  %v2406_v43 = vor.u32 %v2405_v60, %v2402_v53  ;;  %1387 = vst [vmem:[#allocation2 + $0x168] sm:$0xf] %v1386_v33  ;;  %v1032_v38 = vrot.slane %v1028_v58, 4  ;;  %v1034_v14 = vshrl.u32 %v11946_v54, 16 }
 0x195   :  { %v2421_v25 = vrot.slane %v2419_v21, 5  ;;  %v1023_v59 = vsel %vm14017_vm12, %v1015_v27, %v1022_v40  ;;  %v1390_v29 = vsel %vm13981_vm6, %v1024_v55, %v1389_v7  ;;  %v1037_v51 = vshll.u32 %v11946_v54, 16  ;;  %v6534_v31 = vld [vmem:[#allocation2 + $0xb4] sm:$0xe]  ;;  %v15331_v27 = vld [vmem:[%s17736_s2] ss:$0 sm:$0xff] }
 0x196   :  { %v1031_v44 = vor.u32 %v1029_v13, %v1028_v58  ;;  %v2407_v28 = vrot.slane %v2406_v43, 4  ;;  %1388 = vst.msk [vmem:[#allocation2 + $0x16c] sm:$0xf] %vm1190_vm1, %v1023_v59  ;;  %1391 = vst [vmem:[#allocation2 + $0x170] sm:$0x1] %v1390_v29  ;;  %v1036_v63 = vrot.slane %v1034_v14, 7  ;;  %v12136_v54 = vunpack.c.h.bf16 %v15240_v34 }
 0x197   :  { %v2422_v17 = vsel %vm14024_vm13, %v2417_v11, %v2421_v25  ;;  %v6736_v8 = vrot.slane %v6734_v18, 4  ;;  %v11514_v24 = vrot.slane %v6533_v22, 9  ;;  %v6741_v52 = vrot.slane %v13685_v6, 5  ;;  %v13689_v21 = vld [vmem:[#allocation2 + $0xb8] sm:$0xf] }
 0x198   :  { %v1393_v42 = vsel %vm14010_vm10, %v1031_v44, %v1392_v45  ;;  %v6744_v10 = vrot.slane %v13686_v23, 5  ;;  %v2412_v0 = vsel %vm14024_vm13, %v2407_v28, %v15265_v41  ;;  %v1039_v30 = vor.u32 %v1037_v51, %v1036_v63  ;;  %v15336_v40 = vld [vmem:[#allocation2 + $0xbc] sm:$0x1]  ;;  %v15349_v29 = vld [vmem:[#allocation2 + $0xc0] sm:$0xe] }
 0x199   :  { %v1041_v36 = vrot.slane %v1036_v63, 4  ;;  %1394 = vst [vmem:[#allocation2 + $0x174] sm:$0xf] %v1393_v42  ;;  %v6738_v18 = vsel %vm14721_vm2, %v6736_v8, %v6737_v12  ;;  %v11173_v32 = vcombine.low %v2412_v0, %v2422_v17  ;;  %v6742_v41 = vsel %vm14721_vm2, %v11514_v24, %v6741_v52  ;;  %v15359_v0 = vld [vmem:[#allocation2 + $0xc4] sm:$0xf] }
 0x19a   :  { %v11546_v5 = vcombine.low %v15260_v46, %v6738_v18  ;;  %v6743_v26 = vrot.slane %v6741_v52, 4  ;;  %v1040_v35 = vsel %vm14017_vm12, %v1032_v38, %v1039_v30  ;;  %v213_v46 = vmul.f32 %v15315_v56, %v12135_v49 }
 0x19b   :  { %v1397_v12 = vsel %vm13981_vm6, %v1041_v36, %v1396_v4  ;;  %12528 = vmatmul.mubr.msk.bf16.gmra.mrb[52].mxu1 %vm2617_vm11, %v11173_v32  ;;  %v1524_v9 = vld [vmem:[#allocation2 + $0x168] sm:$0x1]  ;;  %1395 = vst.msk [vmem:[#allocation2 + $0x178] sm:$0xf] %vm1190_vm1, %v1040_v35  ;;  %v12139_v11 = vunpack.c.l.bf16 %v12174_v62  ;;  %v12140_v48 = vunpack.c.h.bf16 %v12174_v62  ;;  %v11515_v1 = vrot.slane %v6534_v31, 9 }
 0x19c   :  { %1398 = vst [vmem:[#allocation2 + $0x17c] sm:$0x1] %v1397_v12  ;;  %12829 = vmatprep.mubr.msk.bf16.mxu0 %vm2617_vm11, %v11546_v5  ;;  %v6745_v39 = vsel %vm14721_vm2, %v6743_v26, %v6744_v10  ;;  %v1525_v37 = vsel %vm13981_vm6, 0, %v1524_v9  ;;  %v214_v49 = vmul.f32 %v15315_v56, %v12136_v54  ;;  %v284_v47 = vadd.f32 %v15331_v27, %v213_v46 }
 0x19d   :  { %v11547_v34 = vcombine.low %v6742_v41, %v6745_v39  ;;  %1526 = vst [vmem:[#allocation2 + $0x168] sm:$0x1] %v1525_v37  ;;  %v1633_v58 = vld [vmem:[#allocation2 + $0x170] sm:$0x1]  ;;  %v1708_v50 = vld [vmem:[#allocation2 + $0x16c] sm:$0xf]  ;;  %v215_v53 = vmul.f32 %v15315_v56, %v12139_v11  ;;  %v216_v60 = vmul.f32 %v15315_v56, %v12140_v48 }
 0x19e   :  { %v6748_v7 = vrot.slane %v13689_v21, 5  ;;  %v6751_v55 = vrot.slane %v15336_v40, 5  ;;  %v1634_v33 = vsel %vm13970_vm5, 0, %v1633_v58  ;;  %v2433_v13 = vshll.u32 %v1708_v50, 16  ;;  %v1399_v39 = vld [vmem:[#allocation2 + $0x180] sm:$0xf] }
 0x19f   :  { %v2437_v45 = vshrl.u32 %v1708_v50, 16  ;;  %12830 = vmatmul.mubr.msk.bf16.gmra.mrb[24].mxu0 %vm2617_vm11, %v11547_v34  ;;  %v285_v43 = vadd.f32 %v15331_v27, %v214_v49  ;;  %1635 = vst [vmem:[#allocation2 + $0x170] sm:$0x1] %v1634_v33  ;;  %v348_v38 = vmax.f32 %v284_v47, 0.0  ;;  %v286_v14 = vadd.f32 %v15331_v27, %v215_v53  ;;  %v1403_v37 = vld [vmem:[#allocation2 + $0x188] sm:$0x1] }
 0x1a0   :  { %v1527_v25 = vld [vmem:[#allocation2 + $0x174] sm:$0x1]  ;;  %v287_v22 = vadd.f32 %v15331_v27, %v216_v60  ;;  %v15347_v59 = vsel %vm14721_vm2, %v11515_v1, %v6748_v7  ;;  %v15351_v44 = vrot.slane %v2433_v13, 5  ;;  %v6750_v42 = vrot.slane %v6748_v7, 4 }
 0x1a1   :  { %v2439_v51 = vrot.slane %v2437_v45, 4  ;;  %v1528_v28 = vsel %vm13981_vm6, 0, %v1527_v25  ;;  %v349_v17 = vmax.f32 %v285_v43, 0.0  ;;  %v11947_v63 = vpack.c.bf16 %v348_v38, %v348_v38 }
 0x1a2   :  { %1529 = vst [vmem:[#allocation2 + $0x174] sm:$0x1] %v1528_v28  ;;  %v350_v4 = vmax.f32 %v286_v14, 0.0  ;;  %v351_v8 = vmax.f32 %v287_v22, 0.0  ;;  %v15356_v52 = vld [vmem:[#allocation2 + $0x178] sm:$0xf] }
 0x1a3   :  { %v2440_v24 = vor.u32 %v2439_v51, %v15351_v44  ;;  %v1636_v6 = vld [vmem:[#allocation2 + $0x17c] sm:$0x1]  ;;  %v11948_v23 = vpack.c.bf16 %v349_v17, %v349_v17  ;;  %v11516_v10 = vrot.slane %v15349_v29, 9  ;;  %v6755_v30 = vrot.slane %v15359_v0, 5 }
 0x1a4   :  { %v1637_v36 = vsel %vm13970_vm5, 0, %v1636_v6  ;;  %v2457_v18 = vshll.u32 %v15356_v52, 16  ;;  %v2461_v62 = vshrl.u32 %v15356_v52, 16  ;;  %v1043_v31 = vshrl.u32 %v11947_v63, 16  ;;  %v15366_v32 = vld [vmem:[#allocation2 + $0x168] sm:$0xf] }
 0x1a5   :  { %v2441_v5 = vrot.slane %v2440_v24, 4  ;;  %1638 = vst [vmem:[#allocation2 + $0x17c] sm:$0x1] %v1637_v36  ;;  %v1046_v41 = vshll.u32 %v11947_v63, 16  ;;  %v1051_v26 = vshrl.u32 %v11948_v23, 16  ;;  %v1054_v35 = vshll.u32 %v11948_v23, 16 }
 0x1a6   :  { %v2424_v12 = vshrl.u32 %v15366_v32, 16  ;;  %v2427_v54 = vshll.u32 %v15366_v32, 16  ;;  %v15370_v46 = vrot.slane %v2457_v18, 5  ;;  %v2463_v9 = vrot.slane %v2461_v62, 4  ;;  %v1744_v11 = vld [vmem:[#allocation2 + $0x170] sm:$0x1] }
 0x1a7   :  { %v1045_v48 = vrot.slane %v1043_v31, 7  ;;  %v1053_v1 = vrot.slane %v1051_v26, 7  ;;  %v11949_v34 = vpack.c.bf16 %v350_v4, %v350_v4  ;;  %v11950_v49 = vpack.c.bf16 %v351_v8, %v351_v8 }
 0x1a8   :  { %v2426_v47 = vrot.slane %v2424_v12, 4  ;;  %v2429_v58 = vrot.slane %v2427_v54, 5  ;;  %v2443_v50 = vshll.u32 %v1744_v11, 16  ;;  %v2464_v53 = vor.u32 %v2463_v9, %v15370_v46 }
 0x1a9   :  { %v15373_v60 = vld [vmem:[#allocation2 + $0x174] sm:$0xf]  ;;  %v1048_v21 = vor.u32 %v1046_v41, %v1045_v48  ;;  %v1049_v7 = vrot.slane %v1045_v48, 4  ;;  %v1056_v33 = vor.u32 %v1054_v35, %v1053_v1  ;;  %v1058_v13 = vrot.slane %v1053_v1, 4 }
 0x1aa   :  { %v2430_v45 = vor.u32 %v2429_v58, %v2426_v47  ;;  %v2445_v43 = vrot.slane %v2443_v50, 5  ;;  %v2448_v25 = vshrl.u32 %v15373_v60, 16  ;;  %v2451_v38 = vshll.u32 %v15373_v60, 16  ;;  %v5156_v58 = vld [vmem:[#allocation2 + $0xec] sm:$0x1] }
 0x1ab   :  { %v2465_v14 = vrot.slane %v2464_v53, 4  ;;  %v1057_v22 = vsel %vm14017_vm12, %v1049_v7, %v1056_v33  ;;  %v1400_v51 = vsel %vm14010_vm10, %v1048_v21, %v1399_v39  ;;  %v1404_v28 = vsel %vm13981_vm6, %v1058_v13, %v1403_v37  ;;  %v1406_v39 = vld [vmem:[#allocation2 + $0x18c] sm:$0xf]  ;;  %v6536_v50 = vld [vmem:[#allocation2 + $0xe4] sm:$0xe] }
 0x1ac   :  { %v2431_v17 = vrot.slane %v2430_v45, 4  ;;  %v2446_v63 = vsel %vm14024_vm13, %v2441_v5, %v2445_v43  ;;  %v1745_v4 = vld [vmem:[#allocation2 + $0x17c] sm:$0x1]  ;;  %v2450_v8 = vrot.slane %v2448_v25, 4  ;;  %v2453_v24 = vrot.slane %v2451_v38, 5 }
 0x1ad   :  { %1401 = vst [vmem:[#allocation2 + $0x180] sm:$0xf] %v1400_v51  ;;  %1402 = vst.msk [vmem:[#allocation2 + $0x184] sm:$0xf] %vm1190_vm1, %v1057_v22  ;;  %v2467_v6 = vshll.u32 %v1745_v4, 16  ;;  %v1060_v23 = vshrl.u32 %v11949_v34, 16  ;;  %v6752_v5 = vsel %vm14721_vm2, %v6750_v42, %v6751_v55 }
 0x1ae   :  { %1405 = vst [vmem:[#allocation2 + $0x188] sm:$0x1] %v1404_v28  ;;  %v1063_v36 = vshll.u32 %v11949_v34, 16  ;;  %v1068_v18 = vshrl.u32 %v11950_v49, 16  ;;  %v2436_v62 = vsel %vm14024_vm13, %v2431_v17, %v15351_v44  ;;  %v2454_v31 = vor.u32 %v2453_v24, %v2450_v8  ;;  %v1410_v55 = vld [vmem:[#allocation2 + $0x194] sm:$0x1] }
 0x1af   :  { %v1071_v41 = vshll.u32 %v11950_v49, 16  ;;  %v11174_v26 = vcombine.low %v2436_v62, %v2446_v63  ;;  %v2469_v35 = vrot.slane %v2467_v6, 5  ;;  %v1062_v12 = vrot.slane %v1060_v23, 7  ;;  %v5155_v42 = vld [vmem:[#allocation2 + $0xe8] sm:$0xf] }
 0x1b0   :  { %v1070_v54 = vrot.slane %v1068_v18, 7  ;;  %v2455_v9 = vrot.slane %v2454_v31, 4  ;;  %v11548_v11 = vcombine.low %v15347_v59, %v6752_v5  ;;  %v6757_v48 = vrot.slane %v6755_v30, 4  ;;  %v13692_v59 = vld [vmem:[#allocation2 + $0xc8] sm:$0x1] }
 0x1b1   :  { %12531 = vmatprep.mubr.msk.bf16.mxu1 %vm2617_vm11, %v11174_v26  ;;  %v2470_v44 = vsel %vm14024_vm13, %v2465_v14, %v2469_v35  ;;  %v1065_v40 = vor.u32 %v1063_v36, %v1062_v12  ;;  %v1066_v1 = vrot.slane %v1062_v12, 4  ;;  %v6758_v47 = vrot.slane %v13692_v59, 5  ;;  %v15422_v22 = vld [vmem:[#allocation2 + $0xf4] sm:$0xf]  ;;  %v6537_v51 = vld [vmem:[#allocation2 + $0xf0] sm:$0xe] }
 0x1b2   :  { %v1073_v37 = vor.u32 %v1071_v41, %v1070_v54  ;;  %v2460_v34 = vsel %vm14024_vm13, %v2455_v9, %v15370_v46  ;;  %v1075_v49 = vrot.slane %v1070_v54, 4  ;;  %12833 = vmatprep.mubr.msk.bf16.mxu0 %vm2617_vm11, %v11548_v11  ;;  %v6756_v46 = vsel %vm14721_vm2, %v11516_v10, %v6755_v30  ;;  %v15433_v6 = vld [vmem:[#allocation2 + $0xf8] sm:$0x1]  ;;  %v5161_v12 = vld [vmem:[#allocation2 + $0x100] sm:$0xf] }
 0x1b3   :  { %v11175_v53 = vcombine.low %v2460_v34, %v2470_v44  ;;  %v1407_v45 = vsel %vm14010_vm10, %v1065_v40, %v1406_v39  ;;  %v6759_v10 = vsel %vm14721_vm2, %v6757_v48, %v6758_v47  ;;  %v11517_v0 = vrot.slane %v6536_v50, 9  ;;  %v5162_v54 = vld [vmem:[#allocation2 + $0x104] sm:$0x1]  ;;  %v6538_v9 = vld [vmem:[#allocation2 + $0xfc] sm:$0xe] }
 0x1b4   :  { %v1530_v21 = vld [vmem:[#allocation2 + $0x180] sm:$0x1]  ;;  %v15403_v33 = vld [vmem:[#allocation2 + $0x184] sm:$0xf]  ;;  %v1074_v13 = vsel %vm14017_vm12, %v1066_v1, %v1073_v37  ;;  %1408 = vst [vmem:[#allocation2 + $0x18c] sm:$0xf] %v1407_v45  ;;  %v1411_v29 = vsel %vm13981_vm6, %v1075_v49, %v1410_v55  ;;  %v11549_v63 = vcombine.low %v6756_v46, %v6759_v10 }
 0x1b5   :  { %v1639_v7 = vld [vmem:[#allocation2 + $0x188] sm:$0x1]  ;;  %v1531_v43 = vsel %vm13981_vm6, 0, %v1530_v21  ;;  %v2481_v38 = vshll.u32 %v15403_v33, 16  ;;  %v2485_v14 = vshrl.u32 %v15403_v33, 16  ;;  %12532 = vmatmul.mubr.msk.bf16.gmra.mrb[56].mxu1 %vm2617_vm11, %v11175_v53  ;;  %v6762_v30 = vrot.slane %v5155_v42, 5 }
 0x1b6   :  { %v1640_v25 = vsel %vm13970_vm5, 0, %v1639_v7  ;;  %1409 = vst.msk [vmem:[#allocation2 + $0x190] sm:$0xf] %vm1190_vm1, %v1074_v13  ;;  %1532 = vst [vmem:[#allocation2 + $0x180] sm:$0x1] %v1531_v43  ;;  %v6765_v4 = vrot.slane %v5156_v58, 5  ;;  %12834 = vmatmul.mubr.msk.bf16.gmra.mrb[28].mxu0 %vm2617_vm11, %v11549_v63 }
 0x1b7   :  { %1641 = vst [vmem:[#allocation2 + $0x188] sm:$0x1] %v1640_v25  ;;  %v15429_v28 = vrot.slane %v2481_v38, 5  ;;  %v2487_v17 = vrot.slane %v2485_v14, 4  ;;  %1412 = vst [vmem:[#allocation2 + $0x194] sm:$0x1] %v1411_v29  ;;  %v6763_v8 = vsel %vm14721_vm2, %v11517_v0, %v6762_v30 }
 0x1b8   :  { %v6764_v24 = vrot.slane %v6762_v30, 4  ;;  %v11518_v23 = vrot.slane %v6537_v51, 9  ;;  %v6769_v18 = vrot.slane %v15422_v22, 5  ;;  %v6772_v41 = vrot.slane %v15433_v6, 5  ;;  %v5164_v49 = vld [vmem:[#allocation2 + $0x10c] sm:$0xf] }
 0x1b9   :  { %v2488_v62 = vor.u32 %v2487_v17, %v15429_v28  ;;  %v5165_v59 = vld [vmem:[#allocation2 + $0x110] sm:$0x1]  ;;  %v6539_v21 = vld [vmem:[#allocation2 + $0x108] sm:$0xe]  ;;  %v5167_v43 = vld [vmem:[#allocation2 + $0x118] sm:$0xf] }
 0x1ba   :  { %v6766_v36 = vsel %vm14721_vm2, %v6764_v24, %v6765_v4  ;;  %v6771_v35 = vrot.slane %v6769_v18, 4  ;;  %v6770_v40 = vsel %vm14721_vm2, %v11518_v23, %v6769_v18  ;;  %v11519_v38 = vrot.slane %v6538_v9, 9  ;;  %v6540_v10 = vld [vmem:[#allocation2 + $0x114] sm:$0xe]  ;;  %v5168_v18 = vld [vmem:[#allocation2 + $0x11c] sm:$0x1] }
 0x1bb   :  { %v11550_v31 = vcombine.low %v6763_v8, %v6766_v36  ;;  %v1533_v5 = vld [vmem:[#allocation2 + $0x18c] sm:$0x1]  ;;  %v2489_v47 = vrot.slane %v2488_v62, 4  ;;  %v6776_v14 = vrot.slane %v5161_v12, 5  ;;  %v6779_v29 = vrot.slane %v5162_v54, 5 }
 0x1bc   :  { %v1534_v48 = vsel %vm13981_vm6, 0, %v1533_v5  ;;  %v6773_v53 = vsel %vm14721_vm2, %v6771_v35, %v6772_v41  ;;  %v11520_v51 = vrot.slane %v6539_v21, 9  ;;  %v6783_v4 = vrot.slane %v5164_v49, 5  ;;  %v5171_v41 = vld [vmem:[#allocation2 + $0x128] sm:$0x1] }
 0x1bd   :  { %v15441_v26 = vld [vmem:[#allocation2 + $0x190] sm:$0xf]  ;;  %v15443_v39 = vld [vmem:[#allocation2 + $0x180] sm:$0xf]  ;;  %12837 = vmatprep.mubr.msk.bf16.mxu0 %vm2617_vm11, %v11550_v31  ;;  %1535 = vst [vmem:[#allocation2 + $0x18c] sm:$0x1] %v1534_v48  ;;  %v11551_v25 = vcombine.low %v6770_v40, %v6773_v53  ;;  %v6777_v17 = vsel %vm14721_vm2, %v11519_v38, %v6776_v14 }
 0x1be   :  { %v1746_v11 = vld [vmem:[#allocation2 + $0x188] sm:$0x1]  ;;  %v2505_v44 = vshll.u32 %v15441_v26, 16  ;;  %v2472_v1 = vshrl.u32 %v15443_v39, 16  ;;  %v2475_v37 = vshll.u32 %v15443_v39, 16  ;;  %v2509_v34 = vshrl.u32 %v15441_v26, 16 }
 0x1bf   :  { %v2491_v55 = vshll.u32 %v1746_v11, 16  ;;  %v1642_v42 = vld [vmem:[#allocation2 + $0x194] sm:$0x1]  ;;  %12838 = vmatmul.mubr.msk.bf16.gmra.mrb[32].mxu0 %vm2617_vm11, %v11551_v25  ;;  %v6778_v63 = vrot.slane %v6776_v14, 4  ;;  %v6786_v8 = vrot.slane %v5165_v59, 5  ;;  %v11521_v62 = vrot.slane %v6540_v10, 9 }
 0x1c0   :  { %v1643_v58 = vsel %vm13970_vm5, 0, %v1642_v42  ;;  %v15456_v50 = vrot.slane %v2505_v44, 5  ;;  %v2474_v7 = vrot.slane %v2472_v1, 4  ;;  %v2477_v13 = vrot.slane %v2475_v37, 5  ;;  %v5170_v31 = vld [vmem:[#allocation2 + $0x124] sm:$0xf] }
 0x1c1   :  { %v2493_v45 = vrot.slane %v2491_v55, 5  ;;  %1644 = vst [vmem:[#allocation2 + $0x194] sm:$0x1] %v1643_v58  ;;  %v2511_v46 = vrot.slane %v2509_v34, 4  ;;  %v6780_v35 = vsel %vm14721_vm2, %v6778_v63, %v6779_v29  ;;  %v6784_v12 = vsel %vm14721_vm2, %v11520_v51, %v6783_v4  ;;  %v6541_v1 = vld [vmem:[#allocation2 + $0x120] sm:$0xe] }
 0x1c2   :  { %v2478_v0 = vor.u32 %v2477_v13, %v2474_v7  ;;  %v6785_v54 = vrot.slane %v6783_v4, 4  ;;  %v6790_v9 = vrot.slane %v5167_v43, 5  ;;  %v11552_v40 = vcombine.low %v6777_v17, %v6780_v35  ;;  %v6542_v53 = vld [vmem:[#allocation2 + $0x12c] sm:$0xe]  ;;  %v5174_v38 = vld [vmem:[#allocation2 + $0x134] sm:$0x1] }
 0x1c3   :  { %v2512_v30 = vor.u32 %v2511_v46, %v15456_v50  ;;  %v2494_v23 = vsel %vm14024_vm13, %v2489_v47, %v2493_v45  ;;  %v6793_v21 = vrot.slane %v5168_v18, 5  ;;  %v11522_v7 = vrot.slane %v6541_v1, 9  ;;  %v5173_v46 = vld [vmem:[#allocation2 + $0x130] sm:$0xf]  ;;  %v5176_v14 = vld [vmem:[#allocation2 + $0x13c] sm:$0xf] }
 0x1c4   :  { %v2479_v24 = vrot.slane %v2478_v0, 4  ;;  %v15466_v5 = vld [vmem:[#allocation2 + $0x18c] sm:$0xf]  ;;  %v6787_v42 = vsel %vm14721_vm2, %v6785_v54, %v6786_v8  ;;  %v6791_v34 = vsel %vm14721_vm2, %v11521_v62, %v6790_v9  ;;  %v6792_v49 = vrot.slane %v6790_v9, 4  ;;  %12841 = vmatprep.mubr.msk.bf16.mxu0 %vm2617_vm11, %v11552_v40  ;;  %v6543_v8 = vld [vmem:[#allocation2 + $0x138] sm:$0xe] }
 0x1c5   :  { %v2513_v36 = vrot.slane %v2512_v30, 4  ;;  %v2496_v48 = vshrl.u32 %v15466_v5, 16  ;;  %v2499_v44 = vshll.u32 %v15466_v5, 16  ;;  %v6797_v13 = vrot.slane %v5170_v31, 5  ;;  %v5177_v18 = vld [vmem:[#allocation2 + $0x140] sm:$0x1] }
 0x1c6   :  { %v2484_v11 = vsel %vm14024_vm13, %v2479_v24, %v15429_v28  ;;  %v11553_v28 = vcombine.low %v6784_v12, %v6787_v42  ;;  %v6800_v45 = vrot.slane %v5171_v41, 5  ;;  %v6794_v29 = vsel %vm14721_vm2, %v6792_v49, %v6793_v21  ;;  %v5179_v31 = vld [vmem:[#allocation2 + $0x148] sm:$0xf]  ;;  %v15495_v35 = vld [vmem:[#allocation2 + $0x4] sm:$0xf] }
 0x1c7   :  { %v11176_v37 = vcombine.low %v2484_v11, %v2494_v23  ;;  %v2498_v59 = vrot.slane %v2496_v48, 4  ;;  %v2501_v47 = vrot.slane %v2499_v44, 5  ;;  %v6798_v10 = vsel %vm14721_vm2, %v11522_v7, %v6797_v13  ;;  %v13694_v12 = vld [vmem:[#allocation2] sm:$0xf]  ;;  %v5180_v11 = vld [vmem:[#allocation2 + $0x14c] sm:$0x1] }
 0x1c8   :  { %v1747_v55 = vld [vmem:[#allocation2 + $0x194] sm:$0x1]  ;;  %12842 = vmatmul.mubr.msk.bf16.gmra.mrb[36].mxu0 %vm2617_vm11, %v11553_v28  ;;  %v6799_v0 = vrot.slane %v6797_v13, 4  ;;  %v11523_v30 = vrot.slane %v6542_v53, 9  ;;  %v11554_v63 = vcombine.low %v6791_v34, %v6794_v29  ;;  %v6804_v4 = vrot.slane %v5173_v46, 5 }
 0x1c9   :  { %v2515_v58 = vshll.u32 %v1747_v55, 16  ;;  %12535 = vmatprep.mubr.msk.bf16.mxu1 %vm2617_vm11, %v11176_v37  ;;  %v2502_v43 = vor.u32 %v2501_v47, %v2498_v59  ;;  %v6807_v23 = vrot.slane %v5174_v38, 5  ;;  %v6811_v62 = vrot.slane %v5176_v14, 5  ;;  %v6544_v48 = vld [vmem:[#allocation2 + $0x144] sm:$0xe] }
 0x1ca   :  { %v6801_v24 = vsel %vm14721_vm2, %v6799_v0, %v6800_v45  ;;  %v11210_v54 = vcombine.low %v13694_v12, %v15495_v35  ;;  %12845 = vmatprep.mubr.msk.bf16.mxu0 %vm2617_vm11, %v11554_v63  ;;  %v6806_v9 = vrot.slane %v6804_v4, 4  ;;  %v11524_v37 = vrot.slane %v6543_v8, 9  ;;  %v5182_v42 = vld [vmem:[#allocation2 + $0x154] sm:$0xf]  ;;  %v5183_v13 = vld [vmem:[#allocation2 + $0x158] sm:$0x1] }
 0x1cb   :  { %v2517_v25 = vrot.slane %v2515_v58, 5  ;;  %v2503_v51 = vrot.slane %v2502_v43, 4  ;;  %v11555_v40 = vcombine.low %v6798_v10, %v6801_v24  ;;  %v6814_v55 = vrot.slane %v5177_v18, 5  ;;  %v5185_v58 = vld [vmem:[#allocation2 + $0x160] sm:$0xf] }
 0x1cc   :  { %v6808_v1 = vsel %vm14721_vm2, %v6806_v9, %v6807_v23  ;;  %v11525_v49 = vrot.slane %v6544_v48, 9  ;;  %v6818_v59 = vrot.slane %v5179_v31, 5  ;;  %v6821_v47 = vrot.slane %v5180_v11, 5  ;;  %v6545_v45 = vld [vmem:[#allocation2 + $0x150] sm:$0xe]  ;;  %v12175_v11 = vld [vmem:[%s17734_s0 + $0xf8] sm:$0xff]  }
 0x1cd   :  { %v2518_v17 = vsel %vm14024_vm13, %v2513_v36, %v2517_v25  ;;  %v2508_v41 = vsel %vm14024_vm13, %v2503_v51, %v15456_v50  ;;  %v6805_v36 = vsel %vm14721_vm2, %v11523_v30, %v6804_v4  ;;  %v6813_v50 = vrot.slane %v6811_v62, 4  ;;  %v15511_v46 = vld [vmem:[#allocation2 + $0x10] sm:$0xf]  ;;  %v13696_v43 = vld [vmem:[#allocation2 + $0xc] sm:$0xf] }
 0x1ce   :  { %v11177_v44 = vcombine.low %v2508_v41, %v2518_v17  ;;  %v11556_v34 = vcombine.low %v6805_v36, %v6808_v1  ;;  %v6820_v28 = vrot.slane %v6818_v59, 4  ;;  %v6825_v53 = vrot.slane %v5182_v42, 5  ;;  %v6546_v29 = vld [vmem:[#allocation2 + $0x15c] sm:$0xe]  ;;  %v13697_v0 = vld [vmem:[%s17733_s3 + $0x4] sm:$0x3] }
 0x1cf   :  { %v6812_v21 = vsel %vm14721_vm2, %v11524_v37, %v6811_v62  ;;  %v6815_v7 = vsel %vm14721_vm2, %v6813_v50, %v6814_v55  ;;  %v11211_v25 = vcombine.low %v13696_v43, %v15511_v46  ;;  %v6819_v38 = vsel %vm14721_vm2, %v11525_v49, %v6818_v59  ;;  %v15522_v51 = vld [vmem:[#allocation2 + $0x1c] sm:$0xf]  ;;  %v13699_v17 = vld [vmem:[#allocation2 + $0x18] sm:$0xf]  ;;  %v5186_v4 = vld [vmem:[#allocation2 + $0x164] sm:$0x1] }
 0x1d0   :  { %12536 = vmatmul.mubr.msk.bf16.gmra.mrb[60].mxu1 %vm2617_vm11, %v11177_v44  ;;  %12846 = vmatmul.mubr.msk.bf16.gmra.mrb[40].mxu0 %vm2617_vm11, %v11555_v40  ;;  %v6822_v14 = vsel %vm14721_vm2, %v6820_v28, %v6821_v47  ;;  %v6832_v10 = vrot.slane %v5185_v58, 5  ;;  %v4073_v30 = vsel %vm2714_vm0, %v13697_v0, 0  ;;  %v11212_v63 = vcombine.low %v13699_v17, %v15522_v51  ;;  %v5188_v41 = vld [vmem:[#allocation2 + $0x16c] sm:$0xf]  ;;  %v15529_v36 = vld [vmem:[%s17733_s3 + $0x6] sm:$0x3] }
 0x1d1   :  { %12541 = vmatprep.mubr.msk.bf16.mxu1 %vm2617_vm11, %v11210_v54  ;;  %12849 = vmatprep.mubr.msk.bf16.mxu0 %vm2617_vm11, %v11556_v34  ;;  %v11557_v8 = vcombine.low %v6812_v21, %v6815_v7  ;;  %v11526_v24 = vrot.slane %v6545_v45, 9  ;;  %v6827_v23 = vrot.slane %v6825_v53, 4  ;;  %v6828_v18 = vrot.slane %v5183_v13, 5  ;;  %v5191_v9 = vld [vmem:[#allocation2 + $0x178] sm:$0xf] }
 0x1d2   :  { %v11558_v62 = vcombine.low %v6819_v38, %v6822_v14  ;;  %v11527_v31 = vrot.slane %v6546_v29, 9  ;;  %v6834_v12 = vrot.slane %v6832_v10, 4  ;;  %v6835_v54 = vrot.slane %v5186_v4, 5  ;;  %v6547_v40 = vld [vmem:[#allocation2 + $0x168] sm:$0xe] }
 0x1d3   :  { %v6826_v48 = vsel %vm14721_vm2, %v11526_v24, %v6825_v53  ;;  %v6829_v44 = vsel %vm14721_vm2, %v6827_v23, %v6828_v18  ;;  %v6839_v1 = vrot.slane %v5188_v41, 5  ;;  %v15542_v37 = vld [vmem:[#allocation2 + $0x28] sm:$0xf]  ;;  %v13701_v50 = vld [vmem:[#allocation2 + $0x24] sm:$0xf]  ;;  %v6846_v47 = vrot.slane %v5191_v9, 5 }
 0x1d4   :  { %v11213_v55 = vcombine.low %v13701_v50, %v15542_v37  ;;  %v6833_v42 = vsel %vm14721_vm2, %v11527_v31, %v6832_v10  ;;  %v5189_v34 = vld [vmem:[#allocation2 + $0x170] sm:$0x1]  ;;  %v6836_v49 = vsel %vm14721_vm2, %v6834_v12, %v6835_v54  ;;  %v6548_v59 = vld [vmem:[#allocation2 + $0x174] sm:$0xe]  ;;  %v12143_v58 = vunpack.c.l.bf16 %v12175_v11  ;;  %v5192_v43 = vld [vmem:[#allocation2 + $0x17c] sm:$0x1] }
 0x1d5   :  { %v12144_v28 = vunpack.c.h.bf16 %v12175_v11  ;;  %v15550_v53 = vld [vmem:[#allocation2 + $0x34] sm:$0xf]  ;;  %v13703_v21 = vld [vmem:[#allocation2 + $0x30] sm:$0xf]  ;;  %v11559_v13 = vcombine.low %v6826_v48, %v6829_v44  ;;  %v11528_v45 = vrot.slane %v6547_v40, 9  ;;  %v6842_v38 = vrot.slane %v5189_v34, 5 }
 0x1d6   :  { %v11214_v7 = vcombine.low %v13703_v21, %v15550_v53  ;;  %v217_v14 = vmul.f32 %v15315_v56, %v12143_v58  ;;  %v11560_v10 = vcombine.low %v6833_v42, %v6836_v49  ;;  %v11529_v0 = vrot.slane %v6548_v59, 9  ;;  %v5197_v24 = vld [vmem:[#allocation2 + $0x190] sm:$0xf]  ;;  %v6549_v18 = vld [vmem:[#allocation2 + $0x180] sm:$0xe] }
 0x1d7   :  { %v218_v29 = vmul.f32 %v15315_v56, %v12144_v28  ;;  %v6849_v17 = vrot.slane %v5192_v43, 5  ;;  %v6840_v23 = vsel %vm14721_vm2, %v11528_v45, %v6839_v1  ;;  %v1485_v41 = vld [vmem:[#allocation2 + $0xcc] sm:$0x1]  ;;  %v15564_v12 = vld [vmem:[#allocation2 + $0x40] sm:$0xf]  ;;  %v11530_v58 = vrot.slane %v6549_v18, 9 }
 0x1d8   :  { %12542 = vmatmul.mubr.msk.bf16.vlgmr.msra.gmra.mrb[0].mxu1 %vm2617_vm11, %v11211_v25  ;;  %12850 = vmatmul.mubr.msk.bf16.gmra.mrb[44].mxu0 %vm2617_vm11, %v11557_v8  ;;  %v6841_v25 = vrot.slane %v6839_v1, 4  ;;  %v288_v4 = vadd.f32 %v15331_v27, %v217_v14  ;;  %v13705_v54 = vld [vmem:[#allocation2 + $0x3c] sm:$0xf]  ;;  %v6847_v9 = vsel %vm14721_vm2, %v11529_v0, %v6846_v47  ;;  %v5195_v44 = vld [vmem:[#allocation2 + $0x188] sm:$0x1]  ;;  %v6860_v1 = vrot.slane %v5197_v24, 5 }
 0x1d9   :  { %12606 = vmatpush3.bf16.msra.mxu1 %v4073_v30  ;;  %12545 = vmatprep.mubr.msk.bf16.mxu1 %vm2617_vm11, %v11212_v63  ;;  %v6848_v30 = vrot.slane %v6846_v47, 4  ;;  %v5194_v63 = vld [vmem:[#allocation2 + $0x184] sm:$0xf]  ;;  %v289_v8 = vadd.f32 %v15331_v27, %v218_v29  ;;  %v11215_v27 = vcombine.low %v13705_v54, %v15564_v12  ;;  %v6550_v40 = vld [vmem:[#allocation2 + $0x18c] sm:$0xe]  ;;  %v1486_v47 = vsel %vm13981_vm6, 0, %v1485_v41 }
 0x1da   :  { %13584 = vmatprep.subr.msk.bf16.mxu1 %vm2714_vm0, %v15529_v36  ;;  %12853 = vmatprep.mubr.msk.bf16.mxu0 %vm2617_vm11, %v11558_v62  ;;  %v6843_v56 = vsel %vm14721_vm2, %v6841_v25, %v6842_v38  ;;  %v352_v62 = vmax.f32 %v288_v4, 0.0  ;;  %v6853_v11 = vrot.slane %v5194_v63, 5  ;;  %v15572_v42 = vld [vmem:[#allocation2 + $0x4c] sm:$0xf]  ;;  %v13707_v34 = vld [vmem:[#allocation2 + $0x48] sm:$0xf] }
 0x1db   :  { %v353_v31 = vmax.f32 %v289_v8, 0.0  ;;  %v6850_v48 = vsel %vm14721_vm2, %v6848_v30, %v6849_v17  ;;  %v11216_v49 = vcombine.low %v13707_v34, %v15572_v42  ;;  %v11561_v59 = vcombine.low %v6840_v23, %v6843_v56  ;;  %v5198_v28 = vld [vmem:[#allocation2 + $0x194] sm:$0x1]  ;;  %1487 = vst [vmem:[#allocation2 + $0xcc] sm:$0x1] %v1486_v47 }
 0x1dc   :  { %v11951_v50 = vpack.c.bf16 %v352_v62, %v352_v62  ;;  %v11562_v43 = vcombine.low %v6847_v9, %v6850_v48  ;;  %v6855_v25 = vrot.slane %v6853_v11, 4  ;;  %v6856_v38 = vrot.slane %v5195_v44, 5  ;;  %v1413_v17 = vld [vmem:[#allocation2 + $0x198] sm:$0xf]  ;;  %v1417_v63 = vld [vmem:[#allocation2 + $0x1a0] sm:$0x1] }
 0x1dd   :  { %v11531_v14 = vrot.slane %v6550_v40, 9  ;;  %v6862_v29 = vrot.slane %v6860_v1, 4  ;;  %v15580_v56 = vld [vmem:[#allocation2 + $0x58] sm:$0xf]  ;;  %v13709_v18 = vld [vmem:[#allocation2 + $0x54] sm:$0xf]  ;;  %v11219_v34 = vcombine.low %v13713_v16, %v15606_v2 }
 0x1de   :  { %v1077_v21 = vshrl.u32 %v11951_v50, 16  ;;  %v11217_v62 = vcombine.low %v13709_v18, %v15580_v56  ;;  %v6857_v41 = vsel %vm14721_vm2, %v6855_v25, %v6856_v38  ;;  %v15598_v40 = vld [vmem:[#allocation2 + $0x64] sm:$0xf]  ;;  %v13721_v18 = vld [vmem:[#allocation2 + $0x9c] sm:$0xf] }
 0x1df   :  { %v6861_v54 = vsel %vm14721_vm2, %v11531_v14, %v6860_v1  ;;  %v13717_v25 = vld [vmem:[#allocation2 + $0x84] sm:$0xf]  ;;  %v13725_v16 = vld [vmem:[#allocation2 + $0xb4] sm:$0xf] }
 0x1e0   :  { %12546 = vmatmul.mubr.msk.bf16.gmra.mrb[4].mxu1 %vm2617_vm11, %v11213_v55  ;;  %12854 = vmatmul.mubr.msk.bf16.gmra.mrb[48].mxu0 %vm2617_vm11, %v11559_v13  ;;  %v11952_v55 = vpack.c.bf16 %v353_v31, %v353_v31  ;;  %v1079_v0 = vrot.slane %v1077_v21, 7  ;;  %v6854_v31 = vsel %vm14721_vm2, %v11530_v58, %v6853_v11  ;;  %v13711_v11 = vld [vmem:[#allocation2 + $0x60] sm:$0xf]  ;;  %v15609_v58 = vld [vmem:[#allocation2 + $0x7c] sm:$0xf] }
 0x1e1   :  { %12549 = vmatprep.mubr.msk.bf16.mxu1 %vm2617_vm11, %v11214_v7  ;;  %12857 = vmatprep.mubr.msk.bf16.mxu0 %vm2617_vm11, %v11560_v10  ;;  %v1080_v7 = vshll.u32 %v11951_v50, 16  ;;  %v6863_v10 = vrot.slane %v5198_v28, 5  ;;  %v11218_v50 = vcombine.low %v13711_v11, %v15598_v40  ;;  %v11563_v1 = vcombine.low %v6854_v31, %v6857_v41  ;;  %v15633_v31 = vld [vmem:[#allocation2 + $0xac] sm:$0xf]  ;;  %v13723_v41 = vld [vmem:[#allocation2 + $0xa8] sm:$0xf] }
 0x1e2   :  { %v1085_v13 = vshrl.u32 %v11952_v55, 16  ;;  %v1088_v45 = vshll.u32 %v11952_v55, 16  ;;  %v1083_v8 = vrot.slane %v1079_v0, 4  ;;  %v3726_v15 = vrot.slane %v15609_v58, 5 }
 0x1e3   :  { %v1082_v4 = vor.u32 %v1080_v7, %v1079_v0 }
 0x1e4   :  { %v1087_v30 = vrot.slane %v1085_v13, 7 }
 0x1e5   :  { %v1414_v48 = vsel %vm14010_vm10, %v1082_v4, %v1413_v17 }
 0x1e6   :  { %v1090_v24 = vor.u32 %v1088_v45, %v1087_v30  ;;  %v1092_v23 = vrot.slane %v1087_v30, 4  ;;  %1415 = vst [vmem:[#allocation2 + $0x198] sm:$0xf] %v1414_v48  ;;  %v1539_v48 = vld [vmem:[#allocation2 + $0x1a4] sm:$0x1] }
 0x1e7   :  { %v1540_v11 = vsel %vm13981_vm6, 0, %v1539_v48  ;;  %v15688_v48 = vld [vmem:[#allocation2 + $0x124] sm:$0xf] }
 0x1e8   :  { %12550 = vmatmul.mubr.msk.bf16.gmra.mrb[8].mxu1 %vm2617_vm11, %v11215_v27  ;;  %12858 = vmatmul.mubr.msk.bf16.gmra.mrb[52].mxu0 %vm2617_vm11, %v11561_v59  ;;  %v6864_v27 = vsel %vm14721_vm2, %v6862_v29, %v6863_v10  ;;  %v1091_v9 = vsel %vm14017_vm12, %v1083_v8, %v1090_v24  ;;  %v1418_v44 = vsel %vm13981_vm6, %v1092_v23, %v1417_v63  ;;  %v13714_v59 = vld [vmem:[#allocation2 + $0x78] sm:$0xf]  ;;  %v15619_v29 = vld [vmem:[#allocation2 + $0x94] sm:$0xf]  ;;  %v13719_v10 = vld [vmem:[#allocation2 + $0x90] sm:$0xf] }
 0x1e9   :  { %12553 = vmatprep.mubr.msk.bf16.mxu1 %vm2617_vm11, %v11216_v49  ;;  %12861 = vmatprep.mubr.msk.bf16.mxu0 %vm2617_vm11, %v11562_v43  ;;  %1416 = vst.msk [vmem:[#allocation2 + $0x19c] sm:$0xf] %vm1190_vm1, %v1091_v9  ;;  %1419 = vst [vmem:[#allocation2 + $0x1a0] sm:$0x1] %v1418_v44  ;;  %v11564_v55 = vcombine.low %v6861_v54, %v6864_v27  ;;  %v11220_v28 = vcombine.low %v13714_v59, %v15609_v58  ;;  %v15616_v43 = vld [vmem:[#allocation2 + $0x88] sm:$0xf] }
 0x1ea   :  { %v11221_v38 = vcombine.low %v13717_v25, %v15616_v43  ;;  %v11222_v0 = vcombine.low %v13719_v10, %v15619_v29  ;;  %v13592_v8 = vld [vmem:[#allocation2 + $0x18] sm:$0xff]   ;;  %v15629_v23 = vld [vmem:[#allocation2 + $0xa0] sm:$0xf]  ;;  %v11224_v54 = vcombine.low %v13723_v41, %v15633_v31  ;;  %v13593_v44 = vld [vmem:[#allocation2 + $0x24] sm:$0xff]   ;;  %1541 = vst [vmem:[#allocation2 + $0x1a4] sm:$0x1] %v1540_v11 }
 0x1eb   :  { %v15666_v10 = vld [vmem:[%s17733_s3 + $0x10] sm:$0x3]  ;;  %v5624_v41 = vshrl.u32 %v15422_v22, 16  ;;  %17787 = vst [vmem:[#allocation7_spill] sm:$0xff] %v15688_v48  ;;  %v13760_v58 = vld [vmem:[#allocation2 + $0x74] sm:$0x1] }
 0x1ed   :  { %v6551_v7 = vld [vmem:[#allocation2 + $0x198] sm:$0xe]  ;;  %v1536_v27 = vld [vmem:[#allocation2 + $0x198] sm:$0x1] }
 0x1ee   :  { %v11532_v45 = vrot.slane %v6551_v7, 9  ;;  %v1537_v9 = vsel %vm13981_vm6, 0, %v1536_v27  ;;  %v13737_v27 = vld [vmem:[#allocation2 + $0x114] sm:$0xf] }
 0x1ef   :  { %1538 = vst [vmem:[#allocation2 + $0x198] sm:$0x1] %v1537_v9 }
 0x1f0   :  { %12554 = vmatmul.mubr.msk.bf16.gmra.mrb[12].mxu1 %vm2617_vm11, %v11217_v62  ;;  %12862 = vmatmul.mubr.msk.bf16.gmra.mrb[56].mxu0 %vm2617_vm11, %v11563_v1  ;;  %v1645_v49 = vld [vmem:[#allocation2 + $0x1a0] sm:$0x1]  ;;  %v5200_v21 = vld [vmem:[#allocation2 + $0x19c] sm:$0xf]  ;;  %v11223_v62 = vcombine.low %v13721_v18, %v15629_v23  ;;  %v9160_v1 = vsel %vm2714_vm0, %v15290_v57, 0 }
 0x1f1   :  { %12557 = vmatprep.mubr.msk.bf16.mxu1 %vm2617_vm11, %v11218_v50  ;;  %12865 = vmatprep.mubr.msk.bf16.mxu0 %vm2617_vm11, %v11564_v55  ;;  %v1646_v47 = vsel %vm13970_vm5, 0, %v1645_v49  ;;  %v6867_v13 = vrot.slane %v5200_v21, 5  ;;  %v13594_v50 = vld [vmem:[#allocation2 + $0x30] sm:$0xff]   ;;  %v15645_v55 = vld [vmem:[#allocation2 + $0xb8] sm:$0xf] }
 0x1f2   :  { %1647 = vst [vmem:[#allocation2 + $0x1a0] sm:$0x1] %v1646_v47  ;;  %v13727_v49 = vld [vmem:[#allocation2 + $0xd8] sm:$0xf]  ;;  %v13596_v47 = vld [vmem:[#allocation2 + $0x48] sm:$0xff]  }
 0x1f3   :  { %v6869_v14 = vrot.slane %v6867_v13, 4  ;;  %v6868_v17 = vsel %vm14721_vm2, %v11532_v45, %v6867_v13  ;;  %v11226_v59 = vcombine.low %v13727_v49, %v15649_v19  ;;  %v15655_v57 = vld [vmem:[#allocation2 + $0xe8] sm:$0xf]  ;;  %v13729_v21 = vld [vmem:[#allocation2 + $0xe4] sm:$0xf]  ;;  %v13600_v18 = vld [vmem:[#allocation2 + $0x78] sm:$0xff]  }
 0x1f4   :  { %v11227_v7 = vcombine.low %v13729_v21, %v15655_v57  ;;  %v15659_v13 = vld [vmem:[#allocation2 + $0xf4] sm:$0xf]  ;;  %v13731_v45 = vld [vmem:[#allocation2 + $0xf0] sm:$0xf]  ;;  %v3555_v49 = vld [vmem:[#allocation2] sm:$0xe] }
 0x1f5   :  { %v11228_v25 = vcombine.low %v13731_v45, %v15659_v13  ;;  %v5630_v45 = vshll.u32 %v15433_v6, 16 }
 0x1f8   :  { %12558 = vmatmul.mubr.msk.bf16.gmra.mrb[16].mxu1 %vm2617_vm11, %v11219_v34  ;;  %v11225_v34 = vcombine.low %v13725_v16, %v15645_v55  ;;  %v13601_v16 = vld [vmem:[#allocation2 + $0x84] sm:$0xff]  }
 0x1f9   :  { %12561 = vmatprep.mubr.msk.bf16.mxu1 %vm2617_vm11, %v11220_v28  ;;  %v5201_v30 = vld [vmem:[#allocation2 + $0x1a0] sm:$0x1] }
 0x1fa   :  { %v6870_v63 = vrot.slane %v5201_v30, 5  ;;  %v13595_v28 = vld [vmem:[#allocation2 + $0x3c] sm:$0xff]  }
 0x1fb   :  { %v13733_v30 = vld [vmem:[#allocation2 + $0xfc] sm:$0xf] }
 0x1fc   :  { %v6871_v4 = vsel %vm14721_vm2, %v6869_v14, %v6870_v63  ;;  %v13598_v14 = vld [vmem:[#allocation2 + $0x60] sm:$0xff]   ;;  %v15676_v63 = vld [vmem:[#allocation2 + $0x10c] sm:$0xf] }
 0x1fd   :  { %v11565_v24 = vcombine.low %v6868_v17, %v6871_v4  ;;  %17785 = vst [vmem:[#allocation5_spill] sm:$0xff] %v15676_v63  ;;  %v13735_v4 = vld [vmem:[#allocation2 + $0x108] sm:$0xf] }
 0x1ff   :  { %12866 = vmatmul.mubr.msk.bf16.gmra.mrb[60].mxu0 %vm2617_vm11, %v11565_v24  ;;  %v13599_v24 = vld [vmem:[#allocation2 + $0x6c] sm:$0xff]  }
 0x200   :  { %12562 = vmatmul.mubr.msk.bf16.gmra.mrb[20].mxu1 %vm2617_vm11, %v11221_v38  ;;  %12871 = vmatprep.mubr.msk.bf16.mxu0 %vm2617_vm11, %v13592_v8  ;;  %v13597_v38 = vld [vmem:[#allocation2 + $0x54] sm:$0xff]   ;;  %v11230_v8 = vcombine.low %v13735_v4, %v15676_v63  ;;  %v15704_v4 = vld [vmem:[#allocation2 + $0x13c] sm:$0xf]  ;;  %v3722_v63 = vrot.slane %v13760_v58, 5  ;;  %v3740_v58 = vrot.slane %v15619_v29, 5 }
 0x201   :  { %12565 = vmatprep.mubr.msk.bf16.mxu1 %vm2617_vm11, %v11222_v0  ;;  %v15672_v0 = vld [vmem:[#allocation2 + $0x100] sm:$0xf]  ;;  %17790 = vst [vmem:[#allocation10_spill] sm:$0xff] %v15704_v4 }
 0x202   :  { %v11229_v17 = vcombine.low %v13733_v30, %v15672_v0  ;;  %v13743_v30 = vld [vmem:[#allocation2 + $0x12c] sm:$0xf] }
 0x207   :  { %12872 = vmatmul.mubr.msk.bf16.vlgmr.msra.gmra.mrb[0].mxu0 %vm2617_vm11, %v13593_v44  ;;  %v13739_v44 = vld [vmem:[#allocation2 + $0x120] sm:$0xf] }
 0x208   :  { %12566 = vmatmul.mubr.msk.bf16.gmra.mrb[24].mxu1 %vm2617_vm11, %v11223_v62  ;;  %12936 = vmatpush3.bf16.msra.mxu0 %v9160_v1  ;;  %v5620_v62 = vshll.u32 %v15422_v22, 16  ;;  %v11232_v11 = vcombine.low %v13739_v44, %v15688_v48  ;;  %v5626_v1 = vrot.slane %v5624_v41, 4  ;;  %v13602_v22 = vld [vmem:[#allocation2 + $0x90] sm:$0xff]   ;;  %v3670_v41 = vrot.slane %v15522_v51, 5  ;;  %v15712_v44 = vld [vmem:[#allocation2 + $0x148] sm:$0xf] }
 0x209   :  { %12569 = vmatprep.mubr.msk.bf16.mxu1 %vm2617_vm11, %v11224_v54  ;;  %12875 = vmatprep.mubr.msk.bf16.mxu0 %vm2617_vm11, %v13594_v50  ;;  %v15684_v54 = vld [vmem:[#allocation2 + $0x118] sm:$0xf]  ;;  %17793 = vst [vmem:[#allocation13_spill] sm:$0xff] %v15712_v44  ;;  %v3564_v48 = vld [vmem:[#allocation2 + $0x6c] sm:$0xe] }
 0x20a   :  { %13590 = vmatprep.subr.msk.bf16.mxu0 %vm2714_vm0, %v15666_v10  ;;  %17786 = vst [vmem:[#allocation6_spill] sm:$0xff] %v15684_v54  ;;  %v11231_v9 = vcombine.low %v13737_v27, %v15684_v54  ;;  %v15691_v50 = vrot.slane %v5620_v62, 5  ;;  %v3557_v62 = vld [vmem:[#allocation2 + $0x18] sm:$0xe] }
 0x20c   :  { %17788 = vst [vmem:[#allocation8_spill] sm:$0xff] %v15691_v50 }
 0x20f   :  { %12876 = vmatmul.mubr.msk.bf16.gmra.mrb[4].mxu0 %vm2617_vm11, %v13595_v28  ;;  %v3556_v28 = vld [vmem:[#allocation2 + $0xc] sm:$0xe] }
 0x210   :  { %12570 = vmatmul.mubr.msk.bf16.gmra.mrb[28].mxu1 %vm2617_vm11, %v11225_v34  ;;  %12879 = vmatprep.mubr.msk.bf16.mxu0 %vm2617_vm11, %v13596_v47  ;;  %v3663_v34 = vrot.slane %v15511_v46, 5  ;;  %v13740_v47 = vld [vmem:[#allocation2 + $0x8] sm:$0x1] }
 0x211   :  { %12573 = vmatprep.mubr.msk.bf16.mxu1 %vm2617_vm11, %v11226_v59  ;;  %v3656_v59 = vrot.slane %v15495_v35, 5  ;;  %v3659_v21 = vrot.slane %v13740_v47, 5  ;;  %v11275_v35 = vrot.slane %v3556_v28, 9  ;;  %v13604_v47 = vld [vmem:[#allocation2 + $0xa8] sm:$0xff]  }
 0x212   :  { %v3665_v6 = vrot.slane %v3663_v34, 4 }
 0x217   :  { %12880 = vmatmul.mubr.msk.bf16.gmra.mrb[8].mxu0 %vm2617_vm11, %v13597_v38 }
 0x218   :  { %12574 = vmatmul.mubr.msk.bf16.gmra.mrb[32].mxu1 %vm2617_vm11, %v11227_v7  ;;  %12883 = vmatprep.mubr.msk.bf16.mxu0 %vm2617_vm11, %v13598_v14  ;;  %v5627_v7 = vor.u32 %v5626_v1, %v15691_v50  ;;  %v15700_v14 = vld [vmem:[#allocation2 + $0x130] sm:$0xf]  ;;  %v3680_v50 = vrot.slane %v13754_v3, 5 }
 0x219   :  { %12577 = vmatprep.mubr.msk.bf16.mxu1 %vm2617_vm11, %v11228_v25  ;;  %v13741_v25 = vld [vmem:[#allocation2 + $0x14] sm:$0x1]  ;;  %17789 = vst [vmem:[#allocation9_spill] sm:$0xff] %v15700_v14  ;;  %v11233_v46 = vcombine.low %v13743_v30, %v15700_v14 }
 0x21a   :  { %v3666_v38 = vrot.slane %v13741_v25, 5  ;;  %v15708_v27 = vrot.slane %v5627_v7, 4  ;;  %v15725_v7 = vsel %vm14721_vm2, %v11275_v35, %v3663_v34  ;;  %v3558_v25 = vld [vmem:[#allocation2 + $0x24] sm:$0xe]  ;;  %v15738_v34 = vld [vmem:[#allocation2 + $0x15c] sm:$0xf] }
 0x21b   :  { %v3684_v35 = vrot.slane %v15550_v53, 5 }
 0x21c   :  { %17791 = vst [vmem:[#allocation11_spill] sm:$0xff] %v15708_v27 }
 0x21f   :  { %12884 = vmatmul.mubr.msk.bf16.gmra.mrb[12].mxu0 %vm2617_vm11, %v13599_v24 }
 0x220   :  { %12578 = vmatmul.mubr.msk.bf16.gmra.mrb[36].mxu1 %vm2617_vm11, %v11229_v17  ;;  %12887 = vmatprep.mubr.msk.bf16.mxu0 %vm2617_vm11, %v13600_v18  ;;  %v11274_v17 = vrot.slane %v3555_v49, 9  ;;  %v3658_v18 = vrot.slane %v3656_v59, 4  ;;  %v13749_v49 = vld [vmem:[#allocation2 + $0x150] sm:$0xf] }
 0x221   :  { %12581 = vmatprep.mubr.msk.bf16.mxu1 %vm2617_vm11, %v11230_v8  ;;  %v13745_v8 = vld [vmem:[#allocation2 + $0x138] sm:$0xf] }
 0x222   :  { %v11234_v24 = vcombine.low %v13745_v8, %v15704_v4  ;;  %v15721_v51 = vsel %vm14721_vm2, %v11274_v17, %v3656_v59  ;;  %v15730_v30 = vsel %vm14721_vm2, %v3658_v18, %v3659_v21  ;;  %v3672_v8 = vrot.slane %v3670_v41, 4  ;;  %v3559_v17 = vld [vmem:[#allocation2 + $0x30] sm:$0xe] }
 0x223   :  { %v3677_v18 = vrot.slane %v15542_v37, 5  ;;  %v15762_v37 = vsel %vm2714_vm0, %v15529_v36, 0  ;;  %v3698_v21 = vrot.slane %v15572_v42, 5  ;;  %v13755_v36 = vld [vmem:[#allocation2 + $0x38] sm:$0x1]  ;;  %v13606_v42 = vld [vmem:[#allocation2 + $0xc0] sm:$0xff]  }
 0x224   :  { %v3687_v27 = vrot.slane %v13755_v36, 5  ;;  %v3719_v4 = vrot.slane %v15606_v2, 5 }
 0x226   :  { %v3721_v54 = vrot.slane %v3719_v4, 4 }
 0x227   :  { %12888 = vmatmul.mubr.msk.bf16.gmra.mrb[16].mxu0 %vm2617_vm11, %v13601_v16  ;;  %v13603_v16 = vld [vmem:[#allocation2 + $0x9c] sm:$0xff]  }
 0x228   :  { %12582 = vmatmul.mubr.msk.bf16.gmra.mrb[40].mxu1 %vm2617_vm11, %v11231_v9  ;;  %12891 = vmatprep.mubr.msk.bf16.mxu0 %vm2617_vm11, %v13602_v22  ;;  %v15710_v9 = vrot.slane %v5630_v45, 5  ;;  %v15716_v22 = vld [vmem:[#allocation2 + $0x154] sm:$0xf]  ;;  %v11276_v45 = vrot.slane %v3557_v62, 9 }
 0x229   :  { %12585 = vmatprep.mubr.msk.bf16.mxu1 %vm2617_vm11, %v11232_v11  ;;  %v13747_v11 = vld [vmem:[#allocation2 + $0x144] sm:$0xf]  ;;  %17794 = vst [vmem:[#allocation14_spill] sm:$0xff] %v15716_v22  ;;  %v11236_v28 = vcombine.low %v13749_v49, %v15716_v22  ;;  %v15736_v49 = vld [vmem:[#allocation2 + $0x160] sm:$0xf]  ;;  %v13605_v22 = vld [vmem:[#allocation2 + $0xb4] sm:$0xff]  }
 0x22a   :  { %17792 = vst [vmem:[#allocation12_spill] sm:$0xff] %v15710_v9  ;;  %v11235_v1 = vcombine.low %v13747_v11, %v15712_v44  ;;  %v13750_v11 = vld [vmem:[#allocation2 + $0x20] sm:$0x1]  ;;  %17795 = vst [vmem:[#allocation15_spill] sm:$0xff] %v15736_v49  ;;  %v15766_v62 = vsel %vm14721_vm2, %v11276_v45, %v3670_v41  ;;  %v3705_v9 = vrot.slane %v15580_v56, 5  ;;  %v3686_v45 = vrot.slane %v3684_v35, 4 }
 0x22b   :  { %v3673_v59 = vrot.slane %v13750_v11, 5  ;;  %v11277_v11 = vrot.slane %v3558_v25, 9  ;;  %v3561_v25 = vld [vmem:[#allocation2 + $0x48] sm:$0xe]  ;;  %v3563_v44 = vld [vmem:[#allocation2 + $0x60] sm:$0xe] }
 0x22c   :  { %v11280_v36 = vrot.slane %v3561_v25, 9  ;;  %v3712_v56 = vrot.slane %v15598_v40, 5  ;;  %v15795_v40 = vsel %vm14721_vm2, %v3686_v45, %v3687_v27 }
 0x22d   :  { %v15770_v53 = vsel %vm14721_vm2, %v3672_v8, %v3673_v59  ;;  %v15777_v41 = vsel %vm14721_vm2, %v11277_v11, %v3677_v18  ;;  %v13756_v59 = vld [vmem:[#allocation2 + $0x44] sm:$0x1]  ;;  %v3700_v11 = vrot.slane %v3698_v21, 4 }
 0x22f   :  { %12892 = vmatmul.mubr.msk.bf16.gmra.mrb[20].mxu0 %vm2617_vm11, %v13603_v16  ;;  %v11278_v16 = vrot.slane %v3559_v17, 9  ;;  %v3562_v17 = vld [vmem:[#allocation2 + $0x54] sm:$0xe] }
 0x230   :  { %12586 = vmatmul.mubr.msk.bf16.gmra.mrb[44].mxu1 %vm2617_vm11, %v11233_v46  ;;  %v15734_v46 = vsel %vm14721_vm2, %v3665_v6, %v3666_v38  ;;  %12895 = vmatprep.mubr.msk.bf16.mxu0 %vm2617_vm11, %v13604_v47  ;;  %v3560_v6 = vld [vmem:[#allocation2 + $0x3c] sm:$0xe]  ;;  %v3691_v47 = vrot.slane %v15564_v12, 5  ;;  %v3679_v38 = vrot.slane %v3677_v18, 4  ;;  %v3694_v12 = vrot.slane %v13756_v59, 5 }
 0x231   :  { %12589 = vmatprep.mubr.msk.bf16.mxu1 %vm2617_vm11, %v11234_v24  ;;  %v15742_v24 = vld [vmem:[#allocation2 + $0x16c] sm:$0xf]  ;;  %v11279_v8 = vrot.slane %v3560_v6, 9  ;;  %v15782_v3 = vsel %vm14721_vm2, %v11278_v16, %v3684_v35  ;;  %v13757_v6 = vld [vmem:[#allocation2 + $0x50] sm:$0x1]  ;;  %v11281_v59 = vrot.slane %v3562_v17, 9 }
 0x232   :  { %v3693_v18 = vrot.slane %v3691_v47, 4  ;;  %v3701_v14 = vrot.slane %v13757_v6, 5  ;;  %v3707_v35 = vrot.slane %v3705_v9, 4  ;;  %v13758_v16 = vld [vmem:[#allocation2 + $0x5c] sm:$0x1] }
 0x233   :  { %v3708_v25 = vrot.slane %v13758_v16, 5  ;;  %v15799_v2 = vsel %vm14721_vm2, %v11279_v8, %v3691_v47  ;;  %v13759_v17 = vld [vmem:[#allocation2 + $0x68] sm:$0x1]  ;;  %v11283_v16 = vrot.slane %v3564_v48, 9  ;;  %v15808_v47 = vsel %vm14721_vm2, %v11280_v36, %v3698_v21 }
 0x234   :  { %v3715_v6 = vrot.slane %v13759_v17, 5  ;;  %v15804_v27 = vsel %vm14721_vm2, %v3693_v18, %v3694_v12  ;;  %v15816_v45 = vsel %vm14721_vm2, %v11281_v59, %v3705_v9  ;;  %v13761_v12 = vld [vmem:[#allocation2 + $0x80] sm:$0x1]  ;;  %v13607_v17 = vld [vmem:[#allocation2 + $0xcc] sm:$0xff]  }
 0x235   :  { %17797 = vst [vmem:[#allocation17_spill] sm:$0xff] %v15816_v45  ;;  %v15820_v48 = vsel %vm14721_vm2, %v3707_v35, %v3708_v25  ;;  %v3729_v18 = vrot.slane %v13761_v12, 5  ;;  %v13608_v59 = vld [vmem:[#allocation2 + $0xf0] sm:$0xff]   ;;  %v15840_v25 = vsel %vm14721_vm2, %v11283_v16, %v3719_v4  ;;  %v13763_v12 = vld [vmem:[#allocation2 + $0x98] sm:$0x1] }
 0x236   :  { %17798 = vst [vmem:[#allocation18_spill] sm:$0xff] %v15820_v48  ;;  %17802 = vst [vmem:[#allocation21_spill] sm:$0xff] %v15840_v25  ;;  %v13764_v4 = vld [vmem:[#allocation2 + $0xa4] sm:$0x1]  ;;  %v3761_v25 = vrot.slane %v15645_v55, 5  ;;  %v17808_v55 = vcombine.low %v15443_v39, %v15403_v33 }
 0x237   :  { %12896 = vmatmul.mubr.msk.bf16.gmra.mrb[24].mxu0 %vm2617_vm11, %v13605_v22  ;;  %v3566_v22 = vld [vmem:[#allocation2 + $0x84] sm:$0xe]  ;;  %v8103_v33 = vld [vmem:[#allocation2 + $0x20] sm:$0x1] }
 0x238   :  { %12590 = vmatmul.mubr.msk.bf16.gmra.mrb[48].mxu1 %vm2617_vm11, %v11235_v1  ;;  %v15789_v1 = vsel %vm14721_vm2, %v3679_v38, %v3680_v50  ;;  %v3565_v50 = vld [vmem:[#allocation2 + $0x78] sm:$0xe]  ;;  %12899 = vmatprep.mubr.msk.bf16.mxu0 %vm2617_vm11, %v13606_v42  ;;  %v3714_v38 = vrot.slane %v3712_v56, 4  ;;  %v3728_v42 = vrot.slane %v3726_v15, 4  ;;  %v11285_v9 = vrot.slane %v3566_v22, 9 }
 0x239   :  { %12593 = vmatprep.mubr.msk.bf16.mxu1 %vm2617_vm11, %v11236_v28  ;;  %v11282_v28 = vrot.slane %v3563_v44, 9  ;;  %v15812_v44 = vsel %vm14721_vm2, %v3700_v11, %v3701_v14  ;;  %v11284_v8 = vrot.slane %v3565_v50, 9  ;;  %v17800_v11 = vcombine.low %v15738_v34, %v15736_v49  ;;  %v8104_v22 = vld [vmem:[#allocation2 + $0x24] sm:$0xf] }
 0x23a   :  { %17796 = vst [vmem:[#allocation16_spill] sm:$0xff] %v15812_v44  ;;  %v15836_v35 = vsel %vm14721_vm2, %v3714_v38, %v3715_v6  ;;  %v15844_v50 = vsel %vm14721_vm2, %v3721_v54, %v3722_v63  ;;  %v17804_v34 = vcombine.low %v15366_v32, %v15742_v24  ;;  %v3567_v54 = vld [vmem:[#allocation2 + $0x90] sm:$0xe]  ;;  %v8101_v38 = vld [vmem:[#allocation2 + $0x18] sm:$0xf]  ;;  %v15865_v32 = vsel %vm14721_vm2, %v3728_v42, %v3729_v18 }
 0x23b   :  { %v15828_v36 = vsel %vm14721_vm2, %v11282_v28, %v3712_v56  ;;  %17801 = vst [vmem:[#allocation20_spill] sm:$0xff] %v15836_v35  ;;  %17803 = vst [vmem:[#allocation22_spill] sm:$0xff] %v15844_v50  ;;  %v3733_v56 = vrot.slane %v15616_v43, 5  ;;  %v15861_v43 = vsel %vm14721_vm2, %v11284_v8, %v3726_v15  ;;  %v13762_v24 = vld [vmem:[#allocation2 + $0x8c] sm:$0x1]  ;;  %v3747_v42 = vrot.slane %v15629_v23, 5 }
 0x23c   :  { %17799 = vst [vmem:[#allocation19_spill] sm:$0xff] %v15828_v36  ;;  %17805 = vst [vmem:[#allocation23_spill] sm:$0xff] %v15861_v43  ;;  %v3736_v16 = vrot.slane %v13762_v24, 5  ;;  %v3568_v8 = vld [vmem:[#allocation2 + $0x9c] sm:$0xe]  ;;  %v11286_v29 = vrot.slane %v3567_v54, 9 }
 0x23d   :  { %17806 = vst [vmem:[#allocation24_spill] sm:$0xff] %v15865_v32  ;;  %v15875_v15 = vsel %vm14721_vm2, %v11285_v9, %v3733_v56  ;;  %v8102_v18 = vld [vmem:[#allocation2 + $0x1c] sm:$0xf]  ;;  %v8201_v24 = vshll.u32 %v8101_v38, 16  ;;  %v3743_v63 = vrot.slane %v13763_v12, 5  ;;  %v3750_v9 = vrot.slane %v13764_v4, 5 }
 0x23e   :  { %v3754_v6 = vrot.slane %v15633_v31, 5  ;;  %v3742_v28 = vrot.slane %v3740_v58, 4  ;;  %v11287_v23 = vrot.slane %v3568_v8, 9  ;;  %v8207_v14 = vshll.u32 %v8102_v18, 16  ;;  %v13765_v50 = vld [vmem:[#allocation2 + $0xb0] sm:$0x1] }
 0x23f   :  { %12900 = vmatmul.mubr.msk.bf16.gmra.mrb[28].mxu0 %vm2617_vm11, %v13607_v17  ;;  %v8198_v17 = vshrl.u32 %v8101_v38, 16  ;;  %v8211_v21 = vshrl.u32 %v8102_v18, 16  ;;  %v3749_v54 = vrot.slane %v3747_v42, 4  ;;  %v3757_v38 = vrot.slane %v13765_v50, 5  ;;  %v3570_v8 = vld [vmem:[#allocation2 + $0xb4] sm:$0xe] }
 0x240   :  { %12594 = vmatmul.mubr.msk.bf16.gmra.mrb[52].mxu1 %vm2617_vm11, %v17800_v11  ;;  %12903 = vmatprep.mubr.msk.bf16.mxu0 %vm2617_vm11, %v13608_v59  ;;  %v3735_v11 = vrot.slane %v3733_v56, 4  ;;  %v13609_v59 = vld [vmem:[#allocation2 + $0xfc] sm:$0xff]   ;;  %v13610_v56 = vld [vmem:[#allocation2 + $0x108] sm:$0xff]   ;;  %v17807_v12 = vcombine.low %v15373_v60, %v15356_v52  ;;  %v15896_v4 = vsel %vm14721_vm2, %v11286_v29, %v3740_v58  ;;  %v3756_v52 = vrot.slane %v3754_v6, 4  ;;  %v13611_v44 = vld [vmem:[#allocation2 + $0x114] sm:$0xff]  }
 0x241   :  { %12597 = vmatprep.mubr.msk.bf16.mxu1 %vm2617_vm11, %v17804_v34  ;;  %v15879_v34 = vld [vmem:[#allocation2 + $0xa8] sm:$0xe]  ;;  %v8200_v18 = vrot.slane %v8198_v17, 4  ;;  %v13766_v60 = vld [vmem:[#allocation2 + $0xbc] sm:$0x1]  ;;  %v15906_v58 = vsel %vm14721_vm2, %v3742_v28, %v3743_v63  ;;  %v15910_v29 = vsel %vm14721_vm2, %v11287_v23, %v3747_v42  ;;  %v15912_v39 = vrot.slane %v8207_v14, 5 }
 0x242   :  { %v11288_v49 = vrot.slane %v15879_v34, 9  ;;  %v15892_v31 = vsel %vm14721_vm2, %v3735_v11, %v3736_v16  ;;  %v8203_v34 = vrot.slane %v8201_v24, 5  ;;  %v3764_v50 = vrot.slane %v13766_v60, 5  ;;  %v3572_v17 = vld [vmem:[#allocation2 + $0xe4] sm:$0xe] }
 0x243   :  { %v3768_v16 = vrot.slane %v15649_v19, 5  ;;  %v3775_v11 = vrot.slane %v15655_v57, 5  ;;  %v8213_v24 = vrot.slane %v8211_v21, 4  ;;  %v3763_v60 = vrot.slane %v3761_v25, 4  ;;  %v8105_v19 = vld [vmem:[#allocation2 + $0x28] sm:$0xf] }
 0x244   :  { %v8222_v32 = vshrl.u32 %v8104_v22, 16  ;;  %v8225_v57 = vshll.u32 %v8104_v22, 16  ;;  %v13767_v63 = vld [vmem:[#allocation2 + $0xe0] sm:$0x1]  ;;  %v13768_v35 = vld [vmem:[#allocation2 + $0xec] sm:$0x1]  ;;  %v8204_v23 = vor.u32 %v8203_v34, %v8200_v18  ;;  %v15918_v21 = vsel %vm14721_vm2, %v3749_v54, %v3750_v9 }
 0x245   :  { %v3771_v43 = vrot.slane %v13767_v63, 5  ;;  %v3778_v42 = vrot.slane %v13768_v35, 5  ;;  %v3770_v36 = vrot.slane %v3768_v16, 4  ;;  %v11291_v48 = vrot.slane %v3572_v17, 9  ;;  %v8106_v54 = vld [vmem:[#allocation2 + $0x2c] sm:$0x1] }
 0x246   :  { %v3777_v14 = vrot.slane %v3775_v11, 4  ;;  %v8217_v45 = vshll.u32 %v8103_v33, 16  ;;  %v8235_v22 = vshrl.u32 %v8105_v19, 16  ;;  %v15927_v35 = vsel %vm14721_vm2, %v3756_v52, %v3757_v38  ;;  %v3573_v63 = vld [vmem:[#allocation2 + $0xf0] sm:$0xe] }
 0x247   :  { %12904 = vmatmul.mubr.msk.bf16.gmra.mrb[32].mxu0 %vm2617_vm11, %v13609_v59  ;;  %v8214_v59 = vor.u32 %v8213_v24, %v15912_v39  ;;  %v15935_v9 = vsel %vm14721_vm2, %v3763_v60, %v3764_v50  ;;  %v17809_v34 = vcombine.low %v15466_v5, %v15441_v26  ;;  %v15945_v38 = vrot.slane %v8204_v23, 4  ;;  %v8108_v60 = vld [vmem:[#allocation2 + $0x34] sm:$0xf]  ;;  %v8110_v23 = vld [vmem:[#allocation2 + $0x3c] sm:$0xf] }
 0x248   :  { %12598 = vmatmul.mubr.msk.bf16.gmra.mrb[56].mxu1 %vm2617_vm11, %v17807_v12  ;;  %v3571_v12 = vld [vmem:[#allocation2 + $0xd8] sm:$0xe]  ;;  %12907 = vmatprep.mubr.msk.bf16.mxu0 %vm2617_vm11, %v13610_v56  ;;  %v15923_v56 = vsel %vm14721_vm2, %v11288_v49, %v3754_v6  ;;  %v13612_v49 = vld [vmem:[#allocation2 + $0x120] sm:$0xff]   ;;  %v8224_v52 = vrot.slane %v8222_v32, 4  ;;  %v17810_v50 = vcombine.low %v15721_v51, %v15730_v30  ;;  %v15953_v26 = vsel %vm14721_vm2, %v3770_v36, %v3771_v43  ;;  %v17837_v36 = vld [vmem:[#allocation19_spill] sm:$0xff] }
 0x249   :  { %12601 = vmatprep.mubr.msk.bf16.mxu1 %vm2617_vm11, %v17808_v55  ;;  %v11289_v55 = vrot.slane %v3570_v8, 9  ;;  %v11290_v28 = vrot.slane %v3571_v12, 9  ;;  %v8231_v8 = vshll.u32 %v8105_v19, 16  ;;  %v8107_v12 = vld [vmem:[#allocation2 + $0x30] sm:$0xf]  ;;  %17811 = vst [vmem:[#allocation25_spill] sm:$0xff] %v15953_v26  ;;  %v15957_v5 = vsel %vm14721_vm2, %v11291_v48, %v3775_v11 }
 0x24a   :  { %17812 = vst [vmem:[#allocation26_spill] sm:$0xff] %v15957_v5  ;;  %v8219_v32 = vrot.slane %v8217_v45, 5  ;;  %v8215_v17 = vrot.slane %v8214_v59, 4  ;;  %v8237_v24 = vrot.slane %v8235_v22, 4  ;;  %v8241_v51 = vshll.u32 %v8106_v54, 16  ;;  %v17838_v30 = vld [vmem:[#allocation20_spill] sm:$0xff] }
 0x24b   :  { %v15931_v18 = vsel %vm14721_vm2, %v11289_v55, %v3761_v25  ;;  %v15943_v6 = vsel %vm14721_vm2, %v11290_v28, %v3768_v16  ;;  %v8227_v25 = vrot.slane %v8225_v57, 5  ;;  %v15961_v16 = vsel %vm14721_vm2, %v3777_v14, %v3778_v42  ;;  %v13613_v14 = vld [vmem:[#allocation2 + $0x12c] sm:$0xff]   ;;  %v13770_v19 = vld [vmem:[#allocation2 + $0x104] sm:$0x1]  ;;  %v1594_v11 = vld [vmem:[#allocation2 + $0xd4] sm:$0x1] }
 0x24c   :  { %17813 = vst [vmem:[#allocation27_spill] sm:$0xff] %v15961_v16  ;;  %v15963_v33 = vrot.slane %v8231_v8, 5  ;;  %v8246_v48 = vshrl.u32 %v8107_v12, 16  ;;  %v8249_v43 = vshll.u32 %v8107_v12, 16  ;;  %v8210_v28 = vsel %vm14024_vm13, %v15945_v38, %v15912_v39  ;;  %v13614_v38 = vld [vmem:[#allocation2 + $0x138] sm:$0xff]   ;;  %v13623_v26 = vld [vmem:[#allocation2 + $0x1a4] sm:$0xff]  }
 0x24d   :  { %v3782_v42 = vrot.slane %v15659_v13, 5  ;;  %v8220_v59 = vsel %vm14024_vm13, %v8215_v17, %v8219_v32  ;;  %v15989_v22 = vrot.slane %v8241_v51, 5  ;;  %v3789_v54 = vrot.slane %v15672_v0, 5 }
 0x24e   :  { %v8238_v8 = vor.u32 %v8237_v24, %v15963_v33  ;;  %v8255_v12 = vshll.u32 %v8108_v60, 16  ;;  %v8259_v39 = vshrl.u32 %v8108_v60, 16  ;;  %v17814_v13 = vcombine.low %v15725_v7, %v15734_v46 }
 0x24f   :  { %12908 = vmatmul.mubr.msk.bf16.gmra.mrb[36].mxu0 %vm2617_vm11, %v13611_v44  ;;  %v8228_v44 = vor.u32 %v8227_v25, %v8224_v52  ;;  %v8248_v52 = vrot.slane %v8246_v48, 4  ;;  %v8251_v25 = vrot.slane %v8249_v43, 5  ;;  %v11292_v32 = vrot.slane %v3573_v63, 9  ;;  %v13769_v48 = vld [vmem:[#allocation2 + $0xf8] sm:$0x1] }
 0x250   :  { %12602 = vmatmul.mubr.msk.bf16.gmra.mrb[60].mxu1 %vm2617_vm11, %v17809_v34  ;;  %12911 = vmatprep.mubr.msk.bf16.mxu0 %vm2617_vm11, %v13612_v49  ;;  %v8111_v34 = vld [vmem:[#allocation2 + $0x40] sm:$0xf]  ;;  %v3574_v49 = vld [vmem:[#allocation2 + $0xfc] sm:$0xe]  ;;  %v8270_v17 = vshrl.u32 %v8110_v23, 16  ;;  %v8273_v24 = vshll.u32 %v8110_v23, 16  ;;  %v17815_v0 = vcombine.low %v15766_v62, %v15770_v53  ;;  %v16006_v62 = vcombine.low %v8210_v28, %v8220_v59 }
 0x251   :  { %12607 = vmatprep.mubr.msk.bf16.mxu1 %vm2617_vm11, %v17810_v50  ;;  %v8229_v50 = vrot.slane %v8228_v44, 4  ;;  %v3784_v51 = vrot.slane %v3782_v42, 4  ;;  %v3785_v43 = vrot.slane %v13769_v48, 5  ;;  %v8279_v60 = vshll.u32 %v8111_v34, 16  ;;  %v13771_v63 = vld [vmem:[%s17733_s3 + $0x8] sm:$0x3] }
 0x252   :  { %v8283_v57 = vshrl.u32 %v8111_v34, 16  ;;  %v8239_v7 = vrot.slane %v8238_v8, 4  ;;  %v11293_v46 = vrot.slane %v3574_v49, 9  ;;  %v3792_v44 = vrot.slane %v13770_v19, 5  ;;  %v13773_v48 = vld [vmem:[#allocation2 + $0x11c] sm:$0x1] }
 0x253   :  { %v8252_v53 = vor.u32 %v8251_v25, %v8248_v52  ;;  %v16008_v23 = vrot.slane %v8255_v12, 5  ;;  %v8261_v34 = vrot.slane %v8259_v39, 4  ;;  %v8234_v19 = vsel %vm14024_vm13, %v8229_v50, %v15963_v33  ;;  %v8112_v52 = vld [vmem:[#allocation2 + $0x44] sm:$0x1] }
 0x254   :  { %v16016_v8 = vsel %vm2714_vm0, %v15666_v10, 0  ;;  %v8272_v49 = vrot.slane %v8270_v17, 4  ;;  %v16020_v28 = vsel %vm14721_vm2, %v11292_v32, %v3782_v42  ;;  %v16024_v59 = vsel %vm14721_vm2, %v3784_v51, %v3785_v43  ;;  %v13615_v50 = vld [vmem:[#allocation2 + $0x144] sm:$0xff]  }
 0x255   :  { %17816 = vst [vmem:[#allocation28_spill] sm:$0xff] %v16020_v28  ;;  %17817 = vst [vmem:[#allocation29_spill] sm:$0xff] %v16024_v59  ;;  %v16026_v25 = vrot.slane %v8279_v60, 5  ;;  %v8285_v12 = vrot.slane %v8283_v57, 4  ;;  %v8244_v10 = vsel %vm14024_vm13, %v8239_v7, %v15989_v22  ;;  %v16033_v33 = vsel %vm14721_vm2, %v11293_v46, %v3789_v54  ;;  %v3575_v57 = vld [vmem:[#allocation2 + $0x108] sm:$0xe] }
 0x256   :  { %17818 = vst [vmem:[#allocation30_spill] sm:$0xff] %v16033_v33  ;;  %v16039_v32 = vrot.slane %v8252_v53, 4  ;;  %v8262_v17 = vor.u32 %v8261_v34, %v16008_v23  ;;  %v17820_v22 = vcombine.low %v15777_v41, %v15789_v1  ;;  %v8289_v60 = vshll.u32 %v8112_v52, 16  ;;  %v17821_v7 = vld [vmem:[#allocation5_spill] sm:$0xff]  ;;  %v8116_v53 = vld [vmem:[#allocation2 + $0x54] sm:$0xf] }
 0x257   :  { %12912 = vmatmul.mubr.msk.bf16.gmra.mrb[40].mxu0 %vm2617_vm11, %v13613_v14  ;;  %v8113_v14 = vld [vmem:[#allocation2 + $0x48] sm:$0xf]  ;;  %v3796_v46 = vrot.slane %v17821_v7, 5  ;;  %v8286_v1 = vor.u32 %v8285_v12, %v16026_v25  ;;  %v3806_v55 = vrot.slane %v13773_v48, 5  ;;  %v17849_v33 = vld [vmem:[#allocation13_spill] sm:$0xff] }
 0x258   :  { %12608 = vmatmul.mubr.msk.bf16.vlgmr.msra.gmra.mrb[0].mxu1 %vm2617_vm11, %v17814_v13  ;;  %v3791_v13 = vrot.slane %v3789_v54, 4  ;;  %12915 = vmatprep.mubr.msk.bf16.mxu0 %vm2617_vm11, %v13614_v38  ;;  %v8114_v38 = vld [vmem:[#allocation2 + $0x4c] sm:$0xf]  ;;  %v8297_v51 = vshll.u32 %v8113_v14, 16  ;;  %v13616_v54 = vld [vmem:[#allocation2 + $0x150] sm:$0xff]   ;;  %v8291_v7 = vrot.slane %v8289_v60, 5 }
 0x259   :  { %12672 = vmatpush3.bf16.msra.mxu1 %v15762_v37  ;;  %12611 = vmatprep.mubr.msk.bf16.mxu1 %vm2617_vm11, %v17815_v0  ;;  %v8109_v37 = vld [vmem:[#allocation2 + $0x38] sm:$0x1]  ;;  %v8275_v0 = vrot.slane %v8273_v24, 5  ;;  %v8294_v24 = vshrl.u32 %v8113_v14, 16  ;;  %v8303_v14 = vshll.u32 %v8114_v38, 16  ;;  %v8307_v52 = vshrl.u32 %v8114_v38, 16 }
 0x25a   :  { %13586 = vmatprep.subr.msk.bf16.mxu1 %vm2714_vm0, %v13771_v63  ;;  %v16037_v42 = vsel %vm14721_vm2, %v3791_v13, %v3792_v44  ;;  %v8265_v39 = vshll.u32 %v8109_v37, 16  ;;  %v17822_v13 = vcombine.low %v15782_v3, %v15795_v40  ;;  %v16053_v44 = vcombine.low %v8234_v19, %v8244_v10  ;;  %v17823_v63 = vld [vmem:[#allocation6_spill] sm:$0xff] }
 0x25b   :  { %17819 = vst [vmem:[#allocation31_spill] sm:$0xff] %v16037_v42  ;;  %v8276_v43 = vor.u32 %v8275_v0, %v8272_v49  ;;  %v3803_v37 = vrot.slane %v17823_v63, 5  ;;  %v11294_v49 = vrot.slane %v3575_v57, 9  ;;  %v3576_v0 = vld [vmem:[#allocation2 + $0x114] sm:$0xe]  ;;  %v8258_v3 = vsel %vm14024_vm13, %v16039_v32, %v16008_v23 }
 0x25c   :  { %v8267_v34 = vrot.slane %v8265_v39, 5  ;;  %v8263_v40 = vrot.slane %v8262_v17, 4  ;;  %v8296_v19 = vrot.slane %v8294_v24, 4  ;;  %v8299_v10 = vrot.slane %v8297_v51, 5  ;;  %v13772_v57 = vld [vmem:[#allocation2 + $0x110] sm:$0x1] }
 0x25d   :  { %v8277_v12 = vrot.slane %v8276_v43, 4  ;;  %v3798_v39 = vrot.slane %v3796_v46, 4  ;;  %v8115_v63 = vld [vmem:[#allocation2 + $0x50] sm:$0x1]  ;;  %v8287_v38 = vrot.slane %v8286_v1, 4  ;;  %v11295_v41 = vrot.slane %v3576_v0, 9 }
 0x25e   :  { %v16065_v45 = vrot.slane %v8303_v14, 5  ;;  %v8309_v23 = vrot.slane %v8307_v52, 4  ;;  %v8318_v32 = vshrl.u32 %v8116_v53, 16  ;;  %v8321_v17 = vshll.u32 %v8116_v53, 16  ;;  %v13617_v24 = vld [vmem:[#allocation2 + $0x15c] sm:$0xff]   ;;  %v13618_v0 = vld [vmem:[#allocation2 + $0x168] sm:$0xff]  }
 0x25f   :  { %12916 = vmatmul.mubr.msk.bf16.gmra.mrb[44].mxu0 %vm2617_vm11, %v13615_v50  ;;  %v3805_v50 = vrot.slane %v3803_v37, 4  ;;  %v8268_v51 = vsel %vm14024_vm13, %v8263_v40, %v8267_v34  ;;  %v17824_v1 = vcombine.low %v15799_v2, %v15804_v27  ;;  %v8282_v48 = vsel %vm14024_vm13, %v8277_v12, %v16026_v25  ;;  %v17827_v40 = vld [vmem:[#allocation16_spill] sm:$0xff]  ;;  %v8119_v12 = vld [vmem:[#allocation2 + $0x60] sm:$0xf] }
 0x260   :  { %12612 = vmatmul.mubr.msk.bf16.gmra.mrb[4].mxu1 %vm2617_vm11, %v17820_v22  ;;  %v8117_v22 = vld [vmem:[#allocation2 + $0x58] sm:$0xf]  ;;  %12919 = vmatprep.mubr.msk.bf16.mxu0 %vm2617_vm11, %v13616_v54  ;;  %v8300_v54 = vor.u32 %v8299_v10, %v8296_v19  ;;  %v16078_v53 = vsel %vm14721_vm2, %v11294_v49, %v3796_v46  ;;  %v8313_v14 = vshll.u32 %v8115_v63, 16  ;;  %v1595_v34 = vsel %vm13970_vm5, 0, %v1594_v11  ;;  %v8118_v11 = vld [vmem:[#allocation2 + $0x5c] sm:$0x1] }
 0x261   :  { %12615 = vmatprep.mubr.msk.bf16.mxu1 %vm2617_vm11, %v17822_v13  ;;  %v3799_v13 = vrot.slane %v13772_v57, 5  ;;  %v8327_v43 = vshll.u32 %v8117_v22, 16  ;;  %v8331_v60 = vshrl.u32 %v8117_v22, 16  ;;  %17825 = vst [vmem:[#allocation5_spill] sm:$0xff] %v16078_v53  ;;  %v17828_v19 = vcombine.low %v15808_v47, %v17827_v40  ;;  %1596 = vst [vmem:[#allocation2 + $0xd4] sm:$0x1] %v1595_v34 }
 0x262   :  { %v8292_v2 = vsel %vm14024_vm13, %v8287_v38, %v8291_v7  ;;  %v16094_v25 = vsel %vm14721_vm2, %v11295_v41, %v3803_v37  ;;  %v16098_v46 = vsel %vm14721_vm2, %v3805_v50, %v3806_v55  ;;  %v16100_v47 = vcombine.low %v8258_v3, %v8268_v51  ;;  %v8120_v7 = vld [vmem:[#allocation2 + $0x64] sm:$0xf]  ;;  %v3577_v37 = vld [vmem:[#allocation2 + $0x120] sm:$0xe]  ;;  %v3578_v38 = vld [vmem:[#allocation2 + $0x12c] sm:$0xe] }
 0x263   :  { %v16090_v27 = vsel %vm14721_vm2, %v3798_v39, %v3799_v13  ;;  %17830 = vst [vmem:[#allocation16_spill] sm:$0xff] %v16094_v25  ;;  %17831 = vst [vmem:[#allocation32_spill] sm:$0xff] %v16098_v46  ;;  %v8310_v49 = vor.u32 %v8309_v23, %v16065_v45  ;;  %v8320_v10 = vrot.slane %v8318_v32, 4  ;;  %v8323_v22 = vrot.slane %v8321_v17, 5  ;;  %v17832_v13 = vld [vmem:[#allocation7_spill] sm:$0xff]  ;;  %v17835_v3 = vld [vmem:[#allocation18_spill] sm:$0xff] }
 0x264   :  { %17829 = vst [vmem:[#allocation6_spill] sm:$0xff] %v16090_v27  ;;  %v8301_v39 = vrot.slane %v8300_v54, 4  ;;  %v16104_v57 = vrot.slane %v8327_v43, 5  ;;  %v8333_v41 = vrot.slane %v8331_v60, 4  ;;  %v3810_v55 = vrot.slane %v17832_v13, 5  ;;  %v17840_v46 = vld [vmem:[#allocation9_spill] sm:$0xff] }
 0x265   :  { %v16108_v63 = vcombine.low %v8282_v48, %v8292_v2  ;;  %v8315_v50 = vrot.slane %v8313_v14, 5  ;;  %v8122_v23 = vld [vmem:[#allocation2 + $0x6c] sm:$0xf]  ;;  %v8342_v32 = vshrl.u32 %v8119_v12, 16  ;;  %v8345_v17 = vshll.u32 %v8119_v12, 16  ;;  %v13620_v48 = vld [vmem:[#allocation2 + $0x180] sm:$0xff]  }
 0x266   :  { %v8355_v51 = vshrl.u32 %v8120_v7, 16  ;;  %v8123_v54 = vld [vmem:[#allocation2 + $0x70] sm:$0xf]  ;;  %v8311_v43 = vrot.slane %v8310_v49, 4  ;;  %v8324_v60 = vor.u32 %v8323_v22, %v8320_v10  ;;  %v11296_v34 = vrot.slane %v3577_v37, 9  ;;  %v17834_v12 = vld [vmem:[#allocation17_spill] sm:$0xff] }
 0x267   :  { %12920 = vmatmul.mubr.msk.bf16.gmra.mrb[48].mxu0 %vm2617_vm11, %v13617_v24  ;;  %17833 = vst [vmem:[#allocation7_spill] sm:$0xff] %v16108_v63  ;;  %v8351_v24 = vshll.u32 %v8120_v7, 16  ;;  %v8306_v40 = vsel %vm14024_vm13, %v8301_v39, %v16065_v45  ;;  %v3812_v2 = vrot.slane %v3810_v55, 4  ;;  %v13774_v14 = vld [vmem:[#allocation2 + $0x128] sm:$0x1]  ;;  %v17836_v7 = vcombine.low %v17834_v12, %v17835_v3  ;;  %v17846_v53 = vld [vmem:[#allocation23_spill] sm:$0xff] }
 0x268   :  { %12616 = vmatmul.mubr.msk.bf16.gmra.mrb[8].mxu1 %vm2617_vm11, %v17824_v1  ;;  %12923 = vmatprep.mubr.msk.bf16.mxu0 %vm2617_vm11, %v13618_v0  ;;  %v8337_v1 = vshll.u32 %v8118_v11, 16  ;;  %v13619_v0 = vld [vmem:[#allocation2 + $0x174] sm:$0xff]   ;;  %v3813_v13 = vrot.slane %v13774_v14, 5  ;;  %v8121_v49 = vld [vmem:[#allocation2 + $0x68] sm:$0x1]  ;;  %v8366_v11 = vshrl.u32 %v8122_v23, 16  ;;  %v17839_v52 = vcombine.low %v17837_v36, %v17838_v30 }
 0x269   :  { %12619 = vmatprep.mubr.msk.bf16.mxu1 %vm2617_vm11, %v17828_v19  ;;  %v8334_v19 = vor.u32 %v8333_v41, %v16104_v57  ;;  %v8369_v10 = vshll.u32 %v8122_v23, 16  ;;  %v8375_v22 = vshll.u32 %v8123_v54, 16  ;;  %v8379_v37 = vshrl.u32 %v8123_v54, 16 }
 0x26a   :  { %v8344_v45 = vrot.slane %v8342_v32, 4  ;;  %v8347_v39 = vrot.slane %v8345_v17, 5  ;;  %v16126_v41 = vrot.slane %v8351_v24, 5  ;;  %v8357_v14 = vrot.slane %v8355_v51, 4  ;;  %v8124_v32 = vld [vmem:[#allocation2 + $0x74] sm:$0x1] }
 0x26b   :  { %v8316_v3 = vsel %vm14024_vm13, %v8311_v43, %v8315_v50  ;;  %v16130_v12 = vrot.slane %v8324_v60, 4  ;;  %v3817_v23 = vrot.slane %v17840_v46, 5  ;;  %v16134_v54 = vrot.slane %v8334_v19, 4  ;;  %v3579_v19 = vld [vmem:[#allocation2 + $0x138] sm:$0xe] }
 0x26c   :  { %v16136_v30 = vrot.slane %v8337_v1, 5  ;;  %v16140_v36 = vsel %vm14721_vm2, %v11296_v34, %v3810_v55  ;;  %v8368_v50 = vrot.slane %v8366_v11, 4  ;;  %v8371_v17 = vrot.slane %v8369_v10, 5  ;;  %v8125_v55 = vld [vmem:[#allocation2 + $0x78] sm:$0xf] }
 0x26d   :  { %v16143_v24 = vrot.slane %v8375_v22, 5  ;;  %v16145_v46 = vcombine.low %v8306_v40, %v8316_v3  ;;  %v16149_v51 = vsel %vm14721_vm2, %v3812_v2, %v3813_v13  ;;  %v8348_v43 = vor.u32 %v8347_v39, %v8344_v45  ;;  %v13621_v2 = vld [vmem:[#allocation2 + $0x18c] sm:$0xff]   ;;  %v8128_v45 = vld [vmem:[#allocation2 + $0x84] sm:$0xf]  ;;  %v17847_v13 = vld [vmem:[#allocation24_spill] sm:$0xff] }
 0x26e   :  { %v8358_v60 = vor.u32 %v8357_v14, %v16126_v41  ;;  %v8385_v10 = vshll.u32 %v8124_v32, 16  ;;  %v17842_v22 = vld [vmem:[#allocation10_spill] sm:$0xff]  ;;  %v17843_v39 = vld [vmem:[#allocation21_spill] sm:$0xff]  ;;  %v8390_v25 = vshrl.u32 %v8125_v55, 16  ;;  %v8393_v27 = vshll.u32 %v8125_v55, 16 }
 0x26f   :  { %12924 = vmatmul.mubr.msk.bf16.gmra.mrb[52].mxu0 %vm2617_vm11, %v13619_v0  ;;  %17841 = vst [vmem:[#allocation17_spill] sm:$0xff] %v16145_v46  ;;  %v3819_v0 = vrot.slane %v3817_v23, 4  ;;  %v17844_v14 = vld [vmem:[#allocation22_spill] sm:$0xff]  ;;  %v3580_v1 = vld [vmem:[#allocation2 + $0x144] sm:$0xe]  ;;  %v8349_v32 = vrot.slane %v8348_v43, 4 }
 0x270   :  { %12620 = vmatmul.mubr.msk.bf16.gmra.mrb[12].mxu1 %vm2617_vm11, %v17836_v7  ;;  %v11297_v7 = vrot.slane %v3578_v38, 9  ;;  %12927 = vmatprep.mubr.msk.bf16.mxu0 %vm2617_vm11, %v13620_v48  ;;  %v8381_v38 = vrot.slane %v8379_v37, 4  ;;  %v13775_v48 = vld [vmem:[#allocation2 + $0x134] sm:$0x1]  ;;  %v3824_v37 = vrot.slane %v17842_v22, 5  ;;  %v17845_v3 = vcombine.low %v17843_v39, %v17844_v14 }
 0x271   :  { %12623 = vmatprep.mubr.msk.bf16.mxu1 %vm2617_vm11, %v17839_v52  ;;  %v8361_v52 = vshll.u32 %v8121_v49, 16  ;;  %v3820_v40 = vrot.slane %v13775_v48, 5  ;;  %v8126_v49 = vld [vmem:[#allocation2 + $0x7c] sm:$0xf]  ;;  %v8359_v22 = vrot.slane %v8358_v60, 4  ;;  %v11298_v42 = vrot.slane %v3579_v19, 9 }
 0x272   :  { %v16158_v34 = vsel %vm14721_vm2, %v11297_v7, %v3817_v23  ;;  %v13622_v7 = vld [vmem:[#allocation2 + $0x198] sm:$0xff]   ;;  %v8372_v23 = vor.u32 %v8371_v17, %v8368_v50  ;;  %v8382_v48 = vor.u32 %v8381_v38, %v16143_v24  ;;  %v3831_v59 = vrot.slane %v17849_v33, 5  ;;  %v13776_v55 = vld [vmem:[#allocation2 + $0x140] sm:$0x1]  ;;  %v13777_v33 = vld [vmem:[#allocation2 + $0x14c] sm:$0x1] }
 0x273   :  { %v16164_v11 = vrot.slane %v8361_v52, 5  ;;  %v17848_v52 = vcombine.low %v17846_v53, %v17847_v13  ;;  %v8399_v39 = vshll.u32 %v8126_v49, 16  ;;  %v8403_v14 = vshrl.u32 %v8126_v49, 16 }
 0x274   :  { %v8414_v28 = vshrl.u32 %v8128_v45, 16  ;;  %v8417_v50 = vshll.u32 %v8128_v45, 16  ;;  %v8387_v17 = vrot.slane %v8385_v10, 5  ;;  %v3826_v38 = vrot.slane %v3824_v37, 4 }
 0x275   :  { %v3827_v16 = vrot.slane %v13776_v55, 5  ;;  %v11299_v5 = vrot.slane %v3580_v1, 9  ;;  %v8373_v53 = vrot.slane %v8372_v23, 4  ;;  %v8383_v43 = vrot.slane %v8382_v48, 4  ;;  %v8127_v23 = vld [vmem:[#allocation2 + $0x80] sm:$0x1] }
 0x276   :  { %v8392_v60 = vrot.slane %v8390_v25, 4  ;;  %v8395_v19 = vrot.slane %v8393_v27, 5  ;;  %v3833_v13 = vrot.slane %v3831_v59, 4  ;;  %v16179_v63 = vrot.slane %v8399_v39, 5 }
 0x277   :  { %12928 = vmatmul.mubr.msk.bf16.gmra.mrb[56].mxu0 %vm2617_vm11, %v13621_v2  ;;  %v8405_v45 = vrot.slane %v8403_v14, 4  ;;  %v8416_v2 = vrot.slane %v8414_v28, 4  ;;  %v8419_v10 = vrot.slane %v8417_v50, 5  ;;  %v16183_v1 = vsel %vm14721_vm2, %v3819_v0, %v3820_v40  ;;  %v8130_v28 = vld [vmem:[#allocation2 + $0x8c] sm:$0x1] }
 0x278   :  { %12624 = vmatmul.mubr.msk.bf16.gmra.mrb[16].mxu1 %vm2617_vm11, %v17845_v3  ;;  %v8129_v3 = vld [vmem:[#allocation2 + $0x88] sm:$0xf]  ;;  %12931 = vmatprep.mubr.msk.bf16.mxu0 %vm2617_vm11, %v13622_v7  ;;  %v8354_v25 = vsel %vm14024_vm13, %v8349_v32, %v16126_v41  ;;  %v8364_v27 = vsel %vm14024_vm13, %v8359_v22, %v16164_v11  ;;  %v16193_v7 = vsel %vm14721_vm2, %v11298_v42, %v3824_v37  ;;  %v8433_v32 = vshll.u32 %v8130_v28, 16  ;;  %v3581_v22 = vld [vmem:[#allocation2 + $0x150] sm:$0xe] }
 0x279   :  { %12627 = vmatprep.mubr.msk.bf16.mxu1 %vm2617_vm11, %v17848_v52  ;;  %v3834_v52 = vrot.slane %v13777_v33, 5  ;;  %v8423_v49 = vshll.u32 %v8129_v3, 16  ;;  %v8427_v46 = vshrl.u32 %v8129_v3, 16  ;;  %v17850_v48 = vcombine.low %v15875_v15, %v15892_v31  ;;  %v8131_v50 = vld [vmem:[#allocation2 + $0x90] sm:$0xf] }
 0x27a   :  { %v8378_v0 = vsel %vm14024_vm13, %v8373_v53, %v16143_v24  ;;  %v16204_v41 = vsel %vm14721_vm2, %v3826_v38, %v3827_v16  ;;  %v16208_v40 = vsel %vm14721_vm2, %v11299_v5, %v3831_v59  ;;  %v8396_v42 = vor.u32 %v8395_v19, %v8392_v60  ;;  %v17855_v60 = vld [vmem:[#allocation15_spill] sm:$0xff] }
 0x27b   :  { %v17851_v11 = vcombine.low %v15896_v4, %v15906_v58  ;;  %v8388_v15 = vsel %vm14024_vm13, %v8383_v43, %v8387_v17  ;;  %v16218_v31 = vsel %vm14721_vm2, %v3833_v13, %v3834_v52  ;;  %v16220_v24 = vrot.slane %v8423_v49, 5  ;;  %v8132_v17 = vld [vmem:[#allocation2 + $0x94] sm:$0xf]  ;;  %v3582_v43 = vld [vmem:[#allocation2 + $0x15c] sm:$0xe] }
 0x27c   :  { %v8429_v16 = vrot.slane %v8427_v46, 4  ;;  %v8406_v37 = vor.u32 %v8405_v45, %v16179_v63  ;;  %v8409_v5 = vshll.u32 %v8127_v23, 16  ;;  %v8420_v59 = vor.u32 %v8419_v10, %v8416_v2 }
 0x27d   :  { %v17852_v4 = vsel %vm14024_vm13, %v16134_v54, %v16136_v30  ;;  %v17853_v58 = vsel %vm14024_vm13, %v16130_v12, %v16104_v57  ;;  %v11329_v46 = vcombine.low %v16140_v36, %v16149_v51  ;;  %v16240_v3 = vcombine.low %v8354_v25, %v8364_v27  ;;  %v17854_v57 = vld [vmem:[#allocation14_spill] sm:$0xff]  ;;  %v8134_v25 = vld [vmem:[#allocation2 + $0x9c] sm:$0xf] }
 0x27e   :  { %v16234_v39 = vcombine.low %v17853_v58, %v17852_v4  ;;  %v8397_v30 = vrot.slane %v8396_v42, 4  ;;  %v3838_v12 = vrot.slane %v17854_v57, 5  ;;  %v8430_v55 = vor.u32 %v8429_v16, %v16220_v24  ;;  %v8138_v57 = vld [vmem:[#allocation2 + $0xac] sm:$0xf] }
 0x27f   :  { %12932 = vmatmul.mubr.msk.bf16.gmra.mrb[60].mxu0 %vm2617_vm11, %v13623_v26  ;;  %v16244_v26 = vcombine.low %v8378_v0, %v8388_v15  ;;  %v11300_v53 = vrot.slane %v3581_v22, 9  ;;  %v3845_v19 = vrot.slane %v17855_v60, 5  ;;  %v8411_v13 = vrot.slane %v8409_v5, 5  ;;  %v8135_v5 = vld [vmem:[#allocation2 + $0xa0] sm:$0xf] }
 0x280   :  { %12628 = vmatmul.mubr.msk.bf16.gmra.mrb[20].mxu1 %vm2617_vm11, %v17850_v48  ;;  %12937 = vmatprep.mubr.msk.bf16.mxu0 %vm2617_vm11, %v16006_v62  ;;  %v8407_v62 = vrot.slane %v8406_v37, 4  ;;  %v8421_v33 = vrot.slane %v8420_v59, 4  ;;  %v8435_v52 = vrot.slane %v8433_v32, 5  ;;  %v8438_v49 = vshrl.u32 %v8131_v50, 16  ;;  %v13778_v48 = vld [vmem:[#allocation2 + $0x158] sm:$0x1] }
 0x281   :  { %12631 = vmatprep.mubr.msk.bf16.mxu1 %vm2617_vm11, %v17851_v11  ;;  %v8441_v45 = vshll.u32 %v8131_v50, 16  ;;  %v8447_v2 = vshll.u32 %v8132_v17, 16  ;;  %v8451_v10 = vshrl.u32 %v8132_v17, 16  ;;  %v17856_v27 = vcombine.low %v15910_v29, %v15918_v21  ;;  %v13779_v21 = vld [vmem:[#allocation2 + $0x164] sm:$0x1] }
 0x282   :  { %v8402_v23 = vsel %vm14024_vm13, %v8397_v30, %v16179_v63  ;;  %v3840_v28 = vrot.slane %v3838_v12, 4  ;;  %v3841_v0 = vrot.slane %v13778_v48, 5  ;;  %v11301_v42 = vrot.slane %v3582_v43, 9  ;;  %v3583_v48 = vld [vmem:[#allocation2 + $0x168] sm:$0xe] }
 0x283   :  { %v17857_v11 = vcombine.low %v15923_v56, %v15927_v35  ;;  %v8431_v15 = vrot.slane %v8430_v55, 4  ;;  %v16266_v16 = vsel %vm14721_vm2, %v11300_v53, %v3838_v12  ;;  %v3847_v29 = vrot.slane %v3845_v19, 4  ;;  %v8137_v35 = vld [vmem:[#allocation2 + $0xa8] sm:$0xf]  ;;  %v8136_v53 = vld [vmem:[#allocation2 + $0xa4] sm:$0x1] }
 0x284   :  { %v3848_v37 = vrot.slane %v13779_v21, 5  ;;  %v8412_v63 = vsel %vm14024_vm13, %v8407_v62, %v8411_v13  ;;  %v8426_v59 = vsel %vm14024_vm13, %v8421_v33, %v16220_v24  ;;  %v8462_v32 = vshrl.u32 %v8134_v25, 16  ;;  %v13780_v21 = vld [vmem:[#allocation2 + $0x16c] sm:$0xf] }
 0x285   :  { %v8465_v56 = vshll.u32 %v8134_v25, 16  ;;  %v8440_v22 = vrot.slane %v8438_v49, 4  ;;  %v8443_v4 = vrot.slane %v8441_v45, 5  ;;  %v16275_v58 = vrot.slane %v8447_v2, 5 }
 0x286   :  { %v8453_v30 = vrot.slane %v8451_v10, 4  ;;  %v16282_v24 = vsel %vm14721_vm2, %v3840_v28, %v3841_v0  ;;  %v16286_v12 = vsel %vm14721_vm2, %v11301_v42, %v3845_v19  ;;  %v8471_v50 = vshll.u32 %v8135_v5, 16 }
 0x287   :  { %12938 = vmatmul.mubr.msk.bf16.vlgmr.msra.gmra.mrb[0].mxu0 %vm2617_vm11, %v16053_v44  ;;  %v8133_v44 = vld [vmem:[#allocation2 + $0x98] sm:$0x1]  ;;  %v8475_v17 = vshrl.u32 %v8135_v5, 16  ;;  %v8436_v55 = vsel %vm14024_vm13, %v8431_v15, %v8435_v52  ;;  %v8489_v43 = vshll.u32 %v8137_v35, 16  ;;  %v8464_v60 = vrot.slane %v8462_v32, 4 }
 0x288   :  { %12632 = vmatmul.mubr.msk.bf16.gmra.mrb[24].mxu1 %vm2617_vm11, %v17856_v27  ;;  %13002 = vmatpush3.bf16.msra.mxu0 %v16016_v8  ;;  %v16292_v8 = vsel %vm14721_vm2, %v3847_v29, %v3848_v37  ;;  %v8467_v62 = vrot.slane %v8465_v56, 5  ;;  %v8495_v13 = vshll.u32 %v8138_v57, 16  ;;  %v8499_v33 = vshrl.u32 %v8138_v57, 16  ;;  %v8140_v15 = vld [vmem:[#allocation2 + $0xb4] sm:$0xf] }
 0x289   :  { %12635 = vmatprep.mubr.msk.bf16.mxu1 %vm2617_vm11, %v17857_v11  ;;  %12941 = vmatprep.mubr.msk.bf16.mxu0 %vm2617_vm11, %v16100_v47  ;;  %v8486_v47 = vshrl.u32 %v8137_v35, 16  ;;  %v16294_v49 = vcombine.low %v8402_v23, %v8412_v63  ;;  %v8444_v19 = vor.u32 %v8443_v4, %v8440_v22  ;;  %v8454_v45 = vor.u32 %v8453_v30, %v16275_v58  ;;  %v17859_v23 = vld [vmem:[#allocation25_spill] sm:$0xff]  ;;  %v8141_v32 = vld [vmem:[#allocation2 + $0xb8] sm:$0xf]  ;;  %v17861_v56 = vld [vmem:[#allocation7_spill] sm:$0xff] }
 0x28a   :  { %v8457_v2 = vshll.u32 %v8133_v44, 16  ;;  %v17858_v52 = vcombine.low %v15931_v18, %v15935_v9  ;;  %v16303_v25 = vrot.slane %v8471_v50, 5  ;;  %v8477_v27 = vrot.slane %v8475_v17, 4  ;;  %v8139_v4 = vld [vmem:[#allocation2 + $0xb0] sm:$0x1]  ;;  %v17862_v30 = vld [vmem:[#allocation17_spill] sm:$0xff] }
 0x28b   :  { %v8481_v28 = vshll.u32 %v8136_v53, 16  ;;  %v17860_v0 = vcombine.low %v15943_v6, %v17859_v23  ;;  %v16309_v42 = vcombine.low %v8426_v59, %v8436_v55  ;;  %v8488_v9 = vrot.slane %v8486_v47, 4  ;;  %v3584_v50 = vld [vmem:[#allocation2 + $0x174] sm:$0xe]  ;;  %v13781_v17 = vld [vmem:[#allocation2 + $0x178] sm:$0xf] }
 0x28c   :  { %v8491_v11 = vrot.slane %v8489_v43, 5  ;;  %v8468_v29 = vor.u32 %v8467_v62, %v8464_v60  ;;  %v3852_v37 = vrot.slane %v13780_v21, 5  ;;  %v16313_v5 = vrot.slane %v8495_v13, 5  ;;  %v17863_v23 = vld [vmem:[#allocation26_spill] sm:$0xff]  ;;  %v17876_v18 = vld [vmem:[#allocation32_spill] sm:$0xff] }
 0x28d   :  { %v8501_v63 = vrot.slane %v8499_v33, 4  ;;  %v8445_v6 = vrot.slane %v8444_v19, 4  ;;  %v8455_v35 = vrot.slane %v8454_v45, 4  ;;  %v8459_v59 = vrot.slane %v8457_v2, 5 }
 0x28e   :  { %v11302_v22 = vrot.slane %v3583_v48, 9  ;;  %v8478_v57 = vor.u32 %v8477_v27, %v16303_v25  ;;  %v8483_v44 = vrot.slane %v8481_v28, 5  ;;  %v3859_v55 = vrot.slane %v13781_v17, 5  ;;  %v13782_v27 = vld [vmem:[#allocation2 + $0x170] sm:$0x1] }
 0x28f   :  { %12942 = vmatmul.mubr.msk.bf16.gmra.mrb[4].mxu0 %vm2617_vm11, %v17861_v56  ;;  %v8510_v53 = vshrl.u32 %v8140_v15, 16  ;;  %v8492_v47 = vor.u32 %v8491_v11, %v8488_v9  ;;  %v8513_v43 = vshll.u32 %v8140_v15, 16  ;;  %v8519_v60 = vshll.u32 %v8141_v32, 16  ;;  %v17866_v56 = vld [vmem:[#allocation28_spill] sm:$0xff] }
 0x290   :  { %12636 = vmatmul.mubr.msk.bf16.gmra.mrb[28].mxu1 %vm2617_vm11, %v17858_v52  ;;  %12945 = vmatprep.mubr.msk.bf16.mxu0 %vm2617_vm11, %v17862_v30  ;;  %v8523_v62 = vshrl.u32 %v8141_v32, 16  ;;  %v8469_v13 = vrot.slane %v8468_v29, 4  ;;  %v3854_v33 = vrot.slane %v3852_v37, 4  ;;  %v8502_v19 = vor.u32 %v8501_v63, %v16313_v5  ;;  %v13783_v29 = vld [vmem:[#allocation2 + $0x17c] sm:$0x1] }
 0x291   :  { %12639 = vmatprep.mubr.msk.bf16.mxu1 %vm2617_vm11, %v17860_v0  ;;  %v8505_v45 = vshll.u32 %v8139_v4, 16  ;;  %v8450_v2 = vsel %vm14024_vm13, %v8445_v6, %v16275_v58  ;;  %v8460_v52 = vsel %vm14024_vm13, %v8455_v35, %v8459_v59  ;;  %v3855_v28 = vrot.slane %v13782_v27, 5  ;;  %v17864_v0 = vld [vmem:[#allocation27_spill] sm:$0xff]  ;;  %v8142_v63 = vld [vmem:[#allocation2 + $0xbc] sm:$0x1]  ;;  %v17867_v4 = vld [vmem:[#allocation29_spill] sm:$0xff] }
 0x292   :  { %v11303_v48 = vrot.slane %v3584_v50, 9  ;;  %v17865_v9 = vcombine.low %v17863_v23, %v17864_v0  ;;  %v8479_v11 = vrot.slane %v8478_v57, 4  ;;  %v3861_v15 = vrot.slane %v3859_v55, 4  ;;  %v3585_v50 = vld [vmem:[#allocation2 + $0x180] sm:$0xe] }
 0x293   :  { %v3862_v21 = vrot.slane %v13783_v29, 5  ;;  %v8512_v32 = vrot.slane %v8510_v53, 4  ;;  %v17868_v58 = vcombine.low %v17866_v56, %v17867_v4  ;;  %v8493_v6 = vrot.slane %v8492_v47, 4  ;;  %v13784_v23 = vld [vmem:[#allocation2 + $0x184] sm:$0xf] }
 0x294   :  { %v8515_v35 = vrot.slane %v8513_v43, 5  ;;  %v16334_v59 = vrot.slane %v8519_v60, 5  ;;  %v8525_v30 = vrot.slane %v8523_v62, 4  ;;  %v16338_v17 = vsel %vm14721_vm2, %v11302_v22, %v3852_v37  ;;  %v8143_v22 = vld [vmem:[#allocation2 + $0xc0] sm:$0xf] }
 0x295   :  { %v8503_v57 = vrot.slane %v8502_v19, 4  ;;  %v8507_v27 = vrot.slane %v8505_v45, 5  ;;  %v3866_v0 = vrot.slane %v13784_v23, 5  ;;  %v16342_v53 = vcombine.low %v8450_v2, %v8460_v52  ;;  %v13785_v19 = vld [vmem:[#allocation2 + $0x188] sm:$0x1] }
 0x296   :  { %v8474_v47 = vsel %vm14024_vm13, %v8469_v13, %v16303_v25  ;;  %v16349_v43 = vsel %vm14721_vm2, %v3854_v33, %v3855_v28  ;;  %v16353_v37 = vsel %vm14721_vm2, %v11303_v48, %v3859_v55  ;;  %v16361_v60 = vsel %vm14721_vm2, %v3861_v15, %v3862_v21  ;;  %v3586_v2 = vld [vmem:[#allocation2 + $0x18c] sm:$0xe]  ;;  %v13786_v28 = vld [vmem:[#allocation2 + $0x190] sm:$0xf]  ;;  %v17875_v15 = vld [vmem:[#allocation16_spill] sm:$0xff] }
 0x297   :  { %12946 = vmatmul.mubr.msk.bf16.gmra.mrb[8].mxu0 %vm2617_vm11, %v16234_v39  ;;  %v8484_v39 = vsel %vm14024_vm13, %v8479_v11, %v8483_v44  ;;  %v8529_v25 = vshll.u32 %v8142_v63, 16  ;;  %v11304_v62 = vrot.slane %v3585_v50, 9  ;;  %v8498_v13 = vsel %vm14024_vm13, %v8493_v6, %v16313_v5  ;;  %v8146_v21 = vld [vmem:[#allocation2 + $0xcc] sm:$0xf]  ;;  %v8145_v6 = vld [vmem:[#allocation2 + $0xc8] sm:$0x1] }
 0x298   :  { %12640 = vmatmul.mubr.msk.bf16.gmra.mrb[32].mxu1 %vm2617_vm11, %v17865_v9  ;;  %12949 = vmatprep.mubr.msk.bf16.mxu0 %vm2617_vm11, %v16240_v3  ;;  %v8516_v33 = vor.u32 %v8515_v35, %v8512_v32  ;;  %v8526_v55 = vor.u32 %v8525_v30, %v16334_v59  ;;  %v3869_v45 = vrot.slane %v13785_v19, 5  ;;  %v8144_v3 = vld [vmem:[#allocation2 + $0xc4] sm:$0xf]  ;;  %v8508_v44 = vsel %vm14024_vm13, %v8503_v57, %v8507_v27  ;;  %v17869_v63 = vld [vmem:[#allocation30_spill] sm:$0xff]  ;;  %v17870_v32 = vld [vmem:[#allocation31_spill] sm:$0xff] }
 0x299   :  { %12643 = vmatprep.mubr.msk.bf16.mxu1 %vm2617_vm11, %v17868_v58  ;;  %v3868_v52 = vrot.slane %v3866_v0, 4  ;;  %v3873_v48 = vrot.slane %v13786_v28, 5  ;;  %v8534_v9 = vshrl.u32 %v8143_v22, 16  ;;  %v16369_v11 = vcombine.low %v8474_v47, %v8484_v39  ;;  %v17872_v50 = vld [vmem:[#allocation5_spill] sm:$0xff]  ;;  %v17873_v57 = vld [vmem:[#allocation6_spill] sm:$0xff] }
 0x29a   :  { %v8537_v29 = vshll.u32 %v8143_v22, 16  ;;  %v17871_v56 = vcombine.low %v17869_v63, %v17870_v32  ;;  %v16379_v4 = vrot.slane %v8529_v25, 5  ;;  %v11305_v58 = vrot.slane %v3586_v2, 9  ;;  %v8147_v25 = vld [vmem:[#allocation2 + $0xd0] sm:$0xf] }
 0x29b   :  { %v8543_v35 = vshll.u32 %v8144_v3, 16  ;;  %v8547_v30 = vshrl.u32 %v8144_v3, 16  ;;  %v17874_v27 = vcombine.low %v17872_v50, %v17873_v57  ;;  %v16385_v23 = vcombine.low %v8498_v13, %v8508_v44  ;;  %v8149_v19 = vld [vmem:[#allocation2 + $0xf0] sm:$0xf]  ;;  %v13787_v28 = vld [vmem:[#allocation2 + $0x194] sm:$0x1] }
 0x29c   :  { %v16387_v47 = vrot.slane %v8516_v33, 4  ;;  %v16389_v22 = vrot.slane %v8526_v55, 4  ;;  %v16393_v39 = vsel %vm14721_vm2, %v11304_v62, %v3866_v0  ;;  %v16397_v2 = vsel %vm14721_vm2, %v3868_v52, %v3869_v45  ;;  %v8150_v13 = vld [vmem:[#allocation2 + $0xf4] sm:$0xf]  ;;  %v8155_v5 = vld [vmem:[#allocation2 + $0x108] sm:$0xf] }
 0x29d   :  { %v3875_v3 = vrot.slane %v3873_v48, 4  ;;  %v3876_v63 = vrot.slane %v13787_v28, 5  ;;  %v8536_v32 = vrot.slane %v8534_v9, 4  ;;  %v8539_v33 = vrot.slane %v8537_v29, 5 }
 0x29e   :  { %v8553_v55 = vshll.u32 %v8145_v6, 16  ;;  %v8558_v44 = vshrl.u32 %v8146_v21, 16  ;;  %v16403_v0 = vrot.slane %v8543_v35, 5  ;;  %v8549_v62 = vrot.slane %v8547_v30, 4  ;;  %v8152_v6 = vld [vmem:[#allocation2 + $0xfc] sm:$0xf] }
 0x29f   :  { %12950 = vmatmul.mubr.msk.bf16.gmra.mrb[12].mxu0 %vm2617_vm11, %v16244_v26  ;;  %v8567_v45 = vshll.u32 %v8147_v25, 16  ;;  %v8571_v52 = vshrl.u32 %v8147_v25, 16  ;;  %v8582_v50 = vshrl.u32 %v8149_v19, 16  ;;  %v8585_v57 = vshll.u32 %v8149_v19, 16  ;;  %v8153_v35 = vld [vmem:[#allocation2 + $0x100] sm:$0xf] }
 0x2a0   :  { %12644 = vmatmul.mubr.msk.bf16.gmra.mrb[36].mxu1 %vm2617_vm11, %v17871_v56  ;;  %v8561_v56 = vshll.u32 %v8146_v21, 16  ;;  %12953 = vmatprep.mubr.msk.bf16.mxu0 %vm2617_vm11, %v16294_v49  ;;  %v8595_v9 = vshrl.u32 %v8150_v13, 16  ;;  %v16417_v21 = vsel %vm14721_vm2, %v11305_v58, %v3873_v48  ;;  %v16421_v30 = vsel %vm14721_vm2, %v3875_v3, %v3876_v63  ;;  %v1648_v26 = vld [vmem:[#allocation2 + $0x1ac] sm:$0x1] }
 0x2a1   :  { %12647 = vmatprep.mubr.msk.bf16.mxu1 %vm2617_vm11, %v17874_v27  ;;  %v8591_v27 = vshll.u32 %v8150_v13, 16  ;;  %v8540_v25 = vor.u32 %v8539_v33, %v8536_v32  ;;  %v8560_v19 = vrot.slane %v8558_v44, 4  ;;  %v8151_v13 = vld [vmem:[#allocation2 + $0xf8] sm:$0x1]  ;;  %v17877_v10 = vcombine.low %v17875_v15, %v17876_v18  ;;  %v8156_v15 = vld [vmem:[#allocation2 + $0x10c] sm:$0xf] }
 0x2a2   :  { %v8563_v28 = vrot.slane %v8561_v56, 5  ;;  %v8550_v49 = vor.u32 %v8549_v62, %v16403_v0  ;;  %v16428_v48 = vrot.slane %v8553_v55, 5  ;;  %v16430_v58 = vrot.slane %v8567_v45, 5 }
 0x2a3   :  { %v8573_v38 = vrot.slane %v8571_v52, 4  ;;  %v8584_v3 = vrot.slane %v8582_v50, 4  ;;  %v8587_v63 = vrot.slane %v8585_v57, 5  ;;  %v16436_v32 = vrot.slane %v8591_v27, 5 }
 0x2a4   :  { %v8597_v18 = vrot.slane %v8595_v9, 4  ;;  %v8606_v33 = vshrl.u32 %v8152_v6, 16  ;;  %v8609_v44 = vshll.u32 %v8152_v6, 16  ;;  %v8615_v55 = vshll.u32 %v8153_v35, 16 }
 0x2a5   :  { %v8619_v56 = vshrl.u32 %v8153_v35, 16  ;;  %v8564_v62 = vor.u32 %v8563_v28, %v8560_v19  ;;  %v8630_v45 = vshrl.u32 %v8155_v5, 16  ;;  %v8633_v52 = vshll.u32 %v8155_v5, 16  ;;  %v8154_v19 = vld [vmem:[#allocation2 + $0x104] sm:$0x1] }
 0x2a6   :  { %v1649_v51 = vsel %vm13970_vm5, 0, %v1648_v26  ;;  %v8601_v50 = vshll.u32 %v8151_v13, 16  ;;  %v8639_v57 = vshll.u32 %v8156_v15, 16  ;;  %v8643_v27 = vshrl.u32 %v8156_v15, 16 }
 0x2a7   :  { %12954 = vmatmul.mubr.msk.bf16.gmra.mrb[16].mxu0 %vm2617_vm11, %v16309_v42  ;;  %1650 = vst [vmem:[#allocation2 + $0x1ac] sm:$0x1] %v1649_v51  ;;  %v8541_v9 = vrot.slane %v8540_v25, 4  ;;  %v8588_v35 = vor.u32 %v8587_v63, %v8584_v3  ;;  %v8598_v42 = vor.u32 %v8597_v18, %v16436_v32  ;;  %v8608_v28 = vrot.slane %v8606_v33, 4  ;;  %v8158_v18 = vld [vmem:[#allocation2 + $0x114] sm:$0xf] }
 0x2a8   :  { %12648 = vmatmul.mubr.msk.bf16.gmra.mrb[40].mxu1 %vm2617_vm11, %v17877_v10  ;;  %v8148_v10 = vld [vmem:[#allocation2 + $0xd4] sm:$0x1]  ;;  %12957 = vmatprep.mubr.msk.bf16.mxu0 %vm2617_vm11, %v16342_v53  ;;  %v8611_v5 = vrot.slane %v8609_v44, 5  ;;  %v16446_v29 = vrot.slane %v8615_v55, 5  ;;  %v8621_v26 = vrot.slane %v8619_v56, 4  ;;  %v8551_v36 = vrot.slane %v8550_v49, 4 }
 0x2a9   :  { %12651 = vmatprep.mubr.msk.bf16.mxu1 %vm2617_vm11, %v11329_v46  ;;  %v8574_v46 = vor.u32 %v8573_v38, %v16430_v58  ;;  %v8577_v6 = vshll.u32 %v8148_v10, 16  ;;  %v8565_v54 = vrot.slane %v8564_v62, 4  ;;  %v8632_v53 = vrot.slane %v8630_v45, 4  ;;  %v8157_v55 = vld [vmem:[#allocation2 + $0x110] sm:$0x1] }
 0x2aa   :  { %v8635_v14 = vrot.slane %v8633_v52, 5  ;;  %v17879_v38 = vcombine.low %v16158_v34, %v16183_v1  ;;  %v8603_v13 = vrot.slane %v8601_v50, 5  ;;  %v16452_v3 = vrot.slane %v8639_v57, 5  ;;  %v8161_v50 = vld [vmem:[#allocation2 + $0x120] sm:$0xf] }
 0x2ab   :  { %v8575_v25 = vrot.slane %v8574_v46, 4  ;;  %v8645_v63 = vrot.slane %v8643_v27, 4  ;;  %v17880_v15 = vcombine.low %v16193_v7, %v16204_v41  ;;  %v8579_v49 = vrot.slane %v8577_v6, 5 }
 0x2ac   :  { %v8589_v10 = vrot.slane %v8588_v35, 4  ;;  %v8599_v33 = vrot.slane %v8598_v42, 4  ;;  %v8625_v44 = vshll.u32 %v8154_v19, 16  ;;  %v17881_v34 = vsel %vm14024_vm13, %v16389_v22, %v16379_v4  ;;  %v8159_v22 = vld [vmem:[#allocation2 + $0x118] sm:$0xf] }
 0x2ad   :  { %v17882_v1 = vsel %vm14024_vm13, %v16387_v47, %v16334_v59  ;;  %v11338_v7 = vcombine.low %v16417_v21, %v16421_v30  ;;  %v8612_v41 = vor.u32 %v8611_v5, %v8608_v28  ;;  %v8622_v62 = vor.u32 %v8621_v26, %v16446_v29  ;;  %v8178_v21 = vld [vmem:[#allocation2 + $0x164] sm:$0x1] }
 0x2ae   :  { %v11677_v56 = vcombine.low %v17882_v1, %v17881_v34  ;;  %v8546_v45 = vsel %vm14024_vm13, %v8541_v9, %v16403_v0  ;;  %v8636_v4 = vor.u32 %v8635_v14, %v8632_v53  ;;  %v8654_v52 = vshrl.u32 %v8158_v18, 16  ;;  %v8167_v1 = vld [vmem:[#allocation2 + $0x138] sm:$0xf] }
 0x2af   :  { %12958 = vmatmul.mubr.msk.bf16.gmra.mrb[20].mxu0 %vm2617_vm11, %v16369_v11  ;;  %v8657_v51 = vshll.u32 %v8158_v18, 16  ;;  %v8556_v59 = vsel %vm14024_vm13, %v8551_v36, %v16428_v48  ;;  %v8570_v47 = vsel %vm14024_vm13, %v8565_v54, %v16430_v58  ;;  %v8646_v11 = vor.u32 %v8645_v63, %v16452_v3  ;;  %v8162_v54 = vld [vmem:[#allocation2 + $0x124] sm:$0xf]  ;;  %v8160_v36 = vld [vmem:[#allocation2 + $0x11c] sm:$0x1] }
 0x2b0   :  { %12652 = vmatmul.mubr.msk.bf16.gmra.mrb[44].mxu1 %vm2617_vm11, %v17879_v38  ;;  %12961 = vmatprep.mubr.msk.bf16.mxu0 %vm2617_vm11, %v16385_v23  ;;  %v8649_v46 = vshll.u32 %v8157_v55, 16  ;;  %v8580_v14 = vsel %vm14024_vm13, %v8575_v25, %v8579_v49  ;;  %v8594_v0 = vsel %vm14024_vm13, %v8589_v10, %v16436_v32  ;;  %v8604_v23 = vsel %vm14024_vm13, %v8599_v33, %v8603_v13  ;;  %v8165_v33 = vld [vmem:[#allocation2 + $0x130] sm:$0xf]  ;;  %v8163_v55 = vld [vmem:[#allocation2 + $0x128] sm:$0x1] }
 0x2b1   :  { %12655 = vmatprep.mubr.msk.bf16.mxu1 %vm2617_vm11, %v17880_v15  ;;  %v8627_v57 = vrot.slane %v8625_v44, 5  ;;  %v8613_v48 = vrot.slane %v8612_v41, 4  ;;  %v8623_v27 = vrot.slane %v8622_v62, 4  ;;  %v8663_v9 = vshll.u32 %v8159_v22, 16  ;;  %v8164_v15 = vld [vmem:[#allocation2 + $0x12c] sm:$0xf] }
 0x2b2   :  { %v8667_v6 = vshrl.u32 %v8159_v22, 16  ;;  %v8637_v58 = vrot.slane %v8636_v4, 4  ;;  %v8656_v35 = vrot.slane %v8654_v52, 4  ;;  %v8659_v42 = vrot.slane %v8657_v51, 5  ;;  %v8168_v4 = vld [vmem:[#allocation2 + $0x13c] sm:$0xf] }
 0x2b3   :  { %v8678_v19 = vshrl.u32 %v8161_v50, 16  ;;  %v17883_v28 = vcombine.low %v16208_v40, %v16218_v31  ;;  %v11678_v5 = vcombine.low %v8546_v45, %v8556_v59  ;;  %v8647_v32 = vrot.slane %v8646_v11, 4 }
 0x2b4   :  { %v8651_v26 = vrot.slane %v8649_v46, 5  ;;  %v8681_v53 = vshll.u32 %v8161_v50, 16  ;;  %v17884_v38 = vcombine.low %v16266_v16, %v16282_v24  ;;  %v11679_v25 = vcombine.low %v8570_v47, %v8580_v14 }
 0x2b5   :  { %v11680_v13 = vcombine.low %v8594_v0, %v8604_v23  ;;  %v8687_v63 = vshll.u32 %v8162_v54, 16  ;;  %v8691_v18 = vshrl.u32 %v8162_v54, 16  ;;  %v8618_v40 = vsel %vm14024_vm13, %v8613_v48, %v16446_v29 }
 0x2b6   :  { %v8628_v31 = vsel %vm14024_vm13, %v8623_v27, %v8627_v57  ;;  %v16505_v49 = vrot.slane %v8663_v9, 5  ;;  %v8669_v10 = vrot.slane %v8667_v6, 4  ;;  %v8642_v16 = vsel %vm14024_vm13, %v8637_v58, %v16452_v3  ;;  %v8170_v6 = vld [vmem:[#allocation2 + $0x144] sm:$0xf] }
 0x2b7   :  { %12962 = vmatmul.mubr.msk.bf16.gmra.mrb[24].mxu0 %vm2617_vm11, %v11677_v56  ;;  %v8660_v24 = vor.u32 %v8659_v42, %v8656_v35  ;;  %v8673_v44 = vshll.u32 %v8160_v36, 16  ;;  %v8680_v34 = vrot.slane %v8678_v19, 4  ;;  %v8652_v29 = vsel %vm14024_vm13, %v8647_v32, %v8651_v26  ;;  %v8166_v42 = vld [vmem:[#allocation2 + $0x134] sm:$0x1]  ;;  %v8169_v32 = vld [vmem:[#allocation2 + $0x140] sm:$0x1] }
 0x2b8   :  { %12656 = vmatmul.mubr.msk.bf16.gmra.mrb[48].mxu1 %vm2617_vm11, %v17883_v28  ;;  %12965 = vmatprep.mubr.msk.bf16.mxu0 %vm2617_vm11, %v11678_v5  ;;  %v8683_v41 = vrot.slane %v8681_v53, 5  ;;  %v8702_v62 = vshrl.u32 %v8164_v15, 16  ;;  %v8705_v45 = vshll.u32 %v8164_v15, 16  ;;  %v16514_v22 = vrot.slane %v8687_v63, 5  ;;  %v8173_v63 = vld [vmem:[#allocation2 + $0x150] sm:$0xf] }
 0x2b9   :  { %12659 = vmatprep.mubr.msk.bf16.mxu1 %vm2617_vm11, %v17884_v38  ;;  %v8693_v56 = vrot.slane %v8691_v18, 4  ;;  %v8711_v52 = vshll.u32 %v8165_v33, 16  ;;  %v8715_v51 = vshrl.u32 %v8165_v33, 16  ;;  %v8670_v3 = vor.u32 %v8669_v10, %v16505_v49 }
 0x2ba   :  { %v8697_v59 = vshll.u32 %v8163_v55, 16  ;;  %v8726_v47 = vshrl.u32 %v8167_v1, 16  ;;  %v8729_v11 = vshll.u32 %v8167_v1, 16  ;;  %v16517_v46 = vcombine.low %v8618_v40, %v8628_v31 }
 0x2bb   :  { %v16519_v50 = vrot.slane %v8660_v24, 4  ;;  %v8735_v14 = vshll.u32 %v8168_v4, 16  ;;  %v8739_v0 = vshrl.u32 %v8168_v4, 16  ;;  %v17885_v23 = vcombine.low %v16286_v12, %v16292_v8  ;;  %v8171_v8 = vld [vmem:[#allocation2 + $0x148] sm:$0xf] }
 0x2bc   :  { %v16525_v57 = vrot.slane %v8673_v44, 5  ;;  %v8684_v48 = vor.u32 %v8683_v41, %v8680_v34  ;;  %v8704_v27 = vrot.slane %v8702_v62, 4  ;;  %v8707_v9 = vrot.slane %v8705_v45, 5  ;;  %v8174_v62 = vld [vmem:[#allocation2 + $0x154] sm:$0xf] }
 0x2bd   :  { %v17886_v54 = vcombine.low %v16338_v17, %v16349_v43  ;;  %v11682_v58 = vcombine.low %v8642_v16, %v8652_v29  ;;  %v8694_v35 = vor.u32 %v8693_v56, %v16514_v22  ;;  %v16532_v19 = vrot.slane %v8711_v52, 5  ;;  %v8172_v56 = vld [vmem:[#allocation2 + $0x14c] sm:$0x1] }
 0x2be   :  { %v8717_v12 = vrot.slane %v8715_v51, 4  ;;  %v8671_v28 = vrot.slane %v8670_v3, 4  ;;  %v8699_v5 = vrot.slane %v8697_v59, 5  ;;  %v8728_v26 = vrot.slane %v8726_v47, 4 }
 0x2bf   :  { %v8731_v36 = vrot.slane %v8729_v11, 5  ;;  %12966 = vmatmul.mubr.msk.bf16.gmra.mrb[28].mxu0 %vm2617_vm11, %v11679_v25  ;;  %v16535_v53 = vrot.slane %v8735_v14, 5  ;;  %v8741_v17 = vrot.slane %v8739_v0, 4  ;;  %v8750_v43 = vshrl.u32 %v8170_v6, 16  ;;  %v8176_v11 = vld [vmem:[#allocation2 + $0x15c] sm:$0xf] }
 0x2c0   :  { %12660 = vmatmul.mubr.msk.bf16.gmra.mrb[52].mxu1 %vm2617_vm11, %v17885_v23  ;;  %v8753_v38 = vshll.u32 %v8170_v6, 16  ;;  %12969 = vmatprep.mubr.msk.bf16.mxu0 %vm2617_vm11, %v11680_v13  ;;  %v8685_v18 = vrot.slane %v8684_v48, 4  ;;  %v8708_v15 = vor.u32 %v8707_v9, %v8704_v27  ;;  %v8759_v40 = vshll.u32 %v8171_v8, 16  ;;  %v8177_v23 = vld [vmem:[#allocation2 + $0x160] sm:$0xf]  ;;  %v13624_v27 = vld [vmem:[#allocation2 + $0xc] sm:$0xff]  }
 0x2c1   :  { %12663 = vmatprep.mubr.msk.bf16.mxu1 %vm2617_vm11, %v17886_v54  ;;  %v8763_v31 = vshrl.u32 %v8171_v8, 16  ;;  %v8695_v10 = vrot.slane %v8694_v35, 4  ;;  %v8718_v33 = vor.u32 %v8717_v12, %v16532_v19  ;;  %v8721_v16 = vshll.u32 %v8166_v42, 16  ;;  %v8175_v42 = vld [vmem:[#allocation2 + $0x158] sm:$0x1] }
 0x2c2   :  { %v8745_v24 = vshll.u32 %v8169_v32, 16  ;;  %v8666_v25 = vsel %vm14024_vm13, %v16519_v50, %v16505_v49  ;;  %v8676_v44 = vsel %vm14024_vm13, %v8671_v28, %v16525_v57  ;;  %v8774_v55 = vshrl.u32 %v8173_v63, 16 }
 0x2c3   :  { %v8777_v13 = vshll.u32 %v8173_v63, 16  ;;  %v8732_v34 = vor.u32 %v8731_v36, %v8728_v26  ;;  %v8742_v1 = vor.u32 %v8741_v17, %v16535_v53  ;;  %v8752_v29 = vrot.slane %v8750_v43, 4  ;;  %v8179_v63 = vld [vmem:[#allocation2 + $0x168] sm:$0xf] }
 0x2c4   :  { %v8755_v41 = vrot.slane %v8753_v38, 5  ;;  %v17887_v45 = vcombine.low %v16353_v37, %v16361_v60  ;;  %v8690_v49 = vsel %vm14024_vm13, %v8685_v18, %v16514_v22  ;;  %v16554_v4 = vrot.slane %v8708_v15, 4 }
 0x2c5   :  { %v16556_v52 = vrot.slane %v8759_v40, 5  ;;  %v8765_v51 = vrot.slane %v8763_v31, 4  ;;  %v17888_v3 = vcombine.low %v16393_v39, %v16397_v2  ;;  %v8700_v37 = vsel %vm14024_vm13, %v8695_v10, %v8699_v5  ;;  %v5157_v5 = vld [vmem:[#allocation2 + $0xf0] sm:$0xf]  ;;  %v8180_v40 = vld [vmem:[#allocation2 + $0x16c] sm:$0xf] }
 0x2c6   :  { %v8719_v60 = vrot.slane %v8718_v33, 4  ;;  %v8723_v59 = vrot.slane %v8721_v16, 5  ;;  %v8747_v47 = vrot.slane %v8745_v24, 5  ;;  %v8776_v50 = vrot.slane %v8774_v55, 4 }
 0x2c7   :  { %v8779_v22 = vrot.slane %v8777_v13, 5  ;;  %v8783_v14 = vshll.u32 %v8174_v62, 16  ;;  %v8787_v0 = vshrl.u32 %v8174_v62, 16  ;;  %12970 = vmatmul.mubr.msk.bf16.gmra.mrb[32].mxu0 %vm2617_vm11, %v16517_v46  ;;  %v8733_v57 = vrot.slane %v8732_v34, 4  ;;  %v13625_v62 = vld [vmem:[#allocation2 + $0x18] sm:$0xff]  }
 0x2c8   :  { %12664 = vmatmul.mubr.msk.bf16.gmra.mrb[56].mxu1 %vm2617_vm11, %v17887_v45  ;;  %v8743_v48 = vrot.slane %v8742_v1, 4  ;;  %v8756_v39 = vor.u32 %v8755_v41, %v8752_v29  ;;  %v8769_v2 = vshll.u32 %v8172_v56, 16  ;;  %12973 = vmatprep.mubr.msk.bf16.mxu0 %vm2617_vm11, %v11682_v58  ;;  %v11683_v9 = vcombine.low %v8666_v25, %v8676_v44  ;;  %v17889_v1 = vld [vmem:[#allocation12_spill] sm:$0xff]  ;;  %v17890_v29 = vld [vmem:[#allocation11_spill] sm:$0xff] }
 0x2c9   :  { %12667 = vmatprep.mubr.msk.bf16.mxu1 %vm2617_vm11, %v17888_v3  ;;  %v11684_v6 = vcombine.low %v8690_v49, %v8700_v37  ;;  %v8714_v54 = vsel %vm14024_vm13, %v16554_v4, %v16532_v19  ;;  %v8766_v35 = vor.u32 %v8765_v51, %v16556_v52  ;;  %v8798_v12 = vshrl.u32 %v8176_v11, 16  ;;  %v13626_v51 = vld [vmem:[#allocation2 + $0x24] sm:$0xff]  }
 0x2ca   :  { %v8801_v8 = vshll.u32 %v8176_v11, 16  ;;  %v8807_v46 = vshll.u32 %v8177_v23, 16  ;;  %v8811_v28 = vshrl.u32 %v8177_v23, 16  ;;  %v8724_v32 = vsel %vm14024_vm13, %v8719_v60, %v8723_v59 }
 0x2cb   :  { %v8780_v26 = vor.u32 %v8779_v22, %v8776_v50  ;;  %v16574_v58 = vrot.slane %v8783_v14, 5  ;;  %v8789_v36 = vrot.slane %v8787_v0, 4  ;;  %v8738_v17 = vsel %vm14024_vm13, %v8733_v57, %v16535_v53  ;;  %v8181_v14 = vld [vmem:[#allocation2 + $0x170] sm:$0x1]  ;;  %v8183_v0 = vld [vmem:[#allocation2 + $0x178] sm:$0xf] }
 0x2cc   :  { %v8748_v19 = vsel %vm14024_vm13, %v8743_v48, %v8747_v47  ;;  %v16581_v43 = vrot.slane %v8756_v39, 4  ;;  %v16583_v38 = vrot.slane %v8769_v2, 5  ;;  %v16589_v18 = vrot.slane %v8766_v35, 4  ;;  %v8182_v47 = vld [vmem:[#allocation2 + $0x174] sm:$0xf]  ;;  %v17891_v35 = vld [vmem:[#allocation8_spill] sm:$0xff] }
 0x2cd   :  { %v8793_v15 = vshll.u32 %v8175_v42, 16  ;;  %v5611_v31 = vshrl.u32 %v5157_v5, 16  ;;  %v5614_v10 = vshll.u32 %v5157_v5, 16  ;;  %v8800_v53 = vrot.slane %v8798_v12, 4  ;;  %v8185_v2 = vld [vmem:[#allocation2 + $0x180] sm:$0xf] }
 0x2ce   :  { %v8803_v33 = vrot.slane %v8801_v8, 5  ;;  %v16592_v16 = vrot.slane %v8807_v46, 5  ;;  %v8813_v24 = vrot.slane %v8811_v28, 4  ;;  %v16594_v25 = vrot.slane %v8780_v26, 4  ;;  %v17892_v12 = vld [vmem:[#allocation3_spill] sm:$0xff] }
 0x2cf   :  { %v8790_v44 = vor.u32 %v8789_v36, %v16574_v58  ;;  %v5613_v30 = vrot.slane %v5611_v31, 4  ;;  %12974 = vmatmul.mubr.msk.bf16.gmra.mrb[36].mxu0 %vm2617_vm11, %v11683_v9  ;;  %v8822_v55 = vshrl.u32 %v8179_v63, 16  ;;  %v8825_v13 = vshll.u32 %v8179_v63, 16  ;;  %v13627_v63 = vld [vmem:[#allocation2 + $0x30] sm:$0xff]  }
 0x2d0   :  { %12668 = vmatmul.mubr.msk.bf16.gmra.mrb[60].mxu1 %vm2617_vm11, %v11338_v7  ;;  %v5616_v7 = vrot.slane %v5614_v10, 5  ;;  %v8831_v34 = vshll.u32 %v8180_v40, 16  ;;  %v5633_v41 = vsel %vm14024_vm13, %v17890_v29, %v17889_v1  ;;  %12977 = vmatprep.mubr.msk.bf16.mxu0 %vm2617_vm11, %v11684_v6  ;;  %v11685_v45 = vcombine.low %v8714_v54, %v8724_v32  ;;  %v8186_v54 = vld [vmem:[#allocation2 + $0x184] sm:$0xf]  ;;  %v13628_v10 = vld [vmem:[#allocation2 + $0x3c] sm:$0xff]  }
 0x2d1   :  { %12673 = vmatprep.mubr.msk.bf16.mxu1 %vm2617_vm11, %v13624_v27  ;;  %v11686_v49 = vcombine.low %v8738_v17, %v8748_v19  ;;  %v8835_v4 = vshrl.u32 %v8180_v40, 16  ;;  %v8762_v3 = vsel %vm14024_vm13, %v16581_v43, %v16556_v52  ;;  %v8804_v37 = vor.u32 %v8803_v33, %v8800_v53  ;;  %v8187_v1 = vld [vmem:[#allocation2 + $0x188] sm:$0x1] }
 0x2d2   :  { %v5617_v56 = vor.u32 %v5616_v7, %v5613_v30  ;;  %v8814_v60 = vor.u32 %v8813_v24, %v16592_v16  ;;  %v8817_v59 = vshll.u32 %v8178_v21, 16  ;;  %v8772_v11 = vsel %vm14024_vm13, %v16589_v18, %v16583_v38 }
 0x2d3   :  { %v8786_v50 = vsel %vm14024_vm13, %v16594_v25, %v16574_v58  ;;  %v8795_v22 = vrot.slane %v8793_v15, 5  ;;  %v8791_v52 = vrot.slane %v8790_v44, 4  ;;  %v8824_v57 = vrot.slane %v8822_v55, 4  ;;  %v8184_v25 = vld [vmem:[#allocation2 + $0x17c] sm:$0x1] }
 0x2d4   :  { %v5618_v23 = vrot.slane %v5617_v56, 4  ;;  %v8827_v48 = vrot.slane %v8825_v13, 5  ;;  %v16616_v39 = vrot.slane %v8831_v34, 5  ;;  %v8837_v27 = vrot.slane %v8835_v4, 4  ;;  %v8188_v55 = vld [vmem:[#allocation2 + $0x18c] sm:$0xf] }
 0x2d5   :  { %v8846_v9 = vshrl.u32 %v8182_v47, 16  ;;  %v8849_v6 = vshll.u32 %v8182_v47, 16  ;;  %v8805_v8 = vrot.slane %v8804_v37, 4  ;;  %v8815_v46 = vrot.slane %v8814_v60, 4  ;;  %v8189_v4 = vld [vmem:[#allocation2 + $0x190] sm:$0xf] }
 0x2d6   :  { %v5623_v42 = vsel %vm14024_vm13, %v5618_v23, %v17891_v35  ;;  %v8819_v28 = vrot.slane %v8817_v59, 5  ;;  %v8855_v32 = vshll.u32 %v8183_v0, 16  ;;  %v8859_v26 = vshrl.u32 %v8183_v0, 16  ;;  %v8191_v59 = vld [vmem:[#allocation2 + $0x198] sm:$0xf]  ;;  %v13629_v0 = vld [vmem:[#allocation2 + $0x48] sm:$0xff]  }
 0x2d7   :  { %v16624_v5 = vcombine.low %v5623_v42, %v5633_v41  ;;  %v8870_v58 = vshrl.u32 %v8185_v2, 16  ;;  %v8873_v36 = vshll.u32 %v8185_v2, 16  ;;  %12978 = vmatmul.mubr.msk.bf16.gmra.mrb[40].mxu0 %vm2617_vm11, %v11685_v45  ;;  %v8796_v17 = vsel %vm14024_vm13, %v8791_v52, %v8795_v22  ;;  %v8192_v47 = vld [vmem:[#allocation2 + $0x19c] sm:$0xf]  ;;  %v13630_v2 = vld [vmem:[#allocation2 + $0x54] sm:$0xff]  }
 0x2d8   :  { %12674 = vmatmul.mubr.msk.bf16.vlgmr.msra.gmra.mrb[0].mxu1 %vm2617_vm11, %v13625_v62  ;;  %v8841_v19 = vshll.u32 %v8181_v14, 16  ;;  %v8879_v43 = vshll.u32 %v8186_v54, 16  ;;  %v8883_v38 = vshrl.u32 %v8186_v54, 16  ;;  %12981 = vmatprep.mubr.msk.bf16.mxu0 %vm2617_vm11, %v11686_v49  ;;  %v8828_v18 = vor.u32 %v8827_v48, %v8824_v57 }
 0x2d9   :  { %13068 = vmatpush3.bf16.msra.mxu1 %v17892_v12  ;;  %12677 = vmatprep.mubr.msk.bf16.mxu1 %vm2617_vm11, %v13626_v51  ;;  %v8838_v15 = vor.u32 %v8837_v27, %v16616_v39  ;;  %v8848_v40 = vrot.slane %v8846_v9, 4  ;;  %v8851_v31 = vrot.slane %v8849_v6, 5  ;;  %v11687_v53 = vcombine.low %v8762_v3, %v8772_v11 }
 0x2da   :  { %v8810_v33 = vsel %vm14024_vm13, %v8805_v8, %v16592_v16  ;;  %v8820_v24 = vsel %vm14024_vm13, %v8815_v46, %v8819_v28  ;;  %v16636_v44 = vrot.slane %v8855_v32, 5  ;;  %v8861_v21 = vrot.slane %v8859_v26, 4 }
 0x2db   :  { %v8872_v30 = vrot.slane %v8870_v58, 4  ;;  %v8875_v7 = vrot.slane %v8873_v36, 5  ;;  %v11688_v13 = vcombine.low %v8786_v50, %v8796_v17  ;;  %v8843_v34 = vrot.slane %v8841_v19, 5  ;;  %v8190_v58 = vld [vmem:[#allocation2 + $0x194] sm:$0x1] }
 0x2dc   :  { %v16638_v29 = vrot.slane %v8879_v43, 5  ;;  %v8885_v41 = vrot.slane %v8883_v38, 4  ;;  %v8829_v62 = vrot.slane %v8828_v18, 4  ;;  %v8839_v16 = vrot.slane %v8838_v15, 4  ;;  %v8194_v36 = vld [vmem:[#allocation2 + $0x1a4] sm:$0xf] }
 0x2dd   :  { %v8852_v45 = vor.u32 %v8851_v31, %v8848_v40  ;;  %v8865_v49 = vshll.u32 %v8184_v25, 16  ;;  %v11689_v56 = vcombine.low %v8810_v33, %v8820_v24  ;;  %v8862_v51 = vor.u32 %v8861_v21, %v16636_v44  ;;  %v8193_v31 = vld [vmem:[#allocation2 + $0x1a0] sm:$0x1] }
 0x2de   :  { %v8876_v3 = vor.u32 %v8875_v7, %v8872_v30  ;;  %v8889_v37 = vshll.u32 %v8187_v1, 16  ;;  %v8894_v60 = vshrl.u32 %v8188_v55, 16  ;;  %v8886_v11 = vor.u32 %v8885_v41, %v16638_v29  ;;  %v13631_v25 = vld [vmem:[#allocation2 + $0x60] sm:$0xff]  }
 0x2df   :  { %12982 = vmatmul.mubr.msk.bf16.gmra.mrb[44].mxu0 %vm2617_vm11, %v11687_v53  ;;  %v8897_v50 = vshll.u32 %v8188_v55, 16  ;;  %v8903_v22 = vshll.u32 %v8189_v4, 16  ;;  %v8907_v14 = vshrl.u32 %v8189_v4, 16  ;;  %v8834_v23 = vsel %vm14024_vm13, %v8829_v62, %v16616_v39  ;;  %v13632_v55 = vld [vmem:[#allocation2 + $0x6c] sm:$0xff]  }
 0x2e0   :  { %12678 = vmatmul.mubr.msk.bf16.gmra.mrb[4].mxu1 %vm2617_vm11, %v13627_v63  ;;  %12985 = vmatprep.mubr.msk.bf16.mxu0 %vm2617_vm11, %v11688_v13  ;;  %v8844_v52 = vsel %vm14024_vm13, %v8839_v16, %v8843_v34  ;;  %v8853_v57 = vrot.slane %v8852_v45, 4  ;;  %v8867_v48 = vrot.slane %v8865_v49, 5  ;;  %v8918_v27 = vshrl.u32 %v8191_v59, 16  ;;  %v8195_v63 = vld [vmem:[#allocation2 + $0x1a8] sm:$0xf] }
 0x2e1   :  { %12681 = vmatprep.mubr.msk.bf16.mxu1 %vm2617_vm11, %v13628_v10  ;;  %v8921_v9 = vshll.u32 %v8191_v59, 16  ;;  %v8927_v6 = vshll.u32 %v8192_v47, 16  ;;  %v8931_v54 = vshrl.u32 %v8192_v47, 16  ;;  %v8863_v35 = vrot.slane %v8862_v51, 4  ;;  %v8196_v59 = vld [vmem:[#allocation2 + $0x1ac] sm:$0x1] }
 0x2e2   :  { %v8877_v42 = vrot.slane %v8876_v3, 4  ;;  %v8891_v12 = vrot.slane %v8889_v37, 5  ;;  %v8896_v8 = vrot.slane %v8894_v60, 4  ;;  %v8887_v46 = vrot.slane %v8886_v11, 4  ;;  %v13633_v11 = vld [vmem:[#allocation2 + $0x78] sm:$0xff]  }
 0x2e3   :  { %v8899_v28 = vrot.slane %v8897_v50, 5  ;;  %v8905_v32 = vrot.slane %v8903_v22, 5  ;;  %v8909_v26 = vrot.slane %v8907_v14, 4  ;;  %v11690_v39 = vcombine.low %v8834_v23, %v8844_v52  ;;  %v13634_v23 = vld [vmem:[#allocation2 + $0x84] sm:$0xff]  }
 0x2e4   :  { %v8920_v17 = vrot.slane %v8918_v27, 4  ;;  %v8923_v19 = vrot.slane %v8921_v9, 5  ;;  %v8929_v43 = vrot.slane %v8927_v6, 5  ;;  %v8933_v38 = vrot.slane %v8931_v54, 4  ;;  %v9515_v27 = vld [vmem:[#allocation2 + $0x18] sm:$0xe] }
 0x2e5   :  { %v8858_v18 = vsel %vm14024_vm13, %v8853_v57, %v16636_v44  ;;  %v8868_v15 = vsel %vm14024_vm13, %v8863_v35, %v8867_v48  ;;  %v8882_v40 = vsel %vm14024_vm13, %v8877_v42, %v16638_v29  ;;  %v8892_v10 = vsel %vm14024_vm13, %v8887_v46, %v8891_v12  ;;  %v13788_v48 = vld [vmem:[#allocation2 + $0x1c] sm:$0xf]  ;;  %v13789_v46 = vld [vmem:[#allocation2 + $0x20] sm:$0x1] }
 0x2e6   :  { %v8900_v53 = vor.u32 %v8899_v28, %v8896_v8  ;;  %v8910_v33 = vor.u32 %v8909_v26, %v8905_v32  ;;  %v8913_v24 = vshll.u32 %v8190_v58, 16  ;;  %v8942_v44 = vshrl.u32 %v8194_v36, 16  ;;  %v13790_v58 = vld [vmem:[#allocation2 + $0x28] sm:$0xf] }
 0x2e7   :  { %12986 = vmatmul.mubr.msk.bf16.gmra.mrb[48].mxu0 %vm2617_vm11, %v11689_v56  ;;  %v8945_v21 = vshll.u32 %v8194_v36, 16  ;;  %v8951_v30 = vshll.u32 %v8195_v63, 16  ;;  %v8955_v7 = vshrl.u32 %v8195_v63, 16  ;;  %v8924_v13 = vor.u32 %v8923_v19, %v8920_v17  ;;  %v13636_v17 = vld [vmem:[#allocation2 + $0x9c] sm:$0xff]   ;;  %v13791_v63 = vld [vmem:[#allocation2 + $0x34] sm:$0xf] }
 0x2e8   :  { %12682 = vmatmul.mubr.msk.bf16.gmra.mrb[8].mxu1 %vm2617_vm11, %v13629_v0  ;;  %12989 = vmatprep.mubr.msk.bf16.mxu0 %vm2617_vm11, %v11690_v39  ;;  %v8934_v34 = vor.u32 %v8933_v38, %v8929_v43  ;;  %v8937_v1 = vshll.u32 %v8193_v31, 16  ;;  %v11691_v29 = vcombine.low %v8858_v18, %v8868_v15  ;;  %v11692_v41 = vcombine.low %v8882_v40, %v8892_v10  ;;  %v9516_v38 = vld [vmem:[#allocation2 + $0x24] sm:$0xe]  ;;  %v9517_v15 = vld [vmem:[#allocation2 + $0x30] sm:$0xe] }
 0x2e9   :  { %12685 = vmatprep.mubr.msk.bf16.mxu1 %vm2617_vm11, %v13630_v2  ;;  %v8901_v62 = vrot.slane %v8900_v53, 4  ;;  %v8911_v16 = vrot.slane %v8910_v33, 4  ;;  %v8915_v45 = vrot.slane %v8913_v24, 5  ;;  %v8944_v49 = vrot.slane %v8942_v44, 4  ;;  %v13792_v33 = vld [vmem:[#allocation2 + $0x2c] sm:$0x1] }
 0x2ea   :  { %v8947_v4 = vrot.slane %v8945_v21, 5  ;;  %v8953_v56 = vrot.slane %v8951_v30, 5  ;;  %v8957_v51 = vrot.slane %v8955_v7, 4  ;;  %v8925_v3 = vrot.slane %v8924_v13, 4  ;;  %v13793_v21 = vld [vmem:[#allocation2 + $0x38] sm:$0x1] }
 0x2eb   :  { %v8935_v37 = vrot.slane %v8934_v34, 4  ;;  %v8939_v60 = vrot.slane %v8937_v1, 5  ;;  %v8906_v47 = vsel %vm14024_vm13, %v8901_v62, %v8905_v32  ;;  %v8916_v50 = vsel %vm14024_vm13, %v8911_v16, %v8915_v45  ;;  %v13635_v32 = vld [vmem:[#allocation2 + $0x90] sm:$0xff]   ;;  %v13637_v7 = vld [vmem:[#allocation2 + $0xa8] sm:$0xff]   ;;  %v13794_v34 = vld [vmem:[#allocation2 + $0x40] sm:$0xf] }
 0x2ec   :  { %v8948_v22 = vor.u32 %v8947_v4, %v8944_v49  ;;  %v8958_v14 = vor.u32 %v8957_v51, %v8953_v56  ;;  %v8961_v0 = vshll.u32 %v8196_v59, 16  ;;  %v8930_v52 = vsel %vm14024_vm13, %v8925_v3, %v8929_v43  ;;  %v9518_v16 = vld [vmem:[#allocation2 + $0x3c] sm:$0xe]  ;;  %v13795_v45 = vld [vmem:[#allocation2 + $0x4c] sm:$0xf] }
 0x2ed   :  { %v8940_v57 = vsel %vm14024_vm13, %v8935_v37, %v8939_v60  ;;  %v9645_v2 = vrot.slane %v13788_v48, 5  ;;  %v11693_v9 = vcombine.low %v8906_v47, %v8916_v50  ;;  %v11728_v12 = vrot.slane %v9515_v27, 9  ;;  %v9519_v4 = vld [vmem:[#allocation2 + $0x48] sm:$0xe]  ;;  %v13796_v60 = vld [vmem:[#allocation2 + $0x44] sm:$0x1] }
 0x2ee   :  { %v11694_v6 = vcombine.low %v8930_v52, %v8940_v57  ;;  %v8949_v54 = vrot.slane %v8948_v22, 4  ;;  %v8959_v35 = vrot.slane %v8958_v14, 4  ;;  %v8963_v42 = vrot.slane %v8961_v0, 5  ;;  %v13797_v50 = vld [vmem:[#allocation2 + $0x50] sm:$0x1] }
 0x2ef   :  { %12990 = vmatmul.mubr.msk.bf16.gmra.mrb[52].mxu0 %vm2617_vm11, %v11691_v29  ;;  %v9647_v8 = vrot.slane %v9645_v2, 4  ;;  %v9648_v28 = vrot.slane %v13789_v46, 5  ;;  %v9652_v36 = vrot.slane %v13790_v58, 5  ;;  %v9646_v19 = vsel %vm14721_vm2, %v11728_v12, %v9645_v2  ;;  %v13638_v29 = vld [vmem:[#allocation2 + $0xb4] sm:$0xff]   ;;  %v13640_v2 = vld [vmem:[#allocation2 + $0xe4] sm:$0xff]  }
 0x2f0   :  { %12686 = vmatmul.mubr.msk.bf16.gmra.mrb[12].mxu1 %vm2617_vm11, %v13631_v25  ;;  %12993 = vmatprep.mubr.msk.bf16.mxu0 %vm2617_vm11, %v11692_v41  ;;  %v8954_v26 = vsel %vm14024_vm13, %v8949_v54, %v8953_v56  ;;  %v8964_v39 = vsel %vm14024_vm13, %v8959_v35, %v8963_v42  ;;  %v9659_v18 = vrot.slane %v13791_v63, 5  ;;  %v11729_v10 = vrot.slane %v9516_v38, 9  ;;  %v13798_v14 = vld [vmem:[#allocation2 + $0x58] sm:$0xf]  ;;  %v9520_v48 = vld [vmem:[#allocation2 + $0x54] sm:$0xe] }
 0x2f1   :  { %12689 = vmatprep.mubr.msk.bf16.mxu1 %vm2617_vm11, %v13632_v55  ;;  %v9649_v43 = vsel %vm14721_vm2, %v9647_v8, %v9648_v28  ;;  %v11695_v40 = vcombine.low %v8954_v26, %v8964_v39  ;;  %v9654_v53 = vrot.slane %v9652_v36, 4  ;;  %v9655_v24 = vrot.slane %v13792_v33, 5  ;;  %v9521_v35 = vld [vmem:[#allocation2 + $0x60] sm:$0xe]  ;;  %v13800_v46 = vld [vmem:[#allocation2 + $0x5c] sm:$0x1] }
 0x2f2   :  { %v11761_v31 = vcombine.low %v9646_v19, %v9649_v43  ;;  %v11730_v25 = vrot.slane %v9517_v15, 9  ;;  %v9661_v44 = vrot.slane %v9659_v18, 4  ;;  %v9662_v30 = vrot.slane %v13793_v21, 5  ;;  %v13801_v58 = vld [vmem:[#allocation2 + $0x68] sm:$0x1] }
 0x2f3   :  { %v9653_v55 = vsel %vm14721_vm2, %v11729_v10, %v9652_v36  ;;  %v9656_v13 = vsel %vm14721_vm2, %v9654_v53, %v9655_v24  ;;  %v9666_v1 = vrot.slane %v13794_v34, 5  ;;  %v9673_v49 = vrot.slane %v13795_v45, 5  ;;  %v13802_v19 = vld [vmem:[#allocation2 + $0x70] sm:$0xf]  ;;  %v13803_v15 = vld [vmem:[#allocation2 + $0x7c] sm:$0xf] }
 0x2f4   :  { %v9660_v41 = vsel %vm14721_vm2, %v11730_v25, %v9659_v18  ;;  %v9663_v62 = vsel %vm14721_vm2, %v9661_v44, %v9662_v30  ;;  %v11762_v56 = vcombine.low %v9653_v55, %v9656_v13  ;;  %v11731_v3 = vrot.slane %v9518_v16, 9  ;;  %v9523_v18 = vld [vmem:[#allocation2 + $0x78] sm:$0xe]  ;;  %v13642_v10 = vld [vmem:[#allocation2 + $0xfc] sm:$0xff]   ;;  %v13804_v21 = vld [vmem:[#allocation2 + $0x74] sm:$0x1] }
 0x2f5   :  { %v11763_v51 = vcombine.low %v9660_v41, %v9663_v62  ;;  %v9668_v37 = vrot.slane %v9666_v1, 4  ;;  %v9669_v59 = vrot.slane %v13796_v60, 5  ;;  %v11732_v47 = vrot.slane %v9519_v4, 9  ;;  %v9524_v55 = vld [vmem:[#allocation2 + $0x84] sm:$0xe] }
 0x2f6   :  { %v9676_v22 = vrot.slane %v13797_v50, 5  ;;  %v9680_v0 = vrot.slane %v13798_v14, 5  ;;  %v9667_v52 = vsel %vm14721_vm2, %v11731_v3, %v9666_v1  ;;  %v11733_v12 = vrot.slane %v9520_v48, 9  ;;  %v13805_v34 = vld [vmem:[#allocation2 + $0x80] sm:$0x1] }
 0x2f7   :  { %12994 = vmatmul.mubr.msk.bf16.gmra.mrb[56].mxu0 %vm2617_vm11, %v11693_v9  ;;  %v9670_v57 = vsel %vm14721_vm2, %v9668_v37, %v9669_v59  ;;  %v9674_v27 = vsel %vm14721_vm2, %v11732_v47, %v9673_v49  ;;  %v9683_v28 = vrot.slane %v13800_v46, 5  ;;  %v11734_v26 = vrot.slane %v9521_v35, 9  ;;  %v9525_v62 = vld [vmem:[#allocation2 + $0x90] sm:$0xe]  ;;  %v13807_v16 = vld [vmem:[#allocation2 + $0x94] sm:$0xf] }
 0x2f8   :  { %12690 = vmatmul.mubr.msk.bf16.gmra.mrb[16].mxu1 %vm2617_vm11, %v13633_v11  ;;  %12997 = vmatprep.mubr.msk.bf16.mxu0 %vm2617_vm11, %v11694_v6  ;;  %v9675_v11 = vrot.slane %v9673_v49, 4  ;;  %v13799_v6 = vld [vmem:[#allocation2 + $0x64] sm:$0xf]  ;;  %v11764_v42 = vcombine.low %v9667_v52, %v9670_v57  ;;  %v9682_v8 = vrot.slane %v9680_v0, 4  ;;  %v9690_v36 = vrot.slane %v13801_v58, 5  ;;  %v13644_v46 = vld [vmem:[#allocation2 + $0x114] sm:$0xff]  }
 0x2f9   :  { %12693 = vmatprep.mubr.msk.bf16.mxu1 %vm2617_vm11, %v13634_v23  ;;  %v13639_v23 = vld [vmem:[#allocation2 + $0xc0] sm:$0xff]   ;;  %v9687_v54 = vrot.slane %v13799_v6, 5  ;;  %v9694_v43 = vrot.slane %v13802_v19, 5  ;;  %v9681_v38 = vsel %vm14721_vm2, %v11733_v12, %v9680_v0  ;;  %v9697_v30 = vrot.slane %v13804_v21, 5  ;;  %v9526_v37 = vld [vmem:[#allocation2 + $0x9c] sm:$0xe] }
 0x2fa   :  { %v9677_v9 = vsel %vm14721_vm2, %v9675_v11, %v9676_v22  ;;  %v9684_v63 = vsel %vm14721_vm2, %v9682_v8, %v9683_v28  ;;  %v9704_v1 = vrot.slane %v13805_v34, 5  ;;  %v9715_v45 = vrot.slane %v13807_v16, 5  ;;  %v13808_v4 = vld [vmem:[#allocation2 + $0xa0] sm:$0xf]  ;;  %v13809_v60 = vld [vmem:[#allocation2 + $0xac] sm:$0xf] }
 0x2fb   :  { %v9689_v39 = vrot.slane %v9687_v54, 4  ;;  %v9688_v53 = vsel %vm14721_vm2, %v11734_v26, %v9687_v54  ;;  %v11766_v25 = vcombine.low %v9681_v38, %v9684_v63  ;;  %v9696_v44 = vrot.slane %v9694_v43, 4  ;;  %v13810_v50 = vld [vmem:[#allocation2 + $0x8c] sm:$0x1]  ;;  %v9527_v0 = vld [vmem:[#allocation2 + $0xa8] sm:$0xe] }
 0x2fc   :  { %v11737_v3 = vrot.slane %v9524_v55, 9  ;;  %v9729_v59 = vrot.slane %v13809_v60, 5  ;;  %v9711_v22 = vrot.slane %v13810_v50, 5  ;;  %v11738_v14 = vrot.slane %v9525_v62, 9  ;;  %v13812_v54 = vld [vmem:[#allocation2 + $0xa4] sm:$0x1] }
 0x2fd   :  { %v9691_v33 = vsel %vm14721_vm2, %v9689_v39, %v9690_v36  ;;  %v9698_v47 = vsel %vm14721_vm2, %v9696_v44, %v9697_v30  ;;  %v9717_v48 = vrot.slane %v9715_v45, 4  ;;  %v9725_v35 = vrot.slane %v13812_v54, 5  ;;  %v13813_v12 = vld [vmem:[#allocation2 + $0xb8] sm:$0xf]  ;;  %v13814_v26 = vld [vmem:[#allocation2 + $0xb0] sm:$0x1] }
 0x2fe   :  { %v11767_v49 = vcombine.low %v9688_v53, %v9691_v33  ;;  %v9736_v8 = vrot.slane %v13813_v12, 5  ;;  %v11740_v28 = vrot.slane %v9527_v0, 9  ;;  %v9732_v39 = vrot.slane %v13814_v26, 5  ;;  %v13817_v55 = vld [vmem:[#allocation2 + $0xd0] sm:$0xf] }
 0x2ff   :  { %12998 = vmatmul.mubr.msk.bf16.gmra.mrb[60].mxu0 %vm2617_vm11, %v11695_v40  ;;  %v9701_v40 = vrot.slane %v13803_v15, 5  ;;  %v16743_v19 = vsel %vm14721_vm2, %v11738_v14, %v9715_v45  ;;  %v13815_v15 = vld [vmem:[#allocation2 + $0xc4] sm:$0xf]  ;;  %v13646_v50 = vld [vmem:[#allocation2 + $0x12c] sm:$0xff]   ;;  %v13820_v0 = vld [vmem:[#allocation2 + $0xe8] sm:$0xf] }
 0x300   :  { %12694 = vmatmul.mubr.msk.bf16.gmra.mrb[20].mxu1 %vm2617_vm11, %v13635_v32  ;;  %13003 = vmatprep.mubr.msk.bf16.mxu0 %vm2617_vm11, %v11761_v31  ;;  %v11765_v32 = vcombine.low %v9674_v27, %v9677_v9  ;;  %v13641_v31 = vld [vmem:[#allocation2 + $0xf0] sm:$0xff]   ;;  %v11739_v9 = vrot.slane %v9526_v37, 9  ;;  %v9738_v33 = vrot.slane %v9736_v8, 4  ;;  %v16765_v44 = vsel %vm14721_vm2, %v11740_v28, %v9729_v59 }
 0x301   :  { %12697 = vmatprep.mubr.msk.bf16.mxu1 %vm2617_vm11, %v13636_v17  ;;  %v9522_v17 = vld [vmem:[#allocation2 + $0x6c] sm:$0xe]  ;;  %v9703_v13 = vrot.slane %v9701_v40, 4  ;;  %vm11067_vm0 = vcmask 1040384  }
 0x302   :  { %v11735_v24 = vrot.slane %v9522_v17, 9 }
 0x303   :  { %v9705_v52 = vsel %vm14721_vm2, %v9703_v13, %v9704_v1  ;;  %v9750_v13 = vrot.slane %v13817_v55, 5 }
 0x305   :  { %v9752_v14 = vrot.slane %v9750_v13, 4 }
 0x307   :  { %13004 = vmatmul.mubr.msk.bf16.vlgmr.msra.gmra.mrb[0].mxu0 %vm2617_vm11, %v11762_v56  ;;  %v9722_v56 = vrot.slane %v13808_v4, 5 }
 0x308   :  { %12698 = vmatmul.mubr.msk.bf16.gmra.mrb[24].mxu1 %vm2617_vm11, %v13637_v7  ;;  %13007 = vmatprep.mubr.msk.bf16.mxu0 %vm2617_vm11, %v11763_v51  ;;  %v11736_v7 = vrot.slane %v9523_v18, 9  ;;  %v9695_v51 = vsel %vm14721_vm2, %v11735_v24, %v9694_v43  ;;  %v9529_v43 = vld [vmem:[#allocation2 + $0xc0] sm:$0xe]  ;;  %v13816_v24 = vld [vmem:[#allocation2 + $0xbc] sm:$0x1] }
 0x309   :  { %12701 = vmatprep.mubr.msk.bf16.mxu1 %vm2617_vm11, %v13638_v29  ;;  %v13806_v29 = vld [vmem:[#allocation2 + $0x88] sm:$0xf]  ;;  %v9724_v6 = vrot.slane %v9722_v56, 4  ;;  %v11768_v58 = vcombine.low %v9695_v51, %v9698_v47  ;;  %v11742_v30 = vrot.slane %v9529_v43, 9  ;;  %v13645_v51 = vld [vmem:[#allocation2 + $0x120] sm:$0xff]  }
 0x30a   :  { %v9708_v41 = vrot.slane %v13806_v29, 5  ;;  %v9702_v11 = vsel %vm14721_vm2, %v11736_v7, %v9701_v40  ;;  %v9743_v40 = vrot.slane %v13815_v15, 5  ;;  %v9530_v7 = vld [vmem:[#allocation2 + $0xcc] sm:$0xe]  ;;  %v9531_v43 = vld [vmem:[#allocation2 + $0xf0] sm:$0xe] }
 0x30b   :  { %v11769_v36 = vcombine.low %v9702_v11, %v9705_v52  ;;  %v16760_v53 = vsel %vm14721_vm2, %v9724_v6, %v9725_v35  ;;  %v11743_v60 = vrot.slane %v9530_v7, 9  ;;  %v5163_v11 = vld [vmem:[#allocation2 + $0x108] sm:$0xf]  ;;  %v5600_v52 = vshrl.u32 %v13820_v0, 16 }
 0x30c   :  { %v9710_v57 = vrot.slane %v9708_v41, 4  ;;  %v16739_v17 = vsel %vm14721_vm2, %v11737_v3, %v9708_v41  ;;  %v9745_v45 = vrot.slane %v9743_v40, 4  ;;  %v5659_v35 = vshrl.u32 %v5163_v11, 16 }
 0x30e   :  { %v16747_v38 = vsel %vm14721_vm2, %v9710_v57, %v9711_v22  ;;  %v16791_v22 = vsel %vm14721_vm2, %v11742_v30, %v9743_v40 }
 0x30f   :  { %13008 = vmatmul.mubr.msk.bf16.gmra.mrb[4].mxu0 %vm2617_vm11, %v11764_v42  ;;  %v9528_v42 = vld [vmem:[#allocation2 + $0xb4] sm:$0xe]  ;;  %v11770_v34 = vcombine.low %v16739_v17, %v16747_v38 }
 0x310   :  { %12702 = vmatmul.mubr.msk.bf16.gmra.mrb[28].mxu1 %vm2617_vm11, %v13639_v23  ;;  %13011 = vmatprep.mubr.msk.bf16.mxu0 %vm2617_vm11, %v11765_v32  ;;  %v13643_v23 = vld [vmem:[#allocation2 + $0x108] sm:$0xff]   ;;  %v9731_v32 = vrot.slane %v9729_v59, 4  ;;  %v11741_v18 = vrot.slane %v9528_v42, 9  ;;  %v13819_v59 = vld [vmem:[#allocation2 + $0xd4] sm:$0x1]  ;;  %v5662_v42 = vshll.u32 %v5163_v11, 16 }
 0x311   :  { %12705 = vmatprep.mubr.msk.bf16.mxu1 %vm2617_vm11, %v13640_v2  ;;  %v13811_v2 = vld [vmem:[#allocation2 + $0x98] sm:$0x1]  ;;  %v9753_v47 = vrot.slane %v13819_v59, 5  ;;  %v13824_v38 = vld [vmem:[#allocation2 + $0xf4] sm:$0xf] }
 0x312   :  { %v9718_v27 = vrot.slane %v13811_v2, 5  ;;  %v16769_v21 = vsel %vm14721_vm2, %v9731_v32, %v9732_v39  ;;  %v16780_v16 = vsel %vm14721_vm2, %v11741_v18, %v9736_v8  ;;  %v16800_v8 = vsel %vm14721_vm2, %v11743_v60, %v9750_v13  ;;  %v13826_v60 = vld [vmem:[#allocation2 + $0x100] sm:$0xf] }
 0x313   :  { %v11773_v3 = vcombine.low %v16765_v44, %v16769_v21  ;;  %v16805_v26 = vsel %vm14721_vm2, %v9752_v14, %v9753_v47  ;;  %v9764_v59 = vrot.slane %v13826_v60, 5  ;;  %v13827_v47 = vld [vmem:[#allocation2 + $0x104] sm:$0x1] }
 0x314   :  { %v16751_v63 = vsel %vm14721_vm2, %v9717_v48, %v9718_v27  ;;  %v5654_v11 = vshll.u32 %v13827_v47, 16 }
 0x315   :  { %v11771_v1 = vcombine.low %v16743_v19, %v16751_v63  ;;  %v9757_v63 = vrot.slane %v13824_v38, 5 }
 0x317   :  { %13012 = vmatmul.mubr.msk.bf16.gmra.mrb[8].mxu0 %vm2617_vm11, %v11766_v25  ;;  %v9739_v25 = vrot.slane %v13816_v24, 5  ;;  %v5664_v24 = vrot.slane %v5662_v42, 5  ;;  %v13830_v42 = vld [vmem:[#allocation2 + $0x104] sm:$0x1] }
 0x318   :  { %12706 = vmatmul.mubr.msk.bf16.gmra.mrb[32].mxu1 %vm2617_vm11, %v13641_v31  ;;  %13015 = vmatprep.mubr.msk.bf16.mxu0 %vm2617_vm11, %v11767_v49  ;;  %v5154_v31 = vld [vmem:[#allocation2 + $0xe4] sm:$0xf]  ;;  %v13818_v49 = vld [vmem:[#allocation2 + $0xc8] sm:$0x1] }
 0x319   :  { %12709 = vmatprep.mubr.msk.bf16.mxu1 %vm2617_vm11, %v13642_v10  ;;  %v16756_v10 = vsel %vm14721_vm2, %v11739_v9, %v9722_v56  ;;  %v5587_v29 = vshrl.u32 %v5154_v31, 16  ;;  %v5590_v41 = vshll.u32 %v5154_v31, 16  ;;  %v9746_v4 = vrot.slane %v13818_v49, 5  ;;  %v5160_v56 = vld [vmem:[#allocation2 + $0xfc] sm:$0xf] }
 0x31a   :  { %v11772_v62 = vcombine.low %v16756_v10, %v16760_v53  ;;  %v16787_v37 = vsel %vm14721_vm2, %v9738_v33, %v9739_v25  ;;  %v5635_v2 = vshrl.u32 %v5160_v56, 16  ;;  %v5638_v27 = vshll.u32 %v5160_v56, 16  ;;  %v13821_v9 = vld [vmem:[#allocation2 + $0x100] sm:$0xf]  ;;  %v13647_v25 = vld [vmem:[#allocation2 + $0x138] sm:$0xff]  }
 0x31b   :  { %v5589_v57 = vrot.slane %v5587_v29, 4  ;;  %v5592_v48 = vrot.slane %v5590_v41, 5  ;;  %v5644_v6 = vshll.u32 %v13821_v9, 16  ;;  %v5648_v54 = vshrl.u32 %v13821_v9, 16  ;;  %v13648_v29 = vld [vmem:[#allocation2 + $0x144] sm:$0xff]  }
 0x31c   :  { %v16796_v12 = vsel %vm14721_vm2, %v9745_v45, %v9746_v4  ;;  %v5637_v18 = vrot.slane %v5635_v2, 4  ;;  %v5640_v15 = vrot.slane %v5638_v27, 5  ;;  %v5661_v33 = vrot.slane %v5659_v35, 4  ;;  %v13825_v49 = vld [vmem:[#allocation2 + $0xf8] sm:$0x1] }
 0x31d   :  { %v5593_v19 = vor.u32 %v5592_v48, %v5589_v57  ;;  %v16810_v40 = vrot.slane %v5644_v6, 5  ;;  %v5650_v31 = vrot.slane %v5648_v54, 4  ;;  %v11774_v30 = vcombine.low %v16780_v16, %v16787_v37  ;;  %v9532_v56 = vld [vmem:[#allocation2 + $0xfc] sm:$0xe]  ;;  %v13828_v48 = vld [vmem:[#allocation2 + $0x110] sm:$0x1] }
 0x31e   :  { %v11775_v7 = vcombine.low %v16791_v22, %v16796_v12  ;;  %v11744_v45 = vrot.slane %v9531_v43, 9  ;;  %v9760_v4 = vrot.slane %v13825_v49, 5  ;;  %v5641_v14 = vor.u32 %v5640_v15, %v5637_v18  ;;  %v9533_v27 = vld [vmem:[#allocation2 + $0x108] sm:$0xe]  ;;  %v13829_v9 = vld [vmem:[#allocation2 + $0x10c] sm:$0xf] }
 0x31f   :  { %13016 = vmatmul.mubr.msk.bf16.gmra.mrb[12].mxu0 %vm2617_vm11, %v11768_v58  ;;  %v5602_v58 = vrot.slane %v5600_v52, 4  ;;  %v11745_v52 = vrot.slane %v9532_v56, 9  ;;  %v5678_v2 = vshll.u32 %v13828_v48, 16  ;;  %v9771_v6 = vrot.slane %v13829_v9, 5  ;;  %v9534_v43 = vld [vmem:[#allocation2 + $0x114] sm:$0xe] }
 0x320   :  { %12710 = vmatmul.mubr.msk.bf16.gmra.mrb[36].mxu1 %vm2617_vm11, %v13643_v23  ;;  %13019 = vmatprep.mubr.msk.bf16.mxu0 %vm2617_vm11, %v11769_v36  ;;  %v5596_v23 = vshll.u32 %v13820_v0, 16  ;;  %v13823_v36 = vld [vmem:[#allocation2 + $0xec] sm:$0x1]  ;;  %v5651_v0 = vor.u32 %v5650_v31, %v16810_v40  ;;  %v16832_v35 = vsel %vm14721_vm2, %v11744_v45, %v9757_v63  ;;  %v5642_v38 = vrot.slane %v5641_v14, 4  ;;  %v5166_v31 = vld [vmem:[#allocation2 + $0x114] sm:$0xf] }
 0x321   :  { %12713 = vmatprep.mubr.msk.bf16.mxu1 %vm2617_vm11, %v13644_v46  ;;  %v13822_v46 = vld [vmem:[#allocation2 + $0x10c] sm:$0xf]  ;;  %v5606_v17 = vshll.u32 %v13823_v36, 16  ;;  %v11746_v15 = vrot.slane %v9533_v27, 9  ;;  %v16852_v10 = vsel %vm14721_vm2, %v11745_v52, %v9764_v59  ;;  %v11747_v53 = vrot.slane %v9534_v43, 9 }
 0x322   :  { %v5668_v28 = vshll.u32 %v13822_v46, 16  ;;  %v5672_v32 = vshrl.u32 %v13822_v46, 16  ;;  %v16807_v39 = vrot.slane %v5596_v23, 5  ;;  %v5665_v23 = vor.u32 %v5664_v24, %v5661_v33  ;;  %v13649_v33 = vld [vmem:[#allocation2 + $0x150] sm:$0xff]   ;;  %v13833_v45 = vld [vmem:[#allocation2 + $0x11c] sm:$0x1] }
 0x323   :  { %v9767_v46 = vrot.slane %v13830_v42, 5  ;;  %v5680_v24 = vrot.slane %v5678_v2, 5  ;;  %v9781_v49 = vrot.slane %v13833_v45, 5  ;;  %v5169_v56 = vld [vmem:[#allocation2 + $0x120] sm:$0xf] }
 0x324   :  { %v16817_v55 = vrot.slane %v5668_v28, 5  ;;  %v5674_v13 = vrot.slane %v5672_v32, 4  ;;  %v5603_v41 = vor.u32 %v5602_v58, %v16807_v39  ;;  %v13831_v28 = vld [vmem:[#allocation2 + $0x118] sm:$0xf]  ;;  %v5666_v18 = vrot.slane %v5665_v23, 4 }
 0x325   :  { %v9778_v32 = vrot.slane %v13831_v28, 5  ;;  %v5707_v23 = vshrl.u32 %v5169_v56, 16  ;;  %v5710_v52 = vshll.u32 %v5169_v56, 16  ;;  %v13835_v27 = vld [vmem:[#allocation2 + $0x11c] sm:$0x1]  ;;  %v13651_v28 = vld [vmem:[#allocation2 + $0x168] sm:$0xff]  }
 0x326   :  { %v5675_v57 = vor.u32 %v5674_v13, %v16817_v55  ;;  %v5604_v54 = vrot.slane %v5603_v41, 4  ;;  %v13832_v13 = vld [vmem:[#allocation2 + $0x110] sm:$0x1]  ;;  %v13650_v41 = vld [vmem:[#allocation2 + $0x15c] sm:$0xff]   ;;  %v5671_v60 = vsel %vm14024_vm13, %v5666_v18, %v16817_v55  ;;  %v5702_v9 = vshll.u32 %v13835_v27, 16 }
 0x327   :  { %13020 = vmatmul.mubr.msk.bf16.gmra.mrb[16].mxu0 %vm2617_vm11, %v11770_v34  ;;  %v11776_v34 = vcombine.low %v16800_v8, %v16805_v26  ;;  %v16883_v55 = vsel %vm14721_vm2, %v11747_v53, %v9778_v32 }
 0x328   :  { %12714 = vmatmul.mubr.msk.bf16.gmra.mrb[40].mxu1 %vm2617_vm11, %v13645_v51  ;;  %13023 = vmatprep.mubr.msk.bf16.mxu0 %vm2617_vm11, %v11771_v1  ;;  %v16822_v1 = vrot.slane %v5593_v19, 4  ;;  %v9759_v51 = vrot.slane %v9757_v63, 4  ;;  %v5656_v19 = vrot.slane %v5654_v11, 5  ;;  %v5652_v63 = vrot.slane %v5651_v0, 4 }
 0x329   :  { %12717 = vmatprep.mubr.msk.bf16.mxu1 %vm2617_vm11, %v13646_v50  ;;  %v16824_v50 = vrot.slane %v5606_v17, 5  ;;  %v9766_v17 = vrot.slane %v9764_v59, 4  ;;  %v16871_v59 = vsel %vm14721_vm2, %v11746_v15, %v9771_v6  ;;  %v16913_v15 = vrot.slane %v5702_v9, 5 }
 0x32a   :  { %v5599_v58 = vsel %vm14024_vm13, %v16822_v1, %v16807_v39  ;;  %v16840_v36 = vsel %vm14721_vm2, %v9759_v51, %v9760_v4  ;;  %v5676_v39 = vrot.slane %v5675_v57, 4  ;;  %v5686_v4 = vshll.u32 %v5166_v31, 16 }
 0x32b   :  { %v5609_v44 = vsel %vm14024_vm13, %v5604_v54, %v16824_v50  ;;  %v16859_v21 = vsel %vm14721_vm2, %v9766_v17, %v9767_v46  ;;  %v5647_v1 = vsel %vm14024_vm13, %v5642_v38, %v16810_v40  ;;  %v5657_v51 = vsel %vm14024_vm13, %v5652_v63, %v5656_v19  ;;  %v13834_v40 = vld [vmem:[#allocation2 + $0x118] sm:$0xf]  ;;  %v13836_v19 = vld [vmem:[#allocation2 + $0x124] sm:$0xf] }
 0x32c   :  { %v5681_v47 = vsel %vm14024_vm13, %v5676_v39, %v5680_v24  ;;  %v5692_v50 = vshll.u32 %v13834_v40, 16  ;;  %v5696_v14 = vshrl.u32 %v13834_v40, 16  ;;  %v11777_v57 = vcombine.low %v16832_v35, %v16840_v36  ;;  %v5172_v35 = vld [vmem:[#allocation2 + $0x12c] sm:$0xf]  ;;  %v5175_v63 = vld [vmem:[#allocation2 + $0x138] sm:$0xf] }
 0x32d   :  { %v5688_v2 = vrot.slane %v5686_v4, 5  ;;  %v11778_v54 = vcombine.low %v16852_v10, %v16859_v21  ;;  %v16899_v42 = vcombine.low %v5647_v1, %v5657_v51  ;;  %v16907_v16 = vcombine.low %v5671_v60, %v5681_v47  ;;  %v13838_v39 = vld [vmem:[#allocation2 + $0x124] sm:$0xf]  ;;  %v13849_v21 = vld [vmem:[#allocation2 + $0x148] sm:$0xf] }
 0x32e   :  { %v5709_v36 = vrot.slane %v5707_v23, 4  ;;  %v5712_v17 = vrot.slane %v5710_v52, 5  ;;  %v5716_v43 = vshll.u32 %v13836_v19, 16  ;;  %v5720_v38 = vshrl.u32 %v13836_v19, 16 }
 0x32f   :  { %13024 = vmatmul.mubr.msk.bf16.gmra.mrb[20].mxu0 %vm2617_vm11, %v11772_v62  ;;  %v9780_v62 = vrot.slane %v9778_v32, 4  ;;  %v13652_v32 = vld [vmem:[#allocation2 + $0x174] sm:$0xff]   ;;  %v5731_v22 = vshrl.u32 %v5172_v35, 16  ;;  %v5734_v12 = vshll.u32 %v5172_v35, 16  ;;  %v9785_v24 = vrot.slane %v13838_v39, 5 }
 0x330   :  { %12718 = vmatmul.mubr.msk.bf16.gmra.mrb[44].mxu1 %vm2617_vm11, %v13647_v25  ;;  %13027 = vmatprep.mubr.msk.bf16.mxu0 %vm2617_vm11, %v11773_v3  ;;  %v9773_v25 = vrot.slane %v9771_v6, 4  ;;  %v5683_v3 = vshrl.u32 %v5166_v31, 16  ;;  %v16895_v6 = vcombine.low %v5599_v58, %v5609_v44  ;;  %v5698_v58 = vrot.slane %v5696_v14, 4 }
 0x331   :  { %12721 = vmatprep.mubr.msk.bf16.mxu1 %vm2617_vm11, %v13648_v29  ;;  %v9774_v29 = vrot.slane %v13832_v13, 5  ;;  %v16887_v0 = vsel %vm14721_vm2, %v9780_v62, %v9781_v49  ;;  %v5758_v53 = vshll.u32 %v5175_v63, 16  ;;  %v13840_v62 = vld [vmem:[#allocation2 + $0x13c] sm:$0xf]  ;;  %v16918_v4 = vrot.slane %v5716_v43, 5 }
 0x332   :  { %v5685_v48 = vrot.slane %v5683_v3, 4  ;;  %v11780_v37 = vcombine.low %v16883_v55, %v16887_v0  ;;  %v5764_v45 = vshll.u32 %v13840_v62, 16  ;;  %v5768_v49 = vshrl.u32 %v13840_v62, 16  ;;  %v13843_v43 = vld [vmem:[#allocation2 + $0x134] sm:$0x1] }
 0x333   :  { %v16878_v11 = vsel %vm14721_vm2, %v9773_v25, %v9774_v29  ;;  %v13839_v25 = vld [vmem:[#allocation2 + $0x130] sm:$0xf]  ;;  %v5713_v3 = vor.u32 %v5712_v17, %v5709_v36  ;;  %v5722_v56 = vrot.slane %v5720_v38, 4  ;;  %v5733_v60 = vrot.slane %v5731_v22, 4 }
 0x334   :  { %v11779_v46 = vcombine.low %v16871_v59, %v16878_v11  ;;  %v5689_v18 = vor.u32 %v5688_v2, %v5685_v48  ;;  %v5740_v13 = vshll.u32 %v13839_v25, 16  ;;  %v5744_v29 = vshrl.u32 %v13839_v25, 16  ;;  %v13653_v48 = vld [vmem:[#allocation2 + $0x180] sm:$0xff]   ;;  %v13845_v25 = vld [vmem:[#allocation2 + $0x13c] sm:$0xf] }
 0x335   :  { %v5736_v47 = vrot.slane %v5734_v12, 5  ;;  %v9787_v40 = vrot.slane %v9785_v24, 4  ;;  %v5760_v27 = vrot.slane %v5758_v53, 5  ;;  %v16929_v9 = vrot.slane %v5764_v45, 5  ;;  %v13844_v12 = vld [vmem:[#allocation2 + $0x140] sm:$0x1] }
 0x336   :  { %v16920_v1 = vrot.slane %v5689_v18, 4  ;;  %v16926_v23 = vrot.slane %v5740_v13, 5  ;;  %v5746_v52 = vrot.slane %v5744_v29, 4  ;;  %v5770_v35 = vrot.slane %v5768_v49, 4  ;;  %v13846_v53 = vld [vmem:[#allocation2 + $0x134] sm:$0x1] }
 0x337   :  { %13028 = vmatmul.mubr.msk.bf16.gmra.mrb[24].mxu0 %vm2617_vm11, %v11774_v30  ;;  %v16911_v30 = vrot.slane %v5692_v50, 5  ;;  %v13841_v50 = vld [vmem:[#allocation2 + $0x128] sm:$0x1]  ;;  %v16933_v8 = vrot.slane %v5713_v3, 4  ;;  %v5723_v26 = vor.u32 %v5722_v56, %v16918_v4  ;;  %v5737_v19 = vor.u32 %v5736_v47, %v5733_v60  ;;  %v5178_v56 = vld [vmem:[#allocation2 + $0x144] sm:$0xf] }
 0x338   :  { %12722 = vmatmul.mubr.msk.bf16.gmra.mrb[48].mxu1 %vm2617_vm11, %v13649_v33  ;;  %13031 = vmatprep.mubr.msk.bf16.mxu0 %vm2617_vm11, %v11775_v7  ;;  %v13837_v7 = vld [vmem:[#allocation2 + $0x128] sm:$0x1]  ;;  %v9535_v33 = vld [vmem:[#allocation2 + $0x120] sm:$0xe]  ;;  %v9788_v14 = vrot.slane %v13841_v50, 5  ;;  %v5750_v38 = vshll.u32 %v13843_v43, 16  ;;  %v5747_v22 = vor.u32 %v5746_v52, %v16926_v23  ;;  %v5771_v39 = vor.u32 %v5770_v35, %v16929_v9 }
 0x339   :  { %12725 = vmatprep.mubr.msk.bf16.mxu1 %vm2617_vm11, %v13650_v41  ;;  %v5726_v31 = vshll.u32 %v13837_v7, 16  ;;  %v5755_v41 = vshrl.u32 %v5175_v63, 16  ;;  %v5699_v44 = vor.u32 %v5698_v58, %v16911_v30  ;;  %v11748_v51 = vrot.slane %v9535_v33, 9  ;;  %v9536_v58 = vld [vmem:[#allocation2 + $0x12c] sm:$0xe] }
 0x33a   :  { %v5695_v63 = vsel %vm14024_vm13, %v16920_v1, %v16911_v30  ;;  %v16948_v18 = vsel %vm14721_vm2, %v9787_v40, %v9788_v14  ;;  %v5774_v7 = vshll.u32 %v13844_v12, 16  ;;  %v9799_v13 = vrot.slane %v13845_v25, 5  ;;  %v13655_v1 = vld [vmem:[#allocation2 + $0x198] sm:$0xff]   ;;  %v9538_v52 = vld [vmem:[#allocation2 + $0x144] sm:$0xe] }
 0x33b   :  { %v5757_v2 = vrot.slane %v5755_v41, 4  ;;  %v16940_v36 = vsel %vm14721_vm2, %v11748_v51, %v9785_v24  ;;  %v9537_v24 = vld [vmem:[#allocation2 + $0x138] sm:$0xe]  ;;  %v5719_v29 = vsel %vm14024_vm13, %v16933_v8, %v16918_v4  ;;  %v5724_v41 = vrot.slane %v5723_v26, 4  ;;  %v13847_v4 = vld [vmem:[#allocation2 + $0x140] sm:$0x1] }
 0x33c   :  { %v9795_v62 = vrot.slane %v13846_v53, 5  ;;  %v11781_v45 = vcombine.low %v16940_v36, %v16948_v18  ;;  %v5752_v3 = vrot.slane %v5750_v38, 5  ;;  %v5776_v51 = vrot.slane %v5774_v7, 5  ;;  %v5181_v36 = vld [vmem:[#allocation2 + $0x150] sm:$0xf] }
 0x33d   :  { %v5761_v33 = vor.u32 %v5760_v27, %v5757_v2  ;;  %v11750_v60 = vrot.slane %v9537_v24, 9  ;;  %v9802_v47 = vrot.slane %v13847_v4, 5  ;;  %v5772_v50 = vrot.slane %v5771_v39, 4  ;;  %v13851_v39 = vld [vmem:[#allocation2 + $0x154] sm:$0xf] }
 0x33e   :  { %v9801_v14 = vrot.slane %v9799_v13, 4  ;;  %v5779_v27 = vshrl.u32 %v5178_v56, 16  ;;  %v5782_v10 = vshll.u32 %v5178_v56, 16  ;;  %v5792_v35 = vshrl.u32 %v13849_v21, 16  ;;  %v9539_v0 = vld [vmem:[#allocation2 + $0x150] sm:$0xe] }
 0x33f   :  { %13032 = vmatmul.mubr.msk.bf16.gmra.mrb[28].mxu0 %vm2617_vm11, %v11776_v34  ;;  %v16936_v34 = vrot.slane %v5726_v31, 5  ;;  %v11749_v31 = vrot.slane %v9536_v58, 9  ;;  %v5762_v40 = vrot.slane %v5761_v33, 4  ;;  %v16990_v8 = vsel %vm14721_vm2, %v11750_v60, %v9799_v13  ;;  %v5184_v13 = vld [vmem:[#allocation2 + $0x15c] sm:$0xf] }
 0x340   :  { %12726 = vmatmul.mubr.msk.bf16.gmra.mrb[52].mxu1 %vm2617_vm11, %v13651_v28  ;;  %13035 = vmatprep.mubr.msk.bf16.mxu0 %vm2617_vm11, %v11777_v57  ;;  %v13654_v28 = vld [vmem:[#allocation2 + $0x18c] sm:$0xff]   ;;  %v11751_v26 = vrot.slane %v9538_v52, 9  ;;  %v5781_v43 = vrot.slane %v5779_v27, 4  ;;  %v5784_v38 = vrot.slane %v5782_v10, 5  ;;  %v5812_v24 = vshll.u32 %v13851_v39, 16 }
 0x341   :  { %12729 = vmatprep.mubr.msk.bf16.mxu1 %vm2617_vm11, %v13652_v32  ;;  %v16931_v32 = vrot.slane %v5699_v44, 4  ;;  %v13842_v57 = vld [vmem:[#allocation2 + $0x130] sm:$0xf]  ;;  %v5738_v44 = vrot.slane %v5737_v19, 4  ;;  %v5816_v25 = vshrl.u32 %v13851_v39, 16  ;;  %v5827_v56 = vshrl.u32 %v5184_v13, 16 }
 0x342   :  { %v9792_v17 = vrot.slane %v13842_v57, 5  ;;  %v5767_v57 = vsel %vm14024_vm13, %v5762_v40, %v16929_v9  ;;  %v5803_v9 = vshrl.u32 %v5181_v36, 16  ;;  %v5785_v53 = vor.u32 %v5784_v38, %v5781_v43  ;;  %v13854_v4 = vld [vmem:[#allocation2 + $0x158] sm:$0x1] }
 0x343   :  { %v5705_v30 = vsel %vm14024_vm13, %v16931_v32, %v16913_v15  ;;  %v5748_v15 = vrot.slane %v5747_v22, 4  ;;  %v5794_v22 = vrot.slane %v5792_v35, 4  ;;  %v11752_v60 = vrot.slane %v9539_v0, 9  ;;  %v13857_v35 = vld [vmem:[#allocation2 + $0x158] sm:$0x1] }
 0x344   :  { %v9794_v49 = vrot.slane %v9792_v17, 4  ;;  %v16977_v59 = vsel %vm14721_vm2, %v11749_v31, %v9792_v17  ;;  %v17000_v17 = vsel %vm14721_vm2, %v9801_v14, %v9802_v47  ;;  %v17006_v12 = vcombine.low %v5695_v63, %v5705_v30  ;;  %v13855_v14 = vld [vmem:[#allocation2 + $0x160] sm:$0xf] }
 0x345   :  { %v5753_v32 = vsel %vm14024_vm13, %v5748_v15, %v5752_v3  ;;  %v5806_v31 = vshll.u32 %v5181_v36, 16  ;;  %v11783_v30 = vcombine.low %v16990_v8, %v17000_v17  ;;  %v17032_v15 = vrot.slane %v5812_v24, 5 }
 0x346   :  { %v16981_v11 = vsel %vm14721_vm2, %v9794_v49, %v9795_v62  ;;  %v9816_v47 = vrot.slane %v13854_v4, 5  ;;  %v9820_v52 = vrot.slane %v13855_v14, 5  ;;  %v5786_v10 = vrot.slane %v5785_v53, 4  ;;  %v13863_v14 = vld [vmem:[#allocation2 + $0x178] sm:$0xf] }
 0x347   :  { %13036 = vmatmul.mubr.msk.bf16.gmra.mrb[32].mxu0 %vm2617_vm11, %v11778_v54  ;;  %v5788_v54 = vshll.u32 %v13849_v21, 16  ;;  %v11782_v33 = vcombine.low %v16977_v59, %v16981_v11  ;;  %v5808_v3 = vrot.slane %v5806_v31, 5 }
 0x348   :  { %12730 = vmatmul.mubr.msk.bf16.gmra.mrb[56].mxu1 %vm2617_vm11, %v13653_v48  ;;  %13039 = vmatprep.mubr.msk.bf16.mxu0 %vm2617_vm11, %v11779_v46  ;;  %v13848_v48 = vld [vmem:[#allocation2 + $0x148] sm:$0xf]  ;;  %v5743_v46 = vsel %vm14024_vm13, %v5738_v44, %v16926_v23  ;;  %v5777_v23 = vsel %vm14024_vm13, %v5772_v50, %v5776_v51  ;;  %v5805_v44 = vrot.slane %v5803_v9, 4  ;;  %v5818_v51 = vrot.slane %v5816_v25, 4  ;;  %v9540_v50 = vld [vmem:[#allocation2 + $0x15c] sm:$0xe] }
 0x349   :  { %12733 = vmatprep.mubr.msk.bf16.mxu1 %vm2617_vm11, %v13654_v28  ;;  %v9806_v2 = vrot.slane %v13848_v48, 5  ;;  %v5729_v28 = vsel %vm14024_vm13, %v5724_v41, %v16936_v34  ;;  %v13850_v34 = vld [vmem:[#allocation2 + $0x14c] sm:$0x1]  ;;  %v17004_v18 = vrot.slane %v5788_v54, 5  ;;  %v17019_v63 = vcombine.low %v5767_v57, %v5777_v23  ;;  %v13856_v48 = vld [vmem:[#allocation2 + $0x160] sm:$0xf] }
 0x34a   :  { %v9809_v58 = vrot.slane %v13850_v34, 5  ;;  %v17008_v7 = vcombine.low %v5719_v29, %v5729_v28  ;;  %v5840_v27 = vshrl.u32 %v13856_v48, 16  ;;  %v5822_v28 = vshll.u32 %v13857_v35, 16  ;;  %v9541_v25 = vld [vmem:[#allocation2 + $0x168] sm:$0xe] }
 0x34b   :  { %v9808_v19 = vrot.slane %v9806_v2, 4  ;;  %v17025_v55 = vsel %vm14721_vm2, %v11751_v26, %v9806_v2  ;;  %v5795_v62 = vor.u32 %v5794_v22, %v17004_v18  ;;  %v5836_v2 = vshll.u32 %v13856_v48, 16  ;;  %v13859_v22 = vld [vmem:[#allocation2 + $0x16c] sm:$0xf]  ;;  %v13864_v35 = vld [vmem:[#allocation2 + $0x184] sm:$0xf] }
 0x34c   :  { %v5809_v11 = vor.u32 %v5808_v3, %v5805_v44  ;;  %v11753_v26 = vrot.slane %v9540_v50, 9  ;;  %v9822_v57 = vrot.slane %v9820_v52, 4  ;;  %v5842_v17 = vrot.slane %v5840_v27, 4  ;;  %v13862_v3 = vld [vmem:[#allocation2 + $0x170] sm:$0x1] }
 0x34d   :  { %v17029_v41 = vsel %vm14721_vm2, %v9808_v19, %v9809_v58  ;;  %v5796_v21 = vrot.slane %v5795_v62, 4  ;;  %v5187_v58 = vld [vmem:[#allocation2 + $0x168] sm:$0xf]  ;;  %v17047_v23 = vrot.slane %v5836_v2, 5  ;;  %v5791_v19 = vsel %vm14024_vm13, %v5786_v10, %v17004_v18  ;;  %v13860_v18 = vld [vmem:[#allocation2 + $0x164] sm:$0x1] }
 0x34e   :  { %v11784_v59 = vcombine.low %v17025_v55, %v17029_v41  ;;  %v17054_v38 = vrot.slane %v5822_v28, 5  ;;  %v9827_v9 = vrot.slane %v13859_v22, 5  ;;  %v17056_v31 = vrot.slane %v5809_v11, 4  ;;  %v13861_v41 = vld [vmem:[#allocation2 + $0x16c] sm:$0xf] }
 0x34f   :  { %13040 = vmatmul.mubr.msk.bf16.gmra.mrb[36].mxu0 %vm2617_vm11, %v11780_v37  ;;  %v13852_v37 = vld [vmem:[#allocation2 + $0x154] sm:$0xf]  ;;  %v5851_v39 = vshrl.u32 %v5187_v58, 16  ;;  %v5854_v24 = vshll.u32 %v5187_v58, 16  ;;  %v17062_v55 = vsel %vm14721_vm2, %v11753_v26, %v9820_v52  ;;  %v5846_v0 = vshll.u32 %v13860_v18, 16 }
 0x350   :  { %12734 = vmatmul.mubr.msk.bf16.gmra.mrb[60].mxu1 %vm2617_vm11, %v13655_v1  ;;  %13043 = vmatprep.mubr.msk.bf16.mxu0 %vm2617_vm11, %v11781_v45  ;;  %v9813_v29 = vrot.slane %v13852_v37, 5  ;;  %v13853_v45 = vld [vmem:[#allocation2 + $0x14c] sm:$0x1]  ;;  %v5830_v1 = vshll.u32 %v5184_v13, 16  ;;  %v5860_v53 = vshll.u32 %v13861_v41, 16  ;;  %v5864_v62 = vshrl.u32 %v13861_v41, 16 }
 0x351   :  { %12771 = vmatprep.mubr.msk.bf16.mxu1 %vm2617_vm11, %v16895_v6  ;;  %v17016_v6 = vcombine.low %v5743_v46, %v5753_v32  ;;  %v5798_v49 = vshll.u32 %v13853_v45, 16  ;;  %v5819_v32 = vor.u32 %v5818_v51, %v17032_v15  ;;  %v9829_v44 = vrot.slane %v9827_v9, 4  ;;  %v9542_v50 = vld [vmem:[#allocation2 + $0x174] sm:$0xe]  ;;  %v13867_v58 = vld [vmem:[#allocation2 + $0x178] sm:$0xf] }
 0x352   :  { %v9815_v40 = vrot.slane %v9813_v29, 4  ;;  %v5832_v46 = vrot.slane %v5830_v1, 5  ;;  %v9814_v8 = vsel %vm14721_vm2, %v11752_v60, %v9813_v29  ;;  %v5843_v29 = vor.u32 %v5842_v17, %v17047_v23  ;;  %v5190_v1 = vld [vmem:[#allocation2 + $0x174] sm:$0xf] }
 0x353   :  { %v5800_v54 = vrot.slane %v5798_v49, 5  ;;  %v17058_v13 = vrot.slane %v5819_v32, 4  ;;  %v11754_v49 = vrot.slane %v9541_v25, 9  ;;  %v5853_v60 = vrot.slane %v5851_v39, 4 }
 0x354   :  { %v9817_v36 = vsel %vm14721_vm2, %v9815_v40, %v9816_v47  ;;  %v5856_v4 = vrot.slane %v5854_v24, 5  ;;  %v5848_v40 = vrot.slane %v5846_v0, 5  ;;  %v9834_v52 = vrot.slane %v13863_v14, 5  ;;  %v13872_v14 = vld [vmem:[#allocation2 + $0x184] sm:$0xf] }
 0x355   :  { %v5801_v43 = vsel %vm14024_vm13, %v5796_v21, %v5800_v54  ;;  %v17087_v48 = vrot.slane %v5860_v53, 5  ;;  %v5866_v2 = vrot.slane %v5864_v62, 4  ;;  %v5875_v27 = vshrl.u32 %v5190_v1, 16  ;;  %v13870_v53 = vld [vmem:[#allocation2 + $0x190] sm:$0xf] }
 0x356   :  { %v17073_v45 = vcombine.low %v5791_v19, %v5801_v43  ;;  %v9828_v10 = vsel %vm14721_vm2, %v11754_v49, %v9827_v9  ;;  %v5878_v54 = vshll.u32 %v5190_v1, 16  ;;  %v9841_v28 = vrot.slane %v13864_v35, 5  ;;  %v13871_v1 = vld [vmem:[#allocation2 + $0x19c] sm:$0xf] }
 0x357   :  { %13044 = vmatmul.mubr.msk.bf16.gmra.mrb[40].mxu0 %vm2617_vm11, %v11782_v33  ;;  %v5857_v11 = vor.u32 %v5856_v4, %v5853_v60  ;;  %v11755_v32 = vrot.slane %v9542_v50, 9  ;;  %v9836_v26 = vrot.slane %v9834_v52, 4  ;;  %v5867_v19 = vor.u32 %v5866_v2, %v17087_v48  ;;  %v5196_v2 = vld [vmem:[#allocation2 + $0x18c] sm:$0xf] }
 0x358   :  { %12772 = vmatmul.mubr.msk.bf16.vlgmr.msra.gmra.mrb[32].mxu1 %vm2617_vm11, %v16624_v5  ;;  %v5829_v5 = vrot.slane %v5827_v56, 4  ;;  %13047 = vmatprep.mubr.msk.bf16.mxu0 %vm2617_vm11, %v11783_v30  ;;  %v11785_v30 = vcombine.low %v9814_v8, %v9817_v36  ;;  %v9830_v56 = vrot.slane %v13862_v3, 5  ;;  %v9543_v8 = vld [vmem:[#allocation2 + $0x180] sm:$0xe]  ;;  %v5884_v36 = vshll.u32 %v13867_v58, 16 }
 0x359   :  { %12775 = vmatprep.mubr.msk.bf16.mxu1 %vm2617_vm11, %v16899_v42  ;;  %v13858_v42 = vld [vmem:[#allocation2 + $0x164] sm:$0x1]  ;;  %v5877_v43 = vrot.slane %v5875_v27, 4  ;;  %v5880_v22 = vrot.slane %v5878_v54, 5  ;;  %v11756_v9 = vrot.slane %v9543_v8, 9  ;;  %v17105_v25 = vrot.slane %v5857_v11, 4 }
 0x35a   :  { %v9823_v34 = vrot.slane %v13858_v42, 5  ;;  %v5833_v33 = vor.u32 %v5832_v46, %v5829_v5  ;;  %v9831_v21 = vsel %vm14721_vm2, %v9829_v44, %v9830_v56  ;;  %v13865_v5 = vld [vmem:[#allocation2 + $0x170] sm:$0x1]  ;;  %v13866_v42 = vld [vmem:[#allocation2 + $0x17c] sm:$0x1]  ;;  %v9848_v62 = vrot.slane %v13870_v53, 5 }
 0x35b   :  { %v5870_v46 = vshll.u32 %v13865_v5, 16  ;;  %v5881_v49 = vor.u32 %v5880_v22, %v5877_v43  ;;  %v9842_v44 = vsel %vm14721_vm2, %v11756_v9, %v9841_v28  ;;  %v9544_v56 = vld [vmem:[#allocation2 + $0x18c] sm:$0xe]  ;;  %v13873_v54 = vld [vmem:[#allocation2 + $0x194] sm:$0x1]  ;;  %v5926_v8 = vshll.u32 %v5196_v2, 16 }
 0x35c   :  { %v17068_v37 = vsel %vm14721_vm2, %v9822_v57, %v9823_v34  ;;  %v5834_v51 = vrot.slane %v5833_v33, 4  ;;  %v9837_v34 = vrot.slane %v13866_v42, 5  ;;  %v5888_v57 = vshrl.u32 %v13867_v58, 16  ;;  %v13868_v33 = vld [vmem:[#allocation2 + $0x188] sm:$0x1] }
 0x35d   :  { %v11786_v47 = vcombine.low %v17062_v55, %v17068_v37  ;;  %v9844_v39 = vrot.slane %v13868_v33, 5  ;;  %v17118_v41 = vrot.slane %v5870_v46, 5  ;;  %v9851_v35 = vrot.slane %v13873_v54, 5  ;;  %v13874_v5 = vld [vmem:[#allocation2 + $0x1a0] sm:$0x1] }
 0x35e   :  { %v9838_v55 = vsel %vm14721_vm2, %v9836_v26, %v9837_v34  ;;  %v5890_v18 = vrot.slane %v5888_v57, 4  ;;  %v9858_v46 = vrot.slane %v13874_v5, 5  ;;  %v13875_v26 = vld [vmem:[#allocation2 + $0x190] sm:$0xf]  ;;  %v13877_v22 = vld [vmem:[#allocation2 + $0x188] sm:$0x1] }
 0x35f   :  { %13048 = vmatmul.mubr.msk.bf16.gmra.mrb[44].mxu0 %vm2617_vm11, %v11784_v59  ;;  %v5839_v59 = vsel %vm14024_vm13, %v5834_v51, %v17047_v23  ;;  %v11787_v23 = vcombine.low %v9828_v10, %v9831_v21  ;;  %v5863_v51 = vsel %vm14024_vm13, %v17105_v25, %v17087_v48  ;;  %v11757_v10 = vrot.slane %v9544_v56, 9 }
 0x360   :  { %12776 = vmatmul.mubr.msk.bf16.gmra.mrb[36].mxu1 %vm2617_vm11, %v16907_v16  ;;  %v5815_v16 = vsel %vm14024_vm13, %v17056_v31, %v17032_v15  ;;  %13051 = vmatprep.mubr.msk.bf16.mxu0 %vm2617_vm11, %v11785_v30  ;;  %v5844_v15 = vrot.slane %v5843_v29, 4  ;;  %v9843_v31 = vrot.slane %v9841_v28, 4  ;;  %v17116_v29 = vrot.slane %v5867_v19, 4 }
 0x361   :  { %12779 = vmatprep.mubr.msk.bf16.mxu1 %vm2617_vm11, %v17006_v12  ;;  %v5825_v12 = vsel %vm14024_vm13, %v17058_v13, %v17054_v38  ;;  %v5193_v38 = vld [vmem:[#allocation2 + $0x180] sm:$0xf]  ;;  %v13869_v13 = vld [vmem:[#allocation2 + $0x17c] sm:$0x1]  ;;  %v9850_v21 = vrot.slane %v9848_v62, 4  ;;  %v5882_v28 = vrot.slane %v5881_v49, 4 }
 0x362   :  { %v5849_v17 = vsel %vm14024_vm13, %v5844_v15, %v5848_v40  ;;  %v17103_v24 = vcombine.low %v5815_v16, %v5825_v12  ;;  %v5894_v30 = vshll.u32 %v13869_v13, 16  ;;  %v5899_v0 = vshrl.u32 %v5193_v38, 16 }
 0x363   :  { %v17114_v37 = vcombine.low %v5839_v59, %v5849_v17  ;;  %v9845_v3 = vsel %vm14721_vm2, %v9843_v31, %v9844_v39  ;;  %v9855_v16 = vrot.slane %v13871_v1, 5  ;;  %v5902_v12 = vshll.u32 %v5193_v38, 16  ;;  %v9546_v39 = vld [vmem:[#allocation2 + $0x1a4] sm:$0xe] }
 0x364   :  { %v17129_v4 = vrot.slane %v5894_v30, 5  ;;  %v17132_v50 = vrot.slane %v5899_v0, 4  ;;  %v5912_v15 = vshrl.u32 %v13872_v14, 16  ;;  %v11789_v27 = vcombine.low %v9842_v44, %v9845_v3  ;;  %v13878_v44 = vld [vmem:[#allocation2 + $0x1ac] sm:$0x1] }
 0x365   :  { %v9857_v11 = vrot.slane %v9855_v16, 4  ;;  %v5932_v42 = vshll.u32 %v13875_v26, 16  ;;  %v5936_v34 = vshrl.u32 %v13875_v26, 16  ;;  %v5904_v58 = vrot.slane %v5902_v12, 5 }
 0x366   :  { %v5914_v57 = vrot.slane %v5912_v15, 4  ;;  %v9849_v17 = vsel %vm14721_vm2, %v11757_v10, %v9848_v62  ;;  %v9852_v19 = vsel %vm14721_vm2, %v9850_v21, %v9851_v35  ;;  %v5918_v9 = vshll.u32 %v13877_v22, 16 }
 0x367   :  { %13052 = vmatmul.mubr.msk.bf16.gmra.mrb[48].mxu0 %vm2617_vm11, %v11786_v47  ;;  %v9545_v47 = vld [vmem:[#allocation2 + $0x198] sm:$0xe]  ;;  %v9859_v33 = vsel %vm14721_vm2, %v9857_v11, %v9858_v46  ;;  %v5928_v13 = vrot.slane %v5926_v8, 5  ;;  %v5934_v30 = vrot.slane %v5932_v42, 5  ;;  %v11759_v62 = vrot.slane %v9546_v39, 9 }
 0x368   :  { %12780 = vmatmul.mubr.msk.bf16.gmra.mrb[40].mxu1 %vm2617_vm11, %v17008_v7  ;;  %v9835_v7 = vsel %vm14721_vm2, %v11755_v32, %v9834_v52  ;;  %13055 = vmatprep.mubr.msk.bf16.mxu0 %vm2617_vm11, %v11787_v23  ;;  %v5908_v52 = vshll.u32 %v13872_v14, 16  ;;  %v11758_v59 = vrot.slane %v9545_v47, 9  ;;  %v5923_v32 = vshrl.u32 %v5196_v2, 16  ;;  %v13876_v23 = vld [vmem:[#allocation2 + $0x1a8] sm:$0xf] }
 0x369   :  { %12783 = vmatprep.mubr.msk.bf16.mxu1 %vm2617_vm11, %v17016_v6  ;;  %v17112_v6 = vrot.slane %v5884_v36, 5  ;;  %v11788_v60 = vcombine.low %v9835_v7, %v9838_v55  ;;  %v9862_v43 = vrot.slane %v13876_v23, 5  ;;  %v5938_v55 = vrot.slane %v5936_v34, 4  ;;  %v13881_v46 = vld [vmem:[#allocation2 + $0x1a0] sm:$0x1] }
 0x36a   :  { %v17139_v36 = vrot.slane %v5908_v52, 5  ;;  %v9856_v31 = vsel %vm14721_vm2, %v11758_v59, %v9855_v16  ;;  %v5925_v7 = vrot.slane %v5923_v32, 4  ;;  %v9865_v3 = vrot.slane %v13878_v44, 5  ;;  %v13879_v16 = vld [vmem:[#allocation2 + $0x19c] sm:$0xf] }
 0x36b   :  { %v5891_v40 = vor.u32 %v5890_v18, %v17112_v6  ;;  %v5887_v38 = vsel %vm14024_vm13, %v5882_v28, %v17112_v6  ;;  %v5199_v18 = vld [vmem:[#allocation2 + $0x198] sm:$0xf]  ;;  %v5905_v6 = vor.u32 %v5904_v58, %v17132_v50  ;;  %v11791_v53 = vcombine.low %v9856_v31, %v9859_v33 }
 0x36c   :  { %v9864_v49 = vrot.slane %v9862_v43, 4  ;;  %v5947_v56 = vshrl.u32 %v5199_v18, 16  ;;  %v5950_v1 = vshll.u32 %v5199_v18, 16  ;;  %v5929_v12 = vor.u32 %v5928_v13, %v5925_v7 }
 0x36d   :  { %v5939_v47 = vor.u32 %v5938_v55, %v5934_v30  ;;  %v5920_v52 = vrot.slane %v5918_v9, 5  ;;  %v9863_v2 = vsel %vm14721_vm2, %v11759_v62, %v9862_v43  ;;  %v5966_v32 = vshll.u32 %v13881_v46, 16 }
 0x36e   :  { %v5949_v10 = vrot.slane %v5947_v56, 4  ;;  %v5952_v21 = vrot.slane %v5950_v1, 5  ;;  %v5930_v48 = vrot.slane %v5929_v12, 4 }
 0x36f   :  { %13056 = vmatmul.mubr.msk.bf16.gmra.mrb[52].mxu0 %vm2617_vm11, %v11788_v60  ;;  %v5956_v60 = vshll.u32 %v13879_v16, 16  ;;  %v5940_v25 = vrot.slane %v5939_v47, 4 }
 0x370   :  { %12784 = vmatmul.mubr.msk.bf16.gmra.mrb[44].mxu1 %vm2617_vm11, %v17019_v63  ;;  %v5892_v63 = vrot.slane %v5891_v40, 4  ;;  %13059 = vmatprep.mubr.msk.bf16.mxu0 %vm2617_vm11, %v11789_v27  ;;  %v13880_v40 = vld [vmem:[#allocation2 + $0x194] sm:$0x1]  ;;  %v9866_v27 = vsel %vm14721_vm2, %v9864_v49, %v9865_v3  ;;  %v5953_v11 = vor.u32 %v5952_v21, %v5949_v10  ;;  %v5935_v8 = vsel %vm14024_vm13, %v5930_v48, %v5934_v30 }
 0x371   :  { %12787 = vmatprep.mubr.msk.bf16.mxu1 %vm2617_vm11, %v17073_v45  ;;  %v5873_v45 = vsel %vm14024_vm13, %v17116_v29, %v17118_v41  ;;  %v5915_v29 = vor.u32 %v5914_v57, %v17139_v36  ;;  %v11790_v41 = vcombine.low %v9849_v17, %v9852_v19  ;;  %v5942_v50 = vshll.u32 %v13880_v40, 16 }
 0x372   :  { %v5897_v0 = vsel %vm14024_vm13, %v5892_v63, %v17129_v4  ;;  %v5960_v4 = vshrl.u32 %v13879_v16, 16  ;;  %v5958_v54 = vrot.slane %v5956_v60, 5  ;;  %v11792_v28 = vcombine.low %v9863_v2, %v9866_v27 }
 0x373   :  { %v11465_v14 = vcombine.low %v5887_v38, %v5897_v0  ;;  %v5916_v15 = vrot.slane %v5915_v29, 4  ;;  %v5954_v63 = vrot.slane %v5953_v11, 4 }
 0x374   :  { %v5962_v35 = vrot.slane %v5960_v4, 4 }
 0x375   :  { %v5921_v61 = vsel %vm14024_vm13, %v5916_v15, %v5920_v52  ;;  %v5959_v57 = vsel %vm14024_vm13, %v5954_v63, %v5958_v54 }
 0x376   :  { %v5963_v5 = vor.u32 %v5962_v35, %v5958_v54 }
 0x377   :  { %13060 = vmatmul.mubr.msk.bf16.gmra.mrb[56].mxu0 %vm2617_vm11, %v11790_v41 }
 0x378   :  { %12788 = vmatmul.mubr.msk.bf16.gmra.mrb[48].mxu1 %vm2617_vm11, %v17103_v24  ;;  %v11464_v24 = vcombine.low %v5863_v51, %v5873_v45  ;;  %13063 = vmatprep.mubr.msk.bf16.mxu0 %vm2617_vm11, %v11791_v53  ;;  %v5944_v51 = vrot.slane %v5942_v50, 5  ;;  %v5964_v58 = vrot.slane %v5963_v5, 4 }
 0x379   :  { %12791 = vmatprep.mubr.msk.bf16.mxu1 %vm2617_vm11, %v17114_v37  ;;  %v5906_v37 = vrot.slane %v5905_v6, 4 }
 0x37a   :  { %v5945_v26 = vsel %vm14024_vm13, %v5940_v25, %v5944_v51 }
 0x37b   :  { %v5911_v59 = vsel %vm14024_vm13, %v5906_v37, %v17139_v36  ;;  %v11467_v34 = vcombine.low %v5935_v8, %v5945_v26  ;;  %v5968_v36 = vrot.slane %v5966_v32, 5 }
 0x37c   :  { %v11466_v42 = vcombine.low %v5911_v59, %v5921_v61 }
 0x37d   :  { %v5969_v45 = vsel %vm14024_vm13, %v5964_v58, %v5968_v36 }
 0x37e   :  { %v11468_v17 = vcombine.low %v5959_v57, %v5969_v45 }
 0x37f   :  { %13064 = vmatmul.mubr.msk.bf16.gmra.mrb[60].mxu0 %vm2617_vm11, %v11792_v28 }
 0x380   :  { %12792 = vmatmul.mubr.msk.bf16.gmra.mrb[52].mxu1 %vm2617_vm11, %v11464_v24 }
 0x381   :  { %12795 = vmatprep.mubr.msk.bf16.mxu1 %vm2617_vm11, %v11465_v14 }
 0x388   :  { %12796 = vmatmul.mubr.msk.bf16.gmra.mrb[56].mxu1 %vm2617_vm11, %v11466_v42 }
 0x389   :  { %12799 = vmatprep.mubr.msk.bf16.mxu1 %vm2617_vm11, %v11467_v34 }
 0x390   :  { %12800 = vmatmul.mubr.msk.bf16.gmra.mrb[60].mxu1 %vm2617_vm11, %v11468_v17 }
 0x3ab   :  { %v12675_v19 = vpop.f32.mrb[0].mxu1 }
 0x3ac   :  { %v4787_v23 = vpop.f32.mrb[1].mxu1 }
 0x3ad   :  { %v12676_v43 = vpop.f32.mrb[2].mxu1 }
 0x3ae   :  { %v4790_v38 = vpop.f32.mrb[3].mxu1 }
 0x3b3   :  { %v12679_v22 = vpop.f32.mrb[4].mxu1 }
 0x3b4   :  { %v4803_v9 = vpop.f32.mrb[5].mxu1 }
 0x3b5   :  { %v17196_v31 = vpop.f32.mrb[6].mxu1 }
 0x3b6   :  { %v17198_v33 = vpop.f32.mrb[7].mxu1 }
 0x3bb   :  { %v17200_v39 = vpop.f32.mrb[8].mxu1 }
 0x3bc   :  { %v17202_v7 = vpop.f32.mrb[9].mxu1 }
 0x3bd   :  { %v17204_v13 = vpop.f32.mrb[10].mxu1 }
 0x3be   :  { %v17206_v20 = vpop.f32.mrb[11].mxu1 }
 0x3c3   :  { %v17208_v30 = vpop.f32.mrb[12].mxu1 }
 0x3c4   :  { %v17210_v55 = vpop.f32.mrb[13].mxu1 }
 0x3c5   :  { %v17212_v18 = vpop.f32.mrb[14].mxu1 }
 0x3c6   :  { %v17214_v0 = vpop.f32.mrb[15].mxu1 }
 0x3cb   :  { %v17216_v6 = vpop.f32.mrb[16].mxu1 }
 0x3cc   :  { %v17218_v29 = vpop.f32.mrb[17].mxu1 }
 0x3cd   :  { %v17220_v41 = vpop.f32.mrb[18].mxu1 }
 0x3ce   :  { %v17222_v53 = vpop.f32.mrb[19].mxu1 }
 0x3d3   :  { %v17224_v62 = vpop.f32.mrb[20].mxu1 }
 0x3d4   :  { %v17226_v49 = vpop.f32.mrb[21].mxu1 }
 0x3d5   :  { %v17228_v44 = vpop.f32.mrb[22].mxu1 }
 0x3d6   :  { %v17230_v3 = vpop.f32.mrb[23].mxu1 }
 0x3da   :  { %v13005_v4 = vpop.f32.mrb[0].mxu0 }
 0x3db   :  { %v17232_v56 = vpop.f32.mrb[24].mxu1  ;;  %v13069_v12 = vadd.f32 %v13005_v4, %v12675_v19  ;;  %v10098_v47 = vpop.f32.mrb[1].mxu0 }
 0x3dc   :  { %v17234_v1 = vpop.f32.mrb[25].mxu1  ;;  %v13070_v40 = vadd.f32 %v10098_v47, %v4787_v23  ;;  %v13006_v50 = vpop.f32.mrb[2].mxu0 }
 0x3dd   :  { %v17236_v16 = vpop.f32.mrb[26].mxu1  ;;  %v11955_v24 = vpack.c.bf16 %v13069_v12, %v13069_v12  ;;  %v13071_v14 = vadd.f32 %v13006_v50, %v12676_v43  ;;  %v10101_v52 = vpop.f32.mrb[3].mxu0  ;;  %v10872_v10 = vmul.f32 %v13069_v12, %v13069_v12  ;;  %v10740_v5 = vsel %vm2617_vm11, %v13069_v12, 0.0 }
 0x3de   :  { %v17238_v60 = vpop.f32.mrb[27].mxu1  ;;  %v11953_v37 = vpack.c.bf16 %v13070_v40, %v13070_v40  ;;  %v10870_v15 = vmul.f32 %v13070_v40, %v13070_v40  ;;  %v13072_v2 = vadd.f32 %v10101_v52, %v4790_v38  ;;  %v10737_v35 = vsel %vm2617_vm11, %v13070_v40, 0.0 }
 0x3df   :  { %10675 = vst.msk [vmem:[%s17737_s4 + $0x8] sm:$0xf] %vm1190_vm1, %v11955_v24  ;;  %v11956_v21 = vpack.c.bf16 %v13071_v14, %v13071_v14  ;;  %v10873_v59 = vmul.f32 %v13071_v14, %v13071_v14  ;;  %v10937_v58 = vsel %vm2617_vm11, %v10872_v10, 0.0  ;;  %v10742_v45 = vsel %vm2617_vm11, %v13071_v14, 0.0 }
 0x3e0   :  { %10673 = vst.msk [vmem:[%s17737_s4] sm:$0xf] %vm1190_vm1, %v11953_v37  ;;  %v11954_v48 = vpack.c.bf16 %v13072_v2, %v13072_v2  ;;  %v10738_v25 = vsel %vm2617_vm11, %v13072_v2, 0.0  ;;  %v10871_v51 = vmul.f32 %v13072_v2, %v13072_v2  ;;  %v10934_v46 = vsel %vm2617_vm11, %v10870_v15, 0.0 }
 0x3e1   :  { %10676 = vst.msk [vmem:[%s17737_s4 + $0xc] sm:$0xf] %vm1190_vm1, %v11956_v21  ;;  %v10739_v61 = vadd.f32 %v10738_v25, %v10737_v35  ;;  %v10939_v17 = vsel %vm2617_vm11, %v10873_v59, 0.0 }
 0x3e2   :  { %10674 = vst.msk [vmem:[%s17737_s4 + $0x4] sm:$0xf] %vm1190_vm1, %v11954_v48  ;;  %v10935_v32 = vsel %vm2617_vm11, %v10871_v51, 0.0  ;;  %v13009_v8 = vpop.f32.mrb[4].mxu0 }
 0x3e3   :  { %v17240_v27 = vpop.f32.mrb[28].mxu1  ;;  %v10741_v26 = vadd.f32 %v10740_v5, %v10739_v61  ;;  %v10936_v42 = vadd.f32 %v10935_v32, %v10934_v46  ;;  %v13073_v34 = vadd.f32 %v13009_v8, %v12679_v22  ;;  %v10114_v63 = vpop.f32.mrb[5].mxu0 }
 0x3e4   :  { %v17246_v54 = vpop.f32.mrb[29].mxu1  ;;  %v13074_v36 = vadd.f32 %v10114_v63, %v4803_v9  ;;  %v13010_v57 = vpop.f32.mrb[6].mxu0 }
 0x3e5   :  { %v17254_v28 = vpop.f32.mrb[30].mxu1  ;;  %v10938_v19 = vadd.f32 %v10937_v58, %v10936_v42  ;;  %v11959_v23 = vpack.c.bf16 %v13073_v34, %v13073_v34  ;;  %v10117_v43 = vpop.f32.mrb[7].mxu0  ;;  %v10743_v4 = vadd.f32 %v10742_v45, %v10741_v26  ;;  %v13075_v9 = vadd.f32 %v13010_v57, %v17196_v31 }
 0x3e6   :  { %v17260_v11 = vpop.f32.mrb[31].mxu1  ;;  %v11957_v38 = vpack.c.bf16 %v13074_v36, %v13074_v36  ;;  %v10744_v12 = vsel %vm2617_vm11, %v13074_v36, 0.0  ;;  %v10874_v47 = vmul.f32 %v13074_v36, %v13074_v36  ;;  %v13076_v40 = vadd.f32 %v10117_v43, %v17198_v33 }
 0x3e7   :  { %10679 = vst.msk [vmem:[%s17737_s4 + $0x18] sm:$0xf] %vm1190_vm1, %v11959_v23  ;;  %v10940_v22 = vadd.f32 %v10939_v17, %v10938_v19  ;;  %v10745_v50 = vadd.f32 %v10744_v12, %v10743_v4  ;;  %v10876_v14 = vmul.f32 %v13073_v34, %v13073_v34  ;;  %v11960_v37 = vpack.c.bf16 %v13075_v9, %v13075_v9 }
 0x3e8   :  { %10677 = vst.msk [vmem:[%s17737_s4 + $0x10] sm:$0xf] %vm1190_vm1, %v11957_v38  ;;  %v10941_v24 = vsel %vm2617_vm11, %v10874_v47, 0.0  ;;  %v11958_v15 = vpack.c.bf16 %v13076_v40, %v13076_v40  ;;  %v10746_v2 = vsel %vm2617_vm11, %v13076_v40, 0.0  ;;  %v10875_v10 = vmul.f32 %v13076_v40, %v13076_v40 }
 0x3e9   :  { %v10942_v52 = vadd.f32 %v10941_v24, %v10940_v22  ;;  %10680 = vst.msk [vmem:[%s17737_s4 + $0x1c] sm:$0xf] %vm1190_vm1, %v11960_v37  ;;  %v10747_v31 = vadd.f32 %v10746_v2, %v10745_v50  ;;  %v10748_v48 = vsel %vm2617_vm11, %v13073_v34, 0.0  ;;  %v10877_v25 = vmul.f32 %v13075_v9, %v13075_v9 }
 0x3ea   :  { %v13013_v21 = vpop.f32.mrb[8].mxu0  ;;  %10678 = vst.msk [vmem:[%s17737_s4 + $0x14] sm:$0xf] %vm1190_vm1, %v11958_v15  ;;  %v10943_v51 = vsel %vm2617_vm11, %v10875_v10, 0.0  ;;  %v10945_v5 = vsel %vm2617_vm11, %v10876_v14, 0.0  ;;  %v10750_v26 = vsel %vm2617_vm11, %v13075_v9, 0.0 }
 0x3eb   :  { %v13077_v33 = vadd.f32 %v13013_v21, %v17200_v39  ;;  %v10130_v35 = vpop.f32.mrb[9].mxu0  ;;  %v10749_v46 = vadd.f32 %v10748_v48, %v10747_v31  ;;  %v10944_v32 = vadd.f32 %v10943_v51, %v10942_v52  ;;  %v10947_v45 = vsel %vm2617_vm11, %v10877_v25, 0.0 }
 0x3ec   :  { %v13078_v59 = vadd.f32 %v10130_v35, %v17202_v7  ;;  %v13014_v61 = vpop.f32.mrb[10].mxu0 }
 0x3ed   :  { %v11963_v8 = vpack.c.bf16 %v13077_v33, %v13077_v33  ;;  %v10133_v39 = vpop.f32.mrb[11].mxu0  ;;  %v10946_v58 = vadd.f32 %v10945_v5, %v10944_v32  ;;  %v10751_v7 = vadd.f32 %v10750_v26, %v10749_v46  ;;  %v13079_v36 = vadd.f32 %v13014_v61, %v17204_v13 }
 0x3ee   :  { %v11961_v42 = vpack.c.bf16 %v13078_v59, %v13078_v59  ;;  %v10752_v34 = vsel %vm2617_vm11, %v13078_v59, 0.0  ;;  %v10878_v63 = vmul.f32 %v13078_v59, %v13078_v59  ;;  %v13080_v57 = vadd.f32 %v10133_v39, %v17206_v20 }
 0x3ef   :  { %10683 = vst.msk [vmem:[%s17737_s4 + $0x28] sm:$0xf] %vm1190_vm1, %v11963_v8  ;;  %v10880_v19 = vmul.f32 %v13077_v33, %v13077_v33  ;;  %v10753_v23 = vadd.f32 %v10752_v34, %v10751_v7  ;;  %v10948_v43 = vadd.f32 %v10947_v45, %v10946_v58  ;;  %v11964_v38 = vpack.c.bf16 %v13079_v36, %v13079_v36 }
 0x3f0   :  { %10681 = vst.msk [vmem:[%s17737_s4 + $0x20] sm:$0xf] %vm1190_vm1, %v11961_v42  ;;  %v10949_v17 = vsel %vm2617_vm11, %v10878_v63, 0.0  ;;  %v11962_v4 = vpack.c.bf16 %v13080_v57, %v13080_v57  ;;  %v10754_v12 = vsel %vm2617_vm11, %v13080_v57, 0.0  ;;  %v10879_v47 = vmul.f32 %v13080_v57, %v13080_v57 }
 0x3f1   :  { %v10950_v22 = vadd.f32 %v10949_v17, %v10948_v43  ;;  %10684 = vst.msk [vmem:[%s17737_s4 + $0x2c] sm:$0xf] %vm1190_vm1, %v11964_v38  ;;  %v10755_v20 = vadd.f32 %v10754_v12, %v10753_v23  ;;  %v10756_v50 = vsel %vm2617_vm11, %v13077_v33, 0.0  ;;  %v10881_v24 = vmul.f32 %v13079_v36, %v13079_v36 }
 0x3f2   :  { %v13017_v13 = vpop.f32.mrb[12].mxu0  ;;  %10682 = vst.msk [vmem:[%s17737_s4 + $0x24] sm:$0xf] %vm1190_vm1, %v11962_v4  ;;  %v10951_v14 = vsel %vm2617_vm11, %v10879_v47, 0.0  ;;  %v10953_v15 = vsel %vm2617_vm11, %v10880_v19, 0.0  ;;  %v10758_v31 = vsel %vm2617_vm11, %v13079_v36, 0.0 }
 0x3f3   :  { %v13081_v9 = vadd.f32 %v13017_v13, %v17208_v30  ;;  %v10146_v40 = vpop.f32.mrb[13].mxu0  ;;  %v10757_v2 = vadd.f32 %v10756_v50, %v10755_v20  ;;  %v10952_v10 = vadd.f32 %v10951_v14, %v10950_v22  ;;  %v10955_v61 = vsel %vm2617_vm11, %v10881_v24, 0.0 }
 0x3f4   :  { %v13082_v52 = vadd.f32 %v10146_v40, %v17210_v55  ;;  %v13018_v37 = vpop.f32.mrb[14].mxu0 }
 0x3f5   :  { %v11967_v21 = vpack.c.bf16 %v13081_v9, %v13081_v9  ;;  %v10149_v30 = vpop.f32.mrb[15].mxu0  ;;  %v10954_v25 = vadd.f32 %v10953_v15, %v10952_v10  ;;  %v10759_v55 = vadd.f32 %v10758_v31, %v10757_v2  ;;  %v13083_v51 = vadd.f32 %v13018_v37, %v17212_v18 }
 0x3f6   :  { %v11965_v33 = vpack.c.bf16 %v13082_v52, %v13082_v52  ;;  %v10760_v35 = vsel %vm2617_vm11, %v13082_v52, 0.0  ;;  %v10882_v48 = vmul.f32 %v13082_v52, %v13082_v52  ;;  %v13084_v59 = vadd.f32 %v10149_v30, %v17214_v0 }
 0x3f7   :  { %10687 = vst.msk [vmem:[%s17737_s4 + $0x38] sm:$0xf] %vm1190_vm1, %v11967_v21  ;;  %v10884_v46 = vmul.f32 %v13081_v9, %v13081_v9  ;;  %v10761_v32 = vadd.f32 %v10760_v35, %v10759_v55  ;;  %v10956_v8 = vadd.f32 %v10955_v61, %v10954_v25  ;;  %v11968_v39 = vpack.c.bf16 %v13083_v51, %v13083_v51 }
 0x3f8   :  { %10685 = vst.msk [vmem:[%s17737_s4 + $0x30] sm:$0xf] %vm1190_vm1, %v11965_v33  ;;  %v10957_v5 = vsel %vm2617_vm11, %v10882_v48, 0.0  ;;  %v11966_v26 = vpack.c.bf16 %v13084_v59, %v13084_v59  ;;  %v10762_v42 = vsel %vm2617_vm11, %v13084_v59, 0.0  ;;  %v10883_v34 = vmul.f32 %v13084_v59, %v13084_v59 }
 0x3f9   :  { %v10958_v63 = vadd.f32 %v10957_v5, %v10956_v8  ;;  %10688 = vst.msk [vmem:[%s17737_s4 + $0x3c] sm:$0xf] %vm1190_vm1, %v11968_v39  ;;  %v10763_v0 = vadd.f32 %v10762_v42, %v10761_v32  ;;  %v10764_v36 = vsel %vm2617_vm11, %v13081_v9, 0.0  ;;  %v10885_v57 = vmul.f32 %v13083_v51, %v13083_v51 }
 0x3fa   :  { %v13021_v18 = vpop.f32.mrb[16].mxu0  ;;  %10686 = vst.msk [vmem:[%s17737_s4 + $0x34] sm:$0xf] %vm1190_vm1, %v11966_v26  ;;  %v10959_v45 = vsel %vm2617_vm11, %v10883_v34, 0.0  ;;  %v10961_v23 = vsel %vm2617_vm11, %v10884_v46, 0.0  ;;  %v10766_v12 = vsel %vm2617_vm11, %v13083_v51, 0.0 }
 0x3fb   :  { %v13085_v58 = vadd.f32 %v13021_v18, %v17216_v6  ;;  %v10162_v7 = vpop.f32.mrb[17].mxu0  ;;  %v10765_v43 = vadd.f32 %v10764_v36, %v10763_v0  ;;  %v10960_v38 = vadd.f32 %v10959_v45, %v10958_v63  ;;  %v10963_v50 = vsel %vm2617_vm11, %v10885_v57, 0.0 }
 0x3fc   :  { %v13086_v17 = vadd.f32 %v10162_v7, %v17218_v29  ;;  %v13022_v19 = vpop.f32.mrb[18].mxu0 }
 0x3fd   :  { %v11971_v4 = vpack.c.bf16 %v13085_v58, %v13085_v58  ;;  %v10165_v6 = vpop.f32.mrb[19].mxu0  ;;  %v10962_v20 = vadd.f32 %v10961_v23, %v10960_v38  ;;  %v10767_v29 = vadd.f32 %v10766_v12, %v10765_v43  ;;  %v13087_v9 = vadd.f32 %v13022_v19, %v17220_v41 }
 0x3fe   :  { %v11969_v47 = vpack.c.bf16 %v13086_v17, %v13086_v17  ;;  %v10768_v13 = vsel %vm2617_vm11, %v13086_v17, 0.0  ;;  %v10886_v22 = vmul.f32 %v13086_v17, %v13086_v17  ;;  %v13088_v40 = vadd.f32 %v10165_v6, %v17222_v53 }
 0x3ff   :  { %10691 = vst.msk [vmem:[%s17737_s4 + $0x48] sm:$0xf] %vm1190_vm1, %v11971_v4  ;;  %v10888_v14 = vmul.f32 %v13085_v58, %v13085_v58  ;;  %v10769_v52 = vadd.f32 %v10768_v13, %v10767_v29  ;;  %v10964_v37 = vadd.f32 %v10963_v50, %v10962_v20  ;;  %v11972_v15 = vpack.c.bf16 %v13087_v9, %v13087_v9 }
 0x400   :  { %10689 = vst.msk [vmem:[%s17737_s4 + $0x40] sm:$0xf] %vm1190_vm1, %v11969_v47  ;;  %v10965_v24 = vsel %vm2617_vm11, %v10886_v22, 0.0  ;;  %v11970_v2 = vpack.c.bf16 %v13088_v40, %v13088_v40  ;;  %v10770_v10 = vsel %vm2617_vm11, %v13088_v40, 0.0  ;;  %v10887_v21 = vmul.f32 %v13088_v40, %v13088_v40 }
 0x401   :  { %v10966_v30 = vadd.f32 %v10965_v24, %v10964_v37  ;;  %10692 = vst.msk [vmem:[%s17737_s4 + $0x4c] sm:$0xf] %vm1190_vm1, %v11972_v15  ;;  %v10771_v53 = vadd.f32 %v10770_v10, %v10769_v52  ;;  %v10772_v35 = vsel %vm2617_vm11, %v13085_v58, 0.0  ;;  %v10889_v48 = vmul.f32 %v13087_v9, %v13087_v9 }
 0x402   :  { %v13025_v41 = vpop.f32.mrb[20].mxu0  ;;  %10690 = vst.msk [vmem:[%s17737_s4 + $0x44] sm:$0xf] %vm1190_vm1, %v11970_v2  ;;  %v10967_v25 = vsel %vm2617_vm11, %v10887_v21, 0.0  ;;  %v10969_v59 = vsel %vm2617_vm11, %v10888_v14, 0.0  ;;  %v10774_v32 = vsel %vm2617_vm11, %v13087_v9, 0.0 }
 0x403   :  { %v13089_v31 = vadd.f32 %v13025_v41, %v17224_v62  ;;  %v10178_v33 = vpop.f32.mrb[21].mxu0  ;;  %v10773_v61 = vadd.f32 %v10772_v35, %v10771_v53  ;;  %v10968_v5 = vadd.f32 %v10967_v25, %v10966_v30  ;;  %v10971_v63 = vsel %vm2617_vm11, %v10889_v48, 0.0 }
 0x404   :  { %v13090_v55 = vadd.f32 %v10178_v33, %v17226_v49  ;;  %v13026_v51 = vpop.f32.mrb[22].mxu0 }
 0x405   :  { %v11975_v46 = vpack.c.bf16 %v13089_v31, %v13089_v31  ;;  %v10181_v62 = vpop.f32.mrb[23].mxu0  ;;  %v10970_v42 = vadd.f32 %v10969_v59, %v10968_v5  ;;  %v10775_v49 = vadd.f32 %v10774_v32, %v10773_v61  ;;  %v13091_v34 = vadd.f32 %v13026_v51, %v17228_v44 }
 0x406   :  { %v11973_v8 = vpack.c.bf16 %v13090_v55, %v13090_v55  ;;  %v10776_v39 = vsel %vm2617_vm11, %v13090_v55, 0.0  ;;  %v10890_v26 = vmul.f32 %v13090_v55, %v13090_v55  ;;  %v13092_v18 = vadd.f32 %v10181_v62, %v17230_v3 }
 0x407   :  { %10695 = vst.msk [vmem:[%s17737_s4 + $0x58] sm:$0xf] %vm1190_vm1, %v11975_v46  ;;  %v10892_v58 = vmul.f32 %v13089_v31, %v13089_v31  ;;  %v10777_v7 = vadd.f32 %v10776_v39, %v10775_v49  ;;  %v10972_v36 = vadd.f32 %v10971_v63, %v10970_v42  ;;  %v11976_v57 = vpack.c.bf16 %v13091_v34, %v13091_v34 }
 0x408   :  { %10693 = vst.msk [vmem:[%s17737_s4 + $0x50] sm:$0xf] %vm1190_vm1, %v11973_v8  ;;  %v10973_v0 = vsel %vm2617_vm11, %v10890_v26, 0.0  ;;  %v11974_v45 = vpack.c.bf16 %v13092_v18, %v13092_v18  ;;  %v10778_v17 = vsel %vm2617_vm11, %v13092_v18, 0.0  ;;  %v10891_v19 = vmul.f32 %v13092_v18, %v13092_v18 }
 0x409   :  { %v10974_v23 = vadd.f32 %v10973_v0, %v10972_v36  ;;  %10696 = vst.msk [vmem:[%s17737_s4 + $0x5c] sm:$0xf] %vm1190_vm1, %v11976_v57  ;;  %v10779_v3 = vadd.f32 %v10778_v17, %v10777_v7  ;;  %v10780_v4 = vsel %vm2617_vm11, %v13089_v31, 0.0  ;;  %v10893_v6 = vmul.f32 %v13091_v34, %v13091_v34 }
 0x40a   :  { %v13029_v44 = vpop.f32.mrb[24].mxu0  ;;  %10694 = vst.msk [vmem:[%s17737_s4 + $0x54] sm:$0xf] %vm1190_vm1, %v11974_v45  ;;  %v10975_v12 = vsel %vm2617_vm11, %v10891_v19, 0.0  ;;  %v10977_v22 = vsel %vm2617_vm11, %v10892_v58, 0.0  ;;  %v10782_v40 = vsel %vm2617_vm11, %v13091_v34, 0.0 }
 0x40b   :  { %v13093_v43 = vadd.f32 %v13029_v44, %v17232_v56  ;;  %v10194_v38 = vpop.f32.mrb[25].mxu0  ;;  %v10781_v20 = vadd.f32 %v10780_v4, %v10779_v3  ;;  %v10976_v29 = vadd.f32 %v10975_v12, %v10974_v23  ;;  %v10979_v2 = vsel %vm2617_vm11, %v10893_v6, 0.0 }
 0x40c   :  { %v13094_v47 = vadd.f32 %v10194_v38, %v17234_v1  ;;  %v13030_v13 = vpop.f32.mrb[26].mxu0 }
 0x40d   :  { %v11979_v9 = vpack.c.bf16 %v13093_v43, %v13093_v43  ;;  %v10197_v56 = vpop.f32.mrb[27].mxu0  ;;  %v10978_v52 = vadd.f32 %v10977_v22, %v10976_v29  ;;  %v10783_v1 = vadd.f32 %v10782_v40, %v10781_v20  ;;  %v13095_v37 = vadd.f32 %v13030_v13, %v17236_v16 }
 0x40e   :  { %v11977_v50 = vpack.c.bf16 %v13094_v47, %v13094_v47  ;;  %v10784_v24 = vsel %vm2617_vm11, %v13094_v47, 0.0  ;;  %v10894_v14 = vmul.f32 %v13094_v47, %v13094_v47  ;;  %v13096_v15 = vadd.f32 %v10197_v56, %v17238_v60 }
 0x40f   :  { %10699 = vst.msk [vmem:[%s17737_s4 + $0x68] sm:$0xf] %vm1190_vm1, %v11979_v9  ;;  %v10896_v21 = vmul.f32 %v13093_v43, %v13093_v43  ;;  %v10785_v41 = vadd.f32 %v10784_v24, %v10783_v1  ;;  %v10980_v30 = vadd.f32 %v10979_v2, %v10978_v52  ;;  %v11980_v53 = vpack.c.bf16 %v13095_v37, %v13095_v37 }
 0x410   :  { %10697 = vst.msk [vmem:[%s17737_s4 + $0x60] sm:$0xf] %vm1190_vm1, %v11977_v50  ;;  %v10981_v10 = vsel %vm2617_vm11, %v10894_v14, 0.0  ;;  %v11978_v31 = vpack.c.bf16 %v13096_v15, %v13096_v15  ;;  %v10786_v33 = vsel %vm2617_vm11, %v13096_v15, 0.0  ;;  %v10895_v35 = vmul.f32 %v13096_v15, %v13096_v15 }
 0x411   :  { %v10982_v48 = vadd.f32 %v10981_v10, %v10980_v30  ;;  %10700 = vst.msk [vmem:[%s17737_s4 + $0x6c] sm:$0xf] %vm1190_vm1, %v11980_v53  ;;  %v10787_v60 = vadd.f32 %v10786_v33, %v10785_v41  ;;  %v10788_v51 = vsel %vm2617_vm11, %v13093_v43, 0.0  ;;  %v10897_v59 = vmul.f32 %v13095_v37, %v13095_v37 }
 0x412   :  { %v13033_v16 = vpop.f32.mrb[28].mxu0  ;;  %10698 = vst.msk [vmem:[%s17737_s4 + $0x64] sm:$0xf] %vm1190_vm1, %v11978_v31  ;;  %v10983_v61 = vsel %vm2617_vm11, %v10895_v35, 0.0  ;;  %v10985_v62 = vsel %vm2617_vm11, %v10896_v21, 0.0  ;;  %v10790_v26 = vsel %vm2617_vm11, %v13095_v37, 0.0 }
 0x413   :  { %v13097_v25 = vadd.f32 %v13033_v16, %v17240_v27  ;;  %v10210_v55 = vpop.f32.mrb[29].mxu0  ;;  %v10789_v32 = vadd.f32 %v10788_v51, %v10787_v60  ;;  %v10984_v8 = vadd.f32 %v10983_v61, %v10982_v48  ;;  %v10987_v58 = vsel %vm2617_vm11, %v10897_v59, 0.0 }
 0x414   :  { %v13098_v5 = vadd.f32 %v10210_v55, %v17246_v54  ;;  %v13034_v46 = vpop.f32.mrb[30].mxu0 }
 0x415   :  { %v11983_v39 = vpack.c.bf16 %v13097_v25, %v13097_v25  ;;  %v10213_v27 = vpop.f32.mrb[31].mxu0  ;;  %v10986_v18 = vadd.f32 %v10985_v62, %v10984_v8  ;;  %v10791_v54 = vadd.f32 %v10790_v26, %v10789_v32  ;;  %v13099_v63 = vadd.f32 %v13034_v46, %v17254_v28 }
 0x416   :  { %v11981_v42 = vpack.c.bf16 %v13098_v5, %v13098_v5  ;;  %v10792_v49 = vsel %vm2617_vm11, %v13098_v5, 0.0  ;;  %v10898_v34 = vmul.f32 %v13098_v5, %v13098_v5  ;;  %v13100_v0 = vadd.f32 %v10213_v27, %v17260_v11 }
 0x417   :  { %10703 = vst.msk [vmem:[%s17737_s4 + $0x78] sm:$0xf] %vm1190_vm1, %v11983_v39  ;;  %v10793_v36 = vadd.f32 %v10792_v49, %v10791_v54  ;;  %v10988_v57 = vadd.f32 %v10987_v58, %v10986_v18  ;;  %v11984_v45 = vpack.c.bf16 %v13099_v63, %v13099_v63  ;;  %v10900_v17 = vmul.f32 %v13097_v25, %v13097_v25 }
 0x418   :  { %10701 = vst.msk [vmem:[%s17737_s4 + $0x70] sm:$0xf] %vm1190_vm1, %v11981_v42  ;;  %v10989_v7 = vsel %vm2617_vm11, %v10898_v34, 0.0  ;;  %v11982_v19 = vpack.c.bf16 %v13100_v0, %v13100_v0  ;;  %v10794_v44 = vsel %vm2617_vm11, %v13100_v0, 0.0  ;;  %v10899_v23 = vmul.f32 %v13100_v0, %v13100_v0 }
 0x419   :  { %v10990_v3 = vadd.f32 %v10989_v7, %v10988_v57  ;;  %10704 = vst.msk [vmem:[%s17737_s4 + $0x7c] sm:$0xf] %vm1190_vm1, %v11984_v45  ;;  %v10795_v11 = vadd.f32 %v10794_v44, %v10793_v36  ;;  %v10796_v38 = vsel %vm2617_vm11, %v13097_v25, 0.0  ;;  %v10901_v4 = vmul.f32 %v13099_v63, %v13099_v63 }
 0x41a   :  { %v13037_v28 = vpop.f32.mrb[32].mxu0  ;;  %10702 = vst.msk [vmem:[%s17737_s4 + $0x74] sm:$0xf] %vm1190_vm1, %v11982_v19  ;;  %v10991_v6 = vsel %vm2617_vm11, %v10899_v23, 0.0  ;;  %v10993_v20 = vsel %vm2617_vm11, %v10900_v17, 0.0  ;;  %v10798_v29 = vsel %vm2617_vm11, %v13099_v63, 0.0 }
 0x41b   :  { %v10226_v43 = vpop.f32.mrb[33].mxu0  ;;  %v10797_v47 = vadd.f32 %v10796_v38, %v10795_v11  ;;  %v10992_v13 = vadd.f32 %v10991_v6, %v10990_v3  ;;  %v10995_v40 = vsel %vm2617_vm11, %v10901_v4, 0.0 }
 0x41c   :  { %v13038_v12 = vpop.f32.mrb[34].mxu0 }
 0x41d   :  { %v10229_v22 = vpop.f32.mrb[35].mxu0  ;;  %v10994_v9 = vadd.f32 %v10993_v20, %v10992_v13  ;;  %v10799_v56 = vadd.f32 %v10798_v29, %v10797_v47 }
 0x41f   :  { %v10996_v50 = vadd.f32 %v10995_v40, %v10994_v9 }
 0x422   :  { %v13041_v24 = vpop.f32.mrb[36].mxu0 }
 0x423   :  { %v10242_v14 = vpop.f32.mrb[37].mxu0 }
 0x424   :  { %v13042_v52 = vpop.f32.mrb[38].mxu0 }
 0x425   :  { %v10245_v1 = vpop.f32.mrb[39].mxu0 }
 0x42a   :  { %v17466_v31 = vpop.f32.mrb[40].mxu0 }
 0x42b   :  { %v12773_v37 = vpop.f32.mrb[32].mxu1  ;;  %v17469_v60 = vpop.f32.mrb[41].mxu0 }
 0x42c   :  { %v6329_v15 = vpop.f32.mrb[33].mxu1  ;;  %v13101_v2 = vadd.f32 %v13037_v28, %v12773_v37  ;;  %v17475_v51 = vpop.f32.mrb[42].mxu0 }
 0x42d   :  { %v12774_v10 = vpop.f32.mrb[34].mxu1  ;;  %v13102_v21 = vadd.f32 %v10226_v43, %v6329_v15  ;;  %v17483_v46 = vpop.f32.mrb[43].mxu0 }
 0x42e   :  { %v11987_v41 = vpack.c.bf16 %v13101_v2, %v13101_v2  ;;  %v6332_v30 = vpop.f32.mrb[35].mxu1  ;;  %v13103_v53 = vadd.f32 %v13038_v12, %v12774_v10  ;;  %v10904_v62 = vmul.f32 %v13101_v2, %v13101_v2  ;;  %v10804_v27 = vsel %vm2617_vm11, %v13101_v2, 0.0 }
 0x42f   :  { %v11985_v33 = vpack.c.bf16 %v13102_v21, %v13102_v21  ;;  %v10800_v35 = vsel %vm2617_vm11, %v13102_v21, 0.0  ;;  %v10902_v16 = vmul.f32 %v13102_v21, %v13102_v21  ;;  %v13104_v48 = vadd.f32 %v10229_v22, %v6332_v30 }
 0x430   :  { %10707 = vst.msk [vmem:[%s17737_s4 + $0x88] sm:$0xf] %vm1190_vm1, %v11987_v41  ;;  %v10801_v25 = vadd.f32 %v10800_v35, %v10799_v56  ;;  %v11988_v55 = vpack.c.bf16 %v13103_v53, %v13103_v53  ;;  %v10905_v42 = vmul.f32 %v13103_v53, %v13103_v53  ;;  %v10806_v63 = vsel %vm2617_vm11, %v13103_v53, 0.0 }
 0x431   :  { %10705 = vst.msk [vmem:[%s17737_s4 + $0x80] sm:$0xf] %vm1190_vm1, %v11985_v33  ;;  %v10997_v59 = vsel %vm2617_vm11, %v10902_v16, 0.0  ;;  %v11986_v61 = vpack.c.bf16 %v13104_v48, %v13104_v48  ;;  %v10802_v5 = vsel %vm2617_vm11, %v13104_v48, 0.0  ;;  %v10903_v39 = vmul.f32 %v13104_v48, %v13104_v48 }
 0x432   :  { %v10998_v32 = vadd.f32 %v10997_v59, %v10996_v50  ;;  %10708 = vst.msk [vmem:[%s17737_s4 + $0x8c] sm:$0xf] %vm1190_vm1, %v11988_v55  ;;  %v10803_v8 = vadd.f32 %v10802_v5, %v10801_v25  ;;  %v11001_v36 = vsel %vm2617_vm11, %v10904_v62, 0.0  ;;  %v17497_v19 = vpop.f32.mrb[44].mxu0  ;;  %v11003_v43 = vsel %vm2617_vm11, %v10905_v42, 0.0 }
 0x433   :  { %10706 = vst.msk [vmem:[%s17737_s4 + $0x84] sm:$0xf] %vm1190_vm1, %v11986_v61  ;;  %v12777_v26 = vpop.f32.mrb[36].mxu1  ;;  %v10999_v34 = vsel %vm2617_vm11, %v10903_v39, 0.0  ;;  %v17500_v11 = vpop.f32.mrb[45].mxu0 }
 0x434   :  { %v10805_v49 = vadd.f32 %v10804_v27, %v10803_v8  ;;  %v6345_v18 = vpop.f32.mrb[37].mxu1  ;;  %v13105_v54 = vadd.f32 %v13041_v24, %v12777_v26  ;;  %v11000_v0 = vadd.f32 %v10999_v34, %v10998_v32  ;;  %v17507_v12 = vpop.f32.mrb[46].mxu0 }
 0x435   :  { %v12778_v58 = vpop.f32.mrb[38].mxu1  ;;  %v13106_v7 = vadd.f32 %v10242_v14, %v6345_v18  ;;  %v17514_v22 = vpop.f32.mrb[47].mxu0 }
 0x436   :  { %v11991_v57 = vpack.c.bf16 %v13105_v54, %v13105_v54  ;;  %v10807_v45 = vadd.f32 %v10806_v63, %v10805_v49  ;;  %v6348_v17 = vpop.f32.mrb[39].mxu1  ;;  %v11002_v44 = vadd.f32 %v11001_v36, %v11000_v0  ;;  %v13107_v4 = vadd.f32 %v13042_v52, %v12778_v58 }
 0x437   :  { %v11989_v23 = vpack.c.bf16 %v13106_v7, %v13106_v7  ;;  %v10808_v28 = vsel %vm2617_vm11, %v13106_v7, 0.0  ;;  %v10906_v3 = vmul.f32 %v13106_v7, %v13106_v7  ;;  %v13108_v6 = vadd.f32 %v10245_v1, %v6348_v17 }
 0x438   :  { %10711 = vst.msk [vmem:[%s17737_s4 + $0x98] sm:$0xf] %vm1190_vm1, %v11991_v57  ;;  %v10809_v38 = vadd.f32 %v10808_v28, %v10807_v45  ;;  %v11004_v47 = vadd.f32 %v11003_v43, %v11002_v44  ;;  %v10908_v20 = vmul.f32 %v13105_v54, %v13105_v54  ;;  %v11992_v29 = vpack.c.bf16 %v13107_v4, %v13107_v4 }
 0x439   :  { %10709 = vst.msk [vmem:[%s17737_s4 + $0x90] sm:$0xf] %vm1190_vm1, %v11989_v23  ;;  %v11005_v13 = vsel %vm2617_vm11, %v10906_v3, 0.0  ;;  %v11990_v9 = vpack.c.bf16 %v13108_v6, %v13108_v6  ;;  %v10810_v40 = vsel %vm2617_vm11, %v13108_v6, 0.0  ;;  %v10907_v50 = vmul.f32 %v13108_v6, %v13108_v6 }
 0x43a   :  { %v11006_v56 = vadd.f32 %v11005_v13, %v11004_v47  ;;  %10712 = vst.msk [vmem:[%s17737_s4 + $0x9c] sm:$0xf] %vm1190_vm1, %v11992_v29  ;;  %v10811_v14 = vadd.f32 %v10810_v40, %v10809_v38  ;;  %v10812_v37 = vsel %vm2617_vm11, %v13105_v54, 0.0  ;;  %v10909_v15 = vmul.f32 %v13107_v4, %v13107_v4  ;;  %v17530_v16 = vpop.f32.mrb[48].mxu0 }
 0x43b   :  { %v12781_v24 = vpop.f32.mrb[40].mxu1  ;;  %10710 = vst.msk [vmem:[%s17737_s4 + $0x94] sm:$0xf] %vm1190_vm1, %v11990_v9  ;;  %v11007_v2 = vsel %vm2617_vm11, %v10907_v50, 0.0  ;;  %v11009_v41 = vsel %vm2617_vm11, %v10908_v20, 0.0  ;;  %v10814_v48 = vsel %vm2617_vm11, %v13107_v4, 0.0 }
 0x43c   :  { %v6361_v52 = vpop.f32.mrb[41].mxu1  ;;  %v13109_v1 = vadd.f32 %v17466_v31, %v12781_v24  ;;  %v10813_v30 = vadd.f32 %v10812_v37, %v10811_v14  ;;  %v11008_v53 = vadd.f32 %v11007_v2, %v11006_v56  ;;  %v17534_v59 = vpop.f32.mrb[49].mxu0  ;;  %v11011_v8 = vsel %vm2617_vm11, %v10909_v15, 0.0 }
 0x43d   :  { %v12782_v10 = vpop.f32.mrb[42].mxu1  ;;  %v13110_v21 = vadd.f32 %v17469_v60, %v6361_v52  ;;  %v17542_v32 = vpop.f32.mrb[50].mxu0 }
 0x43e   :  { %v11995_v33 = vpack.c.bf16 %v13109_v1, %v13109_v1  ;;  %v6364_v35 = vpop.f32.mrb[43].mxu1  ;;  %v11010_v61 = vadd.f32 %v11009_v41, %v11008_v53  ;;  %v10815_v60 = vadd.f32 %v10814_v48, %v10813_v30  ;;  %v13111_v5 = vadd.f32 %v17475_v51, %v12782_v10  ;;  %v17550_v27 = vpop.f32.mrb[51].mxu0 }
 0x43f   :  { %v11993_v25 = vpack.c.bf16 %v13110_v21, %v13110_v21  ;;  %v10816_v31 = vsel %vm2617_vm11, %v13110_v21, 0.0  ;;  %v10910_v55 = vmul.f32 %v13110_v21, %v13110_v21  ;;  %v13112_v62 = vadd.f32 %v17483_v46, %v6364_v35 }
 0x440   :  { %10715 = vst.msk [vmem:[%s17737_s4 + $0xa8] sm:$0xf] %vm1190_vm1, %v11995_v33  ;;  %v10912_v26 = vmul.f32 %v13109_v1, %v13109_v1  ;;  %v10817_v42 = vadd.f32 %v10816_v31, %v10815_v60  ;;  %v11012_v49 = vadd.f32 %v11011_v8, %v11010_v61  ;;  %v11996_v34 = vpack.c.bf16 %v13111_v5, %v13111_v5 }
 0x441   :  { %10713 = vst.msk [vmem:[%s17737_s4 + $0xa0] sm:$0xf] %vm1190_vm1, %v11993_v25  ;;  %v11013_v39 = vsel %vm2617_vm11, %v10910_v55, 0.0  ;;  %v11994_v51 = vpack.c.bf16 %v13112_v62, %v13112_v62  ;;  %v10818_v46 = vsel %vm2617_vm11, %v13112_v62, 0.0  ;;  %v10911_v18 = vmul.f32 %v13112_v62, %v13112_v62 }
 0x442   :  { %v11014_v63 = vadd.f32 %v11013_v39, %v11012_v49  ;;  %10716 = vst.msk [vmem:[%s17737_s4 + $0xac] sm:$0xf] %vm1190_vm1, %v11996_v34  ;;  %v10819_v0 = vadd.f32 %v10818_v46, %v10817_v42  ;;  %v10820_v36 = vsel %vm2617_vm11, %v13109_v1, 0.0  ;;  %v10913_v57 = vmul.f32 %v13111_v5, %v13111_v5 }
 0x443   :  { %v12785_v54 = vpop.f32.mrb[44].mxu1  ;;  %10714 = vst.msk [vmem:[%s17737_s4 + $0xa4] sm:$0xf] %vm1190_vm1, %v11994_v51  ;;  %v11015_v45 = vsel %vm2617_vm11, %v10911_v18, 0.0  ;;  %v11017_v23 = vsel %vm2617_vm11, %v10912_v26, 0.0  ;;  %v10822_v4 = vsel %vm2617_vm11, %v13111_v5, 0.0 }
 0x444   :  { %v6377_v58 = vpop.f32.mrb[45].mxu1  ;;  %v13113_v7 = vadd.f32 %v17497_v19, %v12785_v54  ;;  %v10821_v28 = vadd.f32 %v10820_v36, %v10819_v0  ;;  %v11016_v3 = vadd.f32 %v11015_v45, %v11014_v63  ;;  %v17566_v19 = vpop.f32.mrb[52].mxu0  ;;  %v11019_v50 = vsel %vm2617_vm11, %v10913_v57, 0.0 }
 0x445   :  { %v12786_v17 = vpop.f32.mrb[46].mxu1  ;;  %v13114_v44 = vadd.f32 %v17500_v11, %v6377_v58  ;;  %v17570_v20 = vpop.f32.mrb[53].mxu0 }
 0x446   :  { %v11999_v43 = vpack.c.bf16 %v13113_v7, %v13113_v7  ;;  %v6380_v38 = vpop.f32.mrb[47].mxu1  ;;  %v11018_v29 = vadd.f32 %v11017_v23, %v11016_v3  ;;  %v10823_v11 = vadd.f32 %v10822_v4, %v10821_v28  ;;  %v13115_v9 = vadd.f32 %v17507_v12, %v12786_v17  ;;  %v17578_v40 = vpop.f32.mrb[54].mxu0 }
 0x447   :  { %v11997_v6 = vpack.c.bf16 %v13114_v44, %v13114_v44  ;;  %v10824_v47 = vsel %vm2617_vm11, %v13114_v44, 0.0  ;;  %v10914_v13 = vmul.f32 %v13114_v44, %v13114_v44  ;;  %v13116_v56 = vadd.f32 %v17514_v22, %v6380_v38  ;;  %v17586_v14 = vpop.f32.mrb[55].mxu0 }
 0x448   :  { %10719 = vst.msk [vmem:[%s17737_s4 + $0xb8] sm:$0xf] %vm1190_vm1, %v11999_v43  ;;  %v10916_v52 = vmul.f32 %v13113_v7, %v13113_v7  ;;  %v10825_v1 = vadd.f32 %v10824_v47, %v10823_v11  ;;  %v11020_v37 = vadd.f32 %v11019_v50, %v11018_v29  ;;  %v12000_v15 = vpack.c.bf16 %v13115_v9, %v13115_v9 }
 0x449   :  { %10717 = vst.msk [vmem:[%s17737_s4 + $0xb0] sm:$0xf] %vm1190_vm1, %v11997_v6  ;;  %v11021_v24 = vsel %vm2617_vm11, %v10914_v13, 0.0  ;;  %v11998_v12 = vpack.c.bf16 %v13116_v56, %v13116_v56  ;;  %v10826_v22 = vsel %vm2617_vm11, %v13116_v56, 0.0  ;;  %v10915_v2 = vmul.f32 %v13116_v56, %v13116_v56 }
 0x44a   :  { %v11022_v21 = vadd.f32 %v11021_v24, %v11020_v37  ;;  %10720 = vst.msk [vmem:[%s17737_s4 + $0xbc] sm:$0xf] %vm1190_vm1, %v12000_v15  ;;  %v10827_v41 = vadd.f32 %v10826_v22, %v10825_v1  ;;  %v10828_v33 = vsel %vm2617_vm11, %v13113_v7, 0.0  ;;  %v10917_v35 = vmul.f32 %v13115_v9, %v13115_v9 }
 0x44b   :  { %v12789_v10 = vpop.f32.mrb[48].mxu1  ;;  %10718 = vst.msk [vmem:[%s17737_s4 + $0xb4] sm:$0xf] %vm1190_vm1, %v11998_v12  ;;  %v11023_v48 = vsel %vm2617_vm11, %v10915_v2, 0.0  ;;  %v11025_v55 = vsel %vm2617_vm11, %v10916_v52, 0.0  ;;  %v10830_v8 = vsel %vm2617_vm11, %v13115_v9, 0.0 }
 0x44c   :  { %v6393_v30 = vpop.f32.mrb[49].mxu1  ;;  %v13117_v53 = vadd.f32 %v17530_v16, %v12789_v10  ;;  %v10829_v61 = vadd.f32 %v10828_v33, %v10827_v41  ;;  %v11024_v60 = vadd.f32 %v11023_v48, %v11022_v21  ;;  %v17602_v16 = vpop.f32.mrb[56].mxu0  ;;  %v11027_v54 = vsel %vm2617_vm11, %v10917_v35, 0.0 }
 0x44d   :  { %v12790_v25 = vpop.f32.mrb[50].mxu1  ;;  %v13118_v31 = vadd.f32 %v17534_v59, %v6393_v30  ;;  %v17606_v49 = vpop.f32.mrb[57].mxu0 }
 0x44e   :  { %v12003_v5 = vpack.c.bf16 %v13117_v53, %v13117_v53  ;;  %v6396_v62 = vpop.f32.mrb[51].mxu1  ;;  %v11026_v34 = vadd.f32 %v11025_v55, %v11024_v60  ;;  %v10831_v59 = vadd.f32 %v10830_v8, %v10829_v61  ;;  %v13119_v51 = vadd.f32 %v17542_v32, %v12790_v25  ;;  %v17614_v18 = vpop.f32.mrb[58].mxu0 }
 0x44f   :  { %v12001_v39 = vpack.c.bf16 %v13118_v31, %v13118_v31  ;;  %v10832_v26 = vsel %vm2617_vm11, %v13118_v31, 0.0  ;;  %v10918_v42 = vmul.f32 %v13118_v31, %v13118_v31  ;;  %v13120_v46 = vadd.f32 %v17550_v27, %v6396_v62  ;;  %v17622_v0 = vpop.f32.mrb[59].mxu0 }
 0x450   :  { %10723 = vst.msk [vmem:[%s17737_s4 + $0xc8] sm:$0xf] %vm1190_vm1, %v12003_v5  ;;  %v10920_v58 = vmul.f32 %v13117_v53, %v13117_v53  ;;  %v10833_v7 = vadd.f32 %v10832_v26, %v10831_v59  ;;  %v11028_v36 = vadd.f32 %v11027_v54, %v11026_v34  ;;  %v12004_v57 = vpack.c.bf16 %v13119_v51, %v13119_v51 }
 0x451   :  { %10721 = vst.msk [vmem:[%s17737_s4 + $0xc0] sm:$0xf] %vm1190_vm1, %v12001_v39  ;;  %v11029_v63 = vsel %vm2617_vm11, %v10918_v42, 0.0  ;;  %v12002_v32 = vpack.c.bf16 %v13120_v46, %v13120_v46  ;;  %v10834_v27 = vsel %vm2617_vm11, %v13120_v46, 0.0  ;;  %v10919_v45 = vmul.f32 %v13120_v46, %v13120_v46 }
 0x452   :  { %v11030_v44 = vadd.f32 %v11029_v63, %v11028_v36  ;;  %10724 = vst.msk [vmem:[%s17737_s4 + $0xcc] sm:$0xf] %vm1190_vm1, %v12004_v57  ;;  %v10835_v23 = vadd.f32 %v10834_v27, %v10833_v7  ;;  %v10836_v43 = vsel %vm2617_vm11, %v13117_v53, 0.0  ;;  %v10921_v38 = vmul.f32 %v13119_v51, %v13119_v51 }
 0x453   :  { %v12793_v17 = vpop.f32.mrb[52].mxu1  ;;  %10722 = vst.msk [vmem:[%s17737_s4 + $0xc4] sm:$0xf] %vm1190_vm1, %v12002_v32  ;;  %v11031_v4 = vsel %vm2617_vm11, %v10919_v45, 0.0  ;;  %v11033_v13 = vsel %vm2617_vm11, %v10920_v58, 0.0  ;;  %v10838_v50 = vsel %vm2617_vm11, %v13119_v51, 0.0 }
 0x454   :  { %v6409_v28 = vpop.f32.mrb[53].mxu1  ;;  %v13121_v3 = vadd.f32 %v17566_v19, %v12793_v17  ;;  %v10837_v29 = vadd.f32 %v10836_v43, %v10835_v23  ;;  %v11032_v11 = vadd.f32 %v11031_v4, %v11030_v44  ;;  %v17638_v19 = vpop.f32.mrb[60].mxu0  ;;  %v11035_v10 = vsel %vm2617_vm11, %v10921_v38, 0.0 }
 0x455   :  { %v12794_v6 = vpop.f32.mrb[54].mxu1  ;;  %v13122_v47 = vadd.f32 %v17570_v20, %v6409_v28  ;;  %v17642_v37 = vpop.f32.mrb[61].mxu0 }
 0x456   :  { %v12007_v9 = vpack.c.bf16 %v13121_v3, %v13121_v3  ;;  %v6412_v56 = vpop.f32.mrb[55].mxu1  ;;  %v11034_v15 = vadd.f32 %v11033_v13, %v11032_v11  ;;  %v10839_v20 = vadd.f32 %v10838_v50, %v10837_v29  ;;  %v13123_v12 = vadd.f32 %v17578_v40, %v12794_v6  ;;  %v17650_v2 = vpop.f32.mrb[62].mxu0 }
 0x457   :  { %v12005_v24 = vpack.c.bf16 %v13122_v47, %v13122_v47  ;;  %v10840_v52 = vsel %vm2617_vm11, %v13122_v47, 0.0  ;;  %v10922_v1 = vmul.f32 %v13122_v47, %v13122_v47  ;;  %v13124_v22 = vadd.f32 %v17586_v14, %v6412_v56  ;;  %v17658_v41 = vpop.f32.mrb[63].mxu0 }
 0x458   :  { %10727 = vst.msk [vmem:[%s17737_s4 + $0xd8] sm:$0xf] %vm1190_vm1, %v12007_v9  ;;  %v10924_v30 = vmul.f32 %v13121_v3, %v13121_v3  ;;  %v10841_v53 = vadd.f32 %v10840_v52, %v10839_v20  ;;  %v11036_v33 = vadd.f32 %v11035_v10, %v11034_v15  ;;  %v12008_v35 = vpack.c.bf16 %v13123_v12, %v13123_v12 }
 0x459   :  { %10725 = vst.msk [vmem:[%s17737_s4 + $0xd0] sm:$0xf] %vm1190_vm1, %v12005_v24  ;;  %v11037_v21 = vsel %vm2617_vm11, %v10922_v1, 0.0  ;;  %v12006_v40 = vpack.c.bf16 %v13124_v22, %v13124_v22  ;;  %v10842_v14 = vsel %vm2617_vm11, %v13124_v22, 0.0  ;;  %v10923_v48 = vmul.f32 %v13124_v22, %v13124_v22 }
 0x45a   :  { %v11038_v31 = vadd.f32 %v11037_v21, %v11036_v33  ;;  %10728 = vst.msk [vmem:[%s17737_s4 + $0xdc] sm:$0xf] %vm1190_vm1, %v12008_v35  ;;  %v10843_v55 = vadd.f32 %v10842_v14, %v10841_v53  ;;  %v10844_v5 = vsel %vm2617_vm11, %v13121_v3, 0.0  ;;  %v10925_v62 = vmul.f32 %v13123_v12, %v13123_v12 }
 0x45b   :  { %v12797_v25 = vpop.f32.mrb[56].mxu1  ;;  %10726 = vst.msk [vmem:[%s17737_s4 + $0xd4] sm:$0xf] %vm1190_vm1, %v12006_v40  ;;  %v11039_v8 = vsel %vm2617_vm11, %v10923_v48, 0.0  ;;  %v11041_v42 = vsel %vm2617_vm11, %v10924_v30, 0.0 }
 0x45c   :  { %v6425_v61 = vpop.f32.mrb[57].mxu1  ;;  %v13125_v60 = vadd.f32 %v17602_v16, %v12797_v25  ;;  %v10845_v34 = vadd.f32 %v10844_v5, %v10843_v55  ;;  %v11040_v59 = vadd.f32 %v11039_v8, %v11038_v31  ;;  %v10846_v16 = vsel %vm2617_vm11, %v13123_v12, 0.0 }
 0x45d   :  { %v12798_v39 = vpop.f32.mrb[58].mxu1  ;;  %v13126_v26 = vadd.f32 %v17606_v49, %v6425_v61  ;;  %v11043_v32 = vsel %vm2617_vm11, %v10925_v62, 0.0 }
 0x45e   :  { %v12011_v51 = vpack.c.bf16 %v13125_v60, %v13125_v60  ;;  %v6428_v46 = vpop.f32.mrb[59].mxu1  ;;  %v11042_v7 = vadd.f32 %v11041_v42, %v11040_v59  ;;  %v10847_v36 = vadd.f32 %v10846_v16, %v10845_v34  ;;  %v13127_v49 = vadd.f32 %v17614_v18, %v12798_v39 }
 0x45f   :  { %v12009_v54 = vpack.c.bf16 %v13126_v26, %v13126_v26  ;;  %v10848_v63 = vsel %vm2617_vm11, %v13126_v26, 0.0  ;;  %v10926_v58 = vmul.f32 %v13126_v26, %v13126_v26  ;;  %v13128_v57 = vadd.f32 %v17622_v0, %v6428_v46 }
 0x460   :  { %10731 = vst.msk [vmem:[%s17737_s4 + $0xe8] sm:$0xf] %vm1190_vm1, %v12011_v51  ;;  %v10928_v45 = vmul.f32 %v13125_v60, %v13125_v60  ;;  %v10849_v17 = vadd.f32 %v10848_v63, %v10847_v36  ;;  %v11044_v44 = vadd.f32 %v11043_v32, %v11042_v7  ;;  %v12012_v23 = vpack.c.bf16 %v13127_v49, %v13127_v49 }
 0x461   :  { %10729 = vst.msk [vmem:[%s17737_s4 + $0xe0] sm:$0xf] %vm1190_vm1, %v12009_v54  ;;  %v11045_v27 = vsel %vm2617_vm11, %v10926_v58, 0.0  ;;  %v12010_v28 = vpack.c.bf16 %v13128_v57, %v13128_v57  ;;  %v10850_v3 = vsel %vm2617_vm11, %v13128_v57, 0.0  ;;  %v10927_v43 = vmul.f32 %v13128_v57, %v13128_v57 }
 0x462   :  { %v11046_v38 = vadd.f32 %v11045_v27, %v11044_v44  ;;  %10732 = vst.msk [vmem:[%s17737_s4 + $0xec] sm:$0xf] %vm1190_vm1, %v12012_v23  ;;  %v10851_v0 = vadd.f32 %v10850_v3, %v10849_v17  ;;  %v10852_v47 = vsel %vm2617_vm11, %v13125_v60, 0.0  ;;  %v10929_v13 = vmul.f32 %v13127_v49, %v13127_v49 }
 0x463   :  { %v12801_v18 = vpop.f32.mrb[60].mxu1  ;;  %10730 = vst.msk [vmem:[%s17737_s4 + $0xe4] sm:$0xf] %vm1190_vm1, %v12010_v28  ;;  %v11047_v29 = vsel %vm2617_vm11, %v10927_v43, 0.0  ;;  %v11049_v56 = vsel %vm2617_vm11, %v10928_v45, 0.0 }
 0x464   :  { %v6441_v4 = vpop.f32.mrb[61].mxu1  ;;  %v13129_v6 = vadd.f32 %v17638_v19, %v12801_v18  ;;  %v10853_v50 = vadd.f32 %v10852_v47, %v10851_v0  ;;  %v11048_v24 = vadd.f32 %v11047_v29, %v11046_v38  ;;  %v10854_v19 = vsel %vm2617_vm11, %v13127_v49, 0.0 }
 0x465   :  { %v12802_v11 = vpop.f32.mrb[62].mxu1  ;;  %v13130_v9 = vadd.f32 %v17642_v37, %v6441_v4  ;;  %v11051_v30 = vsel %vm2617_vm11, %v10929_v13, 0.0 }
 0x466   :  { %v12015_v52 = vpack.c.bf16 %v13129_v6, %v13129_v6  ;;  %v6444_v1 = vpop.f32.mrb[63].mxu1  ;;  %v11050_v22 = vadd.f32 %v11049_v56, %v11048_v24  ;;  %v10855_v10 = vadd.f32 %v10854_v19, %v10853_v50  ;;  %v13131_v37 = vadd.f32 %v17650_v2, %v12802_v11 }
 0x467   :  { %v12013_v15 = vpack.c.bf16 %v13130_v9, %v13130_v9  ;;  %v10856_v20 = vsel %vm2617_vm11, %v13130_v9, 0.0  ;;  %v10930_v12 = vmul.f32 %v13130_v9, %v13130_v9  ;;  %v13132_v21 = vadd.f32 %v17658_v41, %v6444_v1 }
 0x468   :  { %10735 = vst.msk [vmem:[%s17737_s4 + $0xf8] sm:$0xf] %vm1190_vm1, %v12015_v52  ;;  %v10857_v33 = vadd.f32 %v10856_v20, %v10855_v10  ;;  %v11052_v35 = vadd.f32 %v11051_v30, %v11050_v22  ;;  %v12016_v40 = vpack.c.bf16 %v13131_v37, %v13131_v37  ;;  %v10932_v14 = vmul.f32 %v13129_v6, %v13129_v6 }
 0x469   :  { %10733 = vst.msk [vmem:[%s17737_s4 + $0xf0] sm:$0xf] %vm1190_vm1, %v12013_v15  ;;  %v11053_v53 = vsel %vm2617_vm11, %v10930_v12, 0.0  ;;  %v12014_v48 = vpack.c.bf16 %v13132_v21, %v13132_v21  ;;  %v10858_v25 = vsel %vm2617_vm11, %v13132_v21, 0.0  ;;  %v10931_v31 = vmul.f32 %v13132_v21, %v13132_v21 }
 0x46a   :  { %v11054_v2 = vadd.f32 %v11053_v53, %v11052_v35  ;;  %10736 = vst.msk [vmem:[%s17737_s4 + $0xfc] sm:$0xf] %vm1190_vm1, %v12016_v40  ;;  %v10859_v41 = vadd.f32 %v10858_v25, %v10857_v33  ;;  %v10860_v55 = vsel %vm2617_vm11, %v13129_v6, 0.0  ;;  %v10933_v61 = vmul.f32 %v13131_v37, %v13131_v37 }
 0x46b   :  { %10734 = vst.msk [vmem:[%s17737_s4 + $0xf4] sm:$0xf] %vm1190_vm1, %v12014_v48  ;;  %v11055_v60 = vsel %vm2617_vm11, %v10931_v31, 0.0  ;;  %v11057_v8 = vsel %vm2617_vm11, %v10932_v14, 0.0  ;;  %v10862_v39 = vsel %vm2617_vm11, %v13131_v37, 0.0  ;;  %vm11069_vm1 = vcmask 25600  }
 0x46c   :  { %v10861_v5 = vadd.f32 %v10860_v55, %v10859_v41  ;;  %v11056_v62 = vadd.f32 %v11055_v60, %v11054_v2  ;;  %v11059_v34 = vsel %vm2617_vm11, %v10933_v61, 0.0 }
 0x46e   :  { %v10863_v26 = vadd.f32 %v10862_v39, %v10861_v5  ;;  %v11058_v42 = vadd.f32 %v11057_v8, %v11056_v62 }
 0x470   :  { %v10864_v59 = vrot.slane %v10863_v26, 4  ;;  %v11060_v51 = vadd.f32 %v11059_v34, %v11058_v42 }
 0x472   :  { %v10865_v46 = vadd.f32 %v10864_v59, %v10863_v26  ;;  %v11061_v16 = vrot.slane %v11060_v51, 4 }
 0x474   :  { %v10866_v54 = vrot.slane %v10865_v46, 2  ;;  %v11062_v63 = vadd.f32 %v11061_v16, %v11060_v51 }
 0x476   :  { %v10867_v58 = vadd.f32 %v10866_v54, %v10865_v46  ;;  %v11063_v7 = vrot.slane %v11062_v63, 2 }
 0x478   :  { %v10868_v36 = vrot.slane %v10867_v58, 1  ;;  %v11064_v49 = vadd.f32 %v11063_v7, %v11062_v63 }
 0x47a   :  { %v11065_v57 = vrot.slane %v11064_v49, 1  ;;  %v10869_v32 = vadd.f32 %v10868_v36, %v10867_v58 }
 0x47c   :  { %v11066_v27 = vadd.f32 %v11065_v57, %v11064_v49 }
 0x47e   :  { %v11068_v45 = vsel %vm11067_vm0, %v10869_v32, %v11066_v27 }
 0x47f   :  { %11070 = vst.msk [vmem:[%s17738_s5] sm:$0x3] %vm11069_vm1, %v11068_v45 }

</bundles_post_ra>
